<compile_context>
chip_gen: v5e
topology: v5e:2x2
jax: 0.10.0
libtpu: 0.0.40
codegen_flags: <defaults>
</compile_context>

<pallas_src>
import functools
import math

import jax
import jax.numpy as jnp
from jax.experimental import pallas as pl
from jax.experimental.pallas import tpu as pltpu


# --------------------------------------------------------------------------- #
# Fused conv + bias + ReLU + 2x2 max-pool kernel (one batch element per step). #
# --------------------------------------------------------------------------- #

def _conv_pool_kernel(xe_ref, xo_ref, w_ref, b_ref, o_ref, acc_e, acc_o, *,
                      n_groups, wp2, h_out, w_out, c_out):
    """Conv as `n_groups` GEMMs accumulated in VMEM, pooled epilogue.

    xe_ref/xo_ref : (1, Lh, Kp) bf16  tap-stacked rows for even/odd output cols.
    w_ref         : (n_groups, Kp, c_out) bf16
    b_ref         : (1, 1, c_out) f32
    o_ref         : (1, h_out//2, w_out//2, c_out) bf16
    acc_e/acc_o   : (h_out, wp2, c_out) f32 VMEM scratch accumulators.
    """
    nr = h_out * wp2
    for g in range(n_groups):
        wg = w_ref[g]                                         # (Kp, c_out)
        lhs_e = xe_ref[0, pl.ds(g * wp2, nr), :]              # (nr, Kp) bf16
        lhs_o = xo_ref[0, pl.ds(g * wp2, nr), :]
        pe = jnp.dot(lhs_e, wg, preferred_element_type=jnp.float32)
        po = jnp.dot(lhs_o, wg, preferred_element_type=jnp.float32)
        pe = pe.reshape(h_out, wp2, c_out)                    # layout-clean split
        po = po.reshape(h_out, wp2, c_out)
        if g == 0:
            acc_e[...] = pe
            acc_o[...] = po
        else:
            acc_e[...] += pe
            acc_o[...] += po

    # 2x2 max-pool.  W direction: even/odd output columns live in acc_e/acc_o,
    # so it is a plain elementwise max.  H direction: max over row pairs.
    wmax = jnp.maximum(acc_e[...], acc_o[...])                # (h, wp2, c)
    hh = h_out // 2
    rows = wmax.reshape(hh, 2, wp2, c_out)
    pooled = jnp.maximum(rows[:, 0, :, :], rows[:, 1, :, :])  # (hh, wp2, c)
    pooled = pooled[:, : (w_out // 2), :]                     # drop pad columns

    # Bias + ReLU after the pool (valid: x -> relu(x + b) is monotone per channel).
    act = jnp.maximum(pooled + b_ref[...], 0.0)
    o_ref[0] = act.astype(o_ref.dtype)


def conv_block(x_nhwc, w_groups, bias, *, kh, kw, pad):
    """'Same' stride-1 conv + bias + ReLU + 2x2/2 max-pool, fused in one kernel."""
    n, hin, win, cin = x_nhwc.shape
    assert hin % 2 == 0 and win % 2 == 0, "2x2 max-pool needs even spatial dims"
    n_groups, k_pad, c_out = w_groups.shape
    stack_all = (n_groups == 1)                   # conv1 (cin==1): stack all taps
    h_out, w_out = hin, win
    wp = ((win + 2 * pad + 15) // 16) * 16        # padded width; wp/2 multiple of 8
    wp2 = wp // 2
    hp = hin + 2 * pad

    taps = ([(i, j) for i in range(kh) for j in range(kw)] if stack_all
            else [(0, j) for j in range(kw)])     # row shift handled in-kernel
    k_real = len(taps) * cin
    assert k_real <= k_pad

    lx = (n_groups - 1) * wp + h_out * wp         # flat rows the kernel addresses
    offs = [i * wp + j for (i, j) in taps]
    lpad = lx + max(offs) + 2                     # flat length incl. tail pad

    # Zero-pad spatially, flatten row-major, tail-pad (all tiny, fused by XLA).
    xp = jnp.pad(x_nhwc, ((0, 0), (pad, pad), (pad, wp - win - pad), (0, 0)))
    xf = xp.reshape(n, hp * wp, cin)
    xf = jnp.pad(xf, ((0, 0), (0, lpad - hp * wp), (0, 0)))

    # Stack taps along the channel (lane/K) axis, split by output-column parity.
    cols_e = [xf[:, o: o + lx: 2, :] for o in offs]
    cols_o = [xf[:, o + 1: o + 1 + lx: 2, :] for o in offs]
    if k_pad > k_real:
        zpad = jnp.zeros((n, lx // 2, k_pad - k_real), xf.dtype)
        cols_e.append(zpad)
        cols_o.append(zpad)
    xe = jnp.concatenate(cols_e, axis=-1).astype(jnp.bfloat16)  # (n, lx//2, k_pad)
    xo = jnp.concatenate(cols_o, axis=-1).astype(jnp.bfloat16)

    lxh = lx // 2
    hh, ww = h_out // 2, w_out // 2
    kernel = functools.partial(
        _conv_pool_kernel, n_groups=n_groups, wp2=wp2,
        h_out=h_out, w_out=w_out, c_out=c_out)
    return pl.pallas_call(
        kernel,
        out_shape=jax.ShapeDtypeStruct((n, hh, ww, c_out), jnp.bfloat16),
        grid=(n,),
        in_specs=[
            pl.BlockSpec((1, lxh, k_pad), lambda i: (i, 0, 0)),
            pl.BlockSpec((1, lxh, k_pad), lambda i: (i, 0, 0)),
            pl.BlockSpec((n_groups, k_pad, c_out), lambda i: (0, 0, 0)),
            pl.BlockSpec((1, 1, c_out), lambda i: (0, 0, 0)),
        ],
        out_specs=pl.BlockSpec((1, hh, ww, c_out), lambda i: (i, 0, 0, 0)),
        scratch_shapes=[
            pltpu.VMEM((h_out, wp2, c_out), jnp.float32),
            pltpu.VMEM((h_out, wp2, c_out), jnp.float32),
        ],
        compiler_params=pltpu.CompilerParams(
            dimension_semantics=("parallel",)),
    )(xe, xo, w_groups, bias)


# --------------------------------------------------------------------------- #
# Fused fc1 -> ReLU -> fc2 -> ReLU -> fc3 kernel (weights resident in VMEM).   #
# --------------------------------------------------------------------------- #

def _mlp_kernel(x_ref, w1_ref, b1_ref, w2_ref, b2_ref, w3_ref, b3_ref, o_ref):
    h = jnp.dot(x_ref[...], w1_ref[...],
                preferred_element_type=jnp.float32) + b1_ref[...]
    h = jnp.maximum(h, 0.0).astype(jnp.bfloat16)
    h = jnp.dot(h, w2_ref[...],
                preferred_element_type=jnp.float32) + b2_ref[...]
    h = jnp.maximum(h, 0.0).astype(jnp.bfloat16)
    o_ref[...] = jnp.dot(h, w3_ref[...],
                         preferred_element_type=jnp.float32) + b3_ref[...]


def mlp_head(x, w1, b1, w2, b2, w3, b3):
    n = x.shape[0]
    n_out = w3.shape[1]

    def full(a):
        return pl.BlockSpec(a.shape, lambda i: (0,) * a.ndim)

    return pl.pallas_call(
        _mlp_kernel,
        out_shape=jax.ShapeDtypeStruct((n, n_out), jnp.float32),
        grid=(1,),
        in_specs=[full(x), full(w1), full(b1), full(w2), full(b2),
                  full(w3), full(b3)],
        out_specs=pl.BlockSpec((n, n_out), lambda i: (0, 0)),
        compiler_params=pltpu.CompilerParams(
            dimension_semantics=("arbitrary",)),
    )(x, w1, b1, w2, b2, w3, b3)


# ------------------------------- parameters -------------------------------- #

def init_torch_params(key):
    """PyTorch-layout parameters with nn.Module-style uniform init."""
    ks = jax.random.split(key, 12)

    def u(k, shape, fan_in):
        bound = 1.0 / math.sqrt(fan_in)
        return jax.random.uniform(k, shape, jnp.float32, -bound, bound)

    return {
        "conv1_w": u(ks[0], (32, 1, 7, 7), 1 * 7 * 7),
        "conv1_b": u(ks[1], (32,), 1 * 7 * 7),
        "conv2_w": u(ks[2], (32, 32, 5, 5), 32 * 5 * 5),
        "conv2_b": u(ks[3], (32,), 32 * 5 * 5),
        "conv3_w": u(ks[4], (64, 32, 3, 3), 32 * 3 * 3),
        "conv3_b": u(ks[5], (64,), 32 * 3 * 3),
        "fc1_w": u(ks[6], (150, 64 * 4 * 7), 64 * 4 * 7),
        "fc1_b": u(ks[7], (150,), 64 * 4 * 7),
        "fc2_w": u(ks[8], (80, 150), 150),
        "fc2_b": u(ks[9], (80,), 150),
        "fc3_w": u(ks[10], (5, 80), 80),
        "fc3_b": u(ks[11], (5,), 80),
    }


def prepare_params(p):
    """One-time conversion of PyTorch-layout params to kernel-friendly layouts."""
    def prep_conv(w, b, groups, k_pad):
        cout, cin, kh, kw = w.shape
        # (cout,cin,kh,kw) -> (kh,kw,cin,cout) -> (groups, taps_per_group*cin, cout)
        wg = jnp.transpose(w, (2, 3, 1, 0)).reshape(
            groups, (kh * kw * cin) // groups, cout)
        wg = jnp.pad(wg, ((0, 0), (0, k_pad - wg.shape[1]), (0, 0)))
        return wg.astype(jnp.bfloat16), b.reshape(1, 1, cout).astype(jnp.float32)

    c1w, c1b = prep_conv(p["conv1_w"], p["conv1_b"], 1, 128)    # K: 49  -> 128
    c2w, c2b = prep_conv(p["conv2_w"], p["conv2_b"], 5, 256)    # K: 160 -> 256
    c3w, c3b = prep_conv(p["conv3_w"], p["conv3_b"], 3, 128)    # K: 96  -> 128

    # fc1: reorder rows from NCHW flatten (c*28 + y*7 + x) to NHWC flatten
    # ((y*7 + x)*64 + c) so no activation transpose is needed at runtime.
    w1 = jnp.transpose(p["fc1_w"])                               # (1792, 150)
    w1 = w1.reshape(64, 4, 7, 150).transpose(1, 2, 0, 3).reshape(64 * 4 * 7, 150)

    return dict(
        c1w=c1w, c1b=c1b, c2w=c2w, c2b=c2b, c3w=c3w, c3b=c3b,
        f1w=w1.astype(jnp.bfloat16),
        f1b=p["fc1_b"].reshape(1, -1).astype(jnp.float32),
        f2w=jnp.transpose(p["fc2_w"]).astype(jnp.bfloat16),
        f2b=p["fc2_b"].reshape(1, -1).astype(jnp.float32),
        f3w=jnp.transpose(p["fc3_w"]).astype(jnp.bfloat16),
        f3b=p["fc3_b"].reshape(1, -1).astype(jnp.float32),
    )


# ------------------------------- Net forward ------------------------------- #

def net_forward(params, x_nchw):
    # Accept NCHW like PyTorch, convert to NHWC once.
    x = jnp.transpose(x_nchw.astype(jnp.float32), (0, 2, 3, 1))       # (N,32,56,1)

    x = conv_block(x, params["c1w"], params["c1b"], kh=7, kw=7, pad=3)  # (N,16,28,32)
    x = conv_block(x, params["c2w"], params["c2b"], kh=5, kw=5, pad=2)  # (N, 8,14,32)
    x = conv_block(x, params["c3w"], params["c3b"], kh=3, kw=3, pad=1)  # (N, 4, 7,64)

    xflat = x.reshape(x.shape[0], -1)     # NHWC flatten; fc1 weight pre-reordered
    return mlp_head(xflat, params["f1w"], params["f1b"],
                    params["f2w"], params["f2b"],
                    params["f3w"], params["f3b"])                      # (N, 5) f32


if __name__ == "__main__":
    key = jax.random.PRNGKey(0)
    pkey, xkey = jax.random.split(key)
    params = prepare_params(init_torch_params(pkey))

    # Spatial size 32x56 so three 2x2 pools give 4x7, matching fc1 = 64*4*7.
    x = jax.random.normal(xkey, (2, 1, 32, 56), dtype=jnp.float32)     # NCHW

    fwd = jax.jit(net_forward)
    out = jax.block_until_ready(fwd(params, x))
    assert out.shape == (2, 5) and out.dtype == jnp.float32
    print("KERNEL_OK")
</pallas_src>

<mosaic_0001>
module attributes {stable_mosaic.version = 11 : i64} {
  func.func @_conv_pool_kernel(%arg0: i32, %arg1: memref<1x1024x128xbf16, #tpu.memory_space<vmem>>, %arg2: memref<1x1024x128xbf16, #tpu.memory_space<vmem>>, %arg3: memref<1x128x32xbf16, #tpu.memory_space<vmem>>, %arg4: memref<1x1x32xf32, #tpu.memory_space<vmem>>, %arg5: memref<1x16x28x32xbf16, #tpu.memory_space<vmem>>, %arg6: memref<32x32x32xf32, #tpu.memory_space<vmem>>, %arg7: memref<32x32x32xf32, #tpu.memory_space<vmem>>) attributes {dimension_semantics = [#tpu.dimension_semantics<parallel>], iteration_bounds = array<i64: 2>, scalar_prefetch = 0 : i64, scratch_operands = 2 : i64, tpu.core_type = #tpu.core_type<tc>, window_params = [{transform_indices = @transform_0, window_bounds = array<i64: 1, 1024, 128>}, {transform_indices = @transform_1, window_bounds = array<i64: 1, 1024, 128>}, {pipeline_mode = #tpu.pipeline_mode<synchronous>, transform_indices = @transform_2, window_bounds = array<i64: 1, 128, 32>}, {pipeline_mode = #tpu.pipeline_mode<synchronous>, transform_indices = @transform_3, window_bounds = array<i64: 1, 1, 32>}, {transform_indices = @transform_4, window_bounds = array<i64: 1, 16, 28, 32>}]} {
    %c0 = arith.constant 0 : index
    %c0_0 = arith.constant 0 : index
    %c0_1 = arith.constant 0 : index
    %0 = vector.load %arg3[%c0, %c0_0, %c0_1] : memref<1x128x32xbf16, #tpu.memory_space<vmem>>, vector<1x128x32xbf16>
    %1 = vector.shape_cast %0 : vector<1x128x32xbf16> to vector<128x32xbf16>
    %c0_2 = arith.constant 0 : index
    %c0_3 = arith.constant 0 : index
    %c0_4 = arith.constant 0 : index
    %2 = vector.load %arg1[%c0_2, %c0_3, %c0_4] : memref<1x1024x128xbf16, #tpu.memory_space<vmem>>, vector<1x1024x128xbf16>
    %3 = vector.shape_cast %2 : vector<1x1024x128xbf16> to vector<1024x128xbf16>
    %c0_5 = arith.constant 0 : index
    %c0_6 = arith.constant 0 : index
    %c0_7 = arith.constant 0 : index
    %4 = vector.load %arg2[%c0_5, %c0_6, %c0_7] : memref<1x1024x128xbf16, #tpu.memory_space<vmem>>, vector<1x1024x128xbf16>
    %5 = vector.shape_cast %4 : vector<1x1024x128xbf16> to vector<1024x128xbf16>
    %cst = arith.constant dense<0.000000e+00> : vector<1024x32xf32>
    %6 = tpu.matmul %3, %1, %cst {dimension_numbers = #tpu.dot_dimension_numbers<[1], [0], [0], [1], [0, 0, 1, 1], [], []>} : vector<1024x128xbf16>, vector<128x32xbf16>, vector<1024x32xf32> -> vector<1024x32xf32>
    %cst_8 = arith.constant dense<0.000000e+00> : vector<1024x32xf32>
    %7 = tpu.matmul %5, %1, %cst_8 {dimension_numbers = #tpu.dot_dimension_numbers<[1], [0], [0], [1], [0, 0, 1, 1], [], []>} : vector<1024x128xbf16>, vector<128x32xbf16>, vector<1024x32xf32> -> vector<1024x32xf32>
    %8 = vector.shape_cast %6 : vector<1024x32xf32> to vector<32x32x32xf32>
    %9 = vector.shape_cast %7 : vector<1024x32xf32> to vector<32x32x32xf32>
    %c0_9 = arith.constant 0 : index
    %c0_10 = arith.constant 0 : index
    %c0_11 = arith.constant 0 : index
    %10 = vector.load %arg6[%c0_9, %c0_10, %c0_11] : memref<32x32x32xf32, #tpu.memory_space<vmem>>, vector<32x32x32xf32>
    tpu.vector_store %arg6[%c0_9, %c0_10, %c0_11], %8 {strides = array<i32>} : memref<32x32x32xf32, #tpu.memory_space<vmem>>, vector<32x32x32xf32>,
    %c0_12 = arith.constant 0 : index
    %c0_13 = arith.constant 0 : index
    %c0_14 = arith.constant 0 : index
    %11 = vector.load %arg7[%c0_12, %c0_13, %c0_14] : memref<32x32x32xf32, #tpu.memory_space<vmem>>, vector<32x32x32xf32>
    tpu.vector_store %arg7[%c0_12, %c0_13, %c0_14], %9 {strides = array<i32>} : memref<32x32x32xf32, #tpu.memory_space<vmem>>, vector<32x32x32xf32>,
    %c0_15 = arith.constant 0 : index
    %c0_16 = arith.constant 0 : index
    %c0_17 = arith.constant 0 : index
    %12 = vector.load %arg6[%c0_15, %c0_16, %c0_17] : memref<32x32x32xf32, #tpu.memory_space<vmem>>, vector<32x32x32xf32>
    %c0_18 = arith.constant 0 : index
    %c0_19 = arith.constant 0 : index
    %c0_20 = arith.constant 0 : index
    %13 = vector.load %arg7[%c0_18, %c0_19, %c0_20] : memref<32x32x32xf32, #tpu.memory_space<vmem>>, vector<32x32x32xf32>
    %14 = arith.maximumf %12, %13 : vector<32x32x32xf32>
    %15 = vector.shape_cast %14 : vector<32x32x32xf32> to vector<16x2x32x32xf32>
    %16 = vector.extract_strided_slice %15 {offsets = [0, 0, 0, 0], sizes = [16, 1, 32, 32], strides = [1, 1, 1, 1]} : vector<16x2x32x32xf32> to vector<16x1x32x32xf32>
    %17 = vector.shape_cast %16 : vector<16x1x32x32xf32> to vector<16x32x32xf32>
    %18 = vector.extract_strided_slice %15 {offsets = [0, 1, 0, 0], sizes = [16, 1, 32, 32], strides = [1, 1, 1, 1]} : vector<16x2x32x32xf32> to vector<16x1x32x32xf32>
    %19 = vector.shape_cast %18 : vector<16x1x32x32xf32> to vector<16x32x32xf32>
    %20 = arith.maximumf %17, %19 : vector<16x32x32xf32>
    %21 = vector.extract_strided_slice %20 {offsets = [0, 0, 0], sizes = [16, 28, 32], strides = [1, 1, 1]} : vector<16x32x32xf32> to vector<16x28x32xf32>
    %c0_21 = arith.constant 0 : index
    %c0_22 = arith.constant 0 : index
    %c0_23 = arith.constant 0 : index
    %22 = vector.load %arg4[%c0_21, %c0_22, %c0_23] : memref<1x1x32xf32, #tpu.memory_space<vmem>>, vector<1x1x32xf32>
    %23 = vector.broadcast %22 : vector<1x1x32xf32> to vector<16x28x32xf32>
    %24 = arith.addf %21, %23 : vector<16x28x32xf32>
    %cst_24 = arith.constant 0.000000e+00 : f32
    %25 = vector.broadcast %cst_24 : f32 to vector<16x28x32xf32>
    %26 = arith.maximumf %24, %25 : vector<16x28x32xf32>
    %27 = arith.truncf %26 : vector<16x28x32xf32> to vector<16x28x32xbf16>
    %c0_25 = arith.constant 0 : index
    %c0_26 = arith.constant 0 : index
    %c0_27 = arith.constant 0 : index
    %c0_28 = arith.constant 0 : index
    %28 = vector.load %arg5[%c0_25, %c0_26, %c0_27, %c0_28] : memref<1x16x28x32xbf16, #tpu.memory_space<vmem>>, vector<1x16x28x32xbf16>
    %29 = vector.shape_cast %28 : vector<1x16x28x32xbf16> to vector<16x28x32xbf16>
    %30 = vector.shape_cast %27 : vector<16x28x32xbf16> to vector<1x16x28x32xbf16>
    tpu.vector_store %arg5[%c0_25, %c0_26, %c0_27, %c0_28], %30 {strides = array<i32>} : memref<1x16x28x32xbf16, #tpu.memory_space<vmem>>, vector<1x16x28x32xbf16>,
    return
  }
  func.func @transform_0(%arg0: i32) -> (i32, i32, i32) {
    %c0_i32 = arith.constant 0 : i32
    %c0_i32_0 = arith.constant 0 : i32
    %c0_i32_1 = arith.constant 0 : i32
    return %arg0, %c0_i32, %c0_i32_0 : i32, i32, i32
  }
  func.func @transform_1(%arg0: i32) -> (i32, i32, i32) {
    %c0_i32 = arith.constant 0 : i32
    %c0_i32_0 = arith.constant 0 : i32
    %c0_i32_1 = arith.constant 0 : i32
    return %arg0, %c0_i32, %c0_i32_0 : i32, i32, i32
  }
  func.func @transform_2(%arg0: i32) -> (i32, i32, i32) {
    %c0_i32 = arith.constant 0 : i32
    %c0_i32_0 = arith.constant 0 : i32
    %c0_i32_1 = arith.constant 0 : i32
    %c0_i32_2 = arith.constant 0 : i32
    return %c0_i32, %c0_i32_0, %c0_i32_1 : i32, i32, i32
  }
  func.func @transform_3(%arg0: i32) -> (i32, i32, i32) {
    %c0_i32 = arith.constant 0 : i32
    %c0_i32_0 = arith.constant 0 : i32
    %c0_i32_1 = arith.constant 0 : i32
    %c0_i32_2 = arith.constant 0 : i32
    return %c0_i32, %c0_i32_0, %c0_i32_1 : i32, i32, i32
  }
  func.func @transform_4(%arg0: i32) -> (i32, i32, i32, i32) {
    %c0_i32 = arith.constant 0 : i32
    %c0_i32_0 = arith.constant 0 : i32
    %c0_i32_1 = arith.constant 0 : i32
    %c0_i32_2 = arith.constant 0 : i32
    return %arg0, %c0_i32, %c0_i32_0, %c0_i32_1 : i32, i32, i32, i32
  }
}

module attributes {stable_mosaic.version = 11 : i64} {
  func.func @_conv_pool_kernel(%arg0: i32, %arg1: memref<1x320x256xbf16, #tpu.memory_space<vmem>>, %arg2: memref<1x320x256xbf16, #tpu.memory_space<vmem>>, %arg3: memref<5x256x32xbf16, #tpu.memory_space<vmem>>, %arg4: memref<1x1x32xf32, #tpu.memory_space<vmem>>, %arg5: memref<1x8x14x32xbf16, #tpu.memory_space<vmem>>, %arg6: memref<16x16x32xf32, #tpu.memory_space<vmem>>, %arg7: memref<16x16x32xf32, #tpu.memory_space<vmem>>) attributes {dimension_semantics = [#tpu.dimension_semantics<parallel>], iteration_bounds = array<i64: 2>, scalar_prefetch = 0 : i64, scratch_operands = 2 : i64, tpu.core_type = #tpu.core_type<tc>, window_params = [{transform_indices = @transform_0, window_bounds = array<i64: 1, 320, 256>}, {transform_indices = @transform_1, window_bounds = array<i64: 1, 320, 256>}, {pipeline_mode = #tpu.pipeline_mode<synchronous>, transform_indices = @transform_2, window_bounds = array<i64: 5, 256, 32>}, {pipeline_mode = #tpu.pipeline_mode<synchronous>, transform_indices = @transform_3, window_bounds = array<i64: 1, 1, 32>}, {transform_indices = @transform_4, window_bounds = array<i64: 1, 8, 14, 32>}]} {
    %c0 = arith.constant 0 : index
    %c0_0 = arith.constant 0 : index
    %c0_1 = arith.constant 0 : index
    %0 = vector.load %arg3[%c0, %c0_0, %c0_1] : memref<5x256x32xbf16, #tpu.memory_space<vmem>>, vector<1x256x32xbf16>
    %1 = vector.shape_cast %0 : vector<1x256x32xbf16> to vector<256x32xbf16>
    %c0_2 = arith.constant 0 : index
    %c0_3 = arith.constant 0 : index
    %c0_4 = arith.constant 0 : index
    %2 = vector.load %arg1[%c0_2, %c0_3, %c0_4] : memref<1x320x256xbf16, #tpu.memory_space<vmem>>, vector<1x256x256xbf16>
    %3 = vector.shape_cast %2 : vector<1x256x256xbf16> to vector<256x256xbf16>
    %c0_5 = arith.constant 0 : index
    %c0_6 = arith.constant 0 : index
    %c0_7 = arith.constant 0 : index
    %4 = vector.load %arg2[%c0_5, %c0_6, %c0_7] : memref<1x320x256xbf16, #tpu.memory_space<vmem>>, vector<1x256x256xbf16>
    %5 = vector.shape_cast %4 : vector<1x256x256xbf16> to vector<256x256xbf16>
    %cst = arith.constant dense<0.000000e+00> : vector<256x32xf32>
    %6 = tpu.matmul %3, %1, %cst {dimension_numbers = #tpu.dot_dimension_numbers<[1], [0], [0], [1], [0, 0, 1, 1], [], []>} : vector<256x256xbf16>, vector<256x32xbf16>, vector<256x32xf32> -> vector<256x32xf32>
    %cst_8 = arith.constant dense<0.000000e+00> : vector<256x32xf32>
    %7 = tpu.matmul %5, %1, %cst_8 {dimension_numbers = #tpu.dot_dimension_numbers<[1], [0], [0], [1], [0, 0, 1, 1], [], []>} : vector<256x256xbf16>, vector<256x32xbf16>, vector<256x32xf32> -> vector<256x32xf32>
    %8 = vector.shape_cast %6 : vector<256x32xf32> to vector<16x16x32xf32>
    %9 = vector.shape_cast %7 : vector<256x32xf32> to vector<16x16x32xf32>
    %c0_9 = arith.constant 0 : index
    %c0_10 = arith.constant 0 : index
    %c0_11 = arith.constant 0 : index
    %10 = vector.load %arg6[%c0_9, %c0_10, %c0_11] : memref<16x16x32xf32, #tpu.memory_space<vmem>>, vector<16x16x32xf32>
    tpu.vector_store %arg6[%c0_9, %c0_10, %c0_11], %8 {strides = array<i32>} : memref<16x16x32xf32, #tpu.memory_space<vmem>>, vector<16x16x32xf32>,
    %c0_12 = arith.constant 0 : index
    %c0_13 = arith.constant 0 : index
    %c0_14 = arith.constant 0 : index
    %11 = vector.load %arg7[%c0_12, %c0_13, %c0_14] : memref<16x16x32xf32, #tpu.memory_space<vmem>>, vector<16x16x32xf32>
    tpu.vector_store %arg7[%c0_12, %c0_13, %c0_14], %9 {strides = array<i32>} : memref<16x16x32xf32, #tpu.memory_space<vmem>>, vector<16x16x32xf32>,
    %c1 = arith.constant 1 : index
    %c0_15 = arith.constant 0 : index
    %c0_16 = arith.constant 0 : index
    %12 = vector.load %arg3[%c1, %c0_15, %c0_16] : memref<5x256x32xbf16, #tpu.memory_space<vmem>>, vector<1x256x32xbf16>
    %13 = vector.shape_cast %12 : vector<1x256x32xbf16> to vector<256x32xbf16>
    %c0_17 = arith.constant 0 : index
    %c16 = arith.constant 16 : index
    %c0_18 = arith.constant 0 : index
    %14 = vector.load %arg1[%c0_17, %c16, %c0_18] : memref<1x320x256xbf16, #tpu.memory_space<vmem>>, vector<1x256x256xbf16>
    %15 = vector.shape_cast %14 : vector<1x256x256xbf16> to vector<256x256xbf16>
    %c0_19 = arith.constant 0 : index
    %c16_20 = arith.constant 16 : index
    %c0_21 = arith.constant 0 : index
    %16 = vector.load %arg2[%c0_19, %c16_20, %c0_21] : memref<1x320x256xbf16, #tpu.memory_space<vmem>>, vector<1x256x256xbf16>
    %17 = vector.shape_cast %16 : vector<1x256x256xbf16> to vector<256x256xbf16>
    %cst_22 = arith.constant dense<0.000000e+00> : vector<256x32xf32>
    %18 = tpu.matmul %15, %13, %cst_22 {dimension_numbers = #tpu.dot_dimension_numbers<[1], [0], [0], [1], [0, 0, 1, 1], [], []>} : vector<256x256xbf16>, vector<256x32xbf16>, vector<256x32xf32> -> vector<256x32xf32>
    %cst_23 = arith.constant dense<0.000000e+00> : vector<256x32xf32>
    %19 = tpu.matmul %17, %13, %cst_23 {dimension_numbers = #tpu.dot_dimension_numbers<[1], [0], [0], [1], [0, 0, 1, 1], [], []>} : vector<256x256xbf16>, vector<256x32xbf16>, vector<256x32xf32> -> vector<256x32xf32>
    %20 = vector.shape_cast %18 : vector<256x32xf32> to vector<16x16x32xf32>
    %21 = vector.shape_cast %19 : vector<256x32xf32> to vector<16x16x32xf32>
    %c0_24 = arith.constant 0 : index
    %c0_25 = arith.constant 0 : index
    %c0_26 = arith.constant 0 : index
    %22 = vector.load %arg6[%c0_24, %c0_25, %c0_26] : memref<16x16x32xf32, #tpu.memory_space<vmem>>, vector<16x16x32xf32>
    %23 = arith.addf %22, %20 : vector<16x16x32xf32>
    %c0_27 = arith.constant 0 : index
    %c0_28 = arith.constant 0 : index
    %c0_29 = arith.constant 0 : index
    %24 = vector.load %arg6[%c0_27, %c0_28, %c0_29] : memref<16x16x32xf32, #tpu.memory_space<vmem>>, vector<16x16x32xf32>
    tpu.vector_store %arg6[%c0_27, %c0_28, %c0_29], %23 {strides = array<i32>} : memref<16x16x32xf32, #tpu.memory_space<vmem>>, vector<16x16x32xf32>,
    %c0_30 = arith.constant 0 : index
    %c0_31 = arith.constant 0 : index
    %c0_32 = arith.constant 0 : index
    %25 = vector.load %arg7[%c0_30, %c0_31, %c0_32] : memref<16x16x32xf32, #tpu.memory_space<vmem>>, vector<16x16x32xf32>
    %26 = arith.addf %25, %21 : vector<16x16x32xf32>
    %c0_33 = arith.constant 0 : index
    %c0_34 = arith.constant 0 : index
    %c0_35 = arith.constant 0 : index
    %27 = vector.load %arg7[%c0_33, %c0_34, %c0_35] : memref<16x16x32xf32, #tpu.memory_space<vmem>>, vector<16x16x32xf32>
    tpu.vector_store %arg7[%c0_33, %c0_34, %c0_35], %26 {strides = array<i32>} : memref<16x16x32xf32, #tpu.memory_space<vmem>>, vector<16x16x32xf32>,
    %c2 = arith.constant 2 : index
    %c0_36 = arith.constant 0 : index
    %c0_37 = arith.constant 0 : index
    %28 = vector.load %arg3[%c2, %c0_36, %c0_37] : memref<5x256x32xbf16, #tpu.memory_space<vmem>>, vector<1x256x32xbf16>
    %29 = vector.shape_cast %28 : vector<1x256x32xbf16> to vector<256x32xbf16>
    %c0_38 = arith.constant 0 : index
    %c32 = arith.constant 32 : index
    %c0_39 = arith.constant 0 : index
    %30 = vector.load %arg1[%c0_38, %c32, %c0_39] : memref<1x320x256xbf16, #tpu.memory_space<vmem>>, vector<1x256x256xbf16>
    %31 = vector.shape_cast %30 : vector<1x256x256xbf16> to vector<256x256xbf16>
    %c0_40 = arith.constant 0 : index
    %c32_41 = arith.constant 32 : index
    %c0_42 = arith.constant 0 : index
    %32 = vector.load %arg2[%c0_40, %c32_41, %c0_42] : memref<1x320x256xbf16, #tpu.memory_space<vmem>>, vector<1x256x256xbf16>
    %33 = vector.shape_cast %32 : vector<1x256x256xbf16> to vector<256x256xbf16>
    %cst_43 = arith.constant dense<0.000000e+00> : vector<256x32xf32>
    %34 = tpu.matmul %31, %29, %cst_43 {dimension_numbers = #tpu.dot_dimension_numbers<[1], [0], [0], [1], [0, 0, 1, 1], [], []>} : vector<256x256xbf16>, vector<256x32xbf16>, vector<256x32xf32> -> vector<256x32xf32>
    %cst_44 = arith.constant dense<0.000000e+00> : vector<256x32xf32>
    %35 = tpu.matmul %33, %29, %cst_44 {dimension_numbers = #tpu.dot_dimension_numbers<[1], [0], [0], [1], [0, 0, 1, 1], [], []>} : vector<256x256xbf16>, vector<256x32xbf16>, vector<256x32xf32> -> vector<256x32xf32>
    %36 = vector.shape_cast %34 : vector<256x32xf32> to vector<16x16x32xf32>
    %37 = vector.shape_cast %35 : vector<256x32xf32> to vector<16x16x32xf32>
    %c0_45 = arith.constant 0 : index
    %c0_46 = arith.constant 0 : index
    %c0_47 = arith.constant 0 : index
    %38 = vector.load %arg6[%c0_45, %c0_46, %c0_47] : memref<16x16x32xf32, #tpu.memory_space<vmem>>, vector<16x16x32xf32>
    %39 = arith.addf %38, %36 : vector<16x16x32xf32>
    %c0_48 = arith.constant 0 : index
    %c0_49 = arith.constant 0 : index
    %c0_50 = arith.constant 0 : index
    %40 = vector.load %arg6[%c0_48, %c0_49, %c0_50] : memref<16x16x32xf32, #tpu.memory_space<vmem>>, vector<16x16x32xf32>
    tpu.vector_store %arg6[%c0_48, %c0_49, %c0_50], %39 {strides = array<i32>} : memref<16x16x32xf32, #tpu.memory_space<vmem>>, vector<16x16x32xf32>,
    %c0_51 = arith.constant 0 : index
    %c0_52 = arith.constant 0 : index
    %c0_53 = arith.constant 0 : index
    %41 = vector.load %arg7[%c0_51, %c0_52, %c0_53] : memref<16x16x32xf32, #tpu.memory_space<vmem>>, vector<16x16x32xf32>
    %42 = arith.addf %41, %37 : vector<16x16x32xf32>
    %c0_54 = arith.constant 0 : index
    %c0_55 = arith.constant 0 : index
    %c0_56 = arith.constant 0 : index
    %43 = vector.load %arg7[%c0_54, %c0_55, %c0_56] : memref<16x16x32xf32, #tpu.memory_space<vmem>>, vector<16x16x32xf32>
    tpu.vector_store %arg7[%c0_54, %c0_55, %c0_56], %42 {strides = array<i32>} : memref<16x16x32xf32, #tpu.memory_space<vmem>>, vector<16x16x32xf32>,
    %c3 = arith.constant 3 : index
    %c0_57 = arith.constant 0 : index
    %c0_58 = arith.constant 0 : index
    %44 = vector.load %arg3[%c3, %c0_57, %c0_58] : memref<5x256x32xbf16, #tpu.memory_space<vmem>>, vector<1x256x32xbf16>
    %45 = vector.shape_cast %44 : vector<1x256x32xbf16> to vector<256x32xbf16>
    %c0_59 = arith.constant 0 : index
    %c48 = arith.constant 48 : index
    %c0_60 = arith.constant 0 : index
    %46 = vector.load %arg1[%c0_59, %c48, %c0_60] : memref<1x320x256xbf16, #tpu.memory_space<vmem>>, vector<1x256x256xbf16>
    %47 = vector.shape_cast %46 : vector<1x256x256xbf16> to vector<256x256xbf16>
    %c0_61 = arith.constant 0 : index
    %c48_62 = arith.constant 48 : index
    %c0_63 = arith.constant 0 : index
    %48 = vector.load %arg2[%c0_61, %c48_62, %c0_63] : memref<1x320x256xbf16, #tpu.memory_space<vmem>>, vector<1x256x256xbf16>
    %49 = vector.shape_cast %48 : vector<1x256x256xbf16> to vector<256x256xbf16>
    %cst_64 = arith.constant dense<0.000000e+00> : vector<256x32xf32>
    %50 = tpu.matmul %47, %45, %cst_64 {dimension_numbers = #tpu.dot_dimension_numbers<[1], [0], [0], [1], [0, 0, 1, 1], [], []>} : vector<256x256xbf16>, vector<256x32xbf16>, vector<256x32xf32> -> vector<256x32xf32>
    %cst_65 = arith.constant dense<0.000000e+00> : vector<256x32xf32>
    %51 = tpu.matmul %49, %45, %cst_65 {dimension_numbers = #tpu.dot_dimension_numbers<[1], [0], [0], [1], [0, 0, 1, 1], [], []>} : vector<256x256xbf16>, vector<256x32xbf16>, vector<256x32xf32> -> vector<256x32xf32>
    %52 = vector.shape_cast %50 : vector<256x32xf32> to vector<16x16x32xf32>
    %53 = vector.shape_cast %51 : vector<256x32xf32> to vector<16x16x32xf32>
    %c0_66 = arith.constant 0 : index
    %c0_67 = arith.constant 0 : index
    %c0_68 = arith.constant 0 : index
    %54 = vector.load %arg6[%c0_66, %c0_67, %c0_68] : memref<16x16x32xf32, #tpu.memory_space<vmem>>, vector<16x16x32xf32>
    %55 = arith.addf %54, %52 : vector<16x16x32xf32>
    %c0_69 = arith.constant 0 : index
    %c0_70 = arith.constant 0 : index
    %c0_71 = arith.constant 0 : index
    %56 = vector.load %arg6[%c0_69, %c0_70, %c0_71] : memref<16x16x32xf32, #tpu.memory_space<vmem>>, vector<16x16x32xf32>
    tpu.vector_store %arg6[%c0_69, %c0_70, %c0_71], %55 {strides = array<i32>} : memref<16x16x32xf32, #tpu.memory_space<vmem>>, vector<16x16x32xf32>,
    %c0_72 = arith.constant 0 : index
    %c0_73 = arith.constant 0 : index
    %c0_74 = arith.constant 0 : index
    %57 = vector.load %arg7[%c0_72, %c0_73, %c0_74] : memref<16x16x32xf32, #tpu.memory_space<vmem>>, vector<16x16x32xf32>
    %58 = arith.addf %57, %53 : vector<16x16x32xf32>
    %c0_75 = arith.constant 0 : index
    %c0_76 = arith.constant 0 : index
    %c0_77 = arith.constant 0 : index
    %59 = vector.load %arg7[%c0_75, %c0_76, %c0_77] : memref<16x16x32xf32, #tpu.memory_space<vmem>>, vector<16x16x32xf32>
    tpu.vector_store %arg7[%c0_75, %c0_76, %c0_77], %58 {strides = array<i32>} : memref<16x16x32xf32, #tpu.memory_space<vmem>>, vector<16x16x32xf32>,
    %c4 = arith.constant 4 : index
    %c0_78 = arith.constant 0 : index
    %c0_79 = arith.constant 0 : index
    %60 = vector.load %arg3[%c4, %c0_78, %c0_79] : memref<5x256x32xbf16, #tpu.memory_space<vmem>>, vector<1x256x32xbf16>
    %61 = vector.shape_cast %60 : vector<1x256x32xbf16> to vector<256x32xbf16>
    %c0_80 = arith.constant 0 : index
    %c64 = arith.constant 64 : index
    %c0_81 = arith.constant 0 : index
    %62 = vector.load %arg1[%c0_80, %c64, %c0_81] : memref<1x320x256xbf16, #tpu.memory_space<vmem>>, vector<1x256x256xbf16>
    %63 = vector.shape_cast %62 : vector<1x256x256xbf16> to vector<256x256xbf16>
    %c0_82 = arith.constant 0 : index
    %c64_83 = arith.constant 64 : index
    %c0_84 = arith.constant 0 : index
    %64 = vector.load %arg2[%c0_82, %c64_83, %c0_84] : memref<1x320x256xbf16, #tpu.memory_space<vmem>>, vector<1x256x256xbf16>
    %65 = vector.shape_cast %64 : vector<1x256x256xbf16> to vector<256x256xbf16>
    %cst_85 = arith.constant dense<0.000000e+00> : vector<256x32xf32>
    %66 = tpu.matmul %63, %61, %cst_85 {dimension_numbers = #tpu.dot_dimension_numbers<[1], [0], [0], [1], [0, 0, 1, 1], [], []>} : vector<256x256xbf16>, vector<256x32xbf16>, vector<256x32xf32> -> vector<256x32xf32>
    %cst_86 = arith.constant dense<0.000000e+00> : vector<256x32xf32>
    %67 = tpu.matmul %65, %61, %cst_86 {dimension_numbers = #tpu.dot_dimension_numbers<[1], [0], [0], [1], [0, 0, 1, 1], [], []>} : vector<256x256xbf16>, vector<256x32xbf16>, vector<256x32xf32> -> vector<256x32xf32>
    %68 = vector.shape_cast %66 : vector<256x32xf32> to vector<16x16x32xf32>
    %69 = vector.shape_cast %67 : vector<256x32xf32> to vector<16x16x32xf32>
    %c0_87 = arith.constant 0 : index
    %c0_88 = arith.constant 0 : index
    %c0_89 = arith.constant 0 : index
    %70 = vector.load %arg6[%c0_87, %c0_88, %c0_89] : memref<16x16x32xf32, #tpu.memory_space<vmem>>, vector<16x16x32xf32>
    %71 = arith.addf %70, %68 : vector<16x16x32xf32>
    %c0_90 = arith.constant 0 : index
    %c0_91 = arith.constant 0 : index
    %c0_92 = arith.constant 0 : index
    %72 = vector.load %arg6[%c0_90, %c0_91, %c0_92] : memref<16x16x32xf32, #tpu.memory_space<vmem>>, vector<16x16x32xf32>
    tpu.vector_store %arg6[%c0_90, %c0_91, %c0_92], %71 {strides = array<i32>} : memref<16x16x32xf32, #tpu.memory_space<vmem>>, vector<16x16x32xf32>,
    %c0_93 = arith.constant 0 : index
    %c0_94 = arith.constant 0 : index
    %c0_95 = arith.constant 0 : index
    %73 = vector.load %arg7[%c0_93, %c0_94, %c0_95] : memref<16x16x32xf32, #tpu.memory_space<vmem>>, vector<16x16x32xf32>
    %74 = arith.addf %73, %69 : vector<16x16x32xf32>
    %c0_96 = arith.constant 0 : index
    %c0_97 = arith.constant 0 : index
    %c0_98 = arith.constant 0 : index
    %75 = vector.load %arg7[%c0_96, %c0_97, %c0_98] : memref<16x16x32xf32, #tpu.memory_space<vmem>>, vector<16x16x32xf32>
    tpu.vector_store %arg7[%c0_96, %c0_97, %c0_98], %74 {strides = array<i32>} : memref<16x16x32xf32, #tpu.memory_space<vmem>>, vector<16x16x32xf32>,
    %c0_99 = arith.constant 0 : index
    %c0_100 = arith.constant 0 : index
    %c0_101 = arith.constant 0 : index
    %76 = vector.load %arg6[%c0_99, %c0_100, %c0_101] : memref<16x16x32xf32, #tpu.memory_space<vmem>>, vector<16x16x32xf32>
    %c0_102 = arith.constant 0 : index
    %c0_103 = arith.constant 0 : index
    %c0_104 = arith.constant 0 : index
    %77 = vector.load %arg7[%c0_102, %c0_103, %c0_104] : memref<16x16x32xf32, #tpu.memory_space<vmem>>, vector<16x16x32xf32>
    %78 = arith.maximumf %76, %77 : vector<16x16x32xf32>
    %79 = vector.shape_cast %78 : vector<16x16x32xf32> to vector<8x2x16x32xf32>
    %80 = vector.extract_strided_slice %79 {offsets = [0, 0, 0, 0], sizes = [8, 1, 16, 32], strides = [1, 1, 1, 1]} : vector<8x2x16x32xf32> to vector<8x1x16x32xf32>
    %81 = vector.shape_cast %80 : vector<8x1x16x32xf32> to vector<8x16x32xf32>
    %82 = vector.extract_strided_slice %79 {offsets = [0, 1, 0, 0], sizes = [8, 1, 16, 32], strides = [1, 1, 1, 1]} : vector<8x2x16x32xf32> to vector<8x1x16x32xf32>
    %83 = vector.shape_cast %82 : vector<8x1x16x32xf32> to vector<8x16x32xf32>
    %84 = arith.maximumf %81, %83 : vector<8x16x32xf32>
    %85 = vector.extract_strided_slice %84 {offsets = [0, 0, 0], sizes = [8, 14, 32], strides = [1, 1, 1]} : vector<8x16x32xf32> to vector<8x14x32xf32>
    %c0_105 = arith.constant 0 : index
    %c0_106 = arith.constant 0 : index
    %c0_107 = arith.constant 0 : index
    %86 = vector.load %arg4[%c0_105, %c0_106, %c0_107] : memref<1x1x32xf32, #tpu.memory_space<vmem>>, vector<1x1x32xf32>
    %87 = vector.broadcast %86 : vector<1x1x32xf32> to vector<8x14x32xf32>
    %88 = arith.addf %85, %87 : vector<8x14x32xf32>
    %cst_108 = arith.constant 0.000000e+00 : f32
    %89 = vector.broadcast %cst_108 : f32 to vector<8x14x32xf32>
    %90 = arith.maximumf %88, %89 : vector<8x14x32xf32>
    %91 = arith.truncf %90 : vector<8x14x32xf32> to vector<8x14x32xbf16>
    %c0_109 = arith.constant 0 : index
    %c0_110 = arith.constant 0 : index
    %c0_111 = arith.constant 0 : index
    %c0_112 = arith.constant 0 : index
    %92 = vector.load %arg5[%c0_109, %c0_110, %c0_111, %c0_112] : memref<1x8x14x32xbf16, #tpu.memory_space<vmem>>, vector<1x8x14x32xbf16>
    %93 = vector.shape_cast %92 : vector<1x8x14x32xbf16> to vector<8x14x32xbf16>
    %94 = vector.shape_cast %91 : vector<8x14x32xbf16> to vector<1x8x14x32xbf16>
    tpu.vector_store %arg5[%c0_109, %c0_110, %c0_111, %c0_112], %94 {strides = array<i32>} : memref<1x8x14x32xbf16, #tpu.memory_space<vmem>>, vector<1x8x14x32xbf16>,
    return
  }
  func.func @transform_0(%arg0: i32) -> (i32, i32, i32) {
    %c0_i32 = arith.constant 0 : i32
    %c0_i32_0 = arith.constant 0 : i32
    %c0_i32_1 = arith.constant 0 : i32
    return %arg0, %c0_i32, %c0_i32_0 : i32, i32, i32
  }
  func.func @transform_1(%arg0: i32) -> (i32, i32, i32) {
    %c0_i32 = arith.constant 0 : i32
    %c0_i32_0 = arith.constant 0 : i32
    %c0_i32_1 = arith.constant 0 : i32
    return %arg0, %c0_i32, %c0_i32_0 : i32, i32, i32
  }
  func.func @transform_2(%arg0: i32) -> (i32, i32, i32) {
    %c0_i32 = arith.constant 0 : i32
    %c0_i32_0 = arith.constant 0 : i32
    %c0_i32_1 = arith.constant 0 : i32
    %c0_i32_2 = arith.constant 0 : i32
    return %c0_i32, %c0_i32_0, %c0_i32_1 : i32, i32, i32
  }
  func.func @transform_3(%arg0: i32) -> (i32, i32, i32) {
    %c0_i32 = arith.constant 0 : i32
    %c0_i32_0 = arith.constant 0 : i32
    %c0_i32_1 = arith.constant 0 : i32
    %c0_i32_2 = arith.constant 0 : i32
    return %c0_i32, %c0_i32_0, %c0_i32_1 : i32, i32, i32
  }
  func.func @transform_4(%arg0: i32) -> (i32, i32, i32, i32) {
    %c0_i32 = arith.constant 0 : i32
    %c0_i32_0 = arith.constant 0 : i32
    %c0_i32_1 = arith.constant 0 : i32
    %c0_i32_2 = arith.constant 0 : i32
    return %arg0, %c0_i32, %c0_i32_0, %c0_i32_1 : i32, i32, i32, i32
  }
}

module attributes {stable_mosaic.version = 11 : i64} {
  func.func @_conv_pool_kernel(%arg0: i32, %arg1: memref<1x80x128xbf16, #tpu.memory_space<vmem>>, %arg2: memref<1x80x128xbf16, #tpu.memory_space<vmem>>, %arg3: memref<3x128x64xbf16, #tpu.memory_space<vmem>>, %arg4: memref<1x1x64xf32, #tpu.memory_space<vmem>>, %arg5: memref<1x4x7x64xbf16, #tpu.memory_space<vmem>>, %arg6: memref<8x8x64xf32, #tpu.memory_space<vmem>>, %arg7: memref<8x8x64xf32, #tpu.memory_space<vmem>>) attributes {dimension_semantics = [#tpu.dimension_semantics<parallel>], iteration_bounds = array<i64: 2>, scalar_prefetch = 0 : i64, scratch_operands = 2 : i64, tpu.core_type = #tpu.core_type<tc>, window_params = [{transform_indices = @transform_0, window_bounds = array<i64: 1, 80, 128>}, {transform_indices = @transform_1, window_bounds = array<i64: 1, 80, 128>}, {pipeline_mode = #tpu.pipeline_mode<synchronous>, transform_indices = @transform_2, window_bounds = array<i64: 3, 128, 64>}, {pipeline_mode = #tpu.pipeline_mode<synchronous>, transform_indices = @transform_3, window_bounds = array<i64: 1, 1, 64>}, {transform_indices = @transform_4, window_bounds = array<i64: 1, 4, 7, 64>}]} {
    %c0 = arith.constant 0 : index
    %c0_0 = arith.constant 0 : index
    %c0_1 = arith.constant 0 : index
    %0 = vector.load %arg3[%c0, %c0_0, %c0_1] : memref<3x128x64xbf16, #tpu.memory_space<vmem>>, vector<1x128x64xbf16>
    %1 = vector.shape_cast %0 : vector<1x128x64xbf16> to vector<128x64xbf16>
    %c0_2 = arith.constant 0 : index
    %c0_3 = arith.constant 0 : index
    %c0_4 = arith.constant 0 : index
    %2 = vector.load %arg1[%c0_2, %c0_3, %c0_4] : memref<1x80x128xbf16, #tpu.memory_space<vmem>>, vector<1x64x128xbf16>
    %3 = vector.shape_cast %2 : vector<1x64x128xbf16> to vector<64x128xbf16>
    %c0_5 = arith.constant 0 : index
    %c0_6 = arith.constant 0 : index
    %c0_7 = arith.constant 0 : index
    %4 = vector.load %arg2[%c0_5, %c0_6, %c0_7] : memref<1x80x128xbf16, #tpu.memory_space<vmem>>, vector<1x64x128xbf16>
    %5 = vector.shape_cast %4 : vector<1x64x128xbf16> to vector<64x128xbf16>
    %cst = arith.constant dense<0.000000e+00> : vector<64x64xf32>
    %6 = tpu.matmul %3, %1, %cst {dimension_numbers = #tpu.dot_dimension_numbers<[1], [0], [0], [1], [0, 0, 1, 1], [], []>} : vector<64x128xbf16>, vector<128x64xbf16>, vector<64x64xf32> -> vector<64x64xf32>
    %cst_8 = arith.constant dense<0.000000e+00> : vector<64x64xf32>
    %7 = tpu.matmul %5, %1, %cst_8 {dimension_numbers = #tpu.dot_dimension_numbers<[1], [0], [0], [1], [0, 0, 1, 1], [], []>} : vector<64x128xbf16>, vector<128x64xbf16>, vector<64x64xf32> -> vector<64x64xf32>
    %8 = vector.shape_cast %6 : vector<64x64xf32> to vector<8x8x64xf32>
    %9 = vector.shape_cast %7 : vector<64x64xf32> to vector<8x8x64xf32>
    %c0_9 = arith.constant 0 : index
    %c0_10 = arith.constant 0 : index
    %c0_11 = arith.constant 0 : index
    %10 = vector.load %arg6[%c0_9, %c0_10, %c0_11] : memref<8x8x64xf32, #tpu.memory_space<vmem>>, vector<8x8x64xf32>
    tpu.vector_store %arg6[%c0_9, %c0_10, %c0_11], %8 {strides = array<i32>} : memref<8x8x64xf32, #tpu.memory_space<vmem>>, vector<8x8x64xf32>,
    %c0_12 = arith.constant 0 : index
    %c0_13 = arith.constant 0 : index
    %c0_14 = arith.constant 0 : index
    %11 = vector.load %arg7[%c0_12, %c0_13, %c0_14] : memref<8x8x64xf32, #tpu.memory_space<vmem>>, vector<8x8x64xf32>
    tpu.vector_store %arg7[%c0_12, %c0_13, %c0_14], %9 {strides = array<i32>} : memref<8x8x64xf32, #tpu.memory_space<vmem>>, vector<8x8x64xf32>,
    %c1 = arith.constant 1 : index
    %c0_15 = arith.constant 0 : index
    %c0_16 = arith.constant 0 : index
    %12 = vector.load %arg3[%c1, %c0_15, %c0_16] : memref<3x128x64xbf16, #tpu.memory_space<vmem>>, vector<1x128x64xbf16>
    %13 = vector.shape_cast %12 : vector<1x128x64xbf16> to vector<128x64xbf16>
    %c0_17 = arith.constant 0 : index
    %c8 = arith.constant 8 : index
    %c0_18 = arith.constant 0 : index
    %14 = vector.load %arg1[%c0_17, %c8, %c0_18] : memref<1x80x128xbf16, #tpu.memory_space<vmem>>, vector<1x64x128xbf16>
    %15 = vector.shape_cast %14 : vector<1x64x128xbf16> to vector<64x128xbf16>
    %c0_19 = arith.constant 0 : index
    %c8_20 = arith.constant 8 : index
    %c0_21 = arith.constant 0 : index
    %16 = vector.load %arg2[%c0_19, %c8_20, %c0_21] : memref<1x80x128xbf16, #tpu.memory_space<vmem>>, vector<1x64x128xbf16>
    %17 = vector.shape_cast %16 : vector<1x64x128xbf16> to vector<64x128xbf16>
    %cst_22 = arith.constant dense<0.000000e+00> : vector<64x64xf32>
    %18 = tpu.matmul %15, %13, %cst_22 {dimension_numbers = #tpu.dot_dimension_numbers<[1], [0], [0], [1], [0, 0, 1, 1], [], []>} : vector<64x128xbf16>, vector<128x64xbf16>, vector<64x64xf32> -> vector<64x64xf32>
    %cst_23 = arith.constant dense<0.000000e+00> : vector<64x64xf32>
    %19 = tpu.matmul %17, %13, %cst_23 {dimension_numbers = #tpu.dot_dimension_numbers<[1], [0], [0], [1], [0, 0, 1, 1], [], []>} : vector<64x128xbf16>, vector<128x64xbf16>, vector<64x64xf32> -> vector<64x64xf32>
    %20 = vector.shape_cast %18 : vector<64x64xf32> to vector<8x8x64xf32>
    %21 = vector.shape_cast %19 : vector<64x64xf32> to vector<8x8x64xf32>
    %c0_24 = arith.constant 0 : index
    %c0_25 = arith.constant 0 : index
    %c0_26 = arith.constant 0 : index
    %22 = vector.load %arg6[%c0_24, %c0_25, %c0_26] : memref<8x8x64xf32, #tpu.memory_space<vmem>>, vector<8x8x64xf32>
    %23 = arith.addf %22, %20 : vector<8x8x64xf32>
    %c0_27 = arith.constant 0 : index
    %c0_28 = arith.constant 0 : index
    %c0_29 = arith.constant 0 : index
    %24 = vector.load %arg6[%c0_27, %c0_28, %c0_29] : memref<8x8x64xf32, #tpu.memory_space<vmem>>, vector<8x8x64xf32>
    tpu.vector_store %arg6[%c0_27, %c0_28, %c0_29], %23 {strides = array<i32>} : memref<8x8x64xf32, #tpu.memory_space<vmem>>, vector<8x8x64xf32>,
    %c0_30 = arith.constant 0 : index
    %c0_31 = arith.constant 0 : index
    %c0_32 = arith.constant 0 : index
    %25 = vector.load %arg7[%c0_30, %c0_31, %c0_32] : memref<8x8x64xf32, #tpu.memory_space<vmem>>, vector<8x8x64xf32>
    %26 = arith.addf %25, %21 : vector<8x8x64xf32>
    %c0_33 = arith.constant 0 : index
    %c0_34 = arith.constant 0 : index
    %c0_35 = arith.constant 0 : index
    %27 = vector.load %arg7[%c0_33, %c0_34, %c0_35] : memref<8x8x64xf32, #tpu.memory_space<vmem>>, vector<8x8x64xf32>
    tpu.vector_store %arg7[%c0_33, %c0_34, %c0_35], %26 {strides = array<i32>} : memref<8x8x64xf32, #tpu.memory_space<vmem>>, vector<8x8x64xf32>,
    %c2 = arith.constant 2 : index
    %c0_36 = arith.constant 0 : index
    %c0_37 = arith.constant 0 : index
    %28 = vector.load %arg3[%c2, %c0_36, %c0_37] : memref<3x128x64xbf16, #tpu.memory_space<vmem>>, vector<1x128x64xbf16>
    %29 = vector.shape_cast %28 : vector<1x128x64xbf16> to vector<128x64xbf16>
    %c0_38 = arith.constant 0 : index
    %c16 = arith.constant 16 : index
    %c0_39 = arith.constant 0 : index
    %30 = vector.load %arg1[%c0_38, %c16, %c0_39] : memref<1x80x128xbf16, #tpu.memory_space<vmem>>, vector<1x64x128xbf16>
    %31 = vector.shape_cast %30 : vector<1x64x128xbf16> to vector<64x128xbf16>
    %c0_40 = arith.constant 0 : index
    %c16_41 = arith.constant 16 : index
    %c0_42 = arith.constant 0 : index
    %32 = vector.load %arg2[%c0_40, %c16_41, %c0_42] : memref<1x80x128xbf16, #tpu.memory_space<vmem>>, vector<1x64x128xbf16>
    %33 = vector.shape_cast %32 : vector<1x64x128xbf16> to vector<64x128xbf16>
    %cst_43 = arith.constant dense<0.000000e+00> : vector<64x64xf32>
    %34 = tpu.matmul %31, %29, %cst_43 {dimension_numbers = #tpu.dot_dimension_numbers<[1], [0], [0], [1], [0, 0, 1, 1], [], []>} : vector<64x128xbf16>, vector<128x64xbf16>, vector<64x64xf32> -> vector<64x64xf32>
    %cst_44 = arith.constant dense<0.000000e+00> : vector<64x64xf32>
    %35 = tpu.matmul %33, %29, %cst_44 {dimension_numbers = #tpu.dot_dimension_numbers<[1], [0], [0], [1], [0, 0, 1, 1], [], []>} : vector<64x128xbf16>, vector<128x64xbf16>, vector<64x64xf32> -> vector<64x64xf32>
    %36 = vector.shape_cast %34 : vector<64x64xf32> to vector<8x8x64xf32>
    %37 = vector.shape_cast %35 : vector<64x64xf32> to vector<8x8x64xf32>
    %c0_45 = arith.constant 0 : index
    %c0_46 = arith.constant 0 : index
    %c0_47 = arith.constant 0 : index
    %38 = vector.load %arg6[%c0_45, %c0_46, %c0_47] : memref<8x8x64xf32, #tpu.memory_space<vmem>>, vector<8x8x64xf32>
    %39 = arith.addf %38, %36 : vector<8x8x64xf32>
    %c0_48 = arith.constant 0 : index
    %c0_49 = arith.constant 0 : index
    %c0_50 = arith.constant 0 : index
    %40 = vector.load %arg6[%c0_48, %c0_49, %c0_50] : memref<8x8x64xf32, #tpu.memory_space<vmem>>, vector<8x8x64xf32>
    tpu.vector_store %arg6[%c0_48, %c0_49, %c0_50], %39 {strides = array<i32>} : memref<8x8x64xf32, #tpu.memory_space<vmem>>, vector<8x8x64xf32>,
    %c0_51 = arith.constant 0 : index
    %c0_52 = arith.constant 0 : index
    %c0_53 = arith.constant 0 : index
    %41 = vector.load %arg7[%c0_51, %c0_52, %c0_53] : memref<8x8x64xf32, #tpu.memory_space<vmem>>, vector<8x8x64xf32>
    %42 = arith.addf %41, %37 : vector<8x8x64xf32>
    %c0_54 = arith.constant 0 : index
    %c0_55 = arith.constant 0 : index
    %c0_56 = arith.constant 0 : index
    %43 = vector.load %arg7[%c0_54, %c0_55, %c0_56] : memref<8x8x64xf32, #tpu.memory_space<vmem>>, vector<8x8x64xf32>
    tpu.vector_store %arg7[%c0_54, %c0_55, %c0_56], %42 {strides = array<i32>} : memref<8x8x64xf32, #tpu.memory_space<vmem>>, vector<8x8x64xf32>,
    %c0_57 = arith.constant 0 : index
    %c0_58 = arith.constant 0 : index
    %c0_59 = arith.constant 0 : index
    %44 = vector.load %arg6[%c0_57, %c0_58, %c0_59] : memref<8x8x64xf32, #tpu.memory_space<vmem>>, vector<8x8x64xf32>
    %c0_60 = arith.constant 0 : index
    %c0_61 = arith.constant 0 : index
    %c0_62 = arith.constant 0 : index
    %45 = vector.load %arg7[%c0_60, %c0_61, %c0_62] : memref<8x8x64xf32, #tpu.memory_space<vmem>>, vector<8x8x64xf32>
    %46 = arith.maximumf %44, %45 : vector<8x8x64xf32>
    %47 = vector.shape_cast %46 : vector<8x8x64xf32> to vector<4x2x8x64xf32>
    %48 = vector.extract_strided_slice %47 {offsets = [0, 0, 0, 0], sizes = [4, 1, 8, 64], strides = [1, 1, 1, 1]} : vector<4x2x8x64xf32> to vector<4x1x8x64xf32>
    %49 = vector.shape_cast %48 : vector<4x1x8x64xf32> to vector<4x8x64xf32>
    %50 = vector.extract_strided_slice %47 {offsets = [0, 1, 0, 0], sizes = [4, 1, 8, 64], strides = [1, 1, 1, 1]} : vector<4x2x8x64xf32> to vector<4x1x8x64xf32>
    %51 = vector.shape_cast %50 : vector<4x1x8x64xf32> to vector<4x8x64xf32>
    %52 = arith.maximumf %49, %51 : vector<4x8x64xf32>
    %53 = vector.extract_strided_slice %52 {offsets = [0, 0, 0], sizes = [4, 7, 64], strides = [1, 1, 1]} : vector<4x8x64xf32> to vector<4x7x64xf32>
    %c0_63 = arith.constant 0 : index
    %c0_64 = arith.constant 0 : index
    %c0_65 = arith.constant 0 : index
    %54 = vector.load %arg4[%c0_63, %c0_64, %c0_65] : memref<1x1x64xf32, #tpu.memory_space<vmem>>, vector<1x1x64xf32>
    %55 = vector.broadcast %54 : vector<1x1x64xf32> to vector<4x7x64xf32>
    %56 = arith.addf %53, %55 : vector<4x7x64xf32>
    %cst_66 = arith.constant 0.000000e+00 : f32
    %57 = vector.broadcast %cst_66 : f32 to vector<4x7x64xf32>
    %58 = arith.maximumf %56, %57 : vector<4x7x64xf32>
    %59 = arith.truncf %58 : vector<4x7x64xf32> to vector<4x7x64xbf16>
    %c0_67 = arith.constant 0 : index
    %c0_68 = arith.constant 0 : index
    %c0_69 = arith.constant 0 : index
    %c0_70 = arith.constant 0 : index
    %60 = vector.load %arg5[%c0_67, %c0_68, %c0_69, %c0_70] : memref<1x4x7x64xbf16, #tpu.memory_space<vmem>>, vector<1x4x7x64xbf16>
    %61 = vector.shape_cast %60 : vector<1x4x7x64xbf16> to vector<4x7x64xbf16>
    %62 = vector.shape_cast %59 : vector<4x7x64xbf16> to vector<1x4x7x64xbf16>
    tpu.vector_store %arg5[%c0_67, %c0_68, %c0_69, %c0_70], %62 {strides = array<i32>} : memref<1x4x7x64xbf16, #tpu.memory_space<vmem>>, vector<1x4x7x64xbf16>,
    return
  }
  func.func @transform_0(%arg0: i32) -> (i32, i32, i32) {
    %c0_i32 = arith.constant 0 : i32
    %c0_i32_0 = arith.constant 0 : i32
    %c0_i32_1 = arith.constant 0 : i32
    return %arg0, %c0_i32, %c0_i32_0 : i32, i32, i32
  }
  func.func @transform_1(%arg0: i32) -> (i32, i32, i32) {
    %c0_i32 = arith.constant 0 : i32
    %c0_i32_0 = arith.constant 0 : i32
    %c0_i32_1 = arith.constant 0 : i32
    return %arg0, %c0_i32, %c0_i32_0 : i32, i32, i32
  }
  func.func @transform_2(%arg0: i32) -> (i32, i32, i32) {
    %c0_i32 = arith.constant 0 : i32
    %c0_i32_0 = arith.constant 0 : i32
    %c0_i32_1 = arith.constant 0 : i32
    %c0_i32_2 = arith.constant 0 : i32
    return %c0_i32, %c0_i32_0, %c0_i32_1 : i32, i32, i32
  }
  func.func @transform_3(%arg0: i32) -> (i32, i32, i32) {
    %c0_i32 = arith.constant 0 : i32
    %c0_i32_0 = arith.constant 0 : i32
    %c0_i32_1 = arith.constant 0 : i32
    %c0_i32_2 = arith.constant 0 : i32
    return %c0_i32, %c0_i32_0, %c0_i32_1 : i32, i32, i32
  }
  func.func @transform_4(%arg0: i32) -> (i32, i32, i32, i32) {
    %c0_i32 = arith.constant 0 : i32
    %c0_i32_0 = arith.constant 0 : i32
    %c0_i32_1 = arith.constant 0 : i32
    %c0_i32_2 = arith.constant 0 : i32
    return %arg0, %c0_i32, %c0_i32_0, %c0_i32_1 : i32, i32, i32, i32
  }
}

module attributes {stable_mosaic.version = 11 : i64} {
  func.func @_mlp_kernel(%arg0: i32, %arg1: memref<2x1792xbf16, #tpu.memory_space<vmem>>, %arg2: memref<1792x150xbf16, #tpu.memory_space<vmem>>, %arg3: memref<1x150xf32, #tpu.memory_space<vmem>>, %arg4: memref<150x80xbf16, #tpu.memory_space<vmem>>, %arg5: memref<1x80xf32, #tpu.memory_space<vmem>>, %arg6: memref<80x5xbf16, #tpu.memory_space<vmem>>, %arg7: memref<1x5xf32, #tpu.memory_space<vmem>>, %arg8: memref<2x5xf32, #tpu.memory_space<vmem>>) attributes {dimension_semantics = [#tpu.dimension_semantics<arbitrary>], iteration_bounds = array<i64: 1>, scalar_prefetch = 0 : i64, scratch_operands = 0 : i64, tpu.core_type = #tpu.core_type<tc>, window_params = [{pipeline_mode = #tpu.pipeline_mode<synchronous>, transform_indices = @transform_0, window_bounds = array<i64: 2, 1792>}, {pipeline_mode = #tpu.pipeline_mode<synchronous>, transform_indices = @transform_1, window_bounds = array<i64: 1792, 150>}, {pipeline_mode = #tpu.pipeline_mode<synchronous>, transform_indices = @transform_2, window_bounds = array<i64: 1, 150>}, {pipeline_mode = #tpu.pipeline_mode<synchronous>, transform_indices = @transform_3, window_bounds = array<i64: 150, 80>}, {pipeline_mode = #tpu.pipeline_mode<synchronous>, transform_indices = @transform_4, window_bounds = array<i64: 1, 80>}, {pipeline_mode = #tpu.pipeline_mode<synchronous>, transform_indices = @transform_5, window_bounds = array<i64: 80, 5>}, {pipeline_mode = #tpu.pipeline_mode<synchronous>, transform_indices = @transform_6, window_bounds = array<i64: 1, 5>}, {pipeline_mode = #tpu.pipeline_mode<synchronous>, transform_indices = @transform_7, window_bounds = array<i64: 2, 5>}]} {
    %c0 = arith.constant 0 : index
    %c0_0 = arith.constant 0 : index
    %0 = vector.load %arg1[%c0, %c0_0] : memref<2x1792xbf16, #tpu.memory_space<vmem>>, vector<2x1792xbf16>
    %c0_1 = arith.constant 0 : index
    %c0_2 = arith.constant 0 : index
    %1 = vector.load %arg2[%c0_1, %c0_2] : memref<1792x150xbf16, #tpu.memory_space<vmem>>, vector<1792x150xbf16>
    %cst = arith.constant dense<0.000000e+00> : vector<2x150xf32>
    %2 = tpu.matmul %0, %1, %cst {dimension_numbers = #tpu.dot_dimension_numbers<[1], [0], [0], [1], [0, 0, 1, 1], [], []>} : vector<2x1792xbf16>, vector<1792x150xbf16>, vector<2x150xf32> -> vector<2x150xf32>
    %c0_3 = arith.constant 0 : index
    %c0_4 = arith.constant 0 : index
    %3 = vector.load %arg3[%c0_3, %c0_4] : memref<1x150xf32, #tpu.memory_space<vmem>>, vector<1x150xf32>
    %4 = vector.broadcast %3 : vector<1x150xf32> to vector<2x150xf32>
    %5 = arith.addf %2, %4 : vector<2x150xf32>
    %cst_5 = arith.constant 0.000000e+00 : f32
    %6 = vector.broadcast %cst_5 : f32 to vector<2x150xf32>
    %7 = arith.maximumf %5, %6 : vector<2x150xf32>
    %8 = arith.truncf %7 : vector<2x150xf32> to vector<2x150xbf16>
    %c0_6 = arith.constant 0 : index
    %c0_7 = arith.constant 0 : index
    %9 = vector.load %arg4[%c0_6, %c0_7] : memref<150x80xbf16, #tpu.memory_space<vmem>>, vector<150x80xbf16>
    %cst_8 = arith.constant dense<0.000000e+00> : vector<2x80xf32>
    %10 = tpu.matmul %8, %9, %cst_8 {dimension_numbers = #tpu.dot_dimension_numbers<[1], [0], [0], [1], [0, 0, 1, 1], [], []>} : vector<2x150xbf16>, vector<150x80xbf16>, vector<2x80xf32> -> vector<2x80xf32>
    %c0_9 = arith.constant 0 : index
    %c0_10 = arith.constant 0 : index
    %11 = vector.load %arg5[%c0_9, %c0_10] : memref<1x80xf32, #tpu.memory_space<vmem>>, vector<1x80xf32>
    %12 = vector.broadcast %11 : vector<1x80xf32> to vector<2x80xf32>
    %13 = arith.addf %10, %12 : vector<2x80xf32>
    %cst_11 = arith.constant 0.000000e+00 : f32
    %14 = vector.broadcast %cst_11 : f32 to vector<2x80xf32>
    %15 = arith.maximumf %13, %14 : vector<2x80xf32>
    %16 = arith.truncf %15 : vector<2x80xf32> to vector<2x80xbf16>
    %c0_12 = arith.constant 0 : index
    %c0_13 = arith.constant 0 : index
    %17 = vector.load %arg6[%c0_12, %c0_13] : memref<80x5xbf16, #tpu.memory_space<vmem>>, vector<80x5xbf16>
    %cst_14 = arith.constant dense<0.000000e+00> : vector<2x5xf32>
    %18 = tpu.matmul %16, %17, %cst_14 {dimension_numbers = #tpu.dot_dimension_numbers<[1], [0], [0], [1], [0, 0, 1, 1], [], []>} : vector<2x80xbf16>, vector<80x5xbf16>, vector<2x5xf32> -> vector<2x5xf32>
    %c0_15 = arith.constant 0 : index
    %c0_16 = arith.constant 0 : index
    %19 = vector.load %arg7[%c0_15, %c0_16] : memref<1x5xf32, #tpu.memory_space<vmem>>, vector<1x5xf32>
    %20 = vector.broadcast %19 : vector<1x5xf32> to vector<2x5xf32>
    %21 = arith.addf %18, %20 : vector<2x5xf32>
    %c0_17 = arith.constant 0 : index
    %c0_18 = arith.constant 0 : index
    %22 = vector.load %arg8[%c0_17, %c0_18] : memref<2x5xf32, #tpu.memory_space<vmem>>, vector<2x5xf32>
    tpu.vector_store %arg8[%c0_17, %c0_18], %21 {strides = array<i32>} : memref<2x5xf32, #tpu.memory_space<vmem>>, vector<2x5xf32>,
    return
  }
  func.func @transform_0(%arg0: i32) -> (i32, i32) {
    %c0_i32 = arith.constant 0 : i32
    %c0_i32_0 = arith.constant 0 : i32
    %c0_i32_1 = arith.constant 0 : i32
    return %c0_i32, %c0_i32_0 : i32, i32
  }
  func.func @transform_1(%arg0: i32) -> (i32, i32) {
    %c0_i32 = arith.constant 0 : i32
    %c0_i32_0 = arith.constant 0 : i32
    %c0_i32_1 = arith.constant 0 : i32
    return %c0_i32, %c0_i32_0 : i32, i32
  }
  func.func @transform_2(%arg0: i32) -> (i32, i32) {
    %c0_i32 = arith.constant 0 : i32
    %c0_i32_0 = arith.constant 0 : i32
    %c0_i32_1 = arith.constant 0 : i32
    return %c0_i32, %c0_i32_0 : i32, i32
  }
  func.func @transform_3(%arg0: i32) -> (i32, i32) {
    %c0_i32 = arith.constant 0 : i32
    %c0_i32_0 = arith.constant 0 : i32
    %c0_i32_1 = arith.constant 0 : i32
    return %c0_i32, %c0_i32_0 : i32, i32
  }
  func.func @transform_4(%arg0: i32) -> (i32, i32) {
    %c0_i32 = arith.constant 0 : i32
    %c0_i32_0 = arith.constant 0 : i32
    %c0_i32_1 = arith.constant 0 : i32
    return %c0_i32, %c0_i32_0 : i32, i32
  }
  func.func @transform_5(%arg0: i32) -> (i32, i32) {
    %c0_i32 = arith.constant 0 : i32
    %c0_i32_0 = arith.constant 0 : i32
    %c0_i32_1 = arith.constant 0 : i32
    return %c0_i32, %c0_i32_0 : i32, i32
  }
  func.func @transform_6(%arg0: i32) -> (i32, i32) {
    %c0_i32 = arith.constant 0 : i32
    %c0_i32_0 = arith.constant 0 : i32
    %c0_i32_1 = arith.constant 0 : i32
    return %c0_i32, %c0_i32_0 : i32, i32
  }
  func.func @transform_7(%arg0: i32) -> (i32, i32) {
    %c0_i32 = arith.constant 0 : i32
    %c0_i32_0 = arith.constant 0 : i32
    %c0_i32_1 = arith.constant 0 : i32
    return %c0_i32, %c0_i32_0 : i32, i32
  }
}

</mosaic_0001>

<bundles_post_ra>
// kernel: net_forward.4
= control target key start
LH: loop header
LB: loop body
LE: loop exit
PB: predicated region body
PF: predicated region fallthrough
CT: control target
= control target key end

     0   :  { %s3754_s15 = smov 0   ;;  %s4403_s0 = inlined_call_operand.vmem [shape: bf16[2,1024,128], index: 0, kind: input, shape index: {}]   ;;  %s4404_s1 = inlined_call_operand.vmem [shape: bf16[2,1024,128], index: 1, kind: input, shape index: {}]   ;;  %s4405_s2 = inlined_call_operand.vmem [shape: bf16[1,128,32], index: 2, kind: input, shape index: {}]   ;;  %s4406_s3 = inlined_call_operand.vmem [shape: f32[1,1,32], index: 3, kind: input, shape index: {}]   ;;  %s4407_s4 = inlined_call_operand.vmem [shape: bf16[2,16,28,32], index: 4, kind: output, shape index: {}]  }
   0x1 LB: > { %s2998_s16 = sadd.s32 4294967295, %s3727_s15   ;;  %p3002_p0 = scmp.ge.s32.totalorder %s3727_s15, 1  ;;  %s3727_s15 = sphi %s3754_s15, %s14_s15  }
   0x2   : > { %p172_p1 = scmp.lt.s32.totalorder %s3727_s15, 3 }
   0x4   : > { %p173_p2 = pnand %p3002_p0, %p172_p1 }
   0x5   : > { %p203_p3 = scmp.lt.s32.totalorder (!%p173_p2), %s2998_s16, 1 }
   0x6   : > { %176 = sbr.rel (%p173_p2) target bundleno = 699 (0x2bb), region = 36 }
   0xb   : > { %v3565_v0 = vld [vmem:[%s4405_s2 + $0x38] sm:$0xff]  ;;  %v3564_v1 = vld [vmem:[%s4405_s2 + $0x30] sm:$0xff]  ;;  %v3563_v2 = vld [vmem:[%s4405_s2 + $0x28] sm:$0xff]  ;;  %s4409_s16 = smov (!%p203_p3, %s2998_s16), 1  ;;  %vm1964_vm0 = vcmask 261120   ;;  %vm2865_vm1 = vcmask 257024  }
   0xc   : > { %922 = vmatpush.bf16.msra.mxu0 %v3565_v0  ;;  %3694 = vmatpush.bf16.msra.mxu2 %v3565_v0  ;;  %v3562_v3 = vld [vmem:[%s4405_s2 + $0x20] sm:$0xff]  ;;  %v3561_v4 = vld [vmem:[%s4405_s2 + $0x18] sm:$0xff]  ;;  %v3560_v5 = vld [vmem:[%s4405_s2 + $0x10] sm:$0xff]  ;;  %s3555_s5 = sshll.u32 %s4409_s16, 9  ;;  %s3557_s18 = sshll.u32 %s4409_s16, 8  ;;  %vm2869_vm2 = vcmask 254976  }
   0xd   : > { %1635 = vmatpush.bf16.msra.mxu1 %v3565_v0  ;;  %3702 = vmatpush.bf16.msra.mxu3 %v3565_v0  ;;  %v3559_v6 = vld [vmem:[%s4405_s2 + $0x8] sm:$0xff]  ;;  %v3558_v7 = vld [vmem:[%s4405_s2] sm:$0xff]  ;;  %s3796_s10 = scalar_lea.vmem %s4403_s0, %s3555_s5  ;;  %s3801_s13 = scalar_lea.vmem %s4404_s1, %s3555_s5 }
   0xe   : > { %v3566_v8 = vld [vmem:[%s3796_s10] sm:$0xff]  ;;  %v3567_v12 = vld [vmem:[%s3796_s10 + $0x8] sm:$0xff]  ;;  %v3568_v16 = vld [vmem:[%s3796_s10 + $0x10] sm:$0xff]  ;;  %s3885_s20 = scalar_lea.vmem %s4407_s4, %s3557_s18 }
   0xf   : > { %v3598_v9 = vld [vmem:[%s3796_s10 + $0x100] sm:$0xff]  ;;  %v3599_v13 = vld [vmem:[%s3796_s10 + $0x108] sm:$0xff]  ;;  %v3600_v17 = vld [vmem:[%s3796_s10 + $0x110] sm:$0xff] }
  0x10   : > { %923 = vmatpush.bf16.msra.mxu0 %v3564_v1  ;;  %3695 = vmatpush.bf16.msra.mxu2 %v3564_v1  ;;  %v3630_v10 = vld [vmem:[%s3801_s13] sm:$0xff]  ;;  %v3631_v14 = vld [vmem:[%s3801_s13 + $0x8] sm:$0xff]  ;;  %v3632_v18 = vld [vmem:[%s3801_s13 + $0x10] sm:$0xff] }
  0x11   : > { %1636 = vmatpush.bf16.msra.mxu1 %v3564_v1  ;;  %3703 = vmatpush.bf16.msra.mxu3 %v3564_v1  ;;  %v3662_v11 = vld [vmem:[%s3801_s13 + $0x100] sm:$0xff]  ;;  %v3663_v15 = vld [vmem:[%s3801_s13 + $0x108] sm:$0xff]  ;;  %v3664_v19 = vld [vmem:[%s3801_s13 + $0x110] sm:$0xff] }
  0x12   : > { %v3569_v20 = vld [vmem:[%s3796_s10 + $0x18] sm:$0xff]  ;;  %v3570_v24 = vld [vmem:[%s3796_s10 + $0x20] sm:$0xff]  ;;  %v3571_v28 = vld [vmem:[%s3796_s10 + $0x28] sm:$0xff] }
  0x13   : > { %v3601_v21 = vld [vmem:[%s3796_s10 + $0x118] sm:$0xff]  ;;  %v3602_v25 = vld [vmem:[%s3796_s10 + $0x120] sm:$0xff]  ;;  %v3603_v29 = vld [vmem:[%s3796_s10 + $0x128] sm:$0xff] }
  0x14   : > { %924 = vmatpush.bf16.msra.mxu0 %v3563_v2  ;;  %3696 = vmatpush.bf16.msra.mxu2 %v3563_v2  ;;  %v3633_v22 = vld [vmem:[%s3801_s13 + $0x18] sm:$0xff]  ;;  %v3634_v26 = vld [vmem:[%s3801_s13 + $0x20] sm:$0xff]  ;;  %v3635_v30 = vld [vmem:[%s3801_s13 + $0x28] sm:$0xff] }
  0x15   : > { %1637 = vmatpush.bf16.msra.mxu1 %v3563_v2  ;;  %3704 = vmatpush.bf16.msra.mxu3 %v3563_v2  ;;  %v3665_v23 = vld [vmem:[%s3801_s13 + $0x118] sm:$0xff]  ;;  %v3666_v27 = vld [vmem:[%s3801_s13 + $0x120] sm:$0xff]  ;;  %v3667_v31 = vld [vmem:[%s3801_s13 + $0x128] sm:$0xff] }
  0x16   : > { %v3572_v32 = vld [vmem:[%s3796_s10 + $0x30] sm:$0xff]  ;;  %v3573_v36 = vld [vmem:[%s3796_s10 + $0x38] sm:$0xff]  ;;  %v3574_v40 = vld [vmem:[%s3796_s10 + $0x40] sm:$0xff] }
  0x17   : > { %v3604_v33 = vld [vmem:[%s3796_s10 + $0x130] sm:$0xff]  ;;  %v3605_v37 = vld [vmem:[%s3796_s10 + $0x138] sm:$0xff]  ;;  %v3606_v41 = vld [vmem:[%s3796_s10 + $0x140] sm:$0xff] }
  0x18   : > { %925 = vmatpush.bf16.msra.mxu0 %v3562_v3  ;;  %3697 = vmatpush.bf16.msra.mxu2 %v3562_v3  ;;  %v3636_v34 = vld [vmem:[%s3801_s13 + $0x30] sm:$0xff]  ;;  %v3637_v38 = vld [vmem:[%s3801_s13 + $0x38] sm:$0xff]  ;;  %v3638_v43 = vld [vmem:[%s3801_s13 + $0x40] sm:$0xff] }
  0x19   : > { %1638 = vmatpush.bf16.msra.mxu1 %v3562_v3  ;;  %3705 = vmatpush.bf16.msra.mxu3 %v3562_v3  ;;  %v3668_v35 = vld [vmem:[%s3801_s13 + $0x130] sm:$0xff]  ;;  %v3669_v39 = vld [vmem:[%s3801_s13 + $0x138] sm:$0xff]  ;;  %v3670_v44 = vld [vmem:[%s3801_s13 + $0x140] sm:$0xff] }
  0x1a   : > { %v3575_v52 = vld [vmem:[%s3796_s10 + $0x48] sm:$0xff]  ;;  %v3576_v0 = vld [vmem:[%s3796_s10 + $0x50] sm:$0xff] }
  0x1b   : > { %v3607_v53 = vld [vmem:[%s3796_s10 + $0x148] sm:$0xff]  ;;  %v3608_v1 = vld [vmem:[%s3796_s10 + $0x150] sm:$0xff] }
  0x1c   : > { %926 = vmatpush.bf16.msra.mxu0 %v3561_v4  ;;  %3698 = vmatpush.bf16.msra.mxu2 %v3561_v4  ;;  %v3639_v55 = vld [vmem:[%s3801_s13 + $0x48] sm:$0xff]  ;;  %v3640_v3 = vld [vmem:[%s3801_s13 + $0x50] sm:$0xff] }
  0x1d   : > { %1639 = vmatpush.bf16.msra.mxu1 %v3561_v4  ;;  %3706 = vmatpush.bf16.msra.mxu3 %v3561_v4  ;;  %v3671_v56 = vld [vmem:[%s3801_s13 + $0x148] sm:$0xff]  ;;  %v3672_v4 = vld [vmem:[%s3801_s13 + $0x150] sm:$0xff] }
  0x20   : > { %927 = vmatpush.bf16.msra.mxu0 %v3560_v5  ;;  %3699 = vmatpush.bf16.msra.mxu2 %v3560_v5 }
  0x21   : > { %1640 = vmatpush.bf16.msra.mxu1 %v3560_v5  ;;  %3707 = vmatpush.bf16.msra.mxu3 %v3560_v5 }
  0x24   : > { %928 = vmatpush.bf16.msra.mxu0 %v3559_v6  ;;  %3700 = vmatpush.bf16.msra.mxu2 %v3559_v6 }
  0x25   : > { %1641 = vmatpush.bf16.msra.mxu1 %v3559_v6  ;;  %3708 = vmatpush.bf16.msra.mxu3 %v3559_v6 }
  0x28   : > { %929 = vmatpush.bf16.msra.mxu0 %v3558_v7  ;;  %3701 = vmatpush.bf16.msra.mxu2 %v3558_v7 }
  0x29   : > { %1642 = vmatpush.bf16.msra.mxu1 %v3558_v7  ;;  %3709 = vmatpush.bf16.msra.mxu3 %v3558_v7 }
  0x2b   : > { %930 = vmatmul.bf16.vlgmr.msra.gmra.mxu0 %v3566_v8  ;;  %1090 = vmatmul.bf16.vlgmr.msra.gmra.mxu2 %v3598_v9 }
  0x2c   : > { %1643 = vmatmul.bf16.vlgmr.msra.gmra.mxu1 %v3630_v10  ;;  %1803 = vmatmul.bf16.vlgmr.msra.gmra.mxu3 %v3662_v11 }
  0x3b   : > { %935 = vmatmul.bf16.gmra.mxu0 %v3567_v12  ;;  %1095 = vmatmul.bf16.gmra.mxu2 %v3599_v13 }
  0x3c   : > { %1648 = vmatmul.bf16.gmra.mxu1 %v3631_v14  ;;  %1808 = vmatmul.bf16.gmra.mxu3 %v3663_v15 }
  0x4b   : > { %940 = vmatmul.bf16.gmra.mxu0 %v3568_v16  ;;  %1100 = vmatmul.bf16.gmra.mxu2 %v3600_v17  ;;  %v3871_v16 = vld [vmem:[%s4406_s3] ss:$0 sm:$0xff] }
  0x4c   : > { %1653 = vmatmul.bf16.gmra.mxu1 %v3632_v18  ;;  %1813 = vmatmul.bf16.gmra.mxu3 %v3664_v19 }
  0x5b   : > { %945 = vmatmul.bf16.gmra.mxu0 %v3569_v20  ;;  %1105 = vmatmul.bf16.gmra.mxu2 %v3601_v21 }
  0x5c   : > { %1658 = vmatmul.bf16.gmra.mxu1 %v3633_v22  ;;  %1818 = vmatmul.bf16.gmra.mxu3 %v3665_v23 }
  0x6b   : > { %950 = vmatmul.bf16.gmra.mxu0 %v3570_v24  ;;  %1110 = vmatmul.bf16.gmra.mxu2 %v3602_v25 }
  0x6c   : > { %1663 = vmatmul.bf16.gmra.mxu1 %v3634_v26  ;;  %1823 = vmatmul.bf16.gmra.mxu3 %v3666_v27  ;;  %v3577_v27 = vld [vmem:[%s3796_s10 + $0x58] sm:$0xff] }
  0x7b   : > { %955 = vmatmul.bf16.gmra.mxu0 %v3571_v28  ;;  %1115 = vmatmul.bf16.gmra.mxu2 %v3603_v29  ;;  %v3609_v28 = vld [vmem:[%s3796_s10 + $0x158] sm:$0xff] }
  0x7c   : > { %1668 = vmatmul.bf16.gmra.mxu1 %v3635_v30  ;;  %1828 = vmatmul.bf16.gmra.mxu3 %v3667_v31 }
  0x8b   : > { %960 = vmatmul.bf16.gmra.mxu0 %v3572_v32  ;;  %1120 = vmatmul.bf16.gmra.mxu2 %v3604_v33 }
  0x8c   : > { %1673 = vmatmul.bf16.gmra.mxu1 %v3636_v34  ;;  %1833 = vmatmul.bf16.gmra.mxu3 %v3668_v35  ;;  %v3641_v34 = vld [vmem:[%s3801_s13 + $0x58] sm:$0xff] }
  0x8d   : > { %v3673_v35 = vld [vmem:[%s3801_s13 + $0x158] sm:$0xff] }
  0x9b   : > { %965 = vmatmul.bf16.gmra.mxu0 %v3573_v36  ;;  %1125 = vmatmul.bf16.gmra.mxu2 %v3605_v37 }
  0x9c   : > { %1678 = vmatmul.bf16.gmra.mxu1 %v3637_v38  ;;  %1838 = vmatmul.bf16.gmra.mxu3 %v3669_v39 }
  0xa8   : > { %v931_v42 = vpop.f32.mrf.mxu0 }
  0xa9   : > { %1965 = vst.msk [vmem:[#allocation2] sm:$0xff] %vm1964_vm0, %v931_v42  ;;  %v1644_v45 = vpop.f32.mrf.mxu1 }
  0xaa   : > { %2093 = vst.msk [vmem:[#allocation3] sm:$0xff] %vm1964_vm0, %v1644_v45 }
  0xab   : > { %970 = vmatmul.bf16.gmra.mxu0 %v3574_v40  ;;  %1130 = vmatmul.bf16.gmra.mxu2 %v3606_v41 }
  0xac   : > { %1683 = vmatmul.bf16.gmra.mxu1 %v3638_v43  ;;  %1843 = vmatmul.bf16.gmra.mxu3 %v3670_v44 }
  0xae   : > { %v1091_v46 = vpop.f32.mrf.mxu2 }
  0xaf   : > { %2029 = vst.msk [vmem:[#allocation2 + $0x200] sm:$0xff] %vm1964_vm0, %v1091_v46  ;;  %v1804_v47 = vpop.f32.mrf.mxu3 }
  0xb0   : > { %2157 = vst.msk [vmem:[#allocation3 + $0x200] sm:$0xff] %vm1964_vm0, %v1804_v47  ;;  %v933_v48 = vpop.f32.mrf.mxu0  ;;  %v2221_v7 = vld [vmem:[#allocation2] sm:$0xff] }
  0xb1   : > { %1966 = vst.msk [vmem:[#allocation2 + $0x8] sm:$0xff] %vm1964_vm0, %v933_v48  ;;  %v1646_v49 = vpop.f32.mrf.mxu1  ;;  %v2349_v8 = vld [vmem:[#allocation3] sm:$0xff] }
  0xb2   : > { %2094 = vst.msk [vmem:[#allocation3 + $0x8] sm:$0xff] %vm1964_vm0, %v1646_v49  ;;  %v2477_v14 = vmax.f32 %v2221_v7, %v2349_v8 }
  0xb6   : > { %v1093_v50 = vpop.f32.mrf.mxu2  ;;  %v2285_v18 = vld [vmem:[#allocation2 + $0x200] sm:$0xff] }
  0xb7   : > { %2030 = vst.msk [vmem:[#allocation2 + $0x208] sm:$0xff] %vm1964_vm0, %v1093_v50  ;;  %v1806_v51 = vpop.f32.mrf.mxu3  ;;  %v2413_v19 = vld [vmem:[#allocation3 + $0x200] sm:$0xff] }
  0xb8   : > { %2158 = vst.msk [vmem:[#allocation3 + $0x208] sm:$0xff] %vm1964_vm0, %v1806_v51  ;;  %v936_v54 = vpop.f32.mrf.mxu0  ;;  %v2222_v20 = vld [vmem:[#allocation2 + $0x8] sm:$0xff]  ;;  %v2541_v29 = vmax.f32 %v2285_v18, %v2413_v19 }
  0xb9   : > { %1967 = vst.msk [vmem:[#allocation2 + $0x10] sm:$0xff] %vm1964_vm0, %v936_v54  ;;  %v1649_v57 = vpop.f32.mrf.mxu1  ;;  %v2350_v21 = vld [vmem:[#allocation3 + $0x8] sm:$0xff] }
  0xba   : > { %2095 = vst.msk [vmem:[#allocation3 + $0x10] sm:$0xff] %vm1964_vm0, %v1649_v57  ;;  %v2478_v38 = vmax.f32 %v2222_v20, %v2350_v21 }
  0xbb   : > { %975 = vmatmul.bf16.gmra.mxu0 %v3575_v52  ;;  %1135 = vmatmul.bf16.gmra.mxu2 %v3607_v53 }
  0xbc   : > { %1688 = vmatmul.bf16.gmra.mxu1 %v3639_v55  ;;  %1848 = vmatmul.bf16.gmra.mxu3 %v3671_v56 }
  0xbe   : > { %v1096_v58 = vpop.f32.mrf.mxu2  ;;  %v2286_v44 = vld [vmem:[#allocation2 + $0x208] sm:$0xff] }
  0xbf   : > { %2031 = vst.msk [vmem:[#allocation2 + $0x210] sm:$0xff] %vm1964_vm0, %v1096_v58  ;;  %v1809_v59 = vpop.f32.mrf.mxu3  ;;  %v2414_v45 = vld [vmem:[#allocation3 + $0x208] sm:$0xff] }
  0xc0   : > { %2159 = vst.msk [vmem:[#allocation3 + $0x210] sm:$0xff] %vm1964_vm0, %v1809_v59  ;;  %v938_v60 = vpop.f32.mrf.mxu0  ;;  %v2223_v50 = vld [vmem:[#allocation2 + $0x10] sm:$0xff]  ;;  %v2542_v54 = vmax.f32 %v2286_v44, %v2414_v45 }
  0xc1   : > { %1968 = vst.msk [vmem:[#allocation2 + $0x18] sm:$0xff] %vm1964_vm0, %v938_v60  ;;  %v1651_v61 = vpop.f32.mrf.mxu1  ;;  %v2351_v51 = vld [vmem:[#allocation3 + $0x10] sm:$0xff] }
  0xc2   : > { %2096 = vst.msk [vmem:[#allocation3 + $0x18] sm:$0xff] %vm1964_vm0, %v1651_v61 }
  0xc6   : > { %v1098_v62 = vpop.f32.mrf.mxu2 }
  0xc7   : > { %2032 = vst.msk [vmem:[#allocation2 + $0x218] sm:$0xff] %vm1964_vm0, %v1098_v62  ;;  %v1811_v63 = vpop.f32.mrf.mxu3  ;;  %v2479_v62 = vmax.f32 %v2223_v50, %v2351_v51 }
  0xc8   : > { %2160 = vst.msk [vmem:[#allocation3 + $0x218] sm:$0xff] %vm1964_vm0, %v1811_v63  ;;  %v941_v2 = vpop.f32.mrf.mxu0 }
  0xc9   : > { %1969 = vst.msk [vmem:[#allocation2 + $0x20] sm:$0xff] %vm1964_vm0, %v941_v2  ;;  %v1654_v5 = vpop.f32.mrf.mxu1  ;;  %v2352_v7 = vld [vmem:[#allocation3 + $0x18] sm:$0xff] }
  0xca   : > { %2097 = vst.msk [vmem:[#allocation3 + $0x20] sm:$0xff] %vm1964_vm0, %v1654_v5  ;;  %v2415_v5 = vld [vmem:[#allocation3 + $0x210] sm:$0xff] }
  0xcb   : > { %980 = vmatmul.bf16.gmra.mxu0 %v3576_v0  ;;  %1140 = vmatmul.bf16.gmra.mxu2 %v3608_v1 }
  0xcc   : > { %1693 = vmatmul.bf16.gmra.mxu1 %v3640_v3  ;;  %1853 = vmatmul.bf16.gmra.mxu3 %v3672_v4  ;;  %v2287_v4 = vld [vmem:[#allocation2 + $0x210] sm:$0xff] }
  0xce   : > { %v1101_v6 = vpop.f32.mrf.mxu2 }
  0xcf   : > { %2033 = vst.msk [vmem:[#allocation2 + $0x220] sm:$0xff] %vm1964_vm0, %v1101_v6  ;;  %v1814_v9 = vpop.f32.mrf.mxu3  ;;  %v2224_v6 = vld [vmem:[#allocation2 + $0x18] sm:$0xff] }
  0xd0   : > { %v2225_v10 = vld [vmem:[#allocation2 + $0x20] sm:$0xff]  ;;  %2161 = vst.msk [vmem:[#allocation3 + $0x220] sm:$0xff] %vm1964_vm0, %v1814_v9  ;;  %v943_v11 = vpop.f32.mrf.mxu0 }
  0xd1   : > { %v2353_v12 = vld [vmem:[#allocation3 + $0x20] sm:$0xff]  ;;  %1970 = vst.msk [vmem:[#allocation2 + $0x28] sm:$0xff] %vm1964_vm0, %v943_v11  ;;  %v1656_v13 = vpop.f32.mrf.mxu1 }
  0xd2   : > { %v2481_v15 = vmax.f32 %v2225_v10, %v2353_v12  ;;  %2098 = vst.msk [vmem:[#allocation3 + $0x28] sm:$0xff] %vm1964_vm0, %v1656_v13 }
  0xd4   : > { %v2605_v17 = vmax.f32 %v2477_v14, %v2481_v15  ;;  %v3578_v14 = vld [vmem:[%s3796_s10 + $0x60] sm:$0xff] }
  0xd5   : > { %v3610_v15 = vld [vmem:[%s3796_s10 + $0x160] sm:$0xff] }
  0xd6   : > { %v2673_v22 = vadd.f32 %v3871_v16, %v2605_v17  ;;  %v2289_v23 = vld [vmem:[#allocation2 + $0x220] sm:$0xff]  ;;  %v1103_v24 = vpop.f32.mrf.mxu2  ;;  %v2543_v17 = vmax.f32 %v2287_v4, %v2415_v5  ;;  %v3644_v5 = vld [vmem:[%s3801_s13 + $0x70] sm:$0xff] }
  0xd7   : > { %v2417_v25 = vld [vmem:[#allocation3 + $0x220] sm:$0xff]  ;;  %2034 = vst.msk [vmem:[#allocation2 + $0x228] sm:$0xff] %vm1964_vm0, %v1103_v24  ;;  %v1816_v26 = vpop.f32.mrf.mxu3 }
  0xd8   : > { %v2737_v30 = vmax.f32 %v2673_v22, 0.0  ;;  %v2545_v31 = vmax.f32 %v2289_v23, %v2417_v25  ;;  %v2226_v32 = vld [vmem:[#allocation2 + $0x28] sm:$0xff]  ;;  %2162 = vst.msk [vmem:[#allocation3 + $0x228] sm:$0xff] %vm1964_vm0, %v1816_v26  ;;  %v946_v33 = vpop.f32.mrf.mxu0  ;;  %v3642_v23 = vld [vmem:[%s3801_s13 + $0x60] sm:$0xff] }
  0xd9   : > { %v2354_v36 = vld [vmem:[#allocation3 + $0x28] sm:$0xff]  ;;  %1971 = vst.msk [vmem:[#allocation2 + $0x30] sm:$0xff] %vm1964_vm0, %v946_v33  ;;  %v1659_v37 = vpop.f32.mrf.mxu1  ;;  %v3674_v24 = vld [vmem:[%s3801_s13 + $0x160] sm:$0xff]  ;;  %v2416_v33 = vld [vmem:[#allocation3 + $0x218] sm:$0xff] }
  0xda   : > { %v2801_v39 = vpack.c.bf16 %v2737_v30, %v2737_v30  ;;  %v2637_v40 = vmax.f32 %v2541_v29, %v2545_v31  ;;  %v2482_v41 = vmax.f32 %v2226_v32, %v2354_v36  ;;  %2099 = vst.msk [vmem:[#allocation3 + $0x30] sm:$0xff] %vm1964_vm0, %v1659_v37  ;;  %v2480_v29 = vmax.f32 %v2224_v6, %v2352_v7  ;;  %v2288_v32 = vld [vmem:[#allocation2 + $0x218] sm:$0xff]  ;;  %v3676_v6 = vld [vmem:[%s3801_s13 + $0x170] sm:$0xff] }
  0xdb   : > { %985 = vmatmul.bf16.gmra.mxu0 %v3577_v27  ;;  %1145 = vmatmul.bf16.gmra.mxu2 %v3609_v28 }
  0xdc   : > { %2866 = vst.msk [vmem:[%s3885_s20] sm:$0xf] %vm2865_vm1, %v2801_v39  ;;  %v2705_v42 = vadd.f32 %v3871_v16, %v2637_v40  ;;  %v2606_v43 = vmax.f32 %v2478_v38, %v2482_v41  ;;  %1698 = vmatmul.bf16.gmra.mxu1 %v3641_v34  ;;  %1858 = vmatmul.bf16.gmra.mxu3 %v3673_v35 }
  0xdd   : > { %v2544_v41 = vmax.f32 %v2288_v32, %v2416_v33 }
  0xde   : > { %v2769_v46 = vmax.f32 %v2705_v42, 0.0  ;;  %v2674_v47 = vadd.f32 %v3871_v16, %v2606_v43  ;;  %v2290_v48 = vld [vmem:[#allocation2 + $0x228] sm:$0xff]  ;;  %v1106_v49 = vpop.f32.mrf.mxu2 }
  0xdf   : > { %v2418_v52 = vld [vmem:[#allocation3 + $0x228] sm:$0xff]  ;;  %2035 = vst.msk [vmem:[#allocation2 + $0x230] sm:$0xff] %vm1964_vm0, %v1106_v49  ;;  %v1819_v53 = vpop.f32.mrf.mxu3 }
  0xe0   : > { %v2833_v55 = vpack.c.bf16 %v2769_v46, %v2769_v46  ;;  %v2738_v56 = vmax.f32 %v2674_v47, 0.0  ;;  %v2546_v57 = vmax.f32 %v2290_v48, %v2418_v52  ;;  %v2227_v58 = vld [vmem:[#allocation2 + $0x30] sm:$0xff]  ;;  %2163 = vst.msk [vmem:[#allocation3 + $0x230] sm:$0xff] %vm1964_vm0, %v1819_v53  ;;  %v948_v59 = vpop.f32.mrf.mxu0  ;;  %v3579_v53 = vld [vmem:[%s3796_s10 + $0x68] sm:$0xff] }
  0xe1   : > { %v2355_v60 = vld [vmem:[#allocation3 + $0x30] sm:$0xff]  ;;  %1972 = vst.msk [vmem:[#allocation2 + $0x38] sm:$0xff] %vm1964_vm0, %v948_v59  ;;  %v1661_v61 = vpop.f32.mrf.mxu1 }
  0xe2   : > { %2899 = vst.msk [vmem:[%s3885_s20 + $0x80] sm:$0xf] %vm2865_vm1, %v2833_v55  ;;  %v2802_v63 = vpack.c.bf16 %v2738_v56, %v2738_v56  ;;  %v2638_v0 = vmax.f32 %v2542_v54, %v2546_v57  ;;  %v2483_v1 = vmax.f32 %v2227_v58, %v2355_v60  ;;  %v3611_v54 = vld [vmem:[%s3796_s10 + $0x168] sm:$0xff] }
  0xe3   : > { %2100 = vst.msk [vmem:[#allocation3 + $0x38] sm:$0xff] %vm1964_vm0, %v1661_v61  ;;  %v3643_v57 = vld [vmem:[%s3801_s13 + $0x68] sm:$0xff] }
  0xe4   : > { %2867 = vst.msk [vmem:[%s3885_s20 + $0x4] sm:$0xf] %vm2865_vm1, %v2802_v63  ;;  %v2706_v2 = vadd.f32 %v3871_v16, %v2638_v0  ;;  %v2607_v3 = vmax.f32 %v2479_v62, %v2483_v1  ;;  %v3675_v58 = vld [vmem:[%s3801_s13 + $0x168] sm:$0xff] }
  0xe6   : > { %v2770_v8 = vmax.f32 %v2706_v2, 0.0  ;;  %v2675_v9 = vadd.f32 %v3871_v16, %v2607_v3  ;;  %v2291_v10 = vld [vmem:[#allocation2 + $0x230] sm:$0xff]  ;;  %v1108_v11 = vpop.f32.mrf.mxu2 }
  0xe7   : > { %v2419_v12 = vld [vmem:[#allocation3 + $0x230] sm:$0xff]  ;;  %2036 = vst.msk [vmem:[#allocation2 + $0x238] sm:$0xff] %vm1964_vm0, %v1108_v11  ;;  %v1821_v13 = vpop.f32.mrf.mxu3 }
  0xe8   : > { %v2834_v18 = vpack.c.bf16 %v2770_v8, %v2770_v8  ;;  %v2739_v19 = vmax.f32 %v2675_v9, 0.0  ;;  %v2547_v20 = vmax.f32 %v2291_v10, %v2419_v12  ;;  %v2228_v21 = vld [vmem:[#allocation2 + $0x38] sm:$0xff]  ;;  %2164 = vst.msk [vmem:[#allocation3 + $0x238] sm:$0xff] %vm1964_vm0, %v1821_v13  ;;  %v951_v22 = vpop.f32.mrf.mxu0  ;;  %v3580_v2 = vld [vmem:[%s3796_s10 + $0x70] sm:$0xff] }
  0xe9   : > { %1973 = vst.msk [vmem:[#allocation2 + $0x40] sm:$0xff] %vm1964_vm0, %v951_v22  ;;  %v1664_v25 = vpop.f32.mrf.mxu1  ;;  %v3612_v3 = vld [vmem:[%s3796_s10 + $0x170] sm:$0xff] }
  0xea   : > { %2900 = vst.msk [vmem:[%s3885_s20 + $0x84] sm:$0xf] %vm2865_vm1, %v2834_v18  ;;  %v2803_v26 = vpack.c.bf16 %v2739_v19, %v2739_v19  ;;  %v2639_v27 = vmax.f32 %v2543_v17, %v2547_v20  ;;  %v2356_v28 = vld [vmem:[#allocation3 + $0x38] sm:$0xff] }
  0xeb   : > { %v2484_v30 = vmax.f32 %v2228_v21, %v2356_v28  ;;  %2101 = vst.msk [vmem:[#allocation3 + $0x40] sm:$0xff] %vm1964_vm0, %v1664_v25  ;;  %990 = vmatmul.bf16.gmra.mxu0 %v3578_v14  ;;  %1150 = vmatmul.bf16.gmra.mxu2 %v3610_v15 }
  0xec   : > { %2868 = vst.msk [vmem:[%s3885_s20 + $0x8] sm:$0xf] %vm2865_vm1, %v2803_v26  ;;  %v2707_v31 = vadd.f32 %v3871_v16, %v2639_v27  ;;  %1703 = vmatmul.bf16.gmra.mxu1 %v3642_v23  ;;  %1863 = vmatmul.bf16.gmra.mxu3 %v3674_v24 }
  0xed   : > { %v2608_v34 = vmax.f32 %v2480_v29, %v2484_v30  ;;  %v3581_v29 = vld [vmem:[%s3796_s10 + $0x78] sm:$0xff] }
  0xee   : > { %v2771_v35 = vmax.f32 %v2707_v31, 0.0  ;;  %v2292_v36 = vld [vmem:[#allocation2 + $0x238] sm:$0xff]  ;;  %v1111_v37 = vpop.f32.mrf.mxu2 }
  0xef   : > { %v2676_v38 = vadd.f32 %v3871_v16, %v2608_v34  ;;  %v2420_v39 = vld [vmem:[#allocation3 + $0x238] sm:$0xff]  ;;  %2037 = vst.msk [vmem:[#allocation2 + $0x240] sm:$0xff] %vm1964_vm0, %v1111_v37  ;;  %v1824_v40 = vpop.f32.mrf.mxu3 }
  0xf0   : > { %v2835_v42 = vpack.c.bf16 %v2771_v35, %v2771_v35  ;;  %v2548_v43 = vmax.f32 %v2292_v36, %v2420_v39  ;;  %2165 = vst.msk [vmem:[#allocation3 + $0x240] sm:$0xff] %vm1964_vm0, %v1824_v40  ;;  %v953_v44 = vpop.f32.mrf.mxu0  ;;  %v2229_v9 = vld [vmem:[#allocation2 + $0x40] sm:$0xff]  ;;  %v3613_v30 = vld [vmem:[%s3796_s10 + $0x178] sm:$0xff] }
  0xf1   : > { %v2740_v45 = vmax.f32 %v2676_v38, 0.0  ;;  %1974 = vst.msk [vmem:[#allocation2 + $0x48] sm:$0xff] %vm1964_vm0, %v953_v44  ;;  %v1666_v46 = vpop.f32.mrf.mxu1  ;;  %v3645_v36 = vld [vmem:[%s3801_s13 + $0x78] sm:$0xff] }
  0xf2   : > { %2901 = vst.msk [vmem:[%s3885_s20 + $0x88] sm:$0xf] %vm2865_vm1, %v2835_v42  ;;  %v2640_v47 = vmax.f32 %v2544_v41, %v2548_v43  ;;  %v2357_v10 = vld [vmem:[#allocation3 + $0x40] sm:$0xff]  ;;  %v3677_v37 = vld [vmem:[%s3801_s13 + $0x178] sm:$0xff] }
  0xf3   : > { %v2804_v48 = vpack.c.bf16 %v2740_v45, %v2740_v45  ;;  %2102 = vst.msk [vmem:[#allocation3 + $0x48] sm:$0xff] %vm1964_vm0, %v1666_v46  ;;  %v2485_v17 = vmax.f32 %v2229_v9, %v2357_v10 }
  0xf4   : > { %v2708_v49 = vadd.f32 %v3871_v16, %v2640_v47 }
  0xf5   : > { %2870 = vst.msk [vmem:[%s3885_s20 + $0xc] sm:$0x3] %vm2869_vm2, %v2804_v48 }
  0xf6   : > { %v2772_v50 = vmax.f32 %v2708_v49, 0.0  ;;  %v1113_v51 = vpop.f32.mrf.mxu2  ;;  %v2293_v20 = vld [vmem:[#allocation2 + $0x240] sm:$0xff] }
  0xf7   : > { %2038 = vst.msk [vmem:[#allocation2 + $0x248] sm:$0xff] %vm1964_vm0, %v1113_v51  ;;  %v1826_v52 = vpop.f32.mrf.mxu3  ;;  %v2421_v21 = vld [vmem:[#allocation3 + $0x240] sm:$0xff] }
  0xf8   : > { %v2836_v55 = vpack.c.bf16 %v2772_v50, %v2772_v50  ;;  %2166 = vst.msk [vmem:[#allocation3 + $0x248] sm:$0xff] %vm1964_vm0, %v1826_v52  ;;  %v956_v56 = vpop.f32.mrf.mxu0  ;;  %v2230_v22 = vld [vmem:[#allocation2 + $0x48] sm:$0xff]  ;;  %v2549_v31 = vmax.f32 %v2293_v20, %v2421_v21 }
  0xf9   : > { %1975 = vst.msk [vmem:[#allocation2 + $0x50] sm:$0xff] %vm1964_vm0, %v956_v56  ;;  %v1669_v59 = vpop.f32.mrf.mxu1 }
  0xfa   : > { %2902 = vst.msk [vmem:[%s3885_s20 + $0x8c] sm:$0x3] %vm2869_vm2, %v2836_v55  ;;  %v2358_v23 = vld [vmem:[#allocation3 + $0x48] sm:$0xff] }
  0xfb   : > { %2103 = vst.msk [vmem:[#allocation3 + $0x50] sm:$0xff] %vm1964_vm0, %v1669_v59  ;;  %995 = vmatmul.bf16.gmra.mxu0 %v3579_v53  ;;  %1155 = vmatmul.bf16.gmra.mxu2 %v3611_v54  ;;  %v2486_v40 = vmax.f32 %v2230_v22, %v2358_v23 }
  0xfc   : > { %1708 = vmatmul.bf16.gmra.mxu1 %v3643_v57  ;;  %1868 = vmatmul.bf16.gmra.mxu3 %v3675_v58 }
  0xfe   : > { %v1116_v60 = vpop.f32.mrf.mxu2  ;;  %v2294_v46 = vld [vmem:[#allocation2 + $0x248] sm:$0xff] }
  0xff   : > { %2039 = vst.msk [vmem:[#allocation2 + $0x250] sm:$0xff] %vm1964_vm0, %v1116_v60  ;;  %v1829_v61 = vpop.f32.mrf.mxu3  ;;  %v2422_v47 = vld [vmem:[#allocation3 + $0x248] sm:$0xff] }
 0x100   : > { %2167 = vst.msk [vmem:[#allocation3 + $0x250] sm:$0xff] %vm1964_vm0, %v1829_v61  ;;  %v958_v62 = vpop.f32.mrf.mxu0  ;;  %v2231_v52 = vld [vmem:[#allocation2 + $0x50] sm:$0xff]  ;;  %v2550_v56 = vmax.f32 %v2294_v46, %v2422_v47 }
 0x101   : > { %1976 = vst.msk [vmem:[#allocation2 + $0x58] sm:$0xff] %vm1964_vm0, %v958_v62  ;;  %v1671_v63 = vpop.f32.mrf.mxu1 }
 0x102   : > { %2104 = vst.msk [vmem:[#allocation3 + $0x58] sm:$0xff] %vm1964_vm0, %v1671_v63  ;;  %v2359_v53 = vld [vmem:[#allocation3 + $0x50] sm:$0xff] }
 0x106   : > { %v1118_v0 = vpop.f32.mrf.mxu2 }
 0x107   : > { %2040 = vst.msk [vmem:[#allocation2 + $0x258] sm:$0xff] %vm1964_vm0, %v1118_v0  ;;  %v1831_v1 = vpop.f32.mrf.mxu3  ;;  %v2487_v0 = vmax.f32 %v2231_v52, %v2359_v53 }
 0x108   : > { %2168 = vst.msk [vmem:[#allocation3 + $0x258] sm:$0xff] %vm1964_vm0, %v1831_v1  ;;  %v961_v4 = vpop.f32.mrf.mxu0 }
 0x109   : > { %1977 = vst.msk [vmem:[#allocation2 + $0x60] sm:$0xff] %vm1964_vm0, %v961_v4  ;;  %v1674_v7 = vpop.f32.mrf.mxu1  ;;  %v2360_v9 = vld [vmem:[#allocation3 + $0x58] sm:$0xff] }
 0x10a   : > { %2105 = vst.msk [vmem:[#allocation3 + $0x60] sm:$0xff] %vm1964_vm0, %v1674_v7  ;;  %v2423_v7 = vld [vmem:[#allocation3 + $0x250] sm:$0xff] }
 0x10b   : > { %1000 = vmatmul.bf16.gmra.mxu0 %v3580_v2  ;;  %1160 = vmatmul.bf16.gmra.mxu2 %v3612_v3 }
 0x10c   : > { %1713 = vmatmul.bf16.gmra.mxu1 %v3644_v5  ;;  %1873 = vmatmul.bf16.gmra.mxu3 %v3676_v6  ;;  %v2295_v6 = vld [vmem:[#allocation2 + $0x250] sm:$0xff] }
 0x10e   : > { %v1121_v8 = vpop.f32.mrf.mxu2 }
 0x10f   : > { %2041 = vst.msk [vmem:[#allocation2 + $0x260] sm:$0xff] %vm1964_vm0, %v1121_v8  ;;  %v1834_v11 = vpop.f32.mrf.mxu3  ;;  %v2232_v8 = vld [vmem:[#allocation2 + $0x58] sm:$0xff] }
 0x110   : > { %v2233_v12 = vld [vmem:[#allocation2 + $0x60] sm:$0xff]  ;;  %2169 = vst.msk [vmem:[#allocation3 + $0x260] sm:$0xff] %vm1964_vm0, %v1834_v11  ;;  %v963_v13 = vpop.f32.mrf.mxu0 }
 0x111   : > { %v2361_v14 = vld [vmem:[#allocation3 + $0x60] sm:$0xff]  ;;  %1978 = vst.msk [vmem:[#allocation2 + $0x68] sm:$0xff] %vm1964_vm0, %v963_v13  ;;  %v1676_v15 = vpop.f32.mrf.mxu1 }
 0x112   : > { %v2489_v18 = vmax.f32 %v2233_v12, %v2361_v14  ;;  %2106 = vst.msk [vmem:[#allocation3 + $0x68] sm:$0xff] %vm1964_vm0, %v1676_v15 }
 0x114   : > { %v2609_v19 = vmax.f32 %v2485_v17, %v2489_v18  ;;  %v3582_v17 = vld [vmem:[%s3796_s10 + $0x80] sm:$0xff] }
 0x115   : > { %v3614_v18 = vld [vmem:[%s3796_s10 + $0x180] sm:$0xff] }
 0x116   : > { %v2677_v24 = vadd.f32 %v3871_v16, %v2609_v19  ;;  %v2297_v25 = vld [vmem:[#allocation2 + $0x260] sm:$0xff]  ;;  %v1123_v26 = vpop.f32.mrf.mxu2  ;;  %v2551_v19 = vmax.f32 %v2295_v6, %v2423_v7  ;;  %v3648_v7 = vld [vmem:[%s3801_s13 + $0x90] sm:$0xff] }
 0x117   : > { %v2425_v27 = vld [vmem:[#allocation3 + $0x260] sm:$0xff]  ;;  %2042 = vst.msk [vmem:[#allocation2 + $0x268] sm:$0xff] %vm1964_vm0, %v1123_v26  ;;  %v1836_v28 = vpop.f32.mrf.mxu3 }
 0x118   : > { %v2741_v32 = vmax.f32 %v2677_v24, 0.0  ;;  %v2553_v33 = vmax.f32 %v2297_v25, %v2425_v27  ;;  %v2234_v34 = vld [vmem:[#allocation2 + $0x68] sm:$0xff]  ;;  %2170 = vst.msk [vmem:[#allocation3 + $0x268] sm:$0xff] %vm1964_vm0, %v1836_v28  ;;  %v966_v35 = vpop.f32.mrf.mxu0  ;;  %v3646_v25 = vld [vmem:[%s3801_s13 + $0x80] sm:$0xff] }
 0x119   : > { %v2362_v38 = vld [vmem:[#allocation3 + $0x68] sm:$0xff]  ;;  %1979 = vst.msk [vmem:[#allocation2 + $0x70] sm:$0xff] %vm1964_vm0, %v966_v35  ;;  %v1679_v39 = vpop.f32.mrf.mxu1  ;;  %v3678_v26 = vld [vmem:[%s3801_s13 + $0x180] sm:$0xff]  ;;  %v2424_v35 = vld [vmem:[#allocation3 + $0x258] sm:$0xff] }
 0x11a   : > { %v2805_v41 = vpack.c.bf16 %v2741_v32, %v2741_v32  ;;  %v2641_v42 = vmax.f32 %v2549_v31, %v2553_v33  ;;  %v2490_v43 = vmax.f32 %v2234_v34, %v2362_v38  ;;  %2107 = vst.msk [vmem:[#allocation3 + $0x70] sm:$0xff] %vm1964_vm0, %v1679_v39  ;;  %v2488_v31 = vmax.f32 %v2232_v8, %v2360_v9  ;;  %v2296_v34 = vld [vmem:[#allocation2 + $0x258] sm:$0xff]  ;;  %v3680_v8 = vld [vmem:[%s3801_s13 + $0x190] sm:$0xff] }
 0x11b   : > { %1005 = vmatmul.bf16.gmra.mxu0 %v3581_v29  ;;  %1165 = vmatmul.bf16.gmra.mxu2 %v3613_v30 }
 0x11c   : > { %2871 = vst.msk [vmem:[%s3885_s20 + $0x10] sm:$0xf] %vm2865_vm1, %v2805_v41  ;;  %v2709_v44 = vadd.f32 %v3871_v16, %v2641_v42  ;;  %v2610_v45 = vmax.f32 %v2486_v40, %v2490_v43  ;;  %1718 = vmatmul.bf16.gmra.mxu1 %v3645_v36  ;;  %1878 = vmatmul.bf16.gmra.mxu3 %v3677_v37 }
 0x11d   : > { %v2552_v43 = vmax.f32 %v2296_v34, %v2424_v35 }
 0x11e   : > { %v2773_v48 = vmax.f32 %v2709_v44, 0.0  ;;  %v2678_v49 = vadd.f32 %v3871_v16, %v2610_v45  ;;  %v2298_v50 = vld [vmem:[#allocation2 + $0x268] sm:$0xff]  ;;  %v1126_v51 = vpop.f32.mrf.mxu2 }
 0x11f   : > { %v2426_v54 = vld [vmem:[#allocation3 + $0x268] sm:$0xff]  ;;  %2043 = vst.msk [vmem:[#allocation2 + $0x270] sm:$0xff] %vm1964_vm0, %v1126_v51  ;;  %v1839_v55 = vpop.f32.mrf.mxu3 }
 0x120   : > { %v2837_v57 = vpack.c.bf16 %v2773_v48, %v2773_v48  ;;  %v2742_v58 = vmax.f32 %v2678_v49, 0.0  ;;  %v2554_v59 = vmax.f32 %v2298_v50, %v2426_v54  ;;  %v2235_v60 = vld [vmem:[#allocation2 + $0x70] sm:$0xff]  ;;  %2171 = vst.msk [vmem:[#allocation3 + $0x270] sm:$0xff] %vm1964_vm0, %v1839_v55  ;;  %v968_v61 = vpop.f32.mrf.mxu0  ;;  %v3583_v55 = vld [vmem:[%s3796_s10 + $0x88] sm:$0xff] }
 0x121   : > { %v2363_v62 = vld [vmem:[#allocation3 + $0x70] sm:$0xff]  ;;  %1980 = vst.msk [vmem:[#allocation2 + $0x78] sm:$0xff] %vm1964_vm0, %v968_v61  ;;  %v1681_v63 = vpop.f32.mrf.mxu1 }
 0x122   : > { %2903 = vst.msk [vmem:[%s3885_s20 + $0x90] sm:$0xf] %vm2865_vm1, %v2837_v57  ;;  %v2806_v1 = vpack.c.bf16 %v2742_v58, %v2742_v58  ;;  %v2642_v2 = vmax.f32 %v2550_v56, %v2554_v59  ;;  %v2491_v3 = vmax.f32 %v2235_v60, %v2363_v62  ;;  %v3615_v56 = vld [vmem:[%s3796_s10 + $0x188] sm:$0xff] }
 0x123   : > { %2108 = vst.msk [vmem:[#allocation3 + $0x78] sm:$0xff] %vm1964_vm0, %v1681_v63  ;;  %v3647_v59 = vld [vmem:[%s3801_s13 + $0x88] sm:$0xff] }
 0x124   : > { %2872 = vst.msk [vmem:[%s3885_s20 + $0x14] sm:$0xf] %vm2865_vm1, %v2806_v1  ;;  %v2710_v4 = vadd.f32 %v3871_v16, %v2642_v2  ;;  %v2611_v5 = vmax.f32 %v2487_v0, %v2491_v3  ;;  %v3679_v60 = vld [vmem:[%s3801_s13 + $0x188] sm:$0xff] }
 0x126   : > { %v2774_v10 = vmax.f32 %v2710_v4, 0.0  ;;  %v2679_v11 = vadd.f32 %v3871_v16, %v2611_v5  ;;  %v2299_v12 = vld [vmem:[#allocation2 + $0x270] sm:$0xff]  ;;  %v1128_v13 = vpop.f32.mrf.mxu2 }
 0x127   : > { %v2427_v14 = vld [vmem:[#allocation3 + $0x270] sm:$0xff]  ;;  %2044 = vst.msk [vmem:[#allocation2 + $0x278] sm:$0xff] %vm1964_vm0, %v1128_v13  ;;  %v1841_v15 = vpop.f32.mrf.mxu3 }
 0x128   : > { %v2838_v20 = vpack.c.bf16 %v2774_v10, %v2774_v10  ;;  %v2743_v21 = vmax.f32 %v2679_v11, 0.0  ;;  %v2555_v22 = vmax.f32 %v2299_v12, %v2427_v14  ;;  %v2236_v23 = vld [vmem:[#allocation2 + $0x78] sm:$0xff]  ;;  %2172 = vst.msk [vmem:[#allocation3 + $0x278] sm:$0xff] %vm1964_vm0, %v1841_v15  ;;  %v971_v24 = vpop.f32.mrf.mxu0  ;;  %v3584_v4 = vld [vmem:[%s3796_s10 + $0x90] sm:$0xff] }
 0x129   : > { %1981 = vst.msk [vmem:[#allocation2 + $0x80] sm:$0xff] %vm1964_vm0, %v971_v24  ;;  %v1684_v27 = vpop.f32.mrf.mxu1  ;;  %v3616_v5 = vld [vmem:[%s3796_s10 + $0x190] sm:$0xff] }
 0x12a   : > { %2904 = vst.msk [vmem:[%s3885_s20 + $0x94] sm:$0xf] %vm2865_vm1, %v2838_v20  ;;  %v2807_v28 = vpack.c.bf16 %v2743_v21, %v2743_v21  ;;  %v2643_v29 = vmax.f32 %v2551_v19, %v2555_v22  ;;  %v2364_v30 = vld [vmem:[#allocation3 + $0x78] sm:$0xff] }
 0x12b   : > { %v2492_v32 = vmax.f32 %v2236_v23, %v2364_v30  ;;  %2109 = vst.msk [vmem:[#allocation3 + $0x80] sm:$0xff] %vm1964_vm0, %v1684_v27  ;;  %1010 = vmatmul.bf16.gmra.mxu0 %v3582_v17  ;;  %1170 = vmatmul.bf16.gmra.mxu2 %v3614_v18 }
 0x12c   : > { %2873 = vst.msk [vmem:[%s3885_s20 + $0x18] sm:$0xf] %vm2865_vm1, %v2807_v28  ;;  %v2711_v33 = vadd.f32 %v3871_v16, %v2643_v29  ;;  %1723 = vmatmul.bf16.gmra.mxu1 %v3646_v25  ;;  %1883 = vmatmul.bf16.gmra.mxu3 %v3678_v26 }
 0x12d   : > { %v2612_v36 = vmax.f32 %v2488_v31, %v2492_v32  ;;  %v3585_v31 = vld [vmem:[%s3796_s10 + $0x98] sm:$0xff] }
 0x12e   : > { %v2775_v37 = vmax.f32 %v2711_v33, 0.0  ;;  %v2300_v38 = vld [vmem:[#allocation2 + $0x278] sm:$0xff]  ;;  %v1131_v39 = vpop.f32.mrf.mxu2 }
 0x12f   : > { %v2680_v40 = vadd.f32 %v3871_v16, %v2612_v36  ;;  %v2428_v41 = vld [vmem:[#allocation3 + $0x278] sm:$0xff]  ;;  %2045 = vst.msk [vmem:[#allocation2 + $0x280] sm:$0xff] %vm1964_vm0, %v1131_v39  ;;  %v1844_v42 = vpop.f32.mrf.mxu3 }
 0x130   : > { %v2839_v44 = vpack.c.bf16 %v2775_v37, %v2775_v37  ;;  %v2556_v45 = vmax.f32 %v2300_v38, %v2428_v41  ;;  %2173 = vst.msk [vmem:[#allocation3 + $0x280] sm:$0xff] %vm1964_vm0, %v1844_v42  ;;  %v973_v46 = vpop.f32.mrf.mxu0  ;;  %v2237_v11 = vld [vmem:[#allocation2 + $0x80] sm:$0xff]  ;;  %v3617_v32 = vld [vmem:[%s3796_s10 + $0x198] sm:$0xff] }
 0x131   : > { %v2744_v47 = vmax.f32 %v2680_v40, 0.0  ;;  %1982 = vst.msk [vmem:[#allocation2 + $0x88] sm:$0xff] %vm1964_vm0, %v973_v46  ;;  %v1686_v48 = vpop.f32.mrf.mxu1  ;;  %v3649_v38 = vld [vmem:[%s3801_s13 + $0x98] sm:$0xff] }
 0x132   : > { %2905 = vst.msk [vmem:[%s3885_s20 + $0x98] sm:$0xf] %vm2865_vm1, %v2839_v44  ;;  %v2644_v49 = vmax.f32 %v2552_v43, %v2556_v45  ;;  %v2365_v12 = vld [vmem:[#allocation3 + $0x80] sm:$0xff]  ;;  %v3681_v39 = vld [vmem:[%s3801_s13 + $0x198] sm:$0xff] }
 0x133   : > { %v2808_v50 = vpack.c.bf16 %v2744_v47, %v2744_v47  ;;  %2110 = vst.msk [vmem:[#allocation3 + $0x88] sm:$0xff] %vm1964_vm0, %v1686_v48  ;;  %v2493_v19 = vmax.f32 %v2237_v11, %v2365_v12 }
 0x134   : > { %v2712_v51 = vadd.f32 %v3871_v16, %v2644_v49 }
 0x135   : > { %2874 = vst.msk [vmem:[%s3885_s20 + $0x1c] sm:$0x3] %vm2869_vm2, %v2808_v50 }
 0x136   : > { %v2776_v52 = vmax.f32 %v2712_v51, 0.0  ;;  %v1133_v53 = vpop.f32.mrf.mxu2  ;;  %v2301_v22 = vld [vmem:[#allocation2 + $0x280] sm:$0xff] }
 0x137   : > { %2046 = vst.msk [vmem:[#allocation2 + $0x288] sm:$0xff] %vm1964_vm0, %v1133_v53  ;;  %v1846_v54 = vpop.f32.mrf.mxu3  ;;  %v2429_v23 = vld [vmem:[#allocation3 + $0x280] sm:$0xff] }
 0x138   : > { %v2840_v57 = vpack.c.bf16 %v2776_v52, %v2776_v52  ;;  %2174 = vst.msk [vmem:[#allocation3 + $0x288] sm:$0xff] %vm1964_vm0, %v1846_v54  ;;  %v976_v58 = vpop.f32.mrf.mxu0  ;;  %v2238_v24 = vld [vmem:[#allocation2 + $0x88] sm:$0xff]  ;;  %v2557_v33 = vmax.f32 %v2301_v22, %v2429_v23 }
 0x139   : > { %1983 = vst.msk [vmem:[#allocation2 + $0x90] sm:$0xff] %vm1964_vm0, %v976_v58  ;;  %v1689_v61 = vpop.f32.mrf.mxu1 }
 0x13a   : > { %2906 = vst.msk [vmem:[%s3885_s20 + $0x9c] sm:$0x3] %vm2869_vm2, %v2840_v57  ;;  %v2366_v25 = vld [vmem:[#allocation3 + $0x88] sm:$0xff] }
 0x13b   : > { %2111 = vst.msk [vmem:[#allocation3 + $0x90] sm:$0xff] %vm1964_vm0, %v1689_v61  ;;  %1015 = vmatmul.bf16.gmra.mxu0 %v3583_v55  ;;  %1175 = vmatmul.bf16.gmra.mxu2 %v3615_v56  ;;  %v2494_v42 = vmax.f32 %v2238_v24, %v2366_v25 }
 0x13c   : > { %1728 = vmatmul.bf16.gmra.mxu1 %v3647_v59  ;;  %1888 = vmatmul.bf16.gmra.mxu3 %v3679_v60 }
 0x13e   : > { %v1136_v62 = vpop.f32.mrf.mxu2  ;;  %v2302_v48 = vld [vmem:[#allocation2 + $0x288] sm:$0xff] }
 0x13f   : > { %2047 = vst.msk [vmem:[#allocation2 + $0x290] sm:$0xff] %vm1964_vm0, %v1136_v62  ;;  %v1849_v63 = vpop.f32.mrf.mxu3  ;;  %v2430_v49 = vld [vmem:[#allocation3 + $0x288] sm:$0xff] }
 0x140   : > { %2175 = vst.msk [vmem:[#allocation3 + $0x290] sm:$0xff] %vm1964_vm0, %v1849_v63  ;;  %v978_v0 = vpop.f32.mrf.mxu0  ;;  %v2239_v54 = vld [vmem:[#allocation2 + $0x90] sm:$0xff]  ;;  %v2558_v58 = vmax.f32 %v2302_v48, %v2430_v49 }
 0x141   : > { %1984 = vst.msk [vmem:[#allocation2 + $0x98] sm:$0xff] %vm1964_vm0, %v978_v0  ;;  %v1691_v1 = vpop.f32.mrf.mxu1 }
 0x142   : > { %2112 = vst.msk [vmem:[#allocation3 + $0x98] sm:$0xff] %vm1964_vm0, %v1691_v1  ;;  %v2367_v55 = vld [vmem:[#allocation3 + $0x90] sm:$0xff] }
 0x146   : > { %v1138_v2 = vpop.f32.mrf.mxu2 }
 0x147   : > { %2048 = vst.msk [vmem:[#allocation2 + $0x298] sm:$0xff] %vm1964_vm0, %v1138_v2  ;;  %v1851_v3 = vpop.f32.mrf.mxu3  ;;  %v2495_v2 = vmax.f32 %v2239_v54, %v2367_v55 }
 0x148   : > { %2176 = vst.msk [vmem:[#allocation3 + $0x298] sm:$0xff] %vm1964_vm0, %v1851_v3  ;;  %v981_v6 = vpop.f32.mrf.mxu0 }
 0x149   : > { %1985 = vst.msk [vmem:[#allocation2 + $0xa0] sm:$0xff] %vm1964_vm0, %v981_v6  ;;  %v1694_v9 = vpop.f32.mrf.mxu1  ;;  %v2368_v11 = vld [vmem:[#allocation3 + $0x98] sm:$0xff] }
 0x14a   : > { %2113 = vst.msk [vmem:[#allocation3 + $0xa0] sm:$0xff] %vm1964_vm0, %v1694_v9  ;;  %v2431_v9 = vld [vmem:[#allocation3 + $0x290] sm:$0xff] }
 0x14b   : > { %1020 = vmatmul.bf16.gmra.mxu0 %v3584_v4  ;;  %1180 = vmatmul.bf16.gmra.mxu2 %v3616_v5 }
 0x14c   : > { %1733 = vmatmul.bf16.gmra.mxu1 %v3648_v7  ;;  %1893 = vmatmul.bf16.gmra.mxu3 %v3680_v8  ;;  %v2303_v8 = vld [vmem:[#allocation2 + $0x290] sm:$0xff] }
 0x14e   : > { %v1141_v10 = vpop.f32.mrf.mxu2 }
 0x14f   : > { %2049 = vst.msk [vmem:[#allocation2 + $0x2a0] sm:$0xff] %vm1964_vm0, %v1141_v10  ;;  %v1854_v13 = vpop.f32.mrf.mxu3  ;;  %v2240_v10 = vld [vmem:[#allocation2 + $0x98] sm:$0xff] }
 0x150   : > { %v2241_v14 = vld [vmem:[#allocation2 + $0xa0] sm:$0xff]  ;;  %2177 = vst.msk [vmem:[#allocation3 + $0x2a0] sm:$0xff] %vm1964_vm0, %v1854_v13  ;;  %v983_v15 = vpop.f32.mrf.mxu0 }
 0x151   : > { %v2369_v17 = vld [vmem:[#allocation3 + $0xa0] sm:$0xff]  ;;  %1986 = vst.msk [vmem:[#allocation2 + $0xa8] sm:$0xff] %vm1964_vm0, %v983_v15  ;;  %v1696_v18 = vpop.f32.mrf.mxu1 }
 0x152   : > { %v2497_v20 = vmax.f32 %v2241_v14, %v2369_v17  ;;  %2114 = vst.msk [vmem:[#allocation3 + $0xa8] sm:$0xff] %vm1964_vm0, %v1696_v18 }
 0x154   : > { %v2613_v21 = vmax.f32 %v2493_v19, %v2497_v20  ;;  %v3586_v19 = vld [vmem:[%s3796_s10 + $0xa0] sm:$0xff] }
 0x155   : > { %v3618_v20 = vld [vmem:[%s3796_s10 + $0x1a0] sm:$0xff] }
 0x156   : > { %v2681_v26 = vadd.f32 %v3871_v16, %v2613_v21  ;;  %v2305_v27 = vld [vmem:[#allocation2 + $0x2a0] sm:$0xff]  ;;  %v1143_v28 = vpop.f32.mrf.mxu2  ;;  %v2559_v21 = vmax.f32 %v2303_v8, %v2431_v9  ;;  %v3652_v8 = vld [vmem:[%s3801_s13 + $0xb0] sm:$0xff] }
 0x157   : > { %v2433_v29 = vld [vmem:[#allocation3 + $0x2a0] sm:$0xff]  ;;  %2050 = vst.msk [vmem:[#allocation2 + $0x2a8] sm:$0xff] %vm1964_vm0, %v1143_v28  ;;  %v1856_v30 = vpop.f32.mrf.mxu3  ;;  %v3684_v9 = vld [vmem:[%s3801_s13 + $0x1b0] sm:$0xff] }
 0x158   : > { %v2745_v34 = vmax.f32 %v2681_v26, 0.0  ;;  %v2561_v35 = vmax.f32 %v2305_v27, %v2433_v29  ;;  %v2242_v36 = vld [vmem:[#allocation2 + $0xa8] sm:$0xff]  ;;  %2178 = vst.msk [vmem:[#allocation3 + $0x2a8] sm:$0xff] %vm1964_vm0, %v1856_v30  ;;  %v986_v37 = vpop.f32.mrf.mxu0  ;;  %v3650_v27 = vld [vmem:[%s3801_s13 + $0xa0] sm:$0xff] }
 0x159   : > { %v2370_v40 = vld [vmem:[#allocation3 + $0xa8] sm:$0xff]  ;;  %1987 = vst.msk [vmem:[#allocation2 + $0xb0] sm:$0xff] %vm1964_vm0, %v986_v37  ;;  %v1699_v41 = vpop.f32.mrf.mxu1  ;;  %v3682_v28 = vld [vmem:[%s3801_s13 + $0x1a0] sm:$0xff]  ;;  %v2432_v37 = vld [vmem:[#allocation3 + $0x298] sm:$0xff] }
 0x15a   : > { %v2809_v43 = vpack.c.bf16 %v2745_v34, %v2745_v34  ;;  %v2645_v44 = vmax.f32 %v2557_v33, %v2561_v35  ;;  %v2498_v45 = vmax.f32 %v2242_v36, %v2370_v40  ;;  %2115 = vst.msk [vmem:[#allocation3 + $0xb0] sm:$0xff] %vm1964_vm0, %v1699_v41  ;;  %v2496_v33 = vmax.f32 %v2240_v10, %v2368_v11  ;;  %v2304_v36 = vld [vmem:[#allocation2 + $0x298] sm:$0xff] }
 0x15b   : > { %1025 = vmatmul.bf16.gmra.mxu0 %v3585_v31  ;;  %1185 = vmatmul.bf16.gmra.mxu2 %v3617_v32 }
 0x15c   : > { %2875 = vst.msk [vmem:[%s3885_s20 + $0x20] sm:$0xf] %vm2865_vm1, %v2809_v43  ;;  %v2713_v46 = vadd.f32 %v3871_v16, %v2645_v44  ;;  %v2614_v47 = vmax.f32 %v2494_v42, %v2498_v45  ;;  %1738 = vmatmul.bf16.gmra.mxu1 %v3649_v38  ;;  %1898 = vmatmul.bf16.gmra.mxu3 %v3681_v39 }
 0x15d   : > { %v2560_v45 = vmax.f32 %v2304_v36, %v2432_v37 }
 0x15e   : > { %v2777_v50 = vmax.f32 %v2713_v46, 0.0  ;;  %v2682_v51 = vadd.f32 %v3871_v16, %v2614_v47  ;;  %v2306_v52 = vld [vmem:[#allocation2 + $0x2a8] sm:$0xff]  ;;  %v1146_v53 = vpop.f32.mrf.mxu2 }
 0x15f   : > { %v2434_v56 = vld [vmem:[#allocation3 + $0x2a8] sm:$0xff]  ;;  %2051 = vst.msk [vmem:[#allocation2 + $0x2b0] sm:$0xff] %vm1964_vm0, %v1146_v53  ;;  %v1859_v57 = vpop.f32.mrf.mxu3 }
 0x160   : > { %v2841_v59 = vpack.c.bf16 %v2777_v50, %v2777_v50  ;;  %v2746_v60 = vmax.f32 %v2682_v51, 0.0  ;;  %v2562_v61 = vmax.f32 %v2306_v52, %v2434_v56  ;;  %v2243_v62 = vld [vmem:[#allocation2 + $0xb0] sm:$0xff]  ;;  %2179 = vst.msk [vmem:[#allocation3 + $0x2b0] sm:$0xff] %vm1964_vm0, %v1859_v57  ;;  %v988_v63 = vpop.f32.mrf.mxu0  ;;  %v3587_v57 = vld [vmem:[%s3796_s10 + $0xa8] sm:$0xff] }
 0x161   : > { %v2371_v0 = vld [vmem:[#allocation3 + $0xb0] sm:$0xff]  ;;  %1988 = vst.msk [vmem:[#allocation2 + $0xb8] sm:$0xff] %vm1964_vm0, %v988_v63  ;;  %v1701_v1 = vpop.f32.mrf.mxu1 }
 0x162   : > { %2907 = vst.msk [vmem:[%s3885_s20 + $0xa0] sm:$0xf] %vm2865_vm1, %v2841_v59  ;;  %v2810_v3 = vpack.c.bf16 %v2746_v60, %v2746_v60  ;;  %v2646_v4 = vmax.f32 %v2558_v58, %v2562_v61  ;;  %v2499_v5 = vmax.f32 %v2243_v62, %v2371_v0  ;;  %v3619_v58 = vld [vmem:[%s3796_s10 + $0x1a8] sm:$0xff] }
 0x163   : > { %2116 = vst.msk [vmem:[#allocation3 + $0xb8] sm:$0xff] %vm1964_vm0, %v1701_v1  ;;  %v3651_v61 = vld [vmem:[%s3801_s13 + $0xa8] sm:$0xff] }
 0x164   : > { %2876 = vst.msk [vmem:[%s3885_s20 + $0x24] sm:$0xf] %vm2865_vm1, %v2810_v3  ;;  %v2714_v6 = vadd.f32 %v3871_v16, %v2646_v4  ;;  %v2615_v7 = vmax.f32 %v2495_v2, %v2499_v5  ;;  %v3683_v62 = vld [vmem:[%s3801_s13 + $0x1a8] sm:$0xff]  ;;  %v3588_v5 = vld [vmem:[%s3796_s10 + $0xb0] sm:$0xff] }
 0x166   : > { %v2778_v12 = vmax.f32 %v2714_v6, 0.0  ;;  %v2683_v13 = vadd.f32 %v3871_v16, %v2615_v7  ;;  %v2307_v14 = vld [vmem:[#allocation2 + $0x2b0] sm:$0xff]  ;;  %v1148_v15 = vpop.f32.mrf.mxu2 }
 0x167   : > { %v2435_v17 = vld [vmem:[#allocation3 + $0x2b0] sm:$0xff]  ;;  %2052 = vst.msk [vmem:[#allocation2 + $0x2b8] sm:$0xff] %vm1964_vm0, %v1148_v15  ;;  %v1861_v18 = vpop.f32.mrf.mxu3 }
 0x168   : > { %v2842_v22 = vpack.c.bf16 %v2778_v12, %v2778_v12  ;;  %v2747_v23 = vmax.f32 %v2683_v13, 0.0  ;;  %v2563_v24 = vmax.f32 %v2307_v14, %v2435_v17  ;;  %v2244_v25 = vld [vmem:[#allocation2 + $0xb8] sm:$0xff]  ;;  %2180 = vst.msk [vmem:[#allocation3 + $0x2b8] sm:$0xff] %vm1964_vm0, %v1861_v18  ;;  %v991_v26 = vpop.f32.mrf.mxu0  ;;  %v3620_v6 = vld [vmem:[%s3796_s10 + $0x1b0] sm:$0xff] }
 0x169   : > { %1989 = vst.msk [vmem:[#allocation2 + $0xc0] sm:$0xff] %vm1964_vm0, %v991_v26  ;;  %v1704_v29 = vpop.f32.mrf.mxu1 }
 0x16a   : > { %2908 = vst.msk [vmem:[%s3885_s20 + $0xa4] sm:$0xf] %vm2865_vm1, %v2842_v22  ;;  %v2811_v30 = vpack.c.bf16 %v2747_v23, %v2747_v23  ;;  %v2647_v31 = vmax.f32 %v2559_v21, %v2563_v24  ;;  %v2372_v32 = vld [vmem:[#allocation3 + $0xb8] sm:$0xff] }
 0x16b   : > { %v2500_v34 = vmax.f32 %v2244_v25, %v2372_v32  ;;  %2117 = vst.msk [vmem:[#allocation3 + $0xc0] sm:$0xff] %vm1964_vm0, %v1704_v29  ;;  %1030 = vmatmul.bf16.gmra.mxu0 %v3586_v19  ;;  %1190 = vmatmul.bf16.gmra.mxu2 %v3618_v20 }
 0x16c   : > { %2877 = vst.msk [vmem:[%s3885_s20 + $0x28] sm:$0xf] %vm2865_vm1, %v2811_v30  ;;  %v2715_v35 = vadd.f32 %v3871_v16, %v2647_v31  ;;  %1743 = vmatmul.bf16.gmra.mxu1 %v3650_v27  ;;  %1903 = vmatmul.bf16.gmra.mxu3 %v3682_v28  ;;  %v4099_v27 = vld [vmem:[%s4406_s3] ss:$0 sm:$0xff] }
 0x16d   : > { %v2616_v38 = vmax.f32 %v2496_v33, %v2500_v34  ;;  %v3589_v33 = vld [vmem:[%s3796_s10 + $0xb8] sm:$0xff] }
 0x16e   : > { %v2779_v39 = vmax.f32 %v2715_v35, 0.0  ;;  %v2308_v40 = vld [vmem:[#allocation2 + $0x2b8] sm:$0xff]  ;;  %v1151_v41 = vpop.f32.mrf.mxu2 }
 0x16f   : > { %v2684_v42 = vadd.f32 %v3871_v16, %v2616_v38  ;;  %v2436_v43 = vld [vmem:[#allocation3 + $0x2b8] sm:$0xff]  ;;  %2053 = vst.msk [vmem:[#allocation2 + $0x2c0] sm:$0xff] %vm1964_vm0, %v1151_v41  ;;  %v1864_v44 = vpop.f32.mrf.mxu3 }
 0x170   : > { %v2843_v46 = vpack.c.bf16 %v2779_v39, %v2779_v39  ;;  %v2564_v47 = vmax.f32 %v2308_v40, %v2436_v43  ;;  %2181 = vst.msk [vmem:[#allocation3 + $0x2c0] sm:$0xff] %vm1964_vm0, %v1864_v44  ;;  %v993_v48 = vpop.f32.mrf.mxu0  ;;  %v2245_v12 = vld [vmem:[#allocation2 + $0xc0] sm:$0xff]  ;;  %v3621_v34 = vld [vmem:[%s3796_s10 + $0x1b8] sm:$0xff] }
 0x171   : > { %v2748_v49 = vmax.f32 %v2684_v42, 0.0  ;;  %1990 = vst.msk [vmem:[#allocation2 + $0xc8] sm:$0xff] %vm1964_vm0, %v993_v48  ;;  %v1706_v50 = vpop.f32.mrf.mxu1  ;;  %v3653_v40 = vld [vmem:[%s3801_s13 + $0xb8] sm:$0xff] }
 0x172   : > { %2909 = vst.msk [vmem:[%s3885_s20 + $0xa8] sm:$0xf] %vm2865_vm1, %v2843_v46  ;;  %v2648_v51 = vmax.f32 %v2560_v45, %v2564_v47  ;;  %v2373_v13 = vld [vmem:[#allocation3 + $0xc0] sm:$0xff]  ;;  %v3685_v41 = vld [vmem:[%s3801_s13 + $0x1b8] sm:$0xff] }
 0x173   : > { %v2812_v52 = vpack.c.bf16 %v2748_v49, %v2748_v49  ;;  %2118 = vst.msk [vmem:[#allocation3 + $0xc8] sm:$0xff] %vm1964_vm0, %v1706_v50  ;;  %v2501_v20 = vmax.f32 %v2245_v12, %v2373_v13 }
 0x174   : > { %v2716_v53 = vadd.f32 %v3871_v16, %v2648_v51 }
 0x175   : > { %2878 = vst.msk [vmem:[%s3885_s20 + $0x2c] sm:$0x3] %vm2869_vm2, %v2812_v52 }
 0x176   : > { %v2780_v54 = vmax.f32 %v2716_v53, 0.0  ;;  %v1153_v55 = vpop.f32.mrf.mxu2  ;;  %v2309_v23 = vld [vmem:[#allocation2 + $0x2c0] sm:$0xff] }
 0x177   : > { %2054 = vst.msk [vmem:[#allocation2 + $0x2c8] sm:$0xff] %vm1964_vm0, %v1153_v55  ;;  %v1866_v56 = vpop.f32.mrf.mxu3  ;;  %v2437_v24 = vld [vmem:[#allocation3 + $0x2c0] sm:$0xff] }
 0x178   : > { %v2844_v59 = vpack.c.bf16 %v2780_v54, %v2780_v54  ;;  %2182 = vst.msk [vmem:[#allocation3 + $0x2c8] sm:$0xff] %vm1964_vm0, %v1866_v56  ;;  %v996_v60 = vpop.f32.mrf.mxu0  ;;  %v2246_v25 = vld [vmem:[#allocation2 + $0xc8] sm:$0xff]  ;;  %v2565_v35 = vmax.f32 %v2309_v23, %v2437_v24 }
 0x179   : > { %1991 = vst.msk [vmem:[#allocation2 + $0xd0] sm:$0xff] %vm1964_vm0, %v996_v60  ;;  %v1709_v63 = vpop.f32.mrf.mxu1 }
 0x17a   : > { %2910 = vst.msk [vmem:[%s3885_s20 + $0xac] sm:$0x3] %vm2869_vm2, %v2844_v59  ;;  %v2374_v26 = vld [vmem:[#allocation3 + $0xc8] sm:$0xff] }
 0x17b   : > { %2119 = vst.msk [vmem:[#allocation3 + $0xd0] sm:$0xff] %vm1964_vm0, %v1709_v63  ;;  %1035 = vmatmul.bf16.gmra.mxu0 %v3587_v57  ;;  %1195 = vmatmul.bf16.gmra.mxu2 %v3619_v58  ;;  %v2502_v44 = vmax.f32 %v2246_v25, %v2374_v26 }
 0x17c   : > { %1748 = vmatmul.bf16.gmra.mxu1 %v3651_v61  ;;  %1908 = vmatmul.bf16.gmra.mxu3 %v3683_v62 }
 0x17e   : > { %v1156_v16 = vpop.f32.mrf.mxu2  ;;  %v2310_v50 = vld [vmem:[#allocation2 + $0x2c8] sm:$0xff] }
 0x17f   : > { %2055 = vst.msk [vmem:[#allocation2 + $0x2d0] sm:$0xff] %vm1964_vm0, %v1156_v16  ;;  %v1869_v0 = vpop.f32.mrf.mxu3  ;;  %v2438_v51 = vld [vmem:[#allocation3 + $0x2c8] sm:$0xff] }
 0x180   : > { %2183 = vst.msk [vmem:[#allocation3 + $0x2d0] sm:$0xff] %vm1964_vm0, %v1869_v0  ;;  %v998_v1 = vpop.f32.mrf.mxu0  ;;  %v2247_v56 = vld [vmem:[#allocation2 + $0xd0] sm:$0xff]  ;;  %v2566_v60 = vmax.f32 %v2310_v50, %v2438_v51 }
 0x181   : > { %1992 = vst.msk [vmem:[#allocation2 + $0xd8] sm:$0xff] %vm1964_vm0, %v998_v1  ;;  %v1711_v2 = vpop.f32.mrf.mxu1 }
 0x182   : > { %2120 = vst.msk [vmem:[#allocation3 + $0xd8] sm:$0xff] %vm1964_vm0, %v1711_v2  ;;  %v2375_v57 = vld [vmem:[#allocation3 + $0xd0] sm:$0xff] }
 0x186   : > { %v1158_v3 = vpop.f32.mrf.mxu2 }
 0x187   : > { %2056 = vst.msk [vmem:[#allocation2 + $0x2d8] sm:$0xff] %vm1964_vm0, %v1158_v3  ;;  %v1871_v4 = vpop.f32.mrf.mxu3  ;;  %v2503_v3 = vmax.f32 %v2247_v56, %v2375_v57 }
 0x188   : > { %2184 = vst.msk [vmem:[#allocation3 + $0x2d8] sm:$0xff] %vm1964_vm0, %v1871_v4  ;;  %v1001_v7 = vpop.f32.mrf.mxu0 }
 0x189   : > { %1993 = vst.msk [vmem:[#allocation2 + $0xe0] sm:$0xff] %vm1964_vm0, %v1001_v7  ;;  %v1714_v10 = vpop.f32.mrf.mxu1  ;;  %v2376_v12 = vld [vmem:[#allocation3 + $0xd8] sm:$0xff] }
 0x18a   : > { %2121 = vst.msk [vmem:[#allocation3 + $0xe0] sm:$0xff] %vm1964_vm0, %v1714_v10  ;;  %v2439_v10 = vld [vmem:[#allocation3 + $0x2d0] sm:$0xff] }
 0x18b   : > { %1040 = vmatmul.bf16.gmra.mxu0 %v3588_v5  ;;  %1200 = vmatmul.bf16.gmra.mxu2 %v3620_v6 }
 0x18c   : > { %1753 = vmatmul.bf16.gmra.mxu1 %v3652_v8  ;;  %1913 = vmatmul.bf16.gmra.mxu3 %v3684_v9  ;;  %v2311_v9 = vld [vmem:[#allocation2 + $0x2d0] sm:$0xff] }
 0x18e   : > { %v1161_v11 = vpop.f32.mrf.mxu2 }
 0x18f   : > { %2057 = vst.msk [vmem:[#allocation2 + $0x2e0] sm:$0xff] %vm1964_vm0, %v1161_v11  ;;  %v1874_v14 = vpop.f32.mrf.mxu3  ;;  %v2248_v11 = vld [vmem:[#allocation2 + $0xd8] sm:$0xff] }
 0x190   : > { %v2249_v15 = vld [vmem:[#allocation2 + $0xe0] sm:$0xff]  ;;  %2185 = vst.msk [vmem:[#allocation3 + $0x2e0] sm:$0xff] %vm1964_vm0, %v1874_v14  ;;  %v1003_v17 = vpop.f32.mrf.mxu0 }
 0x191   : > { %v2377_v18 = vld [vmem:[#allocation3 + $0xe0] sm:$0xff]  ;;  %1994 = vst.msk [vmem:[#allocation2 + $0xe8] sm:$0xff] %vm1964_vm0, %v1003_v17  ;;  %v1716_v19 = vpop.f32.mrf.mxu1 }
 0x192   : > { %v2505_v21 = vmax.f32 %v2249_v15, %v2377_v18  ;;  %2122 = vst.msk [vmem:[#allocation3 + $0xe8] sm:$0xff] %vm1964_vm0, %v1716_v19 }
 0x194   : > { %v2617_v22 = vmax.f32 %v2501_v20, %v2505_v21  ;;  %v3590_v20 = vld [vmem:[%s3796_s10 + $0xc0] sm:$0xff] }
 0x195   : > { %v3622_v21 = vld [vmem:[%s3796_s10 + $0x1c0] sm:$0xff] }
 0x196   : > { %v2685_v28 = vadd.f32 %v4099_v27, %v2617_v22  ;;  %v2313_v29 = vld [vmem:[#allocation2 + $0x2e0] sm:$0xff]  ;;  %v1163_v30 = vpop.f32.mrf.mxu2  ;;  %v2567_v22 = vmax.f32 %v2311_v9, %v2439_v10  ;;  %v3656_v10 = vld [vmem:[%s3801_s13 + $0xd0] sm:$0xff] }
 0x197   : > { %v2441_v31 = vld [vmem:[#allocation3 + $0x2e0] sm:$0xff]  ;;  %2058 = vst.msk [vmem:[#allocation2 + $0x2e8] sm:$0xff] %vm1964_vm0, %v1163_v30  ;;  %v1876_v32 = vpop.f32.mrf.mxu3 }
 0x198   : > { %v2749_v36 = vmax.f32 %v2685_v28, 0.0  ;;  %v2569_v37 = vmax.f32 %v2313_v29, %v2441_v31  ;;  %v2250_v38 = vld [vmem:[#allocation2 + $0xe8] sm:$0xff]  ;;  %2186 = vst.msk [vmem:[#allocation3 + $0x2e8] sm:$0xff] %vm1964_vm0, %v1876_v32  ;;  %v1006_v39 = vpop.f32.mrf.mxu0  ;;  %v3654_v29 = vld [vmem:[%s3801_s13 + $0xc0] sm:$0xff] }
 0x199   : > { %v2378_v42 = vld [vmem:[#allocation3 + $0xe8] sm:$0xff]  ;;  %1995 = vst.msk [vmem:[#allocation2 + $0xf0] sm:$0xff] %vm1964_vm0, %v1006_v39  ;;  %v1719_v43 = vpop.f32.mrf.mxu1  ;;  %v3686_v30 = vld [vmem:[%s3801_s13 + $0x1c0] sm:$0xff]  ;;  %v2440_v39 = vld [vmem:[#allocation3 + $0x2d8] sm:$0xff] }
 0x19a   : > { %v2813_v45 = vpack.c.bf16 %v2749_v36, %v2749_v36  ;;  %v2649_v46 = vmax.f32 %v2565_v35, %v2569_v37  ;;  %v2506_v47 = vmax.f32 %v2250_v38, %v2378_v42  ;;  %2123 = vst.msk [vmem:[#allocation3 + $0xf0] sm:$0xff] %vm1964_vm0, %v1719_v43  ;;  %v2504_v35 = vmax.f32 %v2248_v11, %v2376_v12  ;;  %v2312_v38 = vld [vmem:[#allocation2 + $0x2d8] sm:$0xff]  ;;  %v3688_v11 = vld [vmem:[%s3801_s13 + $0x1d0] sm:$0xff] }
 0x19b   : > { %1045 = vmatmul.bf16.gmra.mxu0 %v3589_v33  ;;  %1205 = vmatmul.bf16.gmra.mxu2 %v3621_v34 }
 0x19c   : > { %2879 = vst.msk [vmem:[%s3885_s20 + $0x30] sm:$0xf] %vm2865_vm1, %v2813_v45  ;;  %v2717_v48 = vadd.f32 %v4099_v27, %v2649_v46  ;;  %v2618_v49 = vmax.f32 %v2502_v44, %v2506_v47  ;;  %1758 = vmatmul.bf16.gmra.mxu1 %v3653_v40  ;;  %1918 = vmatmul.bf16.gmra.mxu3 %v3685_v41 }
 0x19d   : > { %v2568_v47 = vmax.f32 %v2312_v38, %v2440_v39 }
 0x19e   : > { %v2781_v52 = vmax.f32 %v2717_v48, 0.0  ;;  %v2686_v53 = vadd.f32 %v4099_v27, %v2618_v49  ;;  %v2314_v54 = vld [vmem:[#allocation2 + $0x2e8] sm:$0xff]  ;;  %v1166_v55 = vpop.f32.mrf.mxu2 }
 0x19f   : > { %v2442_v58 = vld [vmem:[#allocation3 + $0x2e8] sm:$0xff]  ;;  %2059 = vst.msk [vmem:[#allocation2 + $0x2f0] sm:$0xff] %vm1964_vm0, %v1166_v55  ;;  %v1879_v59 = vpop.f32.mrf.mxu3 }
 0x1a0   : > { %v2845_v61 = vpack.c.bf16 %v2781_v52, %v2781_v52  ;;  %v2750_v62 = vmax.f32 %v2686_v53, 0.0  ;;  %v2570_v63 = vmax.f32 %v2314_v54, %v2442_v58  ;;  %v2251_v16 = vld [vmem:[#allocation2 + $0xf0] sm:$0xff]  ;;  %2187 = vst.msk [vmem:[#allocation3 + $0x2f0] sm:$0xff] %vm1964_vm0, %v1879_v59  ;;  %v1008_v0 = vpop.f32.mrf.mxu0  ;;  %v3591_v59 = vld [vmem:[%s3796_s10 + $0xc8] sm:$0xff] }
 0x1a1   : > { %v2379_v1 = vld [vmem:[#allocation3 + $0xf0] sm:$0xff]  ;;  %1996 = vst.msk [vmem:[#allocation2 + $0xf8] sm:$0xff] %vm1964_vm0, %v1008_v0  ;;  %v1721_v2 = vpop.f32.mrf.mxu1 }
 0x1a2   : > { %2911 = vst.msk [vmem:[%s3885_s20 + $0xb0] sm:$0xf] %vm2865_vm1, %v2845_v61  ;;  %v2814_v4 = vpack.c.bf16 %v2750_v62, %v2750_v62  ;;  %v2650_v5 = vmax.f32 %v2566_v60, %v2570_v63  ;;  %v2507_v6 = vmax.f32 %v2251_v16, %v2379_v1  ;;  %v3623_v60 = vld [vmem:[%s3796_s10 + $0x1c8] sm:$0xff] }
 0x1a3   : > { %2124 = vst.msk [vmem:[#allocation3 + $0xf8] sm:$0xff] %vm1964_vm0, %v1721_v2  ;;  %v3655_v63 = vld [vmem:[%s3801_s13 + $0xc8] sm:$0xff] }
 0x1a4   : > { %2880 = vst.msk [vmem:[%s3885_s20 + $0x34] sm:$0xf] %vm2865_vm1, %v2814_v4  ;;  %v2718_v7 = vadd.f32 %v4099_v27, %v2650_v5  ;;  %v2619_v8 = vmax.f32 %v2503_v3, %v2507_v6  ;;  %v3687_v16 = vld [vmem:[%s3801_s13 + $0x1c8] sm:$0xff] }
 0x1a6   : > { %v2782_v13 = vmax.f32 %v2718_v7, 0.0  ;;  %v2687_v14 = vadd.f32 %v4099_v27, %v2619_v8  ;;  %v2315_v15 = vld [vmem:[#allocation2 + $0x2f0] sm:$0xff]  ;;  %v1168_v17 = vpop.f32.mrf.mxu2 }
 0x1a7   : > { %v2443_v18 = vld [vmem:[#allocation3 + $0x2f0] sm:$0xff]  ;;  %2060 = vst.msk [vmem:[#allocation2 + $0x2f8] sm:$0xff] %vm1964_vm0, %v1168_v17  ;;  %v1881_v19 = vpop.f32.mrf.mxu3 }
 0x1a8   : > { %v2846_v23 = vpack.c.bf16 %v2782_v13, %v2782_v13  ;;  %v2751_v24 = vmax.f32 %v2687_v14, 0.0  ;;  %v2571_v25 = vmax.f32 %v2315_v15, %v2443_v18  ;;  %v2252_v26 = vld [vmem:[#allocation2 + $0xf8] sm:$0xff]  ;;  %2188 = vst.msk [vmem:[#allocation3 + $0x2f8] sm:$0xff] %vm1964_vm0, %v1881_v19  ;;  %v1011_v28 = vpop.f32.mrf.mxu0  ;;  %v3592_v7 = vld [vmem:[%s3796_s10 + $0xd0] sm:$0xff] }
 0x1a9   : > { %1997 = vst.msk [vmem:[#allocation2 + $0x100] sm:$0xff] %vm1964_vm0, %v1011_v28  ;;  %v1724_v31 = vpop.f32.mrf.mxu1  ;;  %v3624_v8 = vld [vmem:[%s3796_s10 + $0x1d0] sm:$0xff] }
 0x1aa   : > { %2912 = vst.msk [vmem:[%s3885_s20 + $0xb4] sm:$0xf] %vm2865_vm1, %v2846_v23  ;;  %v2815_v32 = vpack.c.bf16 %v2751_v24, %v2751_v24  ;;  %v2651_v33 = vmax.f32 %v2567_v22, %v2571_v25  ;;  %v2380_v34 = vld [vmem:[#allocation3 + $0xf8] sm:$0xff] }
 0x1ab   : > { %v2508_v36 = vmax.f32 %v2252_v26, %v2380_v34  ;;  %2125 = vst.msk [vmem:[#allocation3 + $0x100] sm:$0xff] %vm1964_vm0, %v1724_v31  ;;  %1050 = vmatmul.bf16.gmra.mxu0 %v3590_v20  ;;  %1210 = vmatmul.bf16.gmra.mxu2 %v3622_v21 }
 0x1ac   : > { %2881 = vst.msk [vmem:[%s3885_s20 + $0x38] sm:$0xf] %vm2865_vm1, %v2815_v32  ;;  %v2719_v37 = vadd.f32 %v4099_v27, %v2651_v33  ;;  %1763 = vmatmul.bf16.gmra.mxu1 %v3654_v29  ;;  %1923 = vmatmul.bf16.gmra.mxu3 %v3686_v30 }
 0x1ad   : > { %v2620_v40 = vmax.f32 %v2504_v35, %v2508_v36  ;;  %v3593_v35 = vld [vmem:[%s3796_s10 + $0xd8] sm:$0xff] }
 0x1ae   : > { %v2783_v41 = vmax.f32 %v2719_v37, 0.0  ;;  %v2316_v42 = vld [vmem:[#allocation2 + $0x2f8] sm:$0xff]  ;;  %v1171_v43 = vpop.f32.mrf.mxu2 }
 0x1af   : > { %v2688_v44 = vadd.f32 %v4099_v27, %v2620_v40  ;;  %v2444_v45 = vld [vmem:[#allocation3 + $0x2f8] sm:$0xff]  ;;  %2061 = vst.msk [vmem:[#allocation2 + $0x300] sm:$0xff] %vm1964_vm0, %v1171_v43  ;;  %v1884_v46 = vpop.f32.mrf.mxu3 }
 0x1b0   : > { %v2847_v48 = vpack.c.bf16 %v2783_v41, %v2783_v41  ;;  %v2572_v49 = vmax.f32 %v2316_v42, %v2444_v45  ;;  %2189 = vst.msk [vmem:[#allocation3 + $0x300] sm:$0xff] %vm1964_vm0, %v1884_v46  ;;  %v1013_v50 = vpop.f32.mrf.mxu0  ;;  %v2253_v14 = vld [vmem:[#allocation2 + $0x100] sm:$0xff]  ;;  %v3625_v36 = vld [vmem:[%s3796_s10 + $0x1d8] sm:$0xff] }
 0x1b1   : > { %v2752_v51 = vmax.f32 %v2688_v44, 0.0  ;;  %1998 = vst.msk [vmem:[#allocation2 + $0x108] sm:$0xff] %vm1964_vm0, %v1013_v50  ;;  %v1726_v52 = vpop.f32.mrf.mxu1  ;;  %v3657_v42 = vld [vmem:[%s3801_s13 + $0xd8] sm:$0xff] }
 0x1b2   : > { %2913 = vst.msk [vmem:[%s3885_s20 + $0xb8] sm:$0xf] %vm2865_vm1, %v2847_v48  ;;  %v2652_v53 = vmax.f32 %v2568_v47, %v2572_v49  ;;  %v2381_v15 = vld [vmem:[#allocation3 + $0x100] sm:$0xff]  ;;  %v3689_v43 = vld [vmem:[%s3801_s13 + $0x1d8] sm:$0xff] }
 0x1b3   : > { %v2816_v54 = vpack.c.bf16 %v2752_v51, %v2752_v51  ;;  %2126 = vst.msk [vmem:[#allocation3 + $0x108] sm:$0xff] %vm1964_vm0, %v1726_v52  ;;  %v2509_v22 = vmax.f32 %v2253_v14, %v2381_v15 }
 0x1b4   : > { %v2720_v55 = vadd.f32 %v4099_v27, %v2652_v53 }
 0x1b5   : > { %2882 = vst.msk [vmem:[%s3885_s20 + $0x3c] sm:$0x3] %vm2869_vm2, %v2816_v54 }
 0x1b6   : > { %v2784_v56 = vmax.f32 %v2720_v55, 0.0  ;;  %v1173_v57 = vpop.f32.mrf.mxu2  ;;  %v2317_v25 = vld [vmem:[#allocation2 + $0x300] sm:$0xff] }
 0x1b7   : > { %2062 = vst.msk [vmem:[#allocation2 + $0x308] sm:$0xff] %vm1964_vm0, %v1173_v57  ;;  %v1886_v58 = vpop.f32.mrf.mxu3  ;;  %v2445_v26 = vld [vmem:[#allocation3 + $0x300] sm:$0xff] }
 0x1b8   : > { %v2848_v61 = vpack.c.bf16 %v2784_v56, %v2784_v56  ;;  %2190 = vst.msk [vmem:[#allocation3 + $0x308] sm:$0xff] %vm1964_vm0, %v1886_v58  ;;  %v1016_v62 = vpop.f32.mrf.mxu0  ;;  %v2254_v28 = vld [vmem:[#allocation2 + $0x108] sm:$0xff]  ;;  %v2573_v37 = vmax.f32 %v2317_v25, %v2445_v26 }
 0x1b9   : > { %1999 = vst.msk [vmem:[#allocation2 + $0x110] sm:$0xff] %vm1964_vm0, %v1016_v62  ;;  %v1729_v0 = vpop.f32.mrf.mxu1 }
 0x1ba   : > { %2914 = vst.msk [vmem:[%s3885_s20 + $0xbc] sm:$0x3] %vm2869_vm2, %v2848_v61  ;;  %v2382_v29 = vld [vmem:[#allocation3 + $0x108] sm:$0xff] }
 0x1bb   : > { %2127 = vst.msk [vmem:[#allocation3 + $0x110] sm:$0xff] %vm1964_vm0, %v1729_v0  ;;  %1055 = vmatmul.bf16.gmra.mxu0 %v3591_v59  ;;  %1215 = vmatmul.bf16.gmra.mxu2 %v3623_v60  ;;  %v2510_v46 = vmax.f32 %v2254_v28, %v2382_v29 }
 0x1bc   : > { %1768 = vmatmul.bf16.gmra.mxu1 %v3655_v63  ;;  %1928 = vmatmul.bf16.gmra.mxu3 %v3687_v16 }
 0x1be   : > { %v1176_v1 = vpop.f32.mrf.mxu2  ;;  %v2318_v52 = vld [vmem:[#allocation2 + $0x308] sm:$0xff] }
 0x1bf   : > { %2063 = vst.msk [vmem:[#allocation2 + $0x310] sm:$0xff] %vm1964_vm0, %v1176_v1  ;;  %v1889_v2 = vpop.f32.mrf.mxu3  ;;  %v2446_v53 = vld [vmem:[#allocation3 + $0x308] sm:$0xff] }
 0x1c0   : > { %2191 = vst.msk [vmem:[#allocation3 + $0x310] sm:$0xff] %vm1964_vm0, %v1889_v2  ;;  %v1018_v3 = vpop.f32.mrf.mxu0  ;;  %v2255_v58 = vld [vmem:[#allocation2 + $0x110] sm:$0xff]  ;;  %v2574_v62 = vmax.f32 %v2318_v52, %v2446_v53 }
 0x1c1   : > { %2000 = vst.msk [vmem:[#allocation2 + $0x118] sm:$0xff] %vm1964_vm0, %v1018_v3  ;;  %v1731_v4 = vpop.f32.mrf.mxu1 }
 0x1c2   : > { %2128 = vst.msk [vmem:[#allocation3 + $0x118] sm:$0xff] %vm1964_vm0, %v1731_v4  ;;  %v2383_v59 = vld [vmem:[#allocation3 + $0x110] sm:$0xff] }
 0x1c6   : > { %v1178_v5 = vpop.f32.mrf.mxu2 }
 0x1c7   : > { %2064 = vst.msk [vmem:[#allocation2 + $0x318] sm:$0xff] %vm1964_vm0, %v1178_v5  ;;  %v1891_v6 = vpop.f32.mrf.mxu3  ;;  %v2511_v5 = vmax.f32 %v2255_v58, %v2383_v59 }
 0x1c8   : > { %2192 = vst.msk [vmem:[#allocation3 + $0x318] sm:$0xff] %vm1964_vm0, %v1891_v6  ;;  %v1021_v9 = vpop.f32.mrf.mxu0 }
 0x1c9   : > { %2001 = vst.msk [vmem:[#allocation2 + $0x120] sm:$0xff] %vm1964_vm0, %v1021_v9  ;;  %v1734_v12 = vpop.f32.mrf.mxu1  ;;  %v2384_v14 = vld [vmem:[#allocation3 + $0x118] sm:$0xff] }
 0x1ca   : > { %2129 = vst.msk [vmem:[#allocation3 + $0x120] sm:$0xff] %vm1964_vm0, %v1734_v12  ;;  %v2447_v12 = vld [vmem:[#allocation3 + $0x310] sm:$0xff] }
 0x1cb   : > { %1060 = vmatmul.bf16.gmra.mxu0 %v3592_v7  ;;  %1220 = vmatmul.bf16.gmra.mxu2 %v3624_v8 }
 0x1cc   : > { %1773 = vmatmul.bf16.gmra.mxu1 %v3656_v10  ;;  %1933 = vmatmul.bf16.gmra.mxu3 %v3688_v11  ;;  %v2319_v11 = vld [vmem:[#allocation2 + $0x310] sm:$0xff] }
 0x1ce   : > { %v1181_v13 = vpop.f32.mrf.mxu2 }
 0x1cf   : > { %2065 = vst.msk [vmem:[#allocation2 + $0x320] sm:$0xff] %vm1964_vm0, %v1181_v13  ;;  %v1894_v17 = vpop.f32.mrf.mxu3  ;;  %v2256_v13 = vld [vmem:[#allocation2 + $0x118] sm:$0xff] }
 0x1d0   : > { %v2257_v18 = vld [vmem:[#allocation2 + $0x120] sm:$0xff]  ;;  %2193 = vst.msk [vmem:[#allocation3 + $0x320] sm:$0xff] %vm1964_vm0, %v1894_v17  ;;  %v1023_v19 = vpop.f32.mrf.mxu0 }
 0x1d1   : > { %v2385_v20 = vld [vmem:[#allocation3 + $0x120] sm:$0xff]  ;;  %2002 = vst.msk [vmem:[#allocation2 + $0x128] sm:$0xff] %vm1964_vm0, %v1023_v19  ;;  %v1736_v21 = vpop.f32.mrf.mxu1 }
 0x1d2   : > { %v2513_v23 = vmax.f32 %v2257_v18, %v2385_v20  ;;  %2130 = vst.msk [vmem:[#allocation3 + $0x128] sm:$0xff] %vm1964_vm0, %v1736_v21 }
 0x1d4   : > { %v2621_v24 = vmax.f32 %v2509_v22, %v2513_v23  ;;  %v3594_v22 = vld [vmem:[%s3796_s10 + $0xe0] sm:$0xff] }
 0x1d5   : > { %v3626_v23 = vld [vmem:[%s3796_s10 + $0x1e0] sm:$0xff] }
 0x1d6   : > { %v2689_v30 = vadd.f32 %v4099_v27, %v2621_v24  ;;  %v2321_v31 = vld [vmem:[#allocation2 + $0x320] sm:$0xff]  ;;  %v1183_v32 = vpop.f32.mrf.mxu2  ;;  %v2575_v24 = vmax.f32 %v2319_v11, %v2447_v12  ;;  %v3660_v12 = vld [vmem:[%s3801_s13 + $0xf0] sm:$0xff] }
 0x1d7   : > { %v2449_v33 = vld [vmem:[#allocation3 + $0x320] sm:$0xff]  ;;  %2066 = vst.msk [vmem:[#allocation2 + $0x328] sm:$0xff] %vm1964_vm0, %v1183_v32  ;;  %v1896_v34 = vpop.f32.mrf.mxu3 }
 0x1d8   : > { %v2753_v38 = vmax.f32 %v2689_v30, 0.0  ;;  %v2577_v39 = vmax.f32 %v2321_v31, %v2449_v33  ;;  %v2258_v40 = vld [vmem:[#allocation2 + $0x128] sm:$0xff]  ;;  %2194 = vst.msk [vmem:[#allocation3 + $0x328] sm:$0xff] %vm1964_vm0, %v1896_v34  ;;  %v1026_v41 = vpop.f32.mrf.mxu0  ;;  %v3658_v31 = vld [vmem:[%s3801_s13 + $0xe0] sm:$0xff] }
 0x1d9   : > { %v2386_v44 = vld [vmem:[#allocation3 + $0x128] sm:$0xff]  ;;  %2003 = vst.msk [vmem:[#allocation2 + $0x130] sm:$0xff] %vm1964_vm0, %v1026_v41  ;;  %v1739_v45 = vpop.f32.mrf.mxu1  ;;  %v3690_v32 = vld [vmem:[%s3801_s13 + $0x1e0] sm:$0xff]  ;;  %v2448_v41 = vld [vmem:[#allocation3 + $0x318] sm:$0xff] }
 0x1da   : > { %v2817_v47 = vpack.c.bf16 %v2753_v38, %v2753_v38  ;;  %v2653_v48 = vmax.f32 %v2573_v37, %v2577_v39  ;;  %v2514_v49 = vmax.f32 %v2258_v40, %v2386_v44  ;;  %2131 = vst.msk [vmem:[#allocation3 + $0x130] sm:$0xff] %vm1964_vm0, %v1739_v45  ;;  %v2512_v37 = vmax.f32 %v2256_v13, %v2384_v14  ;;  %v2320_v40 = vld [vmem:[#allocation2 + $0x318] sm:$0xff]  ;;  %v3692_v13 = vld [vmem:[%s3801_s13 + $0x1f0] sm:$0xff] }
 0x1db   : > { %1065 = vmatmul.bf16.gmra.mxu0 %v3593_v35  ;;  %1225 = vmatmul.bf16.gmra.mxu2 %v3625_v36 }
 0x1dc   : > { %2883 = vst.msk [vmem:[%s3885_s20 + $0x40] sm:$0xf] %vm2865_vm1, %v2817_v47  ;;  %v2721_v50 = vadd.f32 %v4099_v27, %v2653_v48  ;;  %v2622_v51 = vmax.f32 %v2510_v46, %v2514_v49  ;;  %1778 = vmatmul.bf16.gmra.mxu1 %v3657_v42  ;;  %1938 = vmatmul.bf16.gmra.mxu3 %v3689_v43 }
 0x1dd   : > { %v2576_v49 = vmax.f32 %v2320_v40, %v2448_v41 }
 0x1de   : > { %v2785_v54 = vmax.f32 %v2721_v50, 0.0  ;;  %v2690_v55 = vadd.f32 %v4099_v27, %v2622_v51  ;;  %v2322_v56 = vld [vmem:[#allocation2 + $0x328] sm:$0xff]  ;;  %v1186_v57 = vpop.f32.mrf.mxu2 }
 0x1df   : > { %v2450_v60 = vld [vmem:[#allocation3 + $0x328] sm:$0xff]  ;;  %2067 = vst.msk [vmem:[#allocation2 + $0x330] sm:$0xff] %vm1964_vm0, %v1186_v57  ;;  %v1899_v61 = vpop.f32.mrf.mxu3 }
 0x1e0   : > { %v2849_v63 = vpack.c.bf16 %v2785_v54, %v2785_v54  ;;  %v2754_v16 = vmax.f32 %v2690_v55, 0.0  ;;  %v2578_v0 = vmax.f32 %v2322_v56, %v2450_v60  ;;  %v2259_v1 = vld [vmem:[#allocation2 + $0x130] sm:$0xff]  ;;  %2195 = vst.msk [vmem:[#allocation3 + $0x330] sm:$0xff] %vm1964_vm0, %v1899_v61  ;;  %v1028_v2 = vpop.f32.mrf.mxu0  ;;  %v3595_v61 = vld [vmem:[%s3796_s10 + $0xe8] sm:$0xff] }
 0x1e1   : > { %v2387_v3 = vld [vmem:[#allocation3 + $0x130] sm:$0xff]  ;;  %2004 = vst.msk [vmem:[#allocation2 + $0x138] sm:$0xff] %vm1964_vm0, %v1028_v2  ;;  %v1741_v4 = vpop.f32.mrf.mxu1 }
 0x1e2   : > { %2915 = vst.msk [vmem:[%s3885_s20 + $0xc0] sm:$0xf] %vm2865_vm1, %v2849_v63  ;;  %v2818_v6 = vpack.c.bf16 %v2754_v16, %v2754_v16  ;;  %v2654_v7 = vmax.f32 %v2574_v62, %v2578_v0  ;;  %v2515_v8 = vmax.f32 %v2259_v1, %v2387_v3  ;;  %v3627_v62 = vld [vmem:[%s3796_s10 + $0x1e8] sm:$0xff] }
 0x1e3   : > { %2132 = vst.msk [vmem:[#allocation3 + $0x138] sm:$0xff] %vm1964_vm0, %v1741_v4  ;;  %v3659_v0 = vld [vmem:[%s3801_s13 + $0xe8] sm:$0xff] }
 0x1e4   : > { %2884 = vst.msk [vmem:[%s3885_s20 + $0x44] sm:$0xf] %vm2865_vm1, %v2818_v6  ;;  %v2722_v9 = vadd.f32 %v4099_v27, %v2654_v7  ;;  %v2623_v10 = vmax.f32 %v2511_v5, %v2515_v8  ;;  %v3691_v1 = vld [vmem:[%s3801_s13 + $0x1e8] sm:$0xff] }
 0x1e6   : > { %v2786_v15 = vmax.f32 %v2722_v9, 0.0  ;;  %v2691_v17 = vadd.f32 %v4099_v27, %v2623_v10  ;;  %v2323_v18 = vld [vmem:[#allocation2 + $0x330] sm:$0xff]  ;;  %v1188_v19 = vpop.f32.mrf.mxu2 }
 0x1e7   : > { %v2451_v20 = vld [vmem:[#allocation3 + $0x330] sm:$0xff]  ;;  %2068 = vst.msk [vmem:[#allocation2 + $0x338] sm:$0xff] %vm1964_vm0, %v1188_v19  ;;  %v1901_v21 = vpop.f32.mrf.mxu3 }
 0x1e8   : > { %v2850_v25 = vpack.c.bf16 %v2786_v15, %v2786_v15  ;;  %v2755_v26 = vmax.f32 %v2691_v17, 0.0  ;;  %v2579_v28 = vmax.f32 %v2323_v18, %v2451_v20  ;;  %v2260_v29 = vld [vmem:[#allocation2 + $0x138] sm:$0xff]  ;;  %2196 = vst.msk [vmem:[#allocation3 + $0x338] sm:$0xff] %vm1964_vm0, %v1901_v21  ;;  %v1031_v30 = vpop.f32.mrf.mxu0  ;;  %v3596_v9 = vld [vmem:[%s3796_s10 + $0xf0] sm:$0xff] }
 0x1e9   : > { %2005 = vst.msk [vmem:[#allocation2 + $0x140] sm:$0xff] %vm1964_vm0, %v1031_v30  ;;  %v1744_v33 = vpop.f32.mrf.mxu1  ;;  %v3628_v10 = vld [vmem:[%s3796_s10 + $0x1f0] sm:$0xff] }
 0x1ea   : > { %2916 = vst.msk [vmem:[%s3885_s20 + $0xc4] sm:$0xf] %vm2865_vm1, %v2850_v25  ;;  %v2819_v34 = vpack.c.bf16 %v2755_v26, %v2755_v26  ;;  %v2655_v35 = vmax.f32 %v2575_v24, %v2579_v28  ;;  %v2388_v36 = vld [vmem:[#allocation3 + $0x138] sm:$0xff] }
 0x1eb   : > { %v2516_v38 = vmax.f32 %v2260_v29, %v2388_v36  ;;  %2133 = vst.msk [vmem:[#allocation3 + $0x140] sm:$0xff] %vm1964_vm0, %v1744_v33  ;;  %1070 = vmatmul.bf16.gmra.mxu0 %v3594_v22  ;;  %1230 = vmatmul.bf16.gmra.mxu2 %v3626_v23 }
 0x1ec   : > { %2885 = vst.msk [vmem:[%s3885_s20 + $0x48] sm:$0xf] %vm2865_vm1, %v2819_v34  ;;  %v2723_v39 = vadd.f32 %v4099_v27, %v2655_v35  ;;  %1783 = vmatmul.bf16.gmra.mxu1 %v3658_v31  ;;  %1943 = vmatmul.bf16.gmra.mxu3 %v3690_v32 }
 0x1ed   : > { %v2624_v42 = vmax.f32 %v2512_v37, %v2516_v38  ;;  %v3597_v37 = vld [vmem:[%s3796_s10 + $0xf8] sm:$0xff] }
 0x1ee   : > { %v2787_v43 = vmax.f32 %v2723_v39, 0.0  ;;  %v2324_v44 = vld [vmem:[#allocation2 + $0x338] sm:$0xff]  ;;  %v1191_v45 = vpop.f32.mrf.mxu2 }
 0x1ef   : > { %v2692_v46 = vadd.f32 %v4099_v27, %v2624_v42  ;;  %v2452_v47 = vld [vmem:[#allocation3 + $0x338] sm:$0xff]  ;;  %2069 = vst.msk [vmem:[#allocation2 + $0x340] sm:$0xff] %vm1964_vm0, %v1191_v45  ;;  %v1904_v48 = vpop.f32.mrf.mxu3 }
 0x1f0   : > { %v2851_v50 = vpack.c.bf16 %v2787_v43, %v2787_v43  ;;  %v2580_v51 = vmax.f32 %v2324_v44, %v2452_v47  ;;  %2197 = vst.msk [vmem:[#allocation3 + $0x340] sm:$0xff] %vm1964_vm0, %v1904_v48  ;;  %v1033_v52 = vpop.f32.mrf.mxu0  ;;  %v2261_v17 = vld [vmem:[#allocation2 + $0x140] sm:$0xff]  ;;  %v3629_v38 = vld [vmem:[%s3796_s10 + $0x1f8] sm:$0xff] }
 0x1f1   : > { %v2756_v53 = vmax.f32 %v2692_v46, 0.0  ;;  %2006 = vst.msk [vmem:[#allocation2 + $0x148] sm:$0xff] %vm1964_vm0, %v1033_v52  ;;  %v1746_v54 = vpop.f32.mrf.mxu1  ;;  %v3661_v44 = vld [vmem:[%s3801_s13 + $0xf8] sm:$0xff] }
 0x1f2   : > { %2917 = vst.msk [vmem:[%s3885_s20 + $0xc8] sm:$0xf] %vm2865_vm1, %v2851_v50  ;;  %v2656_v55 = vmax.f32 %v2576_v49, %v2580_v51  ;;  %v2389_v18 = vld [vmem:[#allocation3 + $0x140] sm:$0xff]  ;;  %v3693_v45 = vld [vmem:[%s3801_s13 + $0x1f8] sm:$0xff] }
 0x1f3   : > { %v2820_v56 = vpack.c.bf16 %v2756_v53, %v2756_v53  ;;  %2134 = vst.msk [vmem:[#allocation3 + $0x148] sm:$0xff] %vm1964_vm0, %v1746_v54  ;;  %v2517_v24 = vmax.f32 %v2261_v17, %v2389_v18 }
 0x1f4   : > { %v2724_v57 = vadd.f32 %v4099_v27, %v2656_v55 }
 0x1f5   : > { %2886 = vst.msk [vmem:[%s3885_s20 + $0x4c] sm:$0x3] %vm2869_vm2, %v2820_v56 }
 0x1f6   : > { %v2788_v58 = vmax.f32 %v2724_v57, 0.0  ;;  %v1193_v59 = vpop.f32.mrf.mxu2  ;;  %v2325_v28 = vld [vmem:[#allocation2 + $0x340] sm:$0xff] }
 0x1f7   : > { %2070 = vst.msk [vmem:[#allocation2 + $0x348] sm:$0xff] %vm1964_vm0, %v1193_v59  ;;  %v1906_v60 = vpop.f32.mrf.mxu3  ;;  %v2453_v29 = vld [vmem:[#allocation3 + $0x340] sm:$0xff] }
 0x1f8   : > { %v2852_v63 = vpack.c.bf16 %v2788_v58, %v2788_v58  ;;  %2198 = vst.msk [vmem:[#allocation3 + $0x348] sm:$0xff] %vm1964_vm0, %v1906_v60  ;;  %v1036_v16 = vpop.f32.mrf.mxu0  ;;  %v2262_v30 = vld [vmem:[#allocation2 + $0x148] sm:$0xff]  ;;  %v2581_v39 = vmax.f32 %v2325_v28, %v2453_v29 }
 0x1f9   : > { %2007 = vst.msk [vmem:[#allocation2 + $0x150] sm:$0xff] %vm1964_vm0, %v1036_v16  ;;  %v1749_v2 = vpop.f32.mrf.mxu1 }
 0x1fa   : > { %2918 = vst.msk [vmem:[%s3885_s20 + $0xcc] sm:$0x3] %vm2869_vm2, %v2852_v63  ;;  %v2390_v31 = vld [vmem:[#allocation3 + $0x148] sm:$0xff] }
 0x1fb   : > { %2135 = vst.msk [vmem:[#allocation3 + $0x150] sm:$0xff] %vm1964_vm0, %v1749_v2  ;;  %1075 = vmatmul.bf16.gmra.mxu0 %v3595_v61  ;;  %1235 = vmatmul.bf16.gmra.mxu2 %v3627_v62  ;;  %v2518_v48 = vmax.f32 %v2262_v30, %v2390_v31 }
 0x1fc   : > { %1788 = vmatmul.bf16.gmra.mxu1 %v3659_v0  ;;  %1948 = vmatmul.bf16.gmra.mxu3 %v3691_v1 }
 0x1fe   : > { %v1196_v3 = vpop.f32.mrf.mxu2  ;;  %v2326_v54 = vld [vmem:[#allocation2 + $0x348] sm:$0xff] }
 0x1ff   : > { %2071 = vst.msk [vmem:[#allocation2 + $0x350] sm:$0xff] %vm1964_vm0, %v1196_v3  ;;  %v1909_v4 = vpop.f32.mrf.mxu3  ;;  %v2454_v55 = vld [vmem:[#allocation3 + $0x348] sm:$0xff] }
 0x200   : > { %2199 = vst.msk [vmem:[#allocation3 + $0x350] sm:$0xff] %vm1964_vm0, %v1909_v4  ;;  %v1038_v5 = vpop.f32.mrf.mxu0  ;;  %v2263_v60 = vld [vmem:[#allocation2 + $0x150] sm:$0xff]  ;;  %v2582_v16 = vmax.f32 %v2326_v54, %v2454_v55 }
 0x201   : > { %2008 = vst.msk [vmem:[#allocation2 + $0x158] sm:$0xff] %vm1964_vm0, %v1038_v5  ;;  %v1751_v6 = vpop.f32.mrf.mxu1 }
 0x202   : > { %2136 = vst.msk [vmem:[#allocation3 + $0x158] sm:$0xff] %vm1964_vm0, %v1751_v6  ;;  %v2391_v61 = vld [vmem:[#allocation3 + $0x150] sm:$0xff] }
 0x206   : > { %v1198_v7 = vpop.f32.mrf.mxu2 }
 0x207   : > { %2072 = vst.msk [vmem:[#allocation2 + $0x358] sm:$0xff] %vm1964_vm0, %v1198_v7  ;;  %v1911_v8 = vpop.f32.mrf.mxu3  ;;  %v2519_v7 = vmax.f32 %v2263_v60, %v2391_v61 }
 0x208   : > { %2200 = vst.msk [vmem:[#allocation3 + $0x358] sm:$0xff] %vm1964_vm0, %v1911_v8  ;;  %v1041_v11 = vpop.f32.mrf.mxu0 }
 0x209   : > { %2009 = vst.msk [vmem:[#allocation2 + $0x160] sm:$0xff] %vm1964_vm0, %v1041_v11  ;;  %v1754_v14 = vpop.f32.mrf.mxu1 }
 0x20a   : > { %2137 = vst.msk [vmem:[#allocation3 + $0x160] sm:$0xff] %vm1964_vm0, %v1754_v14  ;;  %v2455_v14 = vld [vmem:[#allocation3 + $0x350] sm:$0xff] }
 0x20b   : > { %1080 = vmatmul.bf16.gmra.mxu0 %v3596_v9  ;;  %1240 = vmatmul.bf16.gmra.mxu2 %v3628_v10 }
 0x20c   : > { %1793 = vmatmul.bf16.gmra.mxu1 %v3660_v12  ;;  %1953 = vmatmul.bf16.gmra.mxu3 %v3692_v13  ;;  %v2327_v13 = vld [vmem:[#allocation2 + $0x350] sm:$0xff] }
 0x20e   : > { %v1201_v15 = vpop.f32.mrf.mxu2 }
 0x20f   : > { %2073 = vst.msk [vmem:[#allocation2 + $0x360] sm:$0xff] %vm1964_vm0, %v1201_v15  ;;  %v1914_v19 = vpop.f32.mrf.mxu3 }
 0x210   : > { %v2265_v20 = vld [vmem:[#allocation2 + $0x160] sm:$0xff]  ;;  %2201 = vst.msk [vmem:[#allocation3 + $0x360] sm:$0xff] %vm1964_vm0, %v1914_v19  ;;  %v1043_v21 = vpop.f32.mrf.mxu0 }
 0x211   : > { %v2393_v22 = vld [vmem:[#allocation3 + $0x160] sm:$0xff]  ;;  %2010 = vst.msk [vmem:[#allocation2 + $0x168] sm:$0xff] %vm1964_vm0, %v1043_v21  ;;  %v1756_v23 = vpop.f32.mrf.mxu1 }
 0x212   : > { %v2521_v25 = vmax.f32 %v2265_v20, %v2393_v22  ;;  %2138 = vst.msk [vmem:[#allocation3 + $0x168] sm:$0xff] %vm1964_vm0, %v1756_v23  ;;  %v2583_v22 = vmax.f32 %v2327_v13, %v2455_v14  ;;  %v2264_v23 = vld [vmem:[#allocation2 + $0x158] sm:$0xff] }
 0x214   : > { %v2625_v26 = vmax.f32 %v2517_v24, %v2521_v25  ;;  %v2392_v24 = vld [vmem:[#allocation3 + $0x158] sm:$0xff] }
 0x216   : > { %v2693_v32 = vadd.f32 %v4099_v27, %v2625_v26  ;;  %v2329_v33 = vld [vmem:[#allocation2 + $0x360] sm:$0xff]  ;;  %v1203_v34 = vpop.f32.mrf.mxu2 }
 0x217   : > { %v2457_v35 = vld [vmem:[#allocation3 + $0x360] sm:$0xff]  ;;  %2074 = vst.msk [vmem:[#allocation2 + $0x368] sm:$0xff] %vm1964_vm0, %v1203_v34  ;;  %v1916_v36 = vpop.f32.mrf.mxu3 }
 0x218   : > { %v2757_v40 = vmax.f32 %v2693_v32, 0.0  ;;  %v2585_v41 = vmax.f32 %v2329_v33, %v2457_v35  ;;  %v2266_v42 = vld [vmem:[#allocation2 + $0x168] sm:$0xff]  ;;  %2202 = vst.msk [vmem:[#allocation3 + $0x368] sm:$0xff] %vm1964_vm0, %v1916_v36  ;;  %v1046_v43 = vpop.f32.mrf.mxu0  ;;  %v2520_v35 = vmax.f32 %v2264_v23, %v2392_v24 }
 0x219   : > { %v2394_v46 = vld [vmem:[#allocation3 + $0x168] sm:$0xff]  ;;  %2011 = vst.msk [vmem:[#allocation2 + $0x170] sm:$0xff] %vm1964_vm0, %v1046_v43  ;;  %v1759_v47 = vpop.f32.mrf.mxu1 }
 0x21a   : > { %v2821_v49 = vpack.c.bf16 %v2757_v40, %v2757_v40  ;;  %v2657_v50 = vmax.f32 %v2581_v39, %v2585_v41  ;;  %v2522_v51 = vmax.f32 %v2266_v42, %v2394_v46  ;;  %2139 = vst.msk [vmem:[#allocation3 + $0x170] sm:$0xff] %vm1964_vm0, %v1759_v47  ;;  %v2456_v39 = vld [vmem:[#allocation3 + $0x358] sm:$0xff] }
 0x21b   : > { %1085 = vmatmul.bf16.gmra.mxu0 %v3597_v37  ;;  %1245 = vmatmul.bf16.gmra.mxu2 %v3629_v38  ;;  %v2328_v38 = vld [vmem:[#allocation2 + $0x358] sm:$0xff] }
 0x21c   : > { %2887 = vst.msk [vmem:[%s3885_s20 + $0x50] sm:$0xf] %vm2865_vm1, %v2821_v49  ;;  %v2725_v52 = vadd.f32 %v4099_v27, %v2657_v50  ;;  %v2626_v53 = vmax.f32 %v2518_v48, %v2522_v51  ;;  %1798 = vmatmul.bf16.gmra.mxu1 %v3661_v44  ;;  %1958 = vmatmul.bf16.gmra.mxu3 %v3693_v45 }
 0x21d   : > { %v2584_v47 = vmax.f32 %v2328_v38, %v2456_v39 }
 0x21e   : > { %v2789_v56 = vmax.f32 %v2725_v52, 0.0  ;;  %v2694_v57 = vadd.f32 %v4099_v27, %v2626_v53  ;;  %v2330_v58 = vld [vmem:[#allocation2 + $0x368] sm:$0xff]  ;;  %v1206_v59 = vpop.f32.mrf.mxu2 }
 0x21f   : > { %v2458_v62 = vld [vmem:[#allocation3 + $0x368] sm:$0xff]  ;;  %2075 = vst.msk [vmem:[#allocation2 + $0x370] sm:$0xff] %vm1964_vm0, %v1206_v59  ;;  %v1919_v63 = vpop.f32.mrf.mxu3 }
 0x220   : > { %v2853_v0 = vpack.c.bf16 %v2789_v56, %v2789_v56  ;;  %v2758_v1 = vmax.f32 %v2694_v57, 0.0  ;;  %v2586_v2 = vmax.f32 %v2330_v58, %v2458_v62  ;;  %v2267_v3 = vld [vmem:[#allocation2 + $0x170] sm:$0xff]  ;;  %2203 = vst.msk [vmem:[#allocation3 + $0x370] sm:$0xff] %vm1964_vm0, %v1919_v63  ;;  %v1048_v4 = vpop.f32.mrf.mxu0 }
 0x221   : > { %v2395_v5 = vld [vmem:[#allocation3 + $0x170] sm:$0xff]  ;;  %2012 = vst.msk [vmem:[#allocation2 + $0x178] sm:$0xff] %vm1964_vm0, %v1048_v4  ;;  %v1761_v6 = vpop.f32.mrf.mxu1 }
 0x222   : > { %2919 = vst.msk [vmem:[%s3885_s20 + $0xd0] sm:$0xf] %vm2865_vm1, %v2853_v0  ;;  %v2822_v8 = vpack.c.bf16 %v2758_v1, %v2758_v1  ;;  %v2658_v9 = vmax.f32 %v2582_v16, %v2586_v2  ;;  %v2523_v10 = vmax.f32 %v2267_v3, %v2395_v5 }
 0x223   : > { %2140 = vst.msk [vmem:[#allocation3 + $0x178] sm:$0xff] %vm1964_vm0, %v1761_v6 }
 0x224   : > { %2888 = vst.msk [vmem:[%s3885_s20 + $0x54] sm:$0xf] %vm2865_vm1, %v2822_v8  ;;  %v2726_v11 = vadd.f32 %v4099_v27, %v2658_v9  ;;  %v2627_v12 = vmax.f32 %v2519_v7, %v2523_v10 }
 0x226   : > { %v2790_v15 = vmax.f32 %v2726_v11, 0.0  ;;  %v2695_v17 = vadd.f32 %v4099_v27, %v2627_v12  ;;  %v2331_v18 = vld [vmem:[#allocation2 + $0x370] sm:$0xff]  ;;  %v1208_v19 = vpop.f32.mrf.mxu2 }
 0x227   : > { %v2459_v20 = vld [vmem:[#allocation3 + $0x370] sm:$0xff]  ;;  %2076 = vst.msk [vmem:[#allocation2 + $0x378] sm:$0xff] %vm1964_vm0, %v1208_v19  ;;  %v1921_v21 = vpop.f32.mrf.mxu3 }
 0x228   : > { %v2854_v25 = vpack.c.bf16 %v2790_v15, %v2790_v15  ;;  %v2759_v26 = vmax.f32 %v2695_v17, 0.0  ;;  %v2587_v28 = vmax.f32 %v2331_v18, %v2459_v20  ;;  %v2268_v29 = vld [vmem:[#allocation2 + $0x178] sm:$0xff]  ;;  %2204 = vst.msk [vmem:[#allocation3 + $0x378] sm:$0xff] %vm1964_vm0, %v1921_v21  ;;  %v1051_v30 = vpop.f32.mrf.mxu0  ;;  %v4308_v18 = vld [vmem:[%s4406_s3] ss:$0 sm:$0xff] }
 0x229   : > { %2013 = vst.msk [vmem:[#allocation2 + $0x180] sm:$0xff] %vm1964_vm0, %v1051_v30  ;;  %v1764_v31 = vpop.f32.mrf.mxu1 }
 0x22a   : > { %2920 = vst.msk [vmem:[%s3885_s20 + $0xd4] sm:$0xf] %vm2865_vm1, %v2854_v25  ;;  %v2823_v32 = vpack.c.bf16 %v2759_v26, %v2759_v26  ;;  %v2659_v33 = vmax.f32 %v2583_v22, %v2587_v28  ;;  %v2396_v34 = vld [vmem:[#allocation3 + $0x178] sm:$0xff] }
 0x22b   : > { %v2524_v36 = vmax.f32 %v2268_v29, %v2396_v34  ;;  %2141 = vst.msk [vmem:[#allocation3 + $0x180] sm:$0xff] %vm1964_vm0, %v1764_v31 }
 0x22c   : > { %2889 = vst.msk [vmem:[%s3885_s20 + $0x58] sm:$0xf] %vm2865_vm1, %v2823_v32  ;;  %v2727_v37 = vadd.f32 %v4099_v27, %v2659_v33 }
 0x22d   : > { %v2628_v40 = vmax.f32 %v2520_v35, %v2524_v36 }
 0x22e   : > { %v2791_v41 = vmax.f32 %v2727_v37, 0.0  ;;  %v2332_v42 = vld [vmem:[#allocation2 + $0x378] sm:$0xff]  ;;  %v1211_v43 = vpop.f32.mrf.mxu2 }
 0x22f   : > { %v2696_v44 = vadd.f32 %v4099_v27, %v2628_v40  ;;  %v2460_v45 = vld [vmem:[#allocation3 + $0x378] sm:$0xff]  ;;  %2077 = vst.msk [vmem:[#allocation2 + $0x380] sm:$0xff] %vm1964_vm0, %v1211_v43  ;;  %v1924_v46 = vpop.f32.mrf.mxu3 }
 0x230   : > { %v2855_v48 = vpack.c.bf16 %v2791_v41, %v2791_v41  ;;  %v2588_v49 = vmax.f32 %v2332_v42, %v2460_v45  ;;  %2205 = vst.msk [vmem:[#allocation3 + $0x380] sm:$0xff] %vm1964_vm0, %v1924_v46  ;;  %v1053_v50 = vpop.f32.mrf.mxu0  ;;  %v2269_v5 = vld [vmem:[#allocation2 + $0x180] sm:$0xff] }
 0x231   : > { %v2760_v51 = vmax.f32 %v2696_v44, 0.0  ;;  %2014 = vst.msk [vmem:[#allocation2 + $0x188] sm:$0xff] %vm1964_vm0, %v1053_v50  ;;  %v1766_v52 = vpop.f32.mrf.mxu1 }
 0x232   : > { %2921 = vst.msk [vmem:[%s3885_s20 + $0xd8] sm:$0xf] %vm2865_vm1, %v2855_v48  ;;  %v2660_v53 = vmax.f32 %v2584_v47, %v2588_v49  ;;  %v2397_v6 = vld [vmem:[#allocation3 + $0x180] sm:$0xff] }
 0x233   : > { %v2824_v54 = vpack.c.bf16 %v2760_v51, %v2760_v51  ;;  %2142 = vst.msk [vmem:[#allocation3 + $0x188] sm:$0xff] %vm1964_vm0, %v1766_v52  ;;  %v2525_v12 = vmax.f32 %v2269_v5, %v2397_v6 }
 0x234   : > { %v2728_v55 = vadd.f32 %v4099_v27, %v2660_v53 }
 0x235   : > { %2890 = vst.msk [vmem:[%s3885_s20 + $0x5c] sm:$0x3] %vm2869_vm2, %v2824_v54 }
 0x236   : > { %v2792_v56 = vmax.f32 %v2728_v55, 0.0  ;;  %v1213_v57 = vpop.f32.mrf.mxu2  ;;  %v2333_v15 = vld [vmem:[#allocation2 + $0x380] sm:$0xff] }
 0x237   : > { %2078 = vst.msk [vmem:[#allocation2 + $0x388] sm:$0xff] %vm1964_vm0, %v1213_v57  ;;  %v1926_v58 = vpop.f32.mrf.mxu3  ;;  %v2461_v17 = vld [vmem:[#allocation3 + $0x380] sm:$0xff] }
 0x238   : > { %v2856_v59 = vpack.c.bf16 %v2792_v56, %v2792_v56  ;;  %2206 = vst.msk [vmem:[#allocation3 + $0x388] sm:$0xff] %vm1964_vm0, %v1926_v58  ;;  %v1056_v60 = vpop.f32.mrf.mxu0  ;;  %v2270_v22 = vld [vmem:[#allocation2 + $0x188] sm:$0xff]  ;;  %v2589_v26 = vmax.f32 %v2333_v15, %v2461_v17 }
 0x239   : > { %2015 = vst.msk [vmem:[#allocation2 + $0x190] sm:$0xff] %vm1964_vm0, %v1056_v60  ;;  %v1769_v61 = vpop.f32.mrf.mxu1 }
 0x23a   : > { %2922 = vst.msk [vmem:[%s3885_s20 + $0xdc] sm:$0x3] %vm2869_vm2, %v2856_v59  ;;  %v2398_v23 = vld [vmem:[#allocation3 + $0x188] sm:$0xff] }
 0x23b   : > { %2143 = vst.msk [vmem:[#allocation3 + $0x190] sm:$0xff] %vm1964_vm0, %v1769_v61  ;;  %v2526_v34 = vmax.f32 %v2270_v22, %v2398_v23 }
 0x23e   : > { %v1216_v62 = vpop.f32.mrf.mxu2  ;;  %v2334_v40 = vld [vmem:[#allocation2 + $0x388] sm:$0xff] }
 0x23f   : > { %2079 = vst.msk [vmem:[#allocation2 + $0x390] sm:$0xff] %vm1964_vm0, %v1216_v62  ;;  %v1929_v27 = vpop.f32.mrf.mxu3  ;;  %v2462_v41 = vld [vmem:[#allocation3 + $0x388] sm:$0xff] }
 0x240   : > { %2207 = vst.msk [vmem:[#allocation3 + $0x390] sm:$0xff] %vm1964_vm0, %v1929_v27  ;;  %v1058_v63 = vpop.f32.mrf.mxu0  ;;  %v2271_v46 = vld [vmem:[#allocation2 + $0x190] sm:$0xff]  ;;  %v2590_v50 = vmax.f32 %v2334_v40, %v2462_v41 }
 0x241   : > { %2016 = vst.msk [vmem:[#allocation2 + $0x198] sm:$0xff] %vm1964_vm0, %v1058_v63  ;;  %v1771_v16 = vpop.f32.mrf.mxu1 }
 0x242   : > { %2144 = vst.msk [vmem:[#allocation3 + $0x198] sm:$0xff] %vm1964_vm0, %v1771_v16  ;;  %v2399_v47 = vld [vmem:[#allocation3 + $0x190] sm:$0xff] }
 0x243   : > { %v2527_v58 = vmax.f32 %v2271_v46, %v2399_v47 }
 0x246   : > { %v1218_v0 = vpop.f32.mrf.mxu2  ;;  %v2335_v63 = vld [vmem:[#allocation2 + $0x390] sm:$0xff] }
 0x247   : > { %2080 = vst.msk [vmem:[#allocation2 + $0x398] sm:$0xff] %vm1964_vm0, %v1218_v0  ;;  %v1931_v1 = vpop.f32.mrf.mxu3  ;;  %v2463_v16 = vld [vmem:[#allocation3 + $0x390] sm:$0xff] }
 0x248   : > { %2208 = vst.msk [vmem:[#allocation3 + $0x398] sm:$0xff] %vm1964_vm0, %v1931_v1  ;;  %v1061_v2 = vpop.f32.mrf.mxu0  ;;  %v2591_v6 = vmax.f32 %v2335_v63, %v2463_v16 }
 0x249   : > { %2017 = vst.msk [vmem:[#allocation2 + $0x1a0] sm:$0xff] %vm1964_vm0, %v1061_v2  ;;  %v1774_v3 = vpop.f32.mrf.mxu1 }
 0x24a   : > { %2145 = vst.msk [vmem:[#allocation3 + $0x1a0] sm:$0xff] %vm1964_vm0, %v1774_v3 }
 0x24e   : > { %v1221_v4 = vpop.f32.mrf.mxu2  ;;  %v2336_v23 = vld [vmem:[#allocation2 + $0x398] sm:$0xff] }
 0x24f   : > { %2081 = vst.msk [vmem:[#allocation2 + $0x3a0] sm:$0xff] %vm1964_vm0, %v1221_v4  ;;  %v1934_v7 = vpop.f32.mrf.mxu3 }
 0x250   : > { %v2273_v8 = vld [vmem:[#allocation2 + $0x1a0] sm:$0xff]  ;;  %2209 = vst.msk [vmem:[#allocation3 + $0x3a0] sm:$0xff] %vm1964_vm0, %v1934_v7  ;;  %v1063_v9 = vpop.f32.mrf.mxu0  ;;  %v2272_v7 = vld [vmem:[#allocation2 + $0x198] sm:$0xff] }
 0x251   : > { %v2401_v10 = vld [vmem:[#allocation3 + $0x1a0] sm:$0xff]  ;;  %2018 = vst.msk [vmem:[#allocation2 + $0x1a8] sm:$0xff] %vm1964_vm0, %v1063_v9  ;;  %v1776_v11 = vpop.f32.mrf.mxu1 }
 0x252   : > { %v2529_v13 = vmax.f32 %v2273_v8, %v2401_v10  ;;  %2146 = vst.msk [vmem:[#allocation3 + $0x1a8] sm:$0xff] %vm1964_vm0, %v1776_v11  ;;  %v2400_v8 = vld [vmem:[#allocation3 + $0x198] sm:$0xff] }
 0x254   : > { %v2629_v14 = vmax.f32 %v2525_v12, %v2529_v13 }
 0x256   : > { %v2697_v19 = vadd.f32 %v4308_v18, %v2629_v14  ;;  %v2337_v20 = vld [vmem:[#allocation2 + $0x3a0] sm:$0xff]  ;;  %v1223_v21 = vpop.f32.mrf.mxu2 }
 0x257   : > { %v2465_v24 = vld [vmem:[#allocation3 + $0x3a0] sm:$0xff]  ;;  %2082 = vst.msk [vmem:[#allocation2 + $0x3a8] sm:$0xff] %vm1964_vm0, %v1223_v21  ;;  %v1936_v25 = vpop.f32.mrf.mxu3 }
 0x258   : > { %v2761_v28 = vmax.f32 %v2697_v19, 0.0  ;;  %v2593_v29 = vmax.f32 %v2337_v20, %v2465_v24  ;;  %v2274_v30 = vld [vmem:[#allocation2 + $0x1a8] sm:$0xff]  ;;  %2210 = vst.msk [vmem:[#allocation3 + $0x3a8] sm:$0xff] %vm1964_vm0, %v1936_v25  ;;  %v1066_v31 = vpop.f32.mrf.mxu0  ;;  %v2528_v20 = vmax.f32 %v2272_v7, %v2400_v8  ;;  %v2464_v24 = vld [vmem:[#allocation3 + $0x398] sm:$0xff] }
 0x259   : > { %v2402_v32 = vld [vmem:[#allocation3 + $0x1a8] sm:$0xff]  ;;  %2019 = vst.msk [vmem:[#allocation2 + $0x1b0] sm:$0xff] %vm1964_vm0, %v1066_v31  ;;  %v1779_v33 = vpop.f32.mrf.mxu1 }
 0x25a   : > { %v2825_v35 = vpack.c.bf16 %v2761_v28, %v2761_v28  ;;  %v2661_v36 = vmax.f32 %v2589_v26, %v2593_v29  ;;  %v2530_v37 = vmax.f32 %v2274_v30, %v2402_v32  ;;  %2147 = vst.msk [vmem:[#allocation3 + $0x1b0] sm:$0xff] %vm1964_vm0, %v1779_v33  ;;  %v2592_v33 = vmax.f32 %v2336_v23, %v2464_v24 }
 0x25c   : > { %2891 = vst.msk [vmem:[%s3885_s20 + $0x60] sm:$0xf] %vm2865_vm1, %v2825_v35  ;;  %v2729_v38 = vadd.f32 %v4308_v18, %v2661_v36  ;;  %v2630_v39 = vmax.f32 %v2526_v34, %v2530_v37 }
 0x25e   : > { %v2793_v42 = vmax.f32 %v2729_v38, 0.0  ;;  %v2698_v43 = vadd.f32 %v4308_v18, %v2630_v39  ;;  %v2338_v44 = vld [vmem:[#allocation2 + $0x3a8] sm:$0xff]  ;;  %v1226_v45 = vpop.f32.mrf.mxu2 }
 0x25f   : > { %v2466_v48 = vld [vmem:[#allocation3 + $0x3a8] sm:$0xff]  ;;  %2083 = vst.msk [vmem:[#allocation2 + $0x3b0] sm:$0xff] %vm1964_vm0, %v1226_v45  ;;  %v1939_v49 = vpop.f32.mrf.mxu3 }
 0x260   : > { %v2857_v51 = vpack.c.bf16 %v2793_v42, %v2793_v42  ;;  %v2762_v52 = vmax.f32 %v2698_v43, 0.0  ;;  %v2594_v53 = vmax.f32 %v2338_v44, %v2466_v48  ;;  %v2275_v54 = vld [vmem:[#allocation2 + $0x1b0] sm:$0xff]  ;;  %2211 = vst.msk [vmem:[#allocation3 + $0x3b0] sm:$0xff] %vm1964_vm0, %v1939_v49  ;;  %v1068_v55 = vpop.f32.mrf.mxu0 }
 0x261   : > { %v2403_v56 = vld [vmem:[#allocation3 + $0x1b0] sm:$0xff]  ;;  %2020 = vst.msk [vmem:[#allocation2 + $0x1b8] sm:$0xff] %vm1964_vm0, %v1068_v55  ;;  %v1781_v57 = vpop.f32.mrf.mxu1 }
 0x262   : > { %2923 = vst.msk [vmem:[%s3885_s20 + $0xe0] sm:$0xf] %vm2865_vm1, %v2857_v51  ;;  %v2826_v59 = vpack.c.bf16 %v2762_v52, %v2762_v52  ;;  %v2662_v60 = vmax.f32 %v2590_v50, %v2594_v53  ;;  %v2531_v61 = vmax.f32 %v2275_v54, %v2403_v56 }
 0x263   : > { %2148 = vst.msk [vmem:[#allocation3 + $0x1b8] sm:$0xff] %vm1964_vm0, %v1781_v57 }
 0x264   : > { %2892 = vst.msk [vmem:[%s3885_s20 + $0x64] sm:$0xf] %vm2865_vm1, %v2826_v59  ;;  %v2730_v62 = vadd.f32 %v4308_v18, %v2662_v60  ;;  %v2631_v27 = vmax.f32 %v2527_v58, %v2531_v61 }
 0x266   : > { %v2794_v0 = vmax.f32 %v2730_v62, 0.0  ;;  %v2699_v1 = vadd.f32 %v4308_v18, %v2631_v27  ;;  %v2339_v2 = vld [vmem:[#allocation2 + $0x3b0] sm:$0xff]  ;;  %v1228_v3 = vpop.f32.mrf.mxu2 }
 0x267   : > { %v2467_v4 = vld [vmem:[#allocation3 + $0x3b0] sm:$0xff]  ;;  %2084 = vst.msk [vmem:[#allocation2 + $0x3b8] sm:$0xff] %vm1964_vm0, %v1228_v3  ;;  %v1941_v5 = vpop.f32.mrf.mxu3 }
 0x268   : > { %v2858_v9 = vpack.c.bf16 %v2794_v0, %v2794_v0  ;;  %v2763_v10 = vmax.f32 %v2699_v1, 0.0  ;;  %v2595_v11 = vmax.f32 %v2339_v2, %v2467_v4  ;;  %v2276_v12 = vld [vmem:[#allocation2 + $0x1b8] sm:$0xff]  ;;  %2212 = vst.msk [vmem:[#allocation3 + $0x3b8] sm:$0xff] %vm1964_vm0, %v1941_v5  ;;  %v1071_v13 = vpop.f32.mrf.mxu0 }
 0x269   : > { %2021 = vst.msk [vmem:[#allocation2 + $0x1c0] sm:$0xff] %vm1964_vm0, %v1071_v13  ;;  %v1784_v14 = vpop.f32.mrf.mxu1 }
 0x26a   : > { %2924 = vst.msk [vmem:[%s3885_s20 + $0xe4] sm:$0xf] %vm2865_vm1, %v2858_v9  ;;  %v2827_v15 = vpack.c.bf16 %v2763_v10, %v2763_v10  ;;  %v2663_v17 = vmax.f32 %v2591_v6, %v2595_v11  ;;  %v2404_v19 = vld [vmem:[#allocation3 + $0x1b8] sm:$0xff] }
 0x26b   : > { %v2532_v21 = vmax.f32 %v2276_v12, %v2404_v19  ;;  %2149 = vst.msk [vmem:[#allocation3 + $0x1c0] sm:$0xff] %vm1964_vm0, %v1784_v14 }
 0x26c   : > { %2893 = vst.msk [vmem:[%s3885_s20 + $0x68] sm:$0xf] %vm2865_vm1, %v2827_v15  ;;  %v2731_v22 = vadd.f32 %v4308_v18, %v2663_v17 }
 0x26d   : > { %v2632_v25 = vmax.f32 %v2528_v20, %v2532_v21 }
 0x26e   : > { %v2795_v26 = vmax.f32 %v2731_v22, 0.0  ;;  %v2340_v28 = vld [vmem:[#allocation2 + $0x3b8] sm:$0xff]  ;;  %v1231_v29 = vpop.f32.mrf.mxu2 }
 0x26f   : > { %v2700_v30 = vadd.f32 %v4308_v18, %v2632_v25  ;;  %v2468_v31 = vld [vmem:[#allocation3 + $0x3b8] sm:$0xff]  ;;  %2085 = vst.msk [vmem:[#allocation2 + $0x3c0] sm:$0xff] %vm1964_vm0, %v1231_v29  ;;  %v1944_v32 = vpop.f32.mrf.mxu3 }
 0x270   : > { %v2859_v34 = vpack.c.bf16 %v2795_v26, %v2795_v26  ;;  %v2596_v35 = vmax.f32 %v2340_v28, %v2468_v31  ;;  %2213 = vst.msk [vmem:[#allocation3 + $0x3c0] sm:$0xff] %vm1964_vm0, %v1944_v32  ;;  %v1073_v36 = vpop.f32.mrf.mxu0  ;;  %v2277_v57 = vld [vmem:[#allocation2 + $0x1c0] sm:$0xff] }
 0x271   : > { %v2764_v37 = vmax.f32 %v2700_v30, 0.0  ;;  %2022 = vst.msk [vmem:[#allocation2 + $0x1c8] sm:$0xff] %vm1964_vm0, %v1073_v36  ;;  %v1786_v38 = vpop.f32.mrf.mxu1 }
 0x272   : > { %2925 = vst.msk [vmem:[%s3885_s20 + $0xe8] sm:$0xf] %vm2865_vm1, %v2859_v34  ;;  %v2664_v39 = vmax.f32 %v2592_v33, %v2596_v35  ;;  %v2405_v58 = vld [vmem:[#allocation3 + $0x1c0] sm:$0xff] }
 0x273   : > { %v2828_v40 = vpack.c.bf16 %v2764_v37, %v2764_v37  ;;  %2150 = vst.msk [vmem:[#allocation3 + $0x1c8] sm:$0xff] %vm1964_vm0, %v1786_v38  ;;  %v2533_v63 = vmax.f32 %v2277_v57, %v2405_v58 }
 0x274   : > { %v2732_v41 = vadd.f32 %v4308_v18, %v2664_v39 }
 0x275   : > { %2894 = vst.msk [vmem:[%s3885_s20 + $0x6c] sm:$0x3] %vm2869_vm2, %v2828_v40 }
 0x276   : > { %v2796_v42 = vmax.f32 %v2732_v41, 0.0  ;;  %v1233_v43 = vpop.f32.mrf.mxu2  ;;  %v2341_v1 = vld [vmem:[#allocation2 + $0x3c0] sm:$0xff] }
 0x277   : > { %2086 = vst.msk [vmem:[#allocation2 + $0x3c8] sm:$0xff] %vm1964_vm0, %v1233_v43  ;;  %v1946_v44 = vpop.f32.mrf.mxu3  ;;  %v2469_v2 = vld [vmem:[#allocation3 + $0x3c0] sm:$0xff] }
 0x278   : > { %v2860_v45 = vpack.c.bf16 %v2796_v42, %v2796_v42  ;;  %2214 = vst.msk [vmem:[#allocation3 + $0x3c8] sm:$0xff] %vm1964_vm0, %v1946_v44  ;;  %v1076_v46 = vpop.f32.mrf.mxu0  ;;  %v2278_v6 = vld [vmem:[#allocation2 + $0x1c8] sm:$0xff]  ;;  %v2597_v10 = vmax.f32 %v2341_v1, %v2469_v2 }
 0x279   : > { %2023 = vst.msk [vmem:[#allocation2 + $0x1d0] sm:$0xff] %vm1964_vm0, %v1076_v46  ;;  %v1789_v47 = vpop.f32.mrf.mxu1 }
 0x27a   : > { %2926 = vst.msk [vmem:[%s3885_s20 + $0xec] sm:$0x3] %vm2869_vm2, %v2860_v45  ;;  %v2406_v7 = vld [vmem:[#allocation3 + $0x1c8] sm:$0xff] }
 0x27b   : > { %2151 = vst.msk [vmem:[#allocation3 + $0x1d0] sm:$0xff] %vm1964_vm0, %v1789_v47  ;;  %v2534_v19 = vmax.f32 %v2278_v6, %v2406_v7 }
 0x27e   : > { %v1236_v48 = vpop.f32.mrf.mxu2  ;;  %v2342_v25 = vld [vmem:[#allocation2 + $0x3c8] sm:$0xff] }
 0x27f   : > { %2087 = vst.msk [vmem:[#allocation2 + $0x3d0] sm:$0xff] %vm1964_vm0, %v1236_v48  ;;  %v1949_v49 = vpop.f32.mrf.mxu3  ;;  %v2470_v26 = vld [vmem:[#allocation3 + $0x3c8] sm:$0xff] }
 0x280   : > { %2215 = vst.msk [vmem:[#allocation3 + $0x3d0] sm:$0xff] %vm1964_vm0, %v1949_v49  ;;  %v1078_v50 = vpop.f32.mrf.mxu0  ;;  %v2279_v32 = vld [vmem:[#allocation2 + $0x1d0] sm:$0xff]  ;;  %v2598_v36 = vmax.f32 %v2342_v25, %v2470_v26 }
 0x281   : > { %2024 = vst.msk [vmem:[#allocation2 + $0x1d8] sm:$0xff] %vm1964_vm0, %v1078_v50  ;;  %v1791_v51 = vpop.f32.mrf.mxu1 }
 0x282   : > { %2152 = vst.msk [vmem:[#allocation3 + $0x1d8] sm:$0xff] %vm1964_vm0, %v1791_v51  ;;  %v2407_v33 = vld [vmem:[#allocation3 + $0x1d0] sm:$0xff] }
 0x283   : > { %v2535_v44 = vmax.f32 %v2279_v32, %v2407_v33 }
 0x286   : > { %v1238_v52 = vpop.f32.mrf.mxu2  ;;  %v2343_v50 = vld [vmem:[#allocation2 + $0x3d0] sm:$0xff] }
 0x287   : > { %2088 = vst.msk [vmem:[#allocation2 + $0x3d8] sm:$0xff] %vm1964_vm0, %v1238_v52  ;;  %v1951_v53 = vpop.f32.mrf.mxu3  ;;  %v2471_v51 = vld [vmem:[#allocation3 + $0x3d0] sm:$0xff] }
 0x288   : > { %2216 = vst.msk [vmem:[#allocation3 + $0x3d8] sm:$0xff] %vm1964_vm0, %v1951_v53  ;;  %v1081_v54 = vpop.f32.mrf.mxu0  ;;  %v2599_v58 = vmax.f32 %v2343_v50, %v2471_v51 }
 0x289   : > { %2025 = vst.msk [vmem:[#allocation2 + $0x1e0] sm:$0xff] %vm1964_vm0, %v1081_v54  ;;  %v1794_v55 = vpop.f32.mrf.mxu1 }
 0x28a   : > { %2153 = vst.msk [vmem:[#allocation3 + $0x1e0] sm:$0xff] %vm1964_vm0, %v1794_v55 }
 0x28e   : > { %v1241_v56 = vpop.f32.mrf.mxu2 }
 0x28f   : > { %2089 = vst.msk [vmem:[#allocation2 + $0x3e0] sm:$0xff] %vm1964_vm0, %v1241_v56  ;;  %v1954_v59 = vpop.f32.mrf.mxu3  ;;  %v2472_v6 = vld [vmem:[#allocation3 + $0x3d8] sm:$0xff] }
 0x290   : > { %v2281_v60 = vld [vmem:[#allocation2 + $0x1e0] sm:$0xff]  ;;  %2217 = vst.msk [vmem:[#allocation3 + $0x3e0] sm:$0xff] %vm1964_vm0, %v1954_v59  ;;  %v1083_v61 = vpop.f32.mrf.mxu0  ;;  %v2280_v59 = vld [vmem:[#allocation2 + $0x1d8] sm:$0xff] }
 0x291   : > { %v2409_v62 = vld [vmem:[#allocation3 + $0x1e0] sm:$0xff]  ;;  %2026 = vst.msk [vmem:[#allocation2 + $0x1e8] sm:$0xff] %vm1964_vm0, %v1083_v61  ;;  %v1796_v27 = vpop.f32.mrf.mxu1 }
 0x292   : > { %v2537_v16 = vmax.f32 %v2281_v60, %v2409_v62  ;;  %2154 = vst.msk [vmem:[#allocation3 + $0x1e8] sm:$0xff] %vm1964_vm0, %v1796_v27  ;;  %v2408_v60 = vld [vmem:[#allocation3 + $0x1d8] sm:$0xff] }
 0x293   : > { %v2536_v2 = vmax.f32 %v2280_v59, %v2408_v60 }
 0x294   : > { %v2633_v0 = vmax.f32 %v2533_v63, %v2537_v16 }
 0x296   : > { %v2701_v3 = vadd.f32 %v4308_v18, %v2633_v0  ;;  %v2345_v4 = vld [vmem:[#allocation2 + $0x3e0] sm:$0xff]  ;;  %v1243_v5 = vpop.f32.mrf.mxu2 }
 0x297   : > { %v2473_v8 = vld [vmem:[#allocation3 + $0x3e0] sm:$0xff]  ;;  %2090 = vst.msk [vmem:[#allocation2 + $0x3e8] sm:$0xff] %vm1964_vm0, %v1243_v5  ;;  %v1956_v9 = vpop.f32.mrf.mxu3  ;;  %v2344_v5 = vld [vmem:[#allocation2 + $0x3d8] sm:$0xff] }
 0x298   : > { %v2765_v11 = vmax.f32 %v2701_v3, 0.0  ;;  %v2601_v12 = vmax.f32 %v2345_v4, %v2473_v8  ;;  %v2282_v13 = vld [vmem:[#allocation2 + $0x1e8] sm:$0xff]  ;;  %2218 = vst.msk [vmem:[#allocation3 + $0x3e8] sm:$0xff] %vm1964_vm0, %v1956_v9  ;;  %v1086_v14 = vpop.f32.mrf.mxu0 }
 0x299   : > { %v2410_v15 = vld [vmem:[#allocation3 + $0x1e8] sm:$0xff]  ;;  %2027 = vst.msk [vmem:[#allocation2 + $0x1f0] sm:$0xff] %vm1964_vm0, %v1086_v14  ;;  %v1799_v17 = vpop.f32.mrf.mxu1 }
 0x29a   : > { %v2829_v20 = vpack.c.bf16 %v2765_v11, %v2765_v11  ;;  %v2665_v21 = vmax.f32 %v2597_v10, %v2601_v12  ;;  %v2538_v22 = vmax.f32 %v2282_v13, %v2410_v15  ;;  %2155 = vst.msk [vmem:[#allocation3 + $0x1f0] sm:$0xff] %vm1964_vm0, %v1799_v17  ;;  %v2600_v12 = vmax.f32 %v2344_v5, %v2472_v6 }
 0x29c   : > { %2895 = vst.msk [vmem:[%s3885_s20 + $0x70] sm:$0xf] %vm2865_vm1, %v2829_v20  ;;  %v2733_v23 = vadd.f32 %v4308_v18, %v2665_v21  ;;  %v2634_v24 = vmax.f32 %v2534_v19, %v2538_v22 }
 0x29e   : > { %v2797_v28 = vmax.f32 %v2733_v23, 0.0  ;;  %v2702_v29 = vadd.f32 %v4308_v18, %v2634_v24  ;;  %v2346_v30 = vld [vmem:[#allocation2 + $0x3e8] sm:$0xff]  ;;  %v1246_v31 = vpop.f32.mrf.mxu2 }
 0x29f   : > { %v2474_v34 = vld [vmem:[#allocation3 + $0x3e8] sm:$0xff]  ;;  %2091 = vst.msk [vmem:[#allocation2 + $0x3f0] sm:$0xff] %vm1964_vm0, %v1246_v31  ;;  %v1959_v35 = vpop.f32.mrf.mxu3 }
 0x2a0   : > { %v2861_v37 = vpack.c.bf16 %v2797_v28, %v2797_v28  ;;  %v2766_v38 = vmax.f32 %v2702_v29, 0.0  ;;  %v2602_v39 = vmax.f32 %v2346_v30, %v2474_v34  ;;  %v2283_v40 = vld [vmem:[#allocation2 + $0x1f0] sm:$0xff]  ;;  %2219 = vst.msk [vmem:[#allocation3 + $0x3f0] sm:$0xff] %vm1964_vm0, %v1959_v35  ;;  %v1088_v41 = vpop.f32.mrf.mxu0 }
 0x2a1   : > { %v2411_v42 = vld [vmem:[#allocation3 + $0x1f0] sm:$0xff]  ;;  %2028 = vst.msk [vmem:[#allocation2 + $0x1f8] sm:$0xff] %vm1964_vm0, %v1088_v41  ;;  %v1801_v43 = vpop.f32.mrf.mxu1 }
 0x2a2   : > { %2927 = vst.msk [vmem:[%s3885_s20 + $0xf0] sm:$0xf] %vm2865_vm1, %v2861_v37  ;;  %v2830_v45 = vpack.c.bf16 %v2766_v38, %v2766_v38  ;;  %v2666_v46 = vmax.f32 %v2598_v36, %v2602_v39  ;;  %v2539_v47 = vmax.f32 %v2283_v40, %v2411_v42 }
 0x2a3   : > { %2156 = vst.msk [vmem:[#allocation3 + $0x1f8] sm:$0xff] %vm1964_vm0, %v1801_v43 }
 0x2a4   : > { %2896 = vst.msk [vmem:[%s3885_s20 + $0x74] sm:$0xf] %vm2865_vm1, %v2830_v45  ;;  %v2734_v48 = vadd.f32 %v4308_v18, %v2666_v46  ;;  %v2635_v49 = vmax.f32 %v2535_v44, %v2539_v47 }
 0x2a6   : > { %v2798_v52 = vmax.f32 %v2734_v48, 0.0  ;;  %v2703_v53 = vadd.f32 %v4308_v18, %v2635_v49  ;;  %v2347_v54 = vld [vmem:[#allocation2 + $0x3f0] sm:$0xff]  ;;  %v1248_v55 = vpop.f32.mrf.mxu2 }
 0x2a7   : > { %v2475_v56 = vld [vmem:[#allocation3 + $0x3f0] sm:$0xff]  ;;  %2092 = vst.msk [vmem:[#allocation2 + $0x3f8] sm:$0xff] %vm1964_vm0, %v1248_v55  ;;  %v1961_v57 = vpop.f32.mrf.mxu3 }
 0x2a8   : > { %v2862_v61 = vpack.c.bf16 %v2798_v52, %v2798_v52  ;;  %v2767_v62 = vmax.f32 %v2703_v53, 0.0  ;;  %v2603_v27 = vmax.f32 %v2347_v54, %v2475_v56  ;;  %v2284_v63 = vld [vmem:[#allocation2 + $0x1f8] sm:$0xff]  ;;  %2220 = vst.msk [vmem:[#allocation3 + $0x3f8] sm:$0xff] %vm1964_vm0, %v1961_v57 }
 0x2aa   : > { %2928 = vst.msk [vmem:[%s3885_s20 + $0xf4] sm:$0xf] %vm2865_vm1, %v2862_v61  ;;  %v2831_v16 = vpack.c.bf16 %v2767_v62, %v2767_v62  ;;  %v2667_v0 = vmax.f32 %v2599_v58, %v2603_v27  ;;  %v2412_v1 = vld [vmem:[#allocation3 + $0x1f8] sm:$0xff] }
 0x2ab   : > { %v2540_v3 = vmax.f32 %v2284_v63, %v2412_v1 }
 0x2ac   : > { %2897 = vst.msk [vmem:[%s3885_s20 + $0x78] sm:$0xf] %vm2865_vm1, %v2831_v16  ;;  %v2735_v4 = vadd.f32 %v4308_v18, %v2667_v0 }
 0x2ad   : > { %v2636_v7 = vmax.f32 %v2536_v2, %v2540_v3 }
 0x2ae   : > { %v2799_v8 = vmax.f32 %v2735_v4, 0.0  ;;  %v2348_v9 = vld [vmem:[#allocation2 + $0x3f8] sm:$0xff] }
 0x2af   : > { %v2704_v10 = vadd.f32 %v4308_v18, %v2636_v7  ;;  %v2476_v11 = vld [vmem:[#allocation3 + $0x3f8] sm:$0xff] }
 0x2b0   : > { %v2863_v13 = vpack.c.bf16 %v2799_v8, %v2799_v8  ;;  %v2604_v14 = vmax.f32 %v2348_v9, %v2476_v11 }
 0x2b1   : > { %v2768_v15 = vmax.f32 %v2704_v10, 0.0 }
 0x2b2   : > { %2929 = vst.msk [vmem:[%s3885_s20 + $0xf8] sm:$0xf] %vm2865_vm1, %v2863_v13  ;;  %v2668_v17 = vmax.f32 %v2600_v12, %v2604_v14 }
 0x2b3   : > { %v2832_v19 = vpack.c.bf16 %v2768_v15, %v2768_v15 }
 0x2b4   : > { %v2736_v20 = vadd.f32 %v4308_v18, %v2668_v17 }
 0x2b5   : > { %2898 = vst.msk [vmem:[%s3885_s20 + $0x7c] sm:$0x3] %vm2869_vm2, %v2832_v19 }
 0x2b6   : > { %v2800_v21 = vmax.f32 %v2736_v20, 0.0 }
 0x2b8   : > { %v2864_v22 = vpack.c.bf16 %v2800_v21, %v2800_v21 }
 0x2ba   : > { %2930 = vst.msk [vmem:[%s3885_s20 + $0xfc] sm:$0x3] %vm2869_vm2, %v2864_v22 }
 0x2bb PF: > { %s14_s15 = sadd.s32 1, %s3727_s15  }
 0x2bc   : > { %p11_p4 = scmp.ge.s32.totalorder %s14_s15, 4  }
 0x2be   :  { %13 = sbr.rel (!%p11_p4) target bundleno = 1 (0x1), region = 69 }

// kernel: net_forward.6
= control target key start
LH: loop header
LB: loop body
LE: loop exit
PB: predicated region body
PF: predicated region fallthrough
CT: control target
= control target key end

     0   :  { %s1360_s15 = smov 0   ;;  %s1567_s0 = inlined_call_operand.vmem [shape: bf16[2,80,128], index: 0, kind: input, shape index: {}]   ;;  %s1568_s1 = inlined_call_operand.vmem [shape: bf16[2,80,128], index: 1, kind: input, shape index: {}]   ;;  %s1569_s2 = inlined_call_operand.vmem [shape: bf16[3,128,64], index: 2, kind: input, shape index: {}]   ;;  %s1570_s3 = inlined_call_operand.vmem [shape: f32[1,1,64], index: 3, kind: input, shape index: {}]   ;;  %s1571_s4 = inlined_call_operand.vmem [shape: bf16[2,4,7,64], index: 4, kind: output, shape index: {}]  }
   0x1 LB: > { %s1017_s16 = sadd.s32 4294967295, %s1333_s15   ;;  %p1021_p0 = scmp.ge.s32.totalorder %s1333_s15, 1  ;;  %s1333_s15 = sphi %s1360_s15, %s14_s15  }
   0x2   : > { %p172_p1 = scmp.lt.s32.totalorder %s1333_s15, 3 }
   0x4   : > { %p173_p2 = pnand %p1021_p0, %p172_p1 }
   0x5   : > { %p203_p3 = scmp.lt.s32.totalorder (!%p173_p2), %s1017_s16, 1 }
   0x6   : > { %176 = sbr.rel (%p173_p2) target bundleno = 296 (0x128), region = 36 }
   0xb   : > { %v1260_v0 = vld [vmem:[%s1569_s2 + $0x38] sm:$0xff]  ;;  %v1259_v1 = vld [vmem:[%s1569_s2 + $0x30] sm:$0xff]  ;;  %v1258_v2 = vld [vmem:[%s1569_s2 + $0x28] sm:$0xff]  ;;  %s1575_s16 = smov (!%p203_p3, %s1017_s16), 1  ;;  %vm404_vm0 = vcmask 523264   ;;  %vm935_vm1 = vcmask 519168  }
   0xc   : > { %1301 = vmatpush.bf16.msra.mxu2 %v1260_v0  ;;  %1309 = vmatpush.bf16.msra.mxu3 %v1260_v0  ;;  %v1257_v3 = vld [vmem:[%s1569_s2 + $0x20] sm:$0xff]  ;;  %v1256_v4 = vld [vmem:[%s1569_s2 + $0x18] sm:$0xff]  ;;  %v1255_v5 = vld [vmem:[%s1569_s2 + $0x10] sm:$0xff]  ;;  %s1317_s5 = smul.u32 40, %s1575_s16  ;;  %s1252_s26 = sshll.u32 %s1575_s16, 4 }
   0xd   : > { %322 = vmatpush.bf16.msra.mxu0 %v1260_v0  ;;  %375 = vmatpush.bf16.msra.mxu1 %v1260_v0  ;;  %v1254_v6 = vld [vmem:[%s1569_s2 + $0x8] sm:$0xff]  ;;  %v1253_v7 = vld [vmem:[%s1569_s2] sm:$0xff]  ;;  %v1276_v8 = vld [vmem:[%s1569_s2 + $0x78] sm:$0xff]  ;;  %s1520_s29 = scalar_lea.vmem %s1571_s4, %s1252_s26  ;;  %vm936_vm2 = vsmask.f32 3328 }
   0xe   : > { %s1402_s10 = scalar_lea.vmem %s1567_s0, %s1317_s5  ;;  %s1407_s13 = scalar_lea.vmem %s1568_s1, %s1317_s5  ;;  %v1292_v11 = vld [vmem:[%s1569_s2 + $0xb8] sm:$0xff]  ;;  %v1275_v12 = vld [vmem:[%s1569_s2 + $0x70] sm:$0xff]  ;;  %v1274_v16 = vld [vmem:[%s1569_s2 + $0x68] sm:$0xff] }
   0xf   : > { %v1263_v9 = vld [vmem:[%s1402_s10 + $0x10] sm:$0xff]  ;;  %v1261_v13 = vld [vmem:[%s1402_s10] sm:$0xff]  ;;  %v1290_v17 = vld [vmem:[%s1569_s2 + $0xa8] sm:$0xff] }
  0x10   : > { %1302 = vmatpush.bf16.msra.mxu2 %v1259_v1  ;;  %1310 = vmatpush.bf16.msra.mxu3 %v1259_v1  ;;  %v1267_v10 = vld [vmem:[%s1407_s13 + $0x10] sm:$0xff]  ;;  %v1265_v14 = vld [vmem:[%s1407_s13] sm:$0xff]  ;;  %v1272_v20 = vld [vmem:[%s1569_s2 + $0x58] sm:$0xff] }
  0x11   : > { %323 = vmatpush.bf16.msra.mxu0 %v1259_v1  ;;  %376 = vmatpush.bf16.msra.mxu1 %v1259_v1  ;;  %v1291_v15 = vld [vmem:[%s1569_s2 + $0xb0] sm:$0xff]  ;;  %v1273_v18 = vld [vmem:[%s1569_s2 + $0x60] sm:$0xff]  ;;  %v1264_v21 = vld [vmem:[%s1402_s10 + $0x18] sm:$0xff] }
  0x12   : > { %v1289_v19 = vld [vmem:[%s1569_s2 + $0xa0] sm:$0xff]  ;;  %v1268_v22 = vld [vmem:[%s1407_s13 + $0x18] sm:$0xff]  ;;  %v1271_v24 = vld [vmem:[%s1569_s2 + $0x50] sm:$0xff] }
  0x13   : > { %v1288_v23 = vld [vmem:[%s1569_s2 + $0x98] sm:$0xff]  ;;  %v1262_v25 = vld [vmem:[%s1402_s10 + $0x8] sm:$0xff]  ;;  %v1287_v27 = vld [vmem:[%s1569_s2 + $0x90] sm:$0xff] }
  0x14   : > { %1303 = vmatpush.bf16.msra.mxu2 %v1258_v2  ;;  %1311 = vmatpush.bf16.msra.mxu3 %v1258_v2  ;;  %v1266_v26 = vld [vmem:[%s1407_s13 + $0x8] sm:$0xff]  ;;  %v1269_v30 = vld [vmem:[%s1569_s2 + $0x40] sm:$0xff]  ;;  %v1294_v38 = vld [vmem:[%s1402_s10 + $0x10] sm:$0xff] }
  0x15   : > { %324 = vmatpush.bf16.msra.mxu0 %v1258_v2  ;;  %377 = vmatpush.bf16.msra.mxu1 %v1258_v2  ;;  %v1270_v28 = vld [vmem:[%s1569_s2 + $0x48] sm:$0xff]  ;;  %v1285_v31 = vld [vmem:[%s1569_s2 + $0x80] sm:$0xff]  ;;  %v1298_v39 = vld [vmem:[%s1407_s13 + $0x10] sm:$0xff] }
  0x16   : > { %v1286_v29 = vld [vmem:[%s1569_s2 + $0x88] sm:$0xff]  ;;  %v1279_v40 = vld [vmem:[%s1402_s10 + $0x14] sm:$0xff]  ;;  %v1280_v44 = vld [vmem:[%s1402_s10 + $0x1c] sm:$0xff] }
  0x17   : > { %v1277_v32 = vld [vmem:[%s1402_s10 + $0x4] sm:$0xff]  ;;  %v1278_v36 = vld [vmem:[%s1402_s10 + $0xc] sm:$0xff]  ;;  %v1283_v41 = vld [vmem:[%s1407_s13 + $0x14] sm:$0xff] }
  0x18   : > { %1304 = vmatpush.bf16.msra.mxu2 %v1257_v3  ;;  %1312 = vmatpush.bf16.msra.mxu3 %v1257_v3  ;;  %v1281_v33 = vld [vmem:[%s1407_s13 + $0x4] sm:$0xff]  ;;  %v1282_v37 = vld [vmem:[%s1407_s13 + $0xc] sm:$0xff]  ;;  %v1295_v42 = vld [vmem:[%s1402_s10 + $0x18] sm:$0xff] }
  0x19   : > { %325 = vmatpush.bf16.msra.mxu0 %v1257_v3  ;;  %378 = vmatpush.bf16.msra.mxu1 %v1257_v3  ;;  %v1293_v34 = vld [vmem:[%s1402_s10 + $0x8] sm:$0xff]  ;;  %v1299_v43 = vld [vmem:[%s1407_s13 + $0x18] sm:$0xff]  ;;  %v1296_v46 = vld [vmem:[%s1402_s10 + $0x20] sm:$0xff] }
  0x1a   : > { %v1297_v35 = vld [vmem:[%s1407_s13 + $0x8] sm:$0xff]  ;;  %v1284_v45 = vld [vmem:[%s1407_s13 + $0x1c] sm:$0xff]  ;;  %vm1525_vm3 = vmand %vm935_vm1, %vm936_vm2 }
  0x1b   : > { %v1300_v47 = vld [vmem:[%s1407_s13 + $0x20] sm:$0xff] }
  0x1c   : > { %1305 = vmatpush.bf16.msra.mxu2 %v1256_v4  ;;  %1313 = vmatpush.bf16.msra.mxu3 %v1256_v4 }
  0x1d   : > { %326 = vmatpush.bf16.msra.mxu0 %v1256_v4  ;;  %379 = vmatpush.bf16.msra.mxu1 %v1256_v4 }
  0x20   : > { %1306 = vmatpush.bf16.msra.mxu2 %v1255_v5  ;;  %1314 = vmatpush.bf16.msra.mxu3 %v1255_v5 }
  0x21   : > { %327 = vmatpush.bf16.msra.mxu0 %v1255_v5  ;;  %380 = vmatpush.bf16.msra.mxu1 %v1255_v5 }
  0x24   : > { %1307 = vmatpush.bf16.msra.mxu2 %v1254_v6  ;;  %1315 = vmatpush.bf16.msra.mxu3 %v1254_v6 }
  0x25   : > { %328 = vmatpush.bf16.msra.mxu0 %v1254_v6  ;;  %381 = vmatpush.bf16.msra.mxu1 %v1254_v6 }
  0x28   : > { %1308 = vmatpush.bf16.msra.mxu2 %v1253_v7  ;;  %1316 = vmatpush.bf16.msra.mxu3 %v1253_v7 }
  0x29   : > { %329 = vmatpush.bf16.msra.mxu0 %v1253_v7  ;;  %382 = vmatpush.bf16.msra.mxu1 %v1253_v7 }
  0x2b   : > { %340 = vmatmul.bf16.vlgmr.msra.gmra.mxu2 %v1263_v9  ;;  %393 = vmatmul.bf16.vlgmr.msra.gmra.mxu3 %v1267_v10 }
  0x2c   : > { %526 = vmatpush.bf16.msrb.mxu2 %v1276_v8  ;;  %579 = vmatpush.bf16.msrb.mxu3 %v1276_v8 }
  0x2d   : > { %761 = vmatpush.bf16.msrb.mxu0 %v1292_v11  ;;  %814 = vmatpush.bf16.msrb.mxu1 %v1292_v11 }
  0x2e   : > { %330 = vmatmul.bf16.vlgmr.msra.gmra.mxu0 %v1261_v13  ;;  %383 = vmatmul.bf16.vlgmr.msra.gmra.mxu1 %v1265_v14 }
  0x30   : > { %527 = vmatpush.bf16.msrb.mxu2 %v1275_v12  ;;  %580 = vmatpush.bf16.msrb.mxu3 %v1275_v12 }
  0x31   : > { %762 = vmatpush.bf16.msrb.mxu0 %v1291_v15  ;;  %815 = vmatpush.bf16.msrb.mxu1 %v1291_v15 }
  0x34   : > { %528 = vmatpush.bf16.msrb.mxu2 %v1274_v16  ;;  %581 = vmatpush.bf16.msrb.mxu3 %v1274_v16 }
  0x35   : > { %763 = vmatpush.bf16.msrb.mxu0 %v1290_v17  ;;  %816 = vmatpush.bf16.msrb.mxu1 %v1290_v17 }
  0x38   : > { %529 = vmatpush.bf16.msrb.mxu2 %v1273_v18  ;;  %582 = vmatpush.bf16.msrb.mxu3 %v1273_v18 }
  0x39   : > { %764 = vmatpush.bf16.msrb.mxu0 %v1289_v19  ;;  %817 = vmatpush.bf16.msrb.mxu1 %v1289_v19 }
  0x3b   : > { %345 = vmatmul.bf16.gmra.mxu2 %v1264_v21  ;;  %398 = vmatmul.bf16.gmra.mxu3 %v1268_v22 }
  0x3c   : > { %530 = vmatpush.bf16.msrb.mxu2 %v1272_v20  ;;  %583 = vmatpush.bf16.msrb.mxu3 %v1272_v20 }
  0x3d   : > { %765 = vmatpush.bf16.msrb.mxu0 %v1288_v23  ;;  %818 = vmatpush.bf16.msrb.mxu1 %v1288_v23 }
  0x3e   : > { %335 = vmatmul.bf16.gmra.mxu0 %v1262_v25  ;;  %388 = vmatmul.bf16.gmra.mxu1 %v1266_v26 }
  0x40   : > { %531 = vmatpush.bf16.msrb.mxu2 %v1271_v24  ;;  %584 = vmatpush.bf16.msrb.mxu3 %v1271_v24 }
  0x41   : > { %766 = vmatpush.bf16.msrb.mxu0 %v1287_v27  ;;  %819 = vmatpush.bf16.msrb.mxu1 %v1287_v27 }
  0x44   : > { %532 = vmatpush.bf16.msrb.mxu2 %v1270_v28  ;;  %585 = vmatpush.bf16.msrb.mxu3 %v1270_v28 }
  0x45   : > { %767 = vmatpush.bf16.msrb.mxu0 %v1286_v29  ;;  %820 = vmatpush.bf16.msrb.mxu1 %v1286_v29 }
  0x48   : > { %533 = vmatpush.bf16.msrb.mxu2 %v1269_v30  ;;  %586 = vmatpush.bf16.msrb.mxu3 %v1269_v30 }
  0x49   : > { %768 = vmatpush.bf16.msrb.mxu0 %v1285_v31  ;;  %821 = vmatpush.bf16.msrb.mxu1 %v1285_v31 }
  0x4b   : > { %534 = vmatmul.bf16.vlgmr.msrb.gmra.mxu2 %v1277_v32  ;;  %587 = vmatmul.bf16.vlgmr.msrb.gmra.mxu3 %v1281_v33 }
  0x4e   : > { %769 = vmatmul.bf16.vlgmr.msrb.gmra.mxu0 %v1293_v34  ;;  %822 = vmatmul.bf16.vlgmr.msrb.gmra.mxu1 %v1297_v35 }
  0x5b   : > { %539 = vmatmul.bf16.gmra.mxu2 %v1278_v36  ;;  %592 = vmatmul.bf16.gmra.mxu3 %v1282_v37 }
  0x5e   : > { %774 = vmatmul.bf16.gmra.mxu0 %v1294_v38  ;;  %827 = vmatmul.bf16.gmra.mxu1 %v1298_v39 }
  0x6b   : > { %544 = vmatmul.bf16.gmra.mxu2 %v1279_v40  ;;  %597 = vmatmul.bf16.gmra.mxu3 %v1283_v41 }
  0x6e   : > { %779 = vmatmul.bf16.gmra.mxu0 %v1295_v42  ;;  %832 = vmatmul.bf16.gmra.mxu1 %v1299_v43 }
  0x7b   : > { %549 = vmatmul.bf16.gmra.mxu2 %v1280_v44  ;;  %602 = vmatmul.bf16.gmra.mxu3 %v1284_v45 }
  0x7e   : > { %784 = vmatmul.bf16.gmra.mxu0 %v1296_v46  ;;  %837 = vmatmul.bf16.gmra.mxu1 %v1300_v47 }
  0xab   : > { %v331_v48 = vpop.f32.mrf.mxu0  ;;  %v384_v49 = vpop.f32.mrf.mxu1 }
  0xac   : > { %405 = vst.msk [vmem:[#allocation2] sm:$0xff] %vm404_vm0, %v331_v48 }
  0xad   : > { %413 = vst.msk [vmem:[#allocation3] sm:$0xff] %vm404_vm0, %v384_v49 }
  0xae   : > { %v341_v50 = vpop.f32.mrf.mxu2  ;;  %v394_v51 = vpop.f32.mrf.mxu3 }
  0xaf   : > { %409 = vst.msk [vmem:[#allocation2 + $0x20] sm:$0xff] %vm404_vm0, %v341_v50  ;;  %v1513_v50 = vld [vmem:[%s1570_s3] ss:$0 sm:$0xff] }
  0xb0   : > { %417 = vst.msk [vmem:[#allocation3 + $0x20] sm:$0xff] %vm404_vm0, %v394_v51 }
  0xb3   : > { %v333_v52 = vpop.f32.mrf.mxu0  ;;  %v386_v53 = vpop.f32.mrf.mxu1  ;;  %v608_v3 = vld [vmem:[#allocation2] sm:$0xff] }
  0xb4   : > { %406 = vst.msk [vmem:[#allocation2 + $0x8] sm:$0xff] %vm404_vm0, %v333_v52  ;;  %v632_v5 = vld [vmem:[#allocation3] sm:$0xff] }
  0xb5   : > { %414 = vst.msk [vmem:[#allocation3 + $0x8] sm:$0xff] %vm404_vm0, %v386_v53 }
  0xb6   : > { %v343_v54 = vpop.f32.mrf.mxu2  ;;  %v396_v55 = vpop.f32.mrf.mxu3  ;;  %v612_v53 = vld [vmem:[#allocation2 + $0x20] sm:$0xff] }
  0xb7   : > { %410 = vst.msk [vmem:[#allocation2 + $0x28] sm:$0xff] %vm404_vm0, %v343_v54 }
  0xb8   : > { %418 = vst.msk [vmem:[#allocation3 + $0x28] sm:$0xff] %vm404_vm0, %v396_v55  ;;  %v636_v55 = vld [vmem:[#allocation3 + $0x20] sm:$0xff] }
  0xbb   : > { %v336_v56 = vpop.f32.mrf.mxu0  ;;  %v389_v57 = vpop.f32.mrf.mxu1  ;;  %v609_v11 = vld [vmem:[#allocation2 + $0x8] sm:$0xff] }
  0xbc   : > { %407 = vst.msk [vmem:[#allocation2 + $0x10] sm:$0xff] %vm404_vm0, %v336_v56  ;;  %v633_v13 = vld [vmem:[#allocation3 + $0x8] sm:$0xff] }
  0xbd   : > { %415 = vst.msk [vmem:[#allocation3 + $0x10] sm:$0xff] %vm404_vm0, %v389_v57 }
  0xbe   : > { %v346_v58 = vpop.f32.mrf.mxu2  ;;  %v399_v59 = vpop.f32.mrf.mxu3 }
  0xbf   : > { %411 = vst.msk [vmem:[#allocation2 + $0x30] sm:$0xff] %vm404_vm0, %v346_v58 }
  0xc0   : > { %419 = vst.msk [vmem:[#allocation3 + $0x30] sm:$0xff] %vm404_vm0, %v399_v59 }
  0xc3   : > { %v338_v60 = vpop.f32.mrf.mxu0  ;;  %v391_v61 = vpop.f32.mrf.mxu1  ;;  %v610_v22 = vld [vmem:[#allocation2 + $0x10] sm:$0xff] }
  0xc4   : > { %408 = vst.msk [vmem:[#allocation2 + $0x18] sm:$0xff] %vm404_vm0, %v338_v60  ;;  %v634_v24 = vld [vmem:[#allocation3 + $0x10] sm:$0xff] }
  0xc5   : > { %416 = vst.msk [vmem:[#allocation3 + $0x18] sm:$0xff] %vm404_vm0, %v391_v61 }
  0xc6   : > { %v348_v62 = vpop.f32.mrf.mxu2  ;;  %v401_v63 = vpop.f32.mrf.mxu3 }
  0xc7   : > { %412 = vst.msk [vmem:[#allocation2 + $0x38] sm:$0xff] %vm404_vm0, %v348_v62 }
  0xc8   : > { %420 = vst.msk [vmem:[#allocation3 + $0x38] sm:$0xff] %vm404_vm0, %v401_v63 }
  0xcb   : > { %v770_v0 = vpop.f32.mrf.mxu0  ;;  %v823_v1 = vpop.f32.mrf.mxu1  ;;  %v611_v33 = vld [vmem:[#allocation2 + $0x18] sm:$0xff] }
  0xcc   : > { %v635_v35 = vld [vmem:[#allocation3 + $0x18] sm:$0xff] }
  0xce   : > { %v535_v2 = vpop.f32.mrf.mxu2  ;;  %v588_v4 = vpop.f32.mrf.mxu3 }
  0xcf   : > { %v616_v6 = vadd.f32 %v608_v3, %v535_v2  ;;  %v640_v7 = vadd.f32 %v632_v5, %v588_v4  ;;  %v938_v2 = vld [vmem:[%s1520_s29] sm:$0xf] }
  0xd1   : > { %624 = vst.msk [vmem:[#allocation2] sm:$0xff] %vm404_vm0, %v616_v6 }
  0xd2   : > { %648 = vst.msk [vmem:[#allocation3] sm:$0xff] %vm404_vm0, %v640_v7  ;;  %v613_v7 = vld [vmem:[#allocation2 + $0x28] sm:$0xff] }
  0xd3   : > { %v772_v8 = vpop.f32.mrf.mxu0  ;;  %v825_v9 = vpop.f32.mrf.mxu1 }
  0xd6   : > { %v537_v10 = vpop.f32.mrf.mxu2  ;;  %v590_v12 = vpop.f32.mrf.mxu3 }
  0xd7   : > { %v617_v14 = vadd.f32 %v609_v11, %v537_v10  ;;  %v641_v15 = vadd.f32 %v633_v13, %v590_v12 }
  0xd8   : > { %v843_v16 = vld [vmem:[#allocation2] sm:$0xff] }
  0xd9   : > { %v851_v17 = vadd.f32 %v843_v16, %v770_v0  ;;  %v867_v18 = vld [vmem:[#allocation3] sm:$0xff]  ;;  %625 = vst.msk [vmem:[#allocation2 + $0x8] sm:$0xff] %vm404_vm0, %v617_v14 }
  0xda   : > { %v875_v19 = vadd.f32 %v867_v18, %v823_v1  ;;  %649 = vst.msk [vmem:[#allocation3 + $0x8] sm:$0xff] %vm404_vm0, %v641_v15 }
  0xdb   : > { %859 = vst.msk [vmem:[#allocation2] sm:$0xff] %vm404_vm0, %v851_v17  ;;  %v775_v20 = vpop.f32.mrf.mxu0  ;;  %v828_v27 = vpop.f32.mrf.mxu1 }
  0xdc   : > { %883 = vst.msk [vmem:[#allocation3] sm:$0xff] %vm404_vm0, %v875_v19 }
  0xde   : > { %v540_v21 = vpop.f32.mrf.mxu2  ;;  %v593_v23 = vpop.f32.mrf.mxu3 }
  0xdf   : > { %v618_v25 = vadd.f32 %v610_v22, %v540_v21  ;;  %v642_v26 = vadd.f32 %v634_v24, %v593_v23 }
  0xe0   : > { %v844_v28 = vld [vmem:[#allocation2 + $0x8] sm:$0xff] }
  0xe1   : > { %v852_v29 = vadd.f32 %v844_v28, %v772_v8  ;;  %v868_v30 = vld [vmem:[#allocation3 + $0x8] sm:$0xff]  ;;  %626 = vst.msk [vmem:[#allocation2 + $0x10] sm:$0xff] %vm404_vm0, %v618_v25  ;;  %v638_v28 = vld [vmem:[#allocation3 + $0x30] sm:$0xff] }
  0xe2   : > { %v876_v31 = vadd.f32 %v868_v30, %v825_v9  ;;  %650 = vst.msk [vmem:[#allocation3 + $0x10] sm:$0xff] %vm404_vm0, %v642_v26  ;;  %v891_v40 = vld [vmem:[#allocation2] sm:$0xff]  ;;  %v637_v9 = vld [vmem:[#allocation3 + $0x28] sm:$0xff]  ;;  %v614_v26 = vld [vmem:[#allocation2 + $0x30] sm:$0xff] }
  0xe3   : > { %860 = vst.msk [vmem:[#allocation2 + $0x8] sm:$0xff] %vm404_vm0, %v852_v29  ;;  %v777_v38 = vpop.f32.mrf.mxu0  ;;  %v899_v41 = vld [vmem:[#allocation3] sm:$0xff]  ;;  %v830_v44 = vpop.f32.mrf.mxu1 }
  0xe4   : > { %884 = vst.msk [vmem:[#allocation3 + $0x8] sm:$0xff] %vm404_vm0, %v876_v31  ;;  %v907_v48 = vmax.f32 %v891_v40, %v899_v41 }
  0xe6   : > { %v542_v32 = vpop.f32.mrf.mxu2  ;;  %v595_v34 = vpop.f32.mrf.mxu3 }
  0xe7   : > { %v619_v36 = vadd.f32 %v611_v33, %v542_v32  ;;  %v643_v37 = vadd.f32 %v635_v35, %v595_v34 }
  0xe8   : > { %v845_v39 = vld [vmem:[#allocation2 + $0x10] sm:$0xff] }
  0xe9   : > { %v853_v42 = vadd.f32 %v845_v39, %v775_v20  ;;  %v869_v43 = vld [vmem:[#allocation3 + $0x10] sm:$0xff]  ;;  %627 = vst.msk [vmem:[#allocation2 + $0x18] sm:$0xff] %vm404_vm0, %v619_v36 }
  0xea   : > { %v892_v45 = vld [vmem:[#allocation2 + $0x8] sm:$0xff]  ;;  %v877_v46 = vadd.f32 %v869_v43, %v828_v27  ;;  %651 = vst.msk [vmem:[#allocation3 + $0x18] sm:$0xff] %vm404_vm0, %v643_v37  ;;  %v941_v37 = vld [vmem:[%s1520_s29 + $0x4] sm:$0xf] }
  0xeb   : > { %v900_v47 = vld [vmem:[#allocation3 + $0x8] sm:$0xff]  ;;  %861 = vst.msk [vmem:[#allocation2 + $0x10] sm:$0xff] %vm404_vm0, %v853_v42  ;;  %v780_v62 = vpop.f32.mrf.mxu0  ;;  %v833_v3 = vpop.f32.mrf.mxu1  ;;  %v615_v42 = vld [vmem:[#allocation2 + $0x38] sm:$0xff] }
  0xec   : > { %v908_v49 = vmax.f32 %v892_v45, %v900_v47  ;;  %885 = vst.msk [vmem:[#allocation3 + $0x10] sm:$0xff] %vm404_vm0, %v877_v46 }
  0xee   : > { %v915_v51 = vmax.f32 %v907_v48, %v908_v49  ;;  %v545_v52 = vpop.f32.mrf.mxu2  ;;  %v598_v54 = vpop.f32.mrf.mxu3 }
  0xef   : > { %v620_v56 = vadd.f32 %v612_v53, %v545_v52  ;;  %v644_v57 = vadd.f32 %v636_v55, %v598_v54 }
  0xf0   : > { %v923_v58 = vadd.f32 %v1513_v50, %v915_v51  ;;  %v846_v59 = vld [vmem:[#allocation2 + $0x18] sm:$0xff] }
  0xf1   : > { %v854_v60 = vadd.f32 %v846_v59, %v777_v38  ;;  %v870_v61 = vld [vmem:[#allocation3 + $0x18] sm:$0xff]  ;;  %628 = vst.msk [vmem:[#allocation2 + $0x20] sm:$0xff] %vm404_vm0, %v620_v56 }
  0xf2   : > { %v927_v63 = vmax.f32 %v923_v58, 0.0  ;;  %v878_v0 = vadd.f32 %v870_v61, %v830_v44  ;;  %652 = vst.msk [vmem:[#allocation3 + $0x20] sm:$0xff] %vm404_vm0, %v644_v57  ;;  %v893_v13 = vld [vmem:[#allocation2 + $0x10] sm:$0xff]  ;;  %v639_v44 = vld [vmem:[#allocation3 + $0x38] sm:$0xff] }
  0xf3   : > { %862 = vst.msk [vmem:[#allocation2 + $0x18] sm:$0xff] %vm404_vm0, %v854_v60  ;;  %v901_v14 = vld [vmem:[#allocation3 + $0x10] sm:$0xff]  ;;  %v782_v20 = vpop.f32.mrf.mxu0  ;;  %v835_v23 = vpop.f32.mrf.mxu1 }
  0xf4   : > { %v931_v4 = vpack.c.bf16 %v927_v63, %v927_v63  ;;  %886 = vst.msk [vmem:[#allocation3 + $0x18] sm:$0xff] %vm404_vm0, %v878_v0  ;;  %v909_v21 = vmax.f32 %v893_v13, %v901_v14 }
  0xf6   : > { %v939_v5 = vsel %vm1525_vm3, %v931_v4, %v938_v2  ;;  %v547_v6 = vpop.f32.mrf.mxu2  ;;  %v600_v8 = vpop.f32.mrf.mxu3 }
  0xf7   : > { %940 = vst [vmem:[%s1520_s29] sm:$0xf] %v939_v5  ;;  %v621_v10 = vadd.f32 %v613_v7, %v547_v6  ;;  %v645_v11 = vadd.f32 %v637_v9, %v600_v8  ;;  %v944_v5 = vld [vmem:[%s1520_s29 + $0x8] sm:$0xf] }
  0xf8   : > { %v847_v12 = vld [vmem:[#allocation2 + $0x20] sm:$0xff] }
  0xf9   : > { %v855_v15 = vadd.f32 %v847_v12, %v780_v62  ;;  %v871_v16 = vld [vmem:[#allocation3 + $0x20] sm:$0xff]  ;;  %629 = vst.msk [vmem:[#allocation2 + $0x28] sm:$0xff] %vm404_vm0, %v621_v10 }
  0xfa   : > { %v894_v17 = vld [vmem:[#allocation2 + $0x18] sm:$0xff]  ;;  %v879_v18 = vadd.f32 %v871_v16, %v833_v3  ;;  %653 = vst.msk [vmem:[#allocation3 + $0x28] sm:$0xff] %vm404_vm0, %v645_v11 }
  0xfb   : > { %v902_v19 = vld [vmem:[#allocation3 + $0x18] sm:$0xff]  ;;  %863 = vst.msk [vmem:[#allocation2 + $0x20] sm:$0xff] %vm404_vm0, %v855_v15  ;;  %v785_v39 = vpop.f32.mrf.mxu0  ;;  %v838_v45 = vpop.f32.mrf.mxu1 }
  0xfc   : > { %v910_v22 = vmax.f32 %v894_v17, %v902_v19  ;;  %887 = vst.msk [vmem:[#allocation3 + $0x20] sm:$0xff] %vm404_vm0, %v879_v18  ;;  %v947_v17 = vld [vmem:[%s1520_s29 + $0xc] sm:$0xf] }
  0xfe   : > { %v916_v24 = vmax.f32 %v909_v21, %v910_v22  ;;  %v550_v25 = vpop.f32.mrf.mxu2  ;;  %v603_v27 = vpop.f32.mrf.mxu3 }
  0xff   : > { %v622_v29 = vadd.f32 %v614_v26, %v550_v25  ;;  %v646_v30 = vadd.f32 %v638_v28, %v603_v27 }
 0x100   : > { %v924_v31 = vadd.f32 %v1513_v50, %v916_v24  ;;  %v848_v32 = vld [vmem:[#allocation2 + $0x28] sm:$0xff] }
 0x101   : > { %v856_v33 = vadd.f32 %v848_v32, %v782_v20  ;;  %v872_v34 = vld [vmem:[#allocation3 + $0x28] sm:$0xff]  ;;  %630 = vst.msk [vmem:[#allocation2 + $0x30] sm:$0xff] %vm404_vm0, %v622_v29 }
 0x102   : > { %v928_v35 = vmax.f32 %v924_v31, 0.0  ;;  %v880_v36 = vadd.f32 %v872_v34, %v835_v23  ;;  %654 = vst.msk [vmem:[#allocation3 + $0x30] sm:$0xff] %vm404_vm0, %v646_v30  ;;  %v895_v49 = vld [vmem:[#allocation2 + $0x20] sm:$0xff] }
 0x103   : > { %864 = vst.msk [vmem:[#allocation2 + $0x28] sm:$0xff] %vm404_vm0, %v856_v33  ;;  %v903_v51 = vld [vmem:[#allocation3 + $0x20] sm:$0xff]  ;;  %v787_v61 = vpop.f32.mrf.mxu0  ;;  %v840_v0 = vpop.f32.mrf.mxu1 }
 0x104   : > { %v932_v38 = vpack.c.bf16 %v928_v35, %v928_v35  ;;  %888 = vst.msk [vmem:[#allocation3 + $0x28] sm:$0xff] %vm404_vm0, %v880_v36  ;;  %v911_v57 = vmax.f32 %v895_v49, %v903_v51 }
 0x106   : > { %v942_v40 = vsel %vm1525_vm3, %v932_v38, %v941_v37  ;;  %v552_v41 = vpop.f32.mrf.mxu2  ;;  %v605_v43 = vpop.f32.mrf.mxu3 }
 0x107   : > { %943 = vst [vmem:[%s1520_s29 + $0x4] sm:$0xf] %v942_v40  ;;  %v623_v46 = vadd.f32 %v615_v42, %v552_v41  ;;  %v647_v47 = vadd.f32 %v639_v44, %v605_v43 }
 0x108   : > { %v849_v48 = vld [vmem:[#allocation2 + $0x30] sm:$0xff] }
 0x109   : > { %v857_v52 = vadd.f32 %v849_v48, %v785_v39  ;;  %v873_v53 = vld [vmem:[#allocation3 + $0x30] sm:$0xff]  ;;  %631 = vst.msk [vmem:[#allocation2 + $0x38] sm:$0xff] %vm404_vm0, %v623_v46 }
 0x10a   : > { %v896_v54 = vld [vmem:[#allocation2 + $0x28] sm:$0xff]  ;;  %v881_v55 = vadd.f32 %v873_v53, %v838_v45  ;;  %655 = vst.msk [vmem:[#allocation3 + $0x38] sm:$0xff] %vm404_vm0, %v647_v47 }
 0x10b   : > { %v904_v56 = vld [vmem:[#allocation3 + $0x28] sm:$0xff]  ;;  %865 = vst.msk [vmem:[#allocation2 + $0x30] sm:$0xff] %vm404_vm0, %v857_v52 }
 0x10c   : > { %v912_v58 = vmax.f32 %v896_v54, %v904_v56  ;;  %889 = vst.msk [vmem:[#allocation3 + $0x30] sm:$0xff] %vm404_vm0, %v881_v55 }
 0x10e   : > { %v917_v59 = vmax.f32 %v911_v57, %v912_v58 }
 0x110   : > { %v925_v60 = vadd.f32 %v1513_v50, %v917_v59  ;;  %v850_v62 = vld [vmem:[#allocation2 + $0x38] sm:$0xff] }
 0x111   : > { %v858_v63 = vadd.f32 %v850_v62, %v787_v61  ;;  %v874_v2 = vld [vmem:[#allocation3 + $0x38] sm:$0xff] }
 0x112   : > { %v929_v3 = vmax.f32 %v925_v60, 0.0  ;;  %v882_v4 = vadd.f32 %v874_v2, %v840_v0  ;;  %v897_v8 = vld [vmem:[#allocation2 + $0x30] sm:$0xff] }
 0x113   : > { %866 = vst.msk [vmem:[#allocation2 + $0x38] sm:$0xff] %vm404_vm0, %v858_v63  ;;  %v905_v9 = vld [vmem:[#allocation3 + $0x30] sm:$0xff] }
 0x114   : > { %v933_v6 = vpack.c.bf16 %v929_v3, %v929_v3  ;;  %890 = vst.msk [vmem:[#allocation3 + $0x38] sm:$0xff] %vm404_vm0, %v882_v4  ;;  %v913_v12 = vmax.f32 %v897_v8, %v905_v9 }
 0x116   : > { %v945_v7 = vsel %vm1525_vm3, %v933_v6, %v944_v5 }
 0x117   : > { %946 = vst [vmem:[%s1520_s29 + $0x8] sm:$0xf] %v945_v7 }
 0x11a   : > { %v898_v10 = vld [vmem:[#allocation2 + $0x38] sm:$0xff] }
 0x11b   : > { %v906_v11 = vld [vmem:[#allocation3 + $0x38] sm:$0xff] }
 0x11c   : > { %v914_v13 = vmax.f32 %v898_v10, %v906_v11 }
 0x11e   : > { %v918_v14 = vmax.f32 %v913_v12, %v914_v13 }
 0x120   : > { %v926_v15 = vadd.f32 %v1513_v50, %v918_v14 }
 0x122   : > { %v930_v16 = vmax.f32 %v926_v15, 0.0 }
 0x124   : > { %v934_v18 = vpack.c.bf16 %v930_v16, %v930_v16 }
 0x126   : > { %v948_v19 = vsel %vm1525_vm3, %v934_v18, %v947_v17 }
 0x127   : > { %949 = vst [vmem:[%s1520_s29 + $0xc] sm:$0xf] %v948_v19 }
 0x128 PF: > { %s14_s15 = sadd.s32 1, %s1333_s15  }
 0x129   : > { %p11_p4 = scmp.ge.s32.totalorder %s14_s15, 4  }
 0x12b   :  { %13 = sbr.rel (!%p11_p4) target bundleno = 1 (0x1), region = 71 }

// kernel: net_forward.7
= control target key start
LH: loop header
LB: loop body
LE: loop exit
PB: predicated region body
PF: predicated region fallthrough
CT: control target
= control target key end

     0   :  { %s4722_s0 = inlined_call_operand.vmem [shape: bf16[2,1792], index: 0, kind: input, shape index: {}]   ;;  %s4723_s1 = inlined_call_operand.vmem [shape: bf16[1792,150], index: 1, kind: input, shape index: {}]   ;;  %s4724_s2 = inlined_call_operand.vmem [shape: f32[1,150], index: 2, kind: input, shape index: {}]   ;;  %s4725_s3 = inlined_call_operand.vmem [shape: bf16[150,80], index: 3, kind: input, shape index: {}]   ;;  %s4726_s4 = inlined_call_operand.vmem [shape: f32[1,80], index: 4, kind: input, shape index: {}]   ;;  %s4727_s5 = inlined_call_operand.vmem [shape: bf16[80,5], index: 5, kind: input, shape index: {}]   ;;  %s4728_s6 = inlined_call_operand.vmem [shape: f32[1,5], index: 6, kind: input, shape index: {}]   ;;  %s4729_s7 = inlined_call_operand.hbm [shape: f32[2,5], index: 7, kind: output, shape index: {}]  }
   0x1   :  { %v2033_v0 = vld [vmem:[%s4723_s1 + $0x70] sm:$0xf]  ;;  %v2944_v1 = vld [vmem:[%s4723_s1 + $0x74] sm:$0xf0]  ;;  %v2025_v11 = vld [vmem:[%s4723_s1 + $0x60] sm:$0xf] }
   0x2   :  { %v2097_v2 = vld [vmem:[%s4723_s1 + $0xf0] sm:$0xf]  ;;  %v2034_v3 = vor.u32 %v2944_v1, %v2033_v0  ;;  %v2960_v4 = vld [vmem:[%s4723_s1 + $0xf4] sm:$0xf0]  ;;  %v2942_v13 = vld [vmem:[%s4723_s1 + $0x64] sm:$0xf0] }
   0x3   :  { %v2161_v5 = vld [vmem:[%s4723_s1 + $0x170] sm:$0xf]  ;;  %v2976_v6 = vld [vmem:[%s4723_s1 + $0x174] sm:$0xf0]  ;;  %v2098_v7 = vor.u32 %v2960_v4, %v2097_v2  ;;  %v2089_v14 = vld [vmem:[%s4723_s1 + $0xe0] sm:$0xf]  ;;  %v2026_v16 = vor.u32 %v2942_v13, %v2025_v11 }
   0x4   :  { %v2162_v8 = vor.u32 %v2976_v6, %v2161_v5  ;;  %v2225_v9 = vld [vmem:[%s4723_s1 + $0x1f0] sm:$0xf]  ;;  %v2992_v10 = vld [vmem:[%s4723_s1 + $0x1f4] sm:$0xf0]  ;;  %1412 = vmatpush.bf16.msra.mxu0 %v2034_v3  ;;  %v2958_v15 = vld [vmem:[%s4723_s1 + $0xe4] sm:$0xf0] }
   0x5   :  { %v2226_v12 = vor.u32 %v2992_v10, %v2225_v9  ;;  %1425 = vmatpush.bf16.msra.mxu1 %v2098_v7  ;;  %v2090_v17 = vor.u32 %v2958_v15, %v2089_v14  ;;  %v2153_v18 = vld [vmem:[%s4723_s1 + $0x160] sm:$0xf]  ;;  %v2974_v19 = vld [vmem:[%s4723_s1 + $0x164] sm:$0xf0]  ;;  %v2017_v23 = vld [vmem:[%s4723_s1 + $0x50] sm:$0xf] }
   0x6   :  { %1438 = vmatpush.bf16.msra.mxu2 %v2162_v8  ;;  %v2217_v20 = vld [vmem:[%s4723_s1 + $0x1e0] sm:$0xf]  ;;  %v2154_v21 = vor.u32 %v2974_v19, %v2153_v18  ;;  %v2990_v22 = vld [vmem:[%s4723_s1 + $0x1e4] sm:$0xf0]  ;;  %v2940_v24 = vld [vmem:[%s4723_s1 + $0x54] sm:$0xf0] }
   0x7   :  { %1451 = vmatpush.bf16.msra.mxu3 %v2226_v12  ;;  %v2218_v25 = vor.u32 %v2990_v22, %v2217_v20  ;;  %v2081_v26 = vld [vmem:[%s4723_s1 + $0xd0] sm:$0xf]  ;;  %v2956_v27 = vld [vmem:[%s4723_s1 + $0xd4] sm:$0xf0]  ;;  %v2018_v29 = vor.u32 %v2940_v24, %v2017_v23  ;;  %v2009_v35 = vld [vmem:[%s4723_s1 + $0x40] sm:$0xf] }
   0x8   :  { %v2145_v28 = vld [vmem:[%s4723_s1 + $0x150] sm:$0xf]  ;;  %1413 = vmatpush.bf16.msra.mxu0 %v2026_v16  ;;  %v2972_v30 = vld [vmem:[%s4723_s1 + $0x154] sm:$0xf0]  ;;  %v2082_v33 = vor.u32 %v2956_v27, %v2081_v26  ;;  %v2938_v36 = vld [vmem:[%s4723_s1 + $0x44] sm:$0xf0] }
   0x9   :  { %v2209_v31 = vld [vmem:[%s4723_s1 + $0x1d0] sm:$0xf]  ;;  %v2988_v32 = vld [vmem:[%s4723_s1 + $0x1d4] sm:$0xf0]  ;;  %1426 = vmatpush.bf16.msra.mxu1 %v2090_v17  ;;  %v2146_v34 = vor.u32 %v2972_v30, %v2145_v28  ;;  %v2073_v37 = vld [vmem:[%s4723_s1 + $0xc0] sm:$0xf]  ;;  %v2010_v44 = vor.u32 %v2938_v36, %v2009_v35 }
   0xa   :  { %1439 = vmatpush.bf16.msra.mxu2 %v2154_v21  ;;  %v2210_v38 = vor.u32 %v2988_v32, %v2209_v31  ;;  %v2954_v39 = vld [vmem:[%s4723_s1 + $0xc4] sm:$0xf0]  ;;  %v2137_v40 = vld [vmem:[%s4723_s1 + $0x140] sm:$0xf]  ;;  %v2001_v47 = vld [vmem:[%s4723_s1 + $0x30] sm:$0xf] }
   0xb   :  { %1452 = vmatpush.bf16.msra.mxu3 %v2218_v25  ;;  %v2970_v41 = vld [vmem:[%s4723_s1 + $0x144] sm:$0xf0]  ;;  %v2201_v42 = vld [vmem:[%s4723_s1 + $0x1c0] sm:$0xf]  ;;  %v2074_v45 = vor.u32 %v2954_v39, %v2073_v37  ;;  %v2936_v48 = vld [vmem:[%s4723_s1 + $0x34] sm:$0xf0] }
   0xc   :  { %v2986_v43 = vld [vmem:[%s4723_s1 + $0x1c4] sm:$0xf0]  ;;  %1414 = vmatpush.bf16.msra.mxu0 %v2018_v29  ;;  %v2138_v46 = vor.u32 %v2970_v41, %v2137_v40  ;;  %v2065_v49 = vld [vmem:[%s4723_s1 + $0xb0] sm:$0xf]  ;;  %v2952_v51 = vld [vmem:[%s4723_s1 + $0xb4] sm:$0xf0]  ;;  %v2002_v56 = vor.u32 %v2936_v48, %v2001_v47 }
   0xd   :  { %1427 = vmatpush.bf16.msra.mxu1 %v2082_v33  ;;  %v2202_v50 = vor.u32 %v2986_v43, %v2201_v42  ;;  %v2129_v52 = vld [vmem:[%s4723_s1 + $0x130] sm:$0xf]  ;;  %v2968_v53 = vld [vmem:[%s4723_s1 + $0x134] sm:$0xf0]  ;;  %v2066_v57 = vor.u32 %v2952_v51, %v2065_v49  ;;  %v1993_v59 = vld [vmem:[%s4723_s1 + $0x20] sm:$0xf] }
   0xe   :  { %1440 = vmatpush.bf16.msra.mxu2 %v2146_v34  ;;  %v2193_v54 = vld [vmem:[%s4723_s1 + $0x1b0] sm:$0xf]  ;;  %v2984_v55 = vld [vmem:[%s4723_s1 + $0x1b4] sm:$0xf0]  ;;  %v2130_v58 = vor.u32 %v2968_v53, %v2129_v52  ;;  %v2934_v60 = vld [vmem:[%s4723_s1 + $0x24] sm:$0xf0] }
   0xf   :  { %1453 = vmatpush.bf16.msra.mxu3 %v2210_v38  ;;  %v2057_v61 = vld [vmem:[%s4723_s1 + $0xa0] sm:$0xf]  ;;  %v2194_v62 = vor.u32 %v2984_v55, %v2193_v54  ;;  %v2950_v63 = vld [vmem:[%s4723_s1 + $0xa4] sm:$0xf0]  ;;  %v1994_v4 = vor.u32 %v2934_v60, %v1993_v59  ;;  %v1985_v7 = vld [vmem:[%s4723_s1 + $0x10] sm:$0xf] }
  0x10   :  { %1415 = vmatpush.bf16.msra.mxu0 %v2010_v44  ;;  %v2121_v0 = vld [vmem:[%s4723_s1 + $0x120] sm:$0xf]  ;;  %v2966_v1 = vld [vmem:[%s4723_s1 + $0x124] sm:$0xf0]  ;;  %v2058_v5 = vor.u32 %v2950_v63, %v2057_v61  ;;  %v2932_v8 = vld [vmem:[%s4723_s1 + $0x14] sm:$0xf0] }
  0x11   :  { %1428 = vmatpush.bf16.msra.mxu1 %v2074_v45  ;;  %v2185_v2 = vld [vmem:[%s4723_s1 + $0x1a0] sm:$0xf]  ;;  %v2982_v3 = vld [vmem:[%s4723_s1 + $0x1a4] sm:$0xf0]  ;;  %v2122_v6 = vor.u32 %v2966_v1, %v2121_v0  ;;  %v2049_v9 = vld [vmem:[%s4723_s1 + $0x90] sm:$0xf]  ;;  %v1986_v16 = vor.u32 %v2932_v8, %v1985_v7 }
  0x12   :  { %1441 = vmatpush.bf16.msra.mxu2 %v2138_v46  ;;  %v2186_v10 = vor.u32 %v2982_v3, %v2185_v2  ;;  %v2948_v11 = vld [vmem:[%s4723_s1 + $0x94] sm:$0xf0]  ;;  %v2113_v12 = vld [vmem:[%s4723_s1 + $0x110] sm:$0xf]  ;;  %v1977_v17 = vld [vmem:[%s4723_s1] sm:$0xf] }
  0x13   :  { %1454 = vmatpush.bf16.msra.mxu3 %v2202_v50  ;;  %v2964_v13 = vld [vmem:[%s4723_s1 + $0x114] sm:$0xf0]  ;;  %v2177_v14 = vld [vmem:[%s4723_s1 + $0x190] sm:$0xf]  ;;  %v2930_v18 = vld [vmem:[%s4723_s1 + $0x4] sm:$0xf0]  ;;  %v2050_v19 = vor.u32 %v2948_v11, %v2049_v9 }
  0x14   :  { %1416 = vmatpush.bf16.msra.mxu0 %v2002_v56  ;;  %v2980_v15 = vld [vmem:[%s4723_s1 + $0x194] sm:$0xf0]  ;;  %v2114_v20 = vor.u32 %v2964_v13, %v2113_v12  ;;  %v2041_v21 = vld [vmem:[%s4723_s1 + $0x80] sm:$0xf]  ;;  %v2946_v22 = vld [vmem:[%s4723_s1 + $0x84] sm:$0xf0]  ;;  %v1978_v31 = vor.u32 %v2930_v18, %v1977_v17 }
  0x15   :  { %1429 = vmatpush.bf16.msra.mxu1 %v2066_v57  ;;  %v2105_v23 = vld [vmem:[%s4723_s1 + $0x100] sm:$0xf]  ;;  %v2178_v24 = vor.u32 %v2980_v15, %v2177_v14  ;;  %v2962_v25 = vld [vmem:[%s4723_s1 + $0x104] sm:$0xf0]  ;;  %v2289_v28 = vld [vmem:[%s4723_s1 + $0x270] sm:$0xf]  ;;  %v2042_v35 = vor.u32 %v2946_v22, %v2041_v21 }
  0x16   :  { %1442 = vmatpush.bf16.msra.mxu2 %v2130_v58  ;;  %v2169_v26 = vld [vmem:[%s4723_s1 + $0x180] sm:$0xf]  ;;  %v2978_v27 = vld [vmem:[%s4723_s1 + $0x184] sm:$0xf0]  ;;  %v3008_v29 = vld [vmem:[%s4723_s1 + $0x274] sm:$0xf0]  ;;  %v2106_v36 = vor.u32 %v2962_v25, %v2105_v23 }
  0x17   :  { %1455 = vmatpush.bf16.msra.mxu3 %v2194_v62  ;;  %v2353_v30 = vld [vmem:[%s4723_s1 + $0x2f0] sm:$0xf]  ;;  %v3024_v32 = vld [vmem:[%s4723_s1 + $0x2f4] sm:$0xf0]  ;;  %v2170_v39 = vor.u32 %v2978_v27, %v2169_v26  ;;  %v2290_v40 = vor.u32 %v3008_v29, %v2289_v28  ;;  %v2281_v43 = vld [vmem:[%s4723_s1 + $0x260] sm:$0xf] }
  0x18   :  { %1417 = vmatpush.bf16.msra.mxu0 %v1994_v4  ;;  %v2417_v33 = vld [vmem:[%s4723_s1 + $0x370] sm:$0xf]  ;;  %v3040_v34 = vld [vmem:[%s4723_s1 + $0x374] sm:$0xf0]  ;;  %v2354_v41 = vor.u32 %v3024_v32, %v2353_v30  ;;  %v3006_v44 = vld [vmem:[%s4723_s1 + $0x264] sm:$0xf0] }
  0x19   :  { %1430 = vmatpush.bf16.msra.mxu1 %v2058_v5  ;;  %v2481_v37 = vld [vmem:[%s4723_s1 + $0x3f0] sm:$0xf]  ;;  %v3056_v38 = vld [vmem:[%s4723_s1 + $0x3f4] sm:$0xf0]  ;;  %v2418_v42 = vor.u32 %v3040_v34, %v2417_v33  ;;  %v2345_v45 = vld [vmem:[%s4723_s1 + $0x2e0] sm:$0xf]  ;;  %v2282_v52 = vor.u32 %v3006_v44, %v2281_v43 }
  0x1a   :  { %1443 = vmatpush.bf16.msra.mxu2 %v2122_v6  ;;  %v2482_v46 = vor.u32 %v3056_v38, %v2481_v37  ;;  %v3022_v47 = vld [vmem:[%s4723_s1 + $0x2e4] sm:$0xf0]  ;;  %v2409_v48 = vld [vmem:[%s4723_s1 + $0x360] sm:$0xf]  ;;  %v2273_v55 = vld [vmem:[%s4723_s1 + $0x250] sm:$0xf] }
  0x1b   :  { %1456 = vmatpush.bf16.msra.mxu3 %v2186_v10  ;;  %v3038_v49 = vld [vmem:[%s4723_s1 + $0x364] sm:$0xf0]  ;;  %v2473_v50 = vld [vmem:[%s4723_s1 + $0x3e0] sm:$0xf]  ;;  %v2346_v53 = vor.u32 %v3022_v47, %v2345_v45  ;;  %v3004_v56 = vld [vmem:[%s4723_s1 + $0x254] sm:$0xf0] }
  0x1c   :  { %1418 = vmatpush.bf16.msra.mxu0 %v1986_v16  ;;  %v3054_v51 = vld [vmem:[%s4723_s1 + $0x3e4] sm:$0xf0]  ;;  %v2410_v54 = vor.u32 %v3038_v49, %v2409_v48  ;;  %v2337_v57 = vld [vmem:[%s4723_s1 + $0x2d0] sm:$0xf]  ;;  %v3020_v59 = vld [vmem:[%s4723_s1 + $0x2d4] sm:$0xf0]  ;;  %v2274_v0 = vor.u32 %v3004_v56, %v2273_v55 }
  0x1d   :  { %1431 = vmatpush.bf16.msra.mxu1 %v2050_v19  ;;  %v2474_v58 = vor.u32 %v3054_v51, %v2473_v50  ;;  %v2401_v60 = vld [vmem:[%s4723_s1 + $0x350] sm:$0xf]  ;;  %v3036_v61 = vld [vmem:[%s4723_s1 + $0x354] sm:$0xf0]  ;;  %v2265_v1 = vld [vmem:[%s4723_s1 + $0x240] sm:$0xf]  ;;  %v2338_v3 = vor.u32 %v3020_v59, %v2337_v57 }
  0x1e   :  { %1444 = vmatpush.bf16.msra.mxu2 %v2114_v20  ;;  %v2465_v62 = vld [vmem:[%s4723_s1 + $0x3d0] sm:$0xf]  ;;  %v3052_v63 = vld [vmem:[%s4723_s1 + $0x3d4] sm:$0xf0]  ;;  %v28_v2 = vld [vmem:[%s4722_s0] sm:$0xff]  ;;  %v2402_v4 = vor.u32 %v3036_v61, %v2401_v60 }
  0x1f   :  { %1457 = vmatpush.bf16.msra.mxu3 %v2178_v24  ;;  %v3002_v5 = vld [vmem:[%s4723_s1 + $0x244] sm:$0xf0]  ;;  %v2329_v6 = vld [vmem:[%s4723_s1 + $0x2c0] sm:$0xf]  ;;  %261 = vst [vmem:[#allocation1] ss:$9 sm:$0xff] %v28_v2  ;;  %v2466_v7 = vor.u32 %v3052_v63, %v2465_v62 }
  0x20   :  { %1419 = vmatpush.bf16.msra.mxu0 %v1978_v31  ;;  %v3018_v8 = vld [vmem:[%s4723_s1 + $0x2c4] sm:$0xf0]  ;;  %v2393_v9 = vld [vmem:[%s4723_s1 + $0x340] sm:$0xf]  ;;  %v2266_v13 = vor.u32 %v3002_v5, %v2265_v1  ;;  %v2257_v16 = vld [vmem:[%s4723_s1 + $0x230] sm:$0xf] }
  0x21   :  { %1432 = vmatpush.bf16.msra.mxu1 %v2042_v35  ;;  %v3034_v10 = vld [vmem:[%s4723_s1 + $0x344] sm:$0xf0]  ;;  %v2457_v11 = vld [vmem:[%s4723_s1 + $0x3c0] sm:$0xf]  ;;  %v2330_v14 = vor.u32 %v3018_v8, %v2329_v6  ;;  %v3000_v17 = vld [vmem:[%s4723_s1 + $0x234] sm:$0xf0] }
  0x22   :  { %1445 = vmatpush.bf16.msra.mxu2 %v2106_v36  ;;  %v3050_v12 = vld [vmem:[%s4723_s1 + $0x3c4] sm:$0xf0]  ;;  %v2394_v15 = vor.u32 %v3034_v10, %v2393_v9  ;;  %v2321_v18 = vld [vmem:[%s4723_s1 + $0x2b0] sm:$0xf]  ;;  %v3016_v20 = vld [vmem:[%s4723_s1 + $0x2b4] sm:$0xf0]  ;;  %v2258_v26 = vor.u32 %v3000_v17, %v2257_v16 }
  0x23   :  { %1458 = vmatpush.bf16.msra.mxu3 %v2170_v39  ;;  %v2458_v19 = vor.u32 %v3050_v12, %v2457_v11  ;;  %v2385_v21 = vld [vmem:[%s4723_s1 + $0x330] sm:$0xf]  ;;  %v3032_v22 = vld [vmem:[%s4723_s1 + $0x334] sm:$0xf0]  ;;  %v2249_v25 = vld [vmem:[%s4723_s1 + $0x220] sm:$0xf]  ;;  %v2322_v30 = vor.u32 %v3016_v20, %v2321_v18 }
  0x24   :  { %1464 = vmatpush.bf16.msrb.mxu0 %v2290_v40  ;;  %v2449_v23 = vld [vmem:[%s4723_s1 + $0x3b0] sm:$0xf]  ;;  %v3048_v24 = vld [vmem:[%s4723_s1 + $0x3b4] sm:$0xf0]  ;;  %v2386_v31 = vor.u32 %v3032_v22, %v2385_v21  ;;  %v2998_v32 = vld [vmem:[%s4723_s1 + $0x224] sm:$0xf0] }
  0x25   :  { %1477 = vmatpush.bf16.msrb.mxu1 %v2354_v41  ;;  %v2313_v33 = vld [vmem:[%s4723_s1 + $0x2a0] sm:$0xf]  ;;  %v2450_v35 = vor.u32 %v3048_v24, %v2449_v23  ;;  %v3014_v36 = vld [vmem:[%s4723_s1 + $0x2a4] sm:$0xf0]  ;;  %v2250_v41 = vor.u32 %v2998_v32, %v2249_v25  ;;  %v2996_v45 = vld [vmem:[%s4723_s1 + $0x214] sm:$0xf0] }
  0x26   :  { %1490 = vmatpush.bf16.msrb.mxu2 %v2418_v42  ;;  %v3557_v27 = vld [vmem:[#allocation1 + $0x12] sm:$0xff]  ;;  %v3559_v28 = vld [vmem:[#allocation1] sm:$0xff]  ;;  %v3569_v34 = vld [vmem:[#allocation1 + $0x9] sm:$0xff]  ;;  %v2314_v43 = vor.u32 %v3014_v36, %v2313_v33 }
  0x27   :  { %1503 = vmatpush.bf16.msrb.mxu3 %v2482_v46  ;;  %v3561_v29 = vld [vmem:[#allocation1 + $0x1b] sm:$0xff]  ;;  %v3030_v38 = vld [vmem:[%s4723_s1 + $0x324] sm:$0xf0]  ;;  %1446 = vmatmul.bf16.vlgmr.msra.gmra.mxu2 %v3557_v27  ;;  %v2241_v42 = vld [vmem:[%s4723_s1 + $0x210] sm:$0xf] }
  0x28   :  { %1465 = vmatpush.bf16.msrb.mxu0 %v2282_v52  ;;  %v2377_v37 = vld [vmem:[%s4723_s1 + $0x320] sm:$0xf]  ;;  %v3046_v40 = vld [vmem:[%s4723_s1 + $0x3a4] sm:$0xf0]  ;;  %1459 = vmatmul.bf16.vlgmr.msra.gmra.mxu3 %v3561_v29  ;;  %v2305_v46 = vld [vmem:[%s4723_s1 + $0x290] sm:$0xf]  ;;  %v2242_v55 = vor.u32 %v2996_v45, %v2241_v42 }
  0x29   :  { %1478 = vmatpush.bf16.msrb.mxu1 %v2346_v53  ;;  %v2441_v39 = vld [vmem:[%s4723_s1 + $0x3a0] sm:$0xf]  ;;  %1420 = vmatmul.bf16.vlgmr.msra.gmra.mxu0 %v3559_v28  ;;  %v2378_v44 = vor.u32 %v3030_v38, %v2377_v37  ;;  %v3012_v47 = vld [vmem:[%s4723_s1 + $0x294] sm:$0xf0]  ;;  %v2369_v49 = vld [vmem:[%s4723_s1 + $0x310] sm:$0xf] }
  0x2a   :  { %1491 = vmatpush.bf16.msrb.mxu2 %v2410_v54  ;;  %1433 = vmatmul.bf16.vlgmr.msra.gmra.mxu1 %v3569_v34  ;;  %v2442_v48 = vor.u32 %v3046_v40, %v2441_v39  ;;  %v3028_v50 = vld [vmem:[%s4723_s1 + $0x314] sm:$0xf0]  ;;  %v2433_v51 = vld [vmem:[%s4723_s1 + $0x390] sm:$0xf]  ;;  %v2233_v53 = vld [vmem:[%s4723_s1 + $0x200] sm:$0xf]  ;;  %v2306_v62 = vor.u32 %v3012_v47, %v2305_v46 }
  0x2b   :  { %1504 = vmatpush.bf16.msrb.mxu3 %v2474_v58  ;;  %v3044_v52 = vld [vmem:[%s4723_s1 + $0x394] sm:$0xf0]  ;;  %v2994_v54 = vld [vmem:[%s4723_s1 + $0x204] sm:$0xf0]  ;;  %v2297_v56 = vld [vmem:[%s4723_s1 + $0x280] sm:$0xf]  ;;  %v2370_v63 = vor.u32 %v3028_v50, %v2369_v49 }
  0x2c   :  { %1466 = vmatpush.bf16.msrb.mxu0 %v2274_v0  ;;  %v3010_v57 = vld [vmem:[%s4723_s1 + $0x284] sm:$0xf0]  ;;  %v2361_v58 = vld [vmem:[%s4723_s1 + $0x300] sm:$0xf]  ;;  %v3632_v60 = vld [vmem:[#allocation1 + $0x36] sm:$0xff]  ;;  %v2234_v9 = vor.u32 %v2994_v54, %v2233_v53 }
  0x2d   :  { %1479 = vmatpush.bf16.msrb.mxu1 %v2338_v3  ;;  %v3026_v59 = vld [vmem:[%s4723_s1 + $0x304] sm:$0xf0]  ;;  %v3639_v1 = vld [vmem:[#allocation1 + $0x3f] sm:$0xff]  ;;  %v3641_v2 = vld [vmem:[#allocation1 + $0x2d] sm:$0xff]  ;;  %v2434_v3 = vor.u32 %v3044_v52, %v2433_v51 }
  0x2e   :  { %1492 = vmatpush.bf16.msrb.mxu2 %v2402_v4  ;;  %v29_v61 = vld [vmem:[%s4722_s0 + $0x8] sm:$0x3f]  ;;  %v2425_v4 = vld [vmem:[%s4723_s1 + $0x380] sm:$0xf]  ;;  %v2545_v6 = vld [vmem:[%s4723_s1 + $0x470] sm:$0xf] }
  0x2f   :  { %1505 = vmatpush.bf16.msrb.mxu3 %v2466_v7  ;;  %v3637_v0 = vld [vmem:[#allocation1 + $0x24] sm:$0xff]  ;;  %v3072_v7 = vld [vmem:[%s4723_s1 + $0x474] sm:$0xf0]  ;;  %v2609_v8 = vld [vmem:[%s4723_s1 + $0x4f0] sm:$0xf] }
  0x30   :  { %1467 = vmatpush.bf16.msrb.mxu0 %v2266_v13  ;;  %v3042_v5 = vld [vmem:[%s4723_s1 + $0x384] sm:$0xf0]  ;;  %271 = vst [vmem:[#allocation1] ss:$9 sm:$0xff] %v29_v61  ;;  %v3088_v10 = vld [vmem:[%s4723_s1 + $0x4f4] sm:$0xf0]  ;;  %v2298_v13 = vor.u32 %v3010_v57, %v2297_v56  ;;  %v2546_v18 = vor.u32 %v3072_v7, %v2545_v6 }
  0x31   :  { %1480 = vmatpush.bf16.msrb.mxu1 %v2330_v14  ;;  %v2673_v11 = vld [vmem:[%s4723_s1 + $0x570] sm:$0xf]  ;;  %v3104_v12 = vld [vmem:[%s4723_s1 + $0x574] sm:$0xf0]  ;;  %v2362_v14 = vor.u32 %v3026_v59, %v2361_v58  ;;  %v2426_v17 = vor.u32 %v3042_v5, %v2425_v4  ;;  %v2537_v21 = vld [vmem:[%s4723_s1 + $0x460] sm:$0xf] }
  0x32   :  { %1493 = vmatpush.bf16.msrb.mxu2 %v2394_v15  ;;  %v2737_v15 = vld [vmem:[%s4723_s1 + $0x5f0] sm:$0xf]  ;;  %v3120_v16 = vld [vmem:[%s4723_s1 + $0x5f4] sm:$0xf0]  ;;  %v2674_v20 = vor.u32 %v3104_v12, %v2673_v11  ;;  %v3070_v22 = vld [vmem:[%s4723_s1 + $0x464] sm:$0xf0] }
  0x33   :  { %1506 = vmatpush.bf16.msrb.mxu3 %v2458_v19  ;;  %v2610_v19 = vor.u32 %v3088_v10, %v2609_v8  ;;  %v2601_v23 = vld [vmem:[%s4723_s1 + $0x4e0] sm:$0xf]  ;;  %v2738_v24 = vor.u32 %v3120_v16, %v2737_v15  ;;  %v3086_v25 = vld [vmem:[%s4723_s1 + $0x4e4] sm:$0xf0]  ;;  %v2538_v33 = vor.u32 %v3070_v22, %v2537_v21  ;;  %v2529_v37 = vld [vmem:[%s4723_s1 + $0x450] sm:$0xf] }
  0x34   :  { %1468 = vmatpush.bf16.msrb.mxu0 %v2258_v26  ;;  %v2665_v26 = vld [vmem:[%s4723_s1 + $0x560] sm:$0xf]  ;;  %v3118_v32 = vld [vmem:[%s4723_s1 + $0x5e4] sm:$0xf0]  ;;  %v3068_v38 = vld [vmem:[%s4723_s1 + $0x454] sm:$0xf0] }
  0x35   :  { %1481 = vmatpush.bf16.msrb.mxu1 %v2322_v30  ;;  %v3102_v30 = vld [vmem:[%s4723_s1 + $0x564] sm:$0xf0]  ;;  %v2593_v39 = vld [vmem:[%s4723_s1 + $0x4d0] sm:$0xf]  ;;  %v3116_v45 = vld [vmem:[%s4723_s1 + $0x5d4] sm:$0xf0]  ;;  %v2530_v46 = vor.u32 %v3068_v38, %v2529_v37 }
  0x36   :  { %1494 = vmatpush.bf16.msrb.mxu2 %v2386_v31  ;;  %v2729_v31 = vld [vmem:[%s4723_s1 + $0x5e0] sm:$0xf]  ;;  %v2666_v36 = vor.u32 %v3102_v30, %v2665_v26  ;;  %v2657_v42 = vld [vmem:[%s4723_s1 + $0x550] sm:$0xf]  ;;  %v3066_v50 = vld [vmem:[%s4723_s1 + $0x444] sm:$0xf0] }
  0x37   :  { %1507 = vmatpush.bf16.msrb.mxu3 %v2450_v35  ;;  %v2602_v35 = vor.u32 %v3086_v25, %v2601_v23  ;;  %v2730_v40 = vor.u32 %v3118_v32, %v2729_v31  ;;  %v2521_v49 = vld [vmem:[%s4723_s1 + $0x440] sm:$0xf]  ;;  %v3082_v53 = vld [vmem:[%s4723_s1 + $0x4c4] sm:$0xf0]  ;;  %v3080_v5 = vld [vmem:[%s4723_s1 + $0x4b4] sm:$0xf0] }
  0x38   :  { %1469 = vmatpush.bf16.msrb.mxu0 %v2250_v41  ;;  %v3084_v41 = vld [vmem:[%s4723_s1 + $0x4d4] sm:$0xf0]  ;;  %v2585_v51 = vld [vmem:[%s4723_s1 + $0x4c0] sm:$0xf]  ;;  %v3114_v57 = vld [vmem:[%s4723_s1 + $0x5c4] sm:$0xf0]  ;;  %v2522_v58 = vor.u32 %v3066_v50, %v2521_v49 }
  0x39   :  { %1482 = vmatpush.bf16.msrb.mxu1 %v2314_v43  ;;  %v3100_v43 = vld [vmem:[%s4723_s1 + $0x554] sm:$0xf0]  ;;  %v2594_v47 = vor.u32 %v3084_v41, %v2593_v39  ;;  %v2649_v54 = vld [vmem:[%s4723_s1 + $0x540] sm:$0xf]  ;;  %v2586_v59 = vor.u32 %v3082_v53, %v2585_v51  ;;  %v2641_v6 = vld [vmem:[%s4723_s1 + $0x530] sm:$0xf] }
  0x3a   :  { %1495 = vmatpush.bf16.msrb.mxu2 %v2378_v44  ;;  %v2721_v44 = vld [vmem:[%s4723_s1 + $0x5d0] sm:$0xf]  ;;  %v2713_v56 = vld [vmem:[%s4723_s1 + $0x5c0] sm:$0xf]  ;;  %v3096_v7 = vld [vmem:[%s4723_s1 + $0x534] sm:$0xf0] }
  0x3b   :  { %1508 = vmatpush.bf16.msrb.mxu3 %v2442_v48  ;;  %v2658_v48 = vor.u32 %v3100_v43, %v2657_v42  ;;  %v2722_v52 = vor.u32 %v3116_v45, %v2721_v44  ;;  %v2714_v4 = vor.u32 %v3114_v57, %v2713_v56  ;;  %v2705_v8 = vld [vmem:[%s4723_s1 + $0x5b0] sm:$0xf]  ;;  %v2642_v12 = vor.u32 %v3096_v7, %v2641_v6  ;;  %v2569_v15 = vld [vmem:[%s4723_s1 + $0x4a0] sm:$0xf]  ;;  %v3110_v21 = vld [vmem:[%s4723_s1 + $0x5a4] sm:$0xf0] }
  0x3c   :  { %1470 = vmatpush.bf16.msrb.mxu0 %v2242_v55  ;;  %v3098_v55 = vld [vmem:[%s4723_s1 + $0x544] sm:$0xf0]  ;;  %v2497_v25 = vld [vmem:[%s4723_s1 + $0x410] sm:$0xf]  ;;  %v3060_v26 = vld [vmem:[%s4723_s1 + $0x414] sm:$0xf0] }
  0x3d   :  { %1483 = vmatpush.bf16.msrb.mxu1 %v2306_v62  ;;  %v2650_v61 = vor.u32 %v3098_v55, %v2649_v54  ;;  %v2513_v62 = vld [vmem:[%s4723_s1 + $0x430] sm:$0xf]  ;;  %v3076_v32 = vld [vmem:[%s4723_s1 + $0x494] sm:$0xf0]  ;;  %v2498_v38 = vor.u32 %v3060_v26, %v2497_v25  ;;  %v2489_v39 = vld [vmem:[%s4723_s1 + $0x400] sm:$0xf] }
  0x3e   :  { %1496 = vmatpush.bf16.msrb.mxu2 %v2370_v63  ;;  %v3064_v63 = vld [vmem:[%s4723_s1 + $0x434] sm:$0xf0]  ;;  %v2561_v30 = vld [vmem:[%s4723_s1 + $0x490] sm:$0xf]  ;;  %v2553_v43 = vld [vmem:[%s4723_s1 + $0x480] sm:$0xf] }
  0x3f   :  { %1509 = vmatpush.bf16.msrb.mxu3 %v2434_v3  ;;  %v2577_v3 = vld [vmem:[%s4723_s1 + $0x4b0] sm:$0xf]  ;;  %v2514_v10 = vor.u32 %v3064_v63, %v2513_v62  ;;  %v3108_v37 = vld [vmem:[%s4723_s1 + $0x594] sm:$0xf0]  ;;  %v2562_v41 = vor.u32 %v3076_v32, %v2561_v30  ;;  %v3074_v44 = vld [vmem:[%s4723_s1 + $0x484] sm:$0xf0] }
  0x40   :  { %1471 = vmatpush.bf16.msrb.mxu0 %v2234_v9  ;;  %v3112_v9 = vld [vmem:[%s4723_s1 + $0x5b4] sm:$0xf0]  ;;  %v2578_v11 = vor.u32 %v3080_v5, %v2577_v3  ;;  %v2617_v45 = vld [vmem:[%s4723_s1 + $0x500] sm:$0xf]  ;;  %v3106_v49 = vld [vmem:[%s4723_s1 + $0x584] sm:$0xf0]  ;;  %v2554_v57 = vor.u32 %v3074_v44, %v2553_v43 }
  0x41   :  { %1484 = vmatpush.bf16.msrb.mxu1 %v2298_v13  ;;  %v2505_v13 = vld [vmem:[%s4723_s1 + $0x420] sm:$0xf]  ;;  %v2706_v16 = vor.u32 %v3112_v9, %v2705_v8  ;;  %v2801_v50 = vld [vmem:[%s4723_s1 + $0x670] sm:$0xf]  ;;  %v3136_v51 = vld [vmem:[%s4723_s1 + $0x674] sm:$0xf0] }
  0x42   :  { %1497 = vmatpush.bf16.msrb.mxu2 %v2362_v14  ;;  %v3062_v14 = vld [vmem:[%s4723_s1 + $0x424] sm:$0xf0]  ;;  %v3152_v54 = vld [vmem:[%s4723_s1 + $0x6f4] sm:$0xf0]  ;;  %v2943_v55 = vld [vmem:[%s4723_s1 + $0x74] sm:$0xf]  ;;  %v2802_v63 = vor.u32 %v3136_v51, %v2801_v50 }
  0x43   :  { %1510 = vmatpush.bf16.msrb.mxu3 %v2426_v17  ;;  %1472 = vmatmul.bf16.vlgmr.msrb.gmra.mxu0 %v3637_v0  ;;  %v3078_v17 = vld [vmem:[%s4723_s1 + $0x4a4] sm:$0xf0]  ;;  %v2506_v22 = vor.u32 %v3062_v14, %v2505_v13  ;;  %v2035_v56 = vld [vmem:[%s4723_s1 + $0x78] sm:$0xf0]  ;;  %v2793_v5 = vld [vmem:[%s4723_s1 + $0x660] sm:$0xf] }
  0x44   :  { %1516 = vmatpush.bf16.msra.mxu0 %v2546_v18  ;;  %1485 = vmatmul.bf16.vlgmr.msrb.gmra.mxu1 %v3641_v2  ;;  %v2633_v18 = vld [vmem:[%s4723_s1 + $0x520] sm:$0xf]  ;;  %v2570_v23 = vor.u32 %v3078_v17, %v2569_v15  ;;  %v3134_v6 = vld [vmem:[%s4723_s1 + $0x664] sm:$0xf0]  ;;  %v2957_v13 = vld [vmem:[%s4723_s1 + $0xe4] sm:$0xf] }
  0x45   :  { %1529 = vmatpush.bf16.msra.mxu1 %v2610_v19  ;;  %1498 = vmatmul.bf16.vlgmr.msrb.gmra.mxu2 %v3632_v60  ;;  %v3094_v19 = vld [vmem:[%s4723_s1 + $0x524] sm:$0xf0]  ;;  %v2857_v7 = vld [vmem:[%s4723_s1 + $0x6e0] sm:$0xf]  ;;  %v2091_v14 = vld [vmem:[%s4723_s1 + $0xe8] sm:$0xf0] }
  0x46   :  { %1542 = vmatpush.bf16.msra.mxu2 %v2674_v20  ;;  %1511 = vmatmul.bf16.vlgmr.msrb.gmra.mxu3 %v3639_v1  ;;  %v2697_v20 = vld [vmem:[%s4723_s1 + $0x5a0] sm:$0xf]  ;;  %v3150_v9 = vld [vmem:[%s4723_s1 + $0x6e4] sm:$0xf0]  ;;  %v274_v15 = vld [vmem:[#allocation1 + $0x12] sm:$0xff] }
  0x47   :  { %1555 = vmatpush.bf16.msra.mxu3 %v2738_v24  ;;  %v2634_v24 = vor.u32 %v3094_v19, %v2633_v18  ;;  %v2698_v31 = vor.u32 %v3110_v21, %v2697_v20  ;;  %v275_v17 = vld [vmem:[#allocation1 + $0x1b] sm:$0xff]  ;;  %v2794_v18 = vor.u32 %v3134_v6, %v2793_v5  ;;  %v2858_v19 = vor.u32 %v3150_v9, %v2857_v7  ;;  %v2785_v21 = vld [vmem:[%s4723_s1 + $0x650] sm:$0xf]  ;;  %v2939_v26 = vld [vmem:[%s4723_s1 + $0x54] sm:$0xf] }
  0x48   :  { %1517 = vmatpush.bf16.msra.mxu0 %v2538_v33  ;;  %v2625_v33 = vld [vmem:[%s4723_s1 + $0x510] sm:$0xf]  ;;  %v3148_v25 = vld [vmem:[%s4723_s1 + $0x6d4] sm:$0xf0]  ;;  %v2019_v30 = vld [vmem:[%s4723_s1 + $0x58] sm:$0xf0] }
  0x49   :  { %1530 = vmatpush.bf16.msra.mxu1 %v2602_v35  ;;  %v3092_v35 = vld [vmem:[%s4723_s1 + $0x514] sm:$0xf0]  ;;  %v2083_v32 = vld [vmem:[%s4723_s1 + $0xd8] sm:$0xf0]  ;;  %v2011_v43 = vld [vmem:[%s4723_s1 + $0x48] sm:$0xf0] }
  0x4a   :  { %1543 = vmatpush.bf16.msra.mxu2 %v2666_v36  ;;  %v2689_v36 = vld [vmem:[%s4723_s1 + $0x590] sm:$0xf]  ;;  %v2626_v42 = vor.u32 %v3092_v35, %v2625_v33  ;;  %v2953_v44 = vld [vmem:[%s4723_s1 + $0xc4] sm:$0xf] }
  0x4b   :  { %1556 = vmatpush.bf16.msra.mxu3 %v2730_v40  ;;  %v3058_v40 = vld [vmem:[%s4723_s1 + $0x404] sm:$0xf0] }
  0x4c   :  { %1518 = vmatpush.bf16.msra.mxu0 %v2530_v46  ;;  %v2690_v46 = vor.u32 %v3108_v37, %v2689_v36  ;;  %v2490_v53 = vor.u32 %v3058_v40, %v2489_v39  ;;  %v2022_v36 = vor.u32 %v2939_v26, %v2019_v30  ;;  %v2777_v37 = vld [vmem:[%s4723_s1 + $0x640] sm:$0xf] }
  0x4d   :  { %1531 = vmatpush.bf16.msra.mxu1 %v2594_v47  ;;  %v3090_v47 = vld [vmem:[%s4723_s1 + $0x504] sm:$0xf0]  ;;  %v2841_v39 = vld [vmem:[%s4723_s1 + $0x6c0] sm:$0xf] }
  0x4e   :  { %1544 = vmatpush.bf16.msra.mxu2 %v2658_v48  ;;  %v2681_v48 = vld [vmem:[%s4723_s1 + $0x580] sm:$0xf] }
  0x4f   :  { %1557 = vmatpush.bf16.msra.mxu3 %v2722_v52  ;;  %v2865_v52 = vld [vmem:[%s4723_s1 + $0x6f0] sm:$0xf]  ;;  %v2682_v62 = vor.u32 %v3106_v49, %v2681_v48 }
  0x50   :  { %1519 = vmatpush.bf16.msra.mxu0 %v2522_v58  ;;  %v2618_v58 = vor.u32 %v3090_v47, %v2617_v45  ;;  %v2866_v3 = vor.u32 %v3152_v54, %v2865_v52  ;;  %v2075_v45 = vld [vmem:[%s4723_s1 + $0xc8] sm:$0xf0] }
  0x51   :  { %1532 = vmatpush.bf16.msra.mxu1 %v2586_v59  ;;  %v2959_v59 = vld [vmem:[%s4723_s1 + $0xf4] sm:$0xf] }
  0x52   :  { %1545 = vmatpush.bf16.msra.mxu2 %v2650_v61  ;;  %v2099_v61 = vld [vmem:[%s4723_s1 + $0xf8] sm:$0xf0] }
  0x53   :  { %1558 = vmatpush.bf16.msra.mxu3 %v2714_v4  ;;  %v2038_v4 = vor.u32 %v2943_v55, %v2035_v56  ;;  %v2102_v8 = vor.u32 %v2959_v59, %v2099_v61 }
  0x54   :  { %1520 = vmatpush.bf16.msra.mxu0 %v2514_v10  ;;  %v2941_v10 = vld [vmem:[%s4723_s1 + $0x64] sm:$0xf] }
  0x55   :  { %1533 = vmatpush.bf16.msra.mxu1 %v2578_v11  ;;  %v2027_v11 = vld [vmem:[%s4723_s1 + $0x68] sm:$0xf0] }
  0x56   :  { %1546 = vmatpush.bf16.msra.mxu2 %v2642_v12  ;;  %v3887_v12 = vld [vmem:[#allocation1] sm:$0xff]  ;;  %v2030_v20 = vor.u32 %v2941_v10, %v2027_v11 }
  0x57   :  { %1559 = vmatpush.bf16.msra.mxu3 %v2706_v16  ;;  %v3895_v16 = vld [vmem:[#allocation1 + $0x9] sm:$0xff] }
  0x58   :  { %1521 = vmatpush.bf16.msra.mxu0 %v2506_v22  ;;  %v3132_v22 = vld [vmem:[%s4723_s1 + $0x654] sm:$0xf0] }
  0x59   :  { %1534 = vmatpush.bf16.msra.mxu1 %v2570_v23  ;;  %v2849_v23 = vld [vmem:[%s4723_s1 + $0x6d0] sm:$0xf]  ;;  %v2786_v33 = vor.u32 %v3132_v22, %v2785_v21 }
  0x5a   :  { %1547 = vmatpush.bf16.msra.mxu2 %v2634_v24  ;;  %v2094_v24 = vor.u32 %v2957_v13, %v2091_v14  ;;  %v2850_v35 = vor.u32 %v3148_v25, %v2849_v23 }
  0x5b   :  { %1560 = vmatpush.bf16.msra.mxu3 %v2698_v31  ;;  %v2955_v31 = vld [vmem:[%s4723_s1 + $0xd4] sm:$0xf] }
  0x5c   :  { %1522 = vmatpush.bf16.msra.mxu0 %v2498_v38  ;;  %v3130_v38 = vld [vmem:[%s4723_s1 + $0x644] sm:$0xf0]  ;;  %v2086_v40 = vor.u32 %v2955_v31, %v2083_v32 }
  0x5d   :  { %1535 = vmatpush.bf16.msra.mxu1 %v2562_v41  ;;  %v3146_v41 = vld [vmem:[%s4723_s1 + $0x6c4] sm:$0xf0] }
  0x5e   :  { %1548 = vmatpush.bf16.msra.mxu2 %v2626_v42  ;;  %v2937_v42 = vld [vmem:[%s4723_s1 + $0x44] sm:$0xf] }
  0x5f   :  { %1561 = vmatpush.bf16.msra.mxu3 %v2690_v46 }
  0x60   :  { %1523 = vmatpush.bf16.msra.mxu0 %v2490_v53 }
  0x61   :  { %1536 = vmatpush.bf16.msra.mxu1 %v2554_v57 }
  0x62   :  { %1549 = vmatpush.bf16.msra.mxu2 %v2618_v58 }
  0x63   :  { %1562 = vmatpush.bf16.msra.mxu3 %v2682_v62  ;;  %1524 = vmatmul.bf16.vlgmr.msra.gmra.mxu0 %v3887_v12 }
  0x64   :  { %1568 = vmatpush.bf16.msrb.mxu0 %v2802_v63  ;;  %1537 = vmatmul.bf16.vlgmr.msra.gmra.mxu1 %v3895_v16 }
  0x65   :  { %1581 = vmatpush.bf16.msrb.mxu1 %v2866_v3  ;;  %1550 = vmatmul.bf16.vlgmr.msra.gmra.mxu2 %v274_v15 }
  0x66   :  { %1594 = vmatpush.bf16.msrb.mxu2 %v2038_v4  ;;  %1563 = vmatmul.bf16.vlgmr.msra.gmra.mxu3 %v275_v17 }
  0x67   :  { %1607 = vmatpush.bf16.msrb.mxu3 %v2102_v8 }
  0x68   :  { %1569 = vmatpush.bf16.msrb.mxu0 %v2794_v18 }
  0x69   :  { %1582 = vmatpush.bf16.msrb.mxu1 %v2858_v19 }
  0x6a   :  { %1595 = vmatpush.bf16.msrb.mxu2 %v2030_v20 }
  0x6b   :  { %1608 = vmatpush.bf16.msrb.mxu3 %v2094_v24 }
  0x6c   :  { %12 = vsyncpa [#allocation3], 0  ;;  %1570 = vmatpush.bf16.msrb.mxu0 %v2786_v33  ;;  %v2778_v46 = vor.u32 %v3130_v38, %v2777_v37  ;;  %v2842_v47 = vor.u32 %v3146_v41, %v2841_v39  ;;  %v2014_v48 = vor.u32 %v2937_v42, %v2011_v43  ;;  %v2769_v49 = vld [vmem:[%s4723_s1 + $0x630] sm:$0xf]  ;;  %v3128_v50 = vld [vmem:[%s4723_s1 + $0x634] sm:$0xf0]  ;;  %v2078_v52 = vor.u32 %v2953_v44, %v2075_v45 }
  0x6d   :  { %1583 = vmatpush.bf16.msrb.mxu1 %v2850_v35  ;;  %v2833_v51 = vld [vmem:[%s4723_s1 + $0x6b0] sm:$0xf]  ;;  %v3144_v53 = vld [vmem:[%s4723_s1 + $0x6b4] sm:$0xf0]  ;;  %v2935_v54 = vld [vmem:[%s4723_s1 + $0x34] sm:$0xf]  ;;  %v2770_v58 = vor.u32 %v3128_v50, %v2769_v49 }
  0x6e   :  { %1596 = vmatpush.bf16.msrb.mxu2 %v2022_v36  ;;  %v2003_v55 = vld [vmem:[%s4723_s1 + $0x38] sm:$0xf0]  ;;  %v2951_v56 = vld [vmem:[%s4723_s1 + $0xb4] sm:$0xf]  ;;  %v2834_v59 = vor.u32 %v3144_v53, %v2833_v51  ;;  %v2761_v62 = vld [vmem:[%s4723_s1 + $0x620] sm:$0xf] }
  0x6f   :  { %1609 = vmatpush.bf16.msrb.mxu3 %v2086_v40  ;;  %v2067_v57 = vld [vmem:[%s4723_s1 + $0xb8] sm:$0xf0]  ;;  %v2006_v61 = vor.u32 %v2935_v54, %v2003_v55  ;;  %v3126_v63 = vld [vmem:[%s4723_s1 + $0x624] sm:$0xf0]  ;;  %v2825_v3 = vld [vmem:[%s4723_s1 + $0x6a0] sm:$0xf] }
  0x70   :  { %1571 = vmatpush.bf16.msrb.mxu0 %v2778_v46  ;;  %v2070_v4 = vor.u32 %v2951_v56, %v2067_v57  ;;  %v3142_v5 = vld [vmem:[%s4723_s1 + $0x6a4] sm:$0xf0]  ;;  %v2933_v6 = vld [vmem:[%s4723_s1 + $0x24] sm:$0xf]  ;;  %v1995_v7 = vld [vmem:[%s4723_s1 + $0x28] sm:$0xf0]  ;;  %v2762_v10 = vor.u32 %v3126_v63, %v2761_v62 }
  0x71   :  { %1584 = vmatpush.bf16.msrb.mxu1 %v2842_v47  ;;  %v2949_v8 = vld [vmem:[%s4723_s1 + $0xa4] sm:$0xf]  ;;  %v2059_v9 = vld [vmem:[%s4723_s1 + $0xa8] sm:$0xf0]  ;;  %v2826_v11 = vor.u32 %v3142_v5, %v2825_v3  ;;  %v1998_v13 = vor.u32 %v2933_v6, %v1995_v7  ;;  %v2753_v14 = vld [vmem:[%s4723_s1 + $0x610] sm:$0xf] }
  0x72   :  { %1597 = vmatpush.bf16.msrb.mxu2 %v2014_v48  ;;  %v3124_v15 = vld [vmem:[%s4723_s1 + $0x614] sm:$0xf0]  ;;  %v2817_v17 = vld [vmem:[%s4723_s1 + $0x690] sm:$0xf]  ;;  %v2062_v18 = vor.u32 %v2949_v8, %v2059_v9  ;;  %v2931_v20 = vld [vmem:[%s4723_s1 + $0x14] sm:$0xf] }
  0x73   :  { %1610 = vmatpush.bf16.msrb.mxu3 %v2078_v52  ;;  %v3140_v19 = vld [vmem:[%s4723_s1 + $0x694] sm:$0xf0]  ;;  %v1987_v21 = vld [vmem:[%s4723_s1 + $0x18] sm:$0xf0]  ;;  %v2947_v22 = vld [vmem:[%s4723_s1 + $0x94] sm:$0xf]  ;;  %v2754_v24 = vor.u32 %v3124_v15, %v2753_v14 }
  0x74   :  { %1572 = vmatpush.bf16.msrb.mxu0 %v2770_v58  ;;  %v2051_v23 = vld [vmem:[%s4723_s1 + $0x98] sm:$0xf0]  ;;  %v2745_v25 = vld [vmem:[%s4723_s1 + $0x600] sm:$0xf]  ;;  %v3122_v26 = vld [vmem:[%s4723_s1 + $0x604] sm:$0xf0]  ;;  %v2818_v30 = vor.u32 %v3140_v19, %v2817_v17  ;;  %v1990_v31 = vor.u32 %v2931_v20, %v1987_v21 }
  0x75   :  { %1585 = vmatpush.bf16.msrb.mxu1 %v2834_v59  ;;  %v2809_v32 = vld [vmem:[%s4723_s1 + $0x680] sm:$0xf]  ;;  %v3138_v33 = vld [vmem:[%s4723_s1 + $0x684] sm:$0xf0]  ;;  %v2929_v35 = vld [vmem:[%s4723_s1 + $0x4] sm:$0xf]  ;;  %v2054_v36 = vor.u32 %v2947_v22, %v2051_v23  ;;  %v2746_v43 = vor.u32 %v3122_v26, %v2745_v25 }
  0x76   :  { %1598 = vmatpush.bf16.msrb.mxu2 %v2006_v61  ;;  %v1979_v37 = vld [vmem:[%s4723_s1 + $0x8] sm:$0xf0]  ;;  %v2945_v38 = vld [vmem:[%s4723_s1 + $0x84] sm:$0xf]  ;;  %v2975_v40 = vld [vmem:[%s4723_s1 + $0x174] sm:$0xf]  ;;  %v2810_v47 = vor.u32 %v3138_v33, %v2809_v32 }
  0x77   :  { %1611 = vmatpush.bf16.msrb.mxu3 %v2070_v4  ;;  %v2043_v39 = vld [vmem:[%s4723_s1 + $0x88] sm:$0xf0]  ;;  %v2163_v41 = vld [vmem:[%s4723_s1 + $0x178] sm:$0xf0]  ;;  %v2991_v42 = vld [vmem:[%s4723_s1 + $0x1f4] sm:$0xf]  ;;  %v1982_v48 = vor.u32 %v2929_v35, %v1979_v37 }
  0x78   :  { %1573 = vmatpush.bf16.msrb.mxu0 %v2762_v10  ;;  %v2227_v44 = vld [vmem:[%s4723_s1 + $0x1f8] sm:$0xf0]  ;;  %v3007_v45 = vld [vmem:[%s4723_s1 + $0x274] sm:$0xf]  ;;  %v2046_v51 = vor.u32 %v2945_v38, %v2043_v39  ;;  %v2166_v52 = vor.u32 %v2975_v40, %v2163_v41  ;;  %v2973_v55 = vld [vmem:[%s4723_s1 + $0x164] sm:$0xf] }
  0x79   :  { %1586 = vmatpush.bf16.msrb.mxu1 %v2826_v11  ;;  %v2291_v46 = vld [vmem:[%s4723_s1 + $0x278] sm:$0xf0]  ;;  %v3023_v49 = vld [vmem:[%s4723_s1 + $0x2f4] sm:$0xf]  ;;  %v2230_v53 = vor.u32 %v2991_v42, %v2227_v44  ;;  %v2155_v56 = vld [vmem:[%s4723_s1 + $0x168] sm:$0xf0] }
  0x7a   :  { %1599 = vmatpush.bf16.msrb.mxu2 %v1998_v13  ;;  %v2355_v50 = vld [vmem:[%s4723_s1 + $0x2f8] sm:$0xf0]  ;;  %v2294_v54 = vor.u32 %v3007_v45, %v2291_v46  ;;  %v2989_v57 = vld [vmem:[%s4723_s1 + $0x1e4] sm:$0xf]  ;;  %v2219_v59 = vld [vmem:[%s4723_s1 + $0x1e8] sm:$0xf0]  ;;  %v2158_v6 = vor.u32 %v2973_v55, %v2155_v56 }
  0x7b   :  { %1612 = vmatpush.bf16.msrb.mxu3 %v2062_v18  ;;  %v2358_v58 = vor.u32 %v3023_v49, %v2355_v50  ;;  %v3005_v61 = vld [vmem:[%s4723_s1 + $0x264] sm:$0xf]  ;;  %v2283_v62 = vld [vmem:[%s4723_s1 + $0x268] sm:$0xf0]  ;;  %v2222_v7 = vor.u32 %v2989_v57, %v2219_v59  ;;  %v2971_v9 = vld [vmem:[%s4723_s1 + $0x154] sm:$0xf] }
  0x7c   :  { %1574 = vmatpush.bf16.msrb.mxu0 %v2754_v24  ;;  %v4085_v63 = vld [vmem:[#allocation1 + $0x24] sm:$0xff]  ;;  %v2347_v4 = vld [vmem:[%s4723_s1 + $0x2e8] sm:$0xf0]  ;;  %v2286_v8 = vor.u32 %v3005_v61, %v2283_v62  ;;  %v2147_v10 = vld [vmem:[%s4723_s1 + $0x158] sm:$0xf0]  ;;  %vm1864_vm0 = vcmask 1042432  }
  0x7d   :  { %1587 = vmatpush.bf16.msrb.mxu1 %v2818_v30  ;;  %v3021_v3 = vld [vmem:[%s4723_s1 + $0x2e4] sm:$0xf]  ;;  %v4093_v5 = vld [vmem:[#allocation1 + $0x2d] sm:$0xff]  ;;  %v2211_v14 = vld [vmem:[%s4723_s1 + $0x1d8] sm:$0xf0]  ;;  %v2150_v20 = vor.u32 %v2971_v9, %v2147_v10  ;;  %vm1860_vm1 = vcmask 179200  }
  0x7e   :  { %1600 = vmatpush.bf16.msrb.mxu2 %v1990_v31  ;;  %v2987_v11 = vld [vmem:[%s4723_s1 + $0x1d4] sm:$0xf]  ;;  %v2350_v13 = vor.u32 %v3021_v3, %v2347_v4  ;;  %v2275_v17 = vld [vmem:[%s4723_s1 + $0x258] sm:$0xf0]  ;;  %v2969_v23 = vld [vmem:[%s4723_s1 + $0x144] sm:$0xf] }
  0x7f   :  { %1613 = vmatpush.bf16.msrb.mxu3 %v2054_v36  ;;  %v3003_v15 = vld [vmem:[%s4723_s1 + $0x254] sm:$0xf]  ;;  %v2339_v19 = vld [vmem:[%s4723_s1 + $0x2d8] sm:$0xf0]  ;;  %v2214_v21 = vor.u32 %v2987_v11, %v2211_v14  ;;  %v2139_v24 = vld [vmem:[%s4723_s1 + $0x148] sm:$0xf0] }
  0x80   :  { %1575 = vmatpush.bf16.msrb.mxu0 %v2746_v43  ;;  %v3019_v18 = vld [vmem:[%s4723_s1 + $0x2d4] sm:$0xf]  ;;  %v2278_v22 = vor.u32 %v3003_v15, %v2275_v17  ;;  %v3001_v26 = vld [vmem:[%s4723_s1 + $0x244] sm:$0xf]  ;;  %v2267_v30 = vld [vmem:[%s4723_s1 + $0x248] sm:$0xf0]  ;;  %v2142_v33 = vor.u32 %v2969_v23, %v2139_v24 }
  0x81   :  { %1588 = vmatpush.bf16.msrb.mxu1 %v2810_v47  ;;  %v2342_v25 = vor.u32 %v3019_v18, %v2339_v19  ;;  %v3017_v31 = vld [vmem:[%s4723_s1 + $0x2c4] sm:$0xf]  ;;  %v2331_v32 = vld [vmem:[%s4723_s1 + $0x2c8] sm:$0xf0]  ;;  %v2270_v36 = vor.u32 %v3001_v26, %v2267_v30  ;;  %v2967_v37 = vld [vmem:[%s4723_s1 + $0x134] sm:$0xf] }
  0x82   :  { %1601 = vmatpush.bf16.msrb.mxu2 %v1982_v48  ;;  %v2131_v38 = vld [vmem:[%s4723_s1 + $0x138] sm:$0xf0]  ;;  %v2983_v39 = vld [vmem:[%s4723_s1 + $0x1b4] sm:$0xf]  ;;  %v2334_v40 = vor.u32 %v3017_v31, %v2331_v32  ;;  %v2965_v49 = vld [vmem:[%s4723_s1 + $0x124] sm:$0xf] }
  0x83   :  { %1614 = vmatpush.bf16.msrb.mxu3 %v2046_v51  ;;  %1576 = vmatmul.bf16.vlgmr.msrb.gmra.mxu0 %v4085_v63  ;;  %v2195_v41 = vld [vmem:[%s4723_s1 + $0x1b8] sm:$0xf0]  ;;  %v2999_v42 = vld [vmem:[%s4723_s1 + $0x234] sm:$0xf]  ;;  %v2134_v46 = vor.u32 %v2967_v37, %v2131_v38  ;;  %v2123_v50 = vld [vmem:[%s4723_s1 + $0x128] sm:$0xf0] }
  0x84   :  { %1620 = vmatpush.bf16.msra.mxu0 %v2166_v52  ;;  %1589 = vmatmul.bf16.vlgmr.msrb.gmra.mxu1 %v4093_v5  ;;  %v2259_v43 = vld [vmem:[%s4723_s1 + $0x238] sm:$0xf0]  ;;  %v3015_v44 = vld [vmem:[%s4723_s1 + $0x2b4] sm:$0xf]  ;;  %v2198_v47 = vor.u32 %v2983_v39, %v2195_v41  ;;  %v2981_v51 = vld [vmem:[%s4723_s1 + $0x1a4] sm:$0xf] }
  0x85   :  { %1633 = vmatpush.bf16.msra.mxu1 %v2230_v53  ;;  %1602 = vmatmul.bf16.vlgmr.msrb.gmra.mxu2 %v3559_v28  ;;  %v2985_v28 = vld [vmem:[%s4723_s1 + $0x1c4] sm:$0xf]  ;;  %v2323_v45 = vld [vmem:[%s4723_s1 + $0x2b8] sm:$0xf0]  ;;  %v2262_v48 = vor.u32 %v2999_v42, %v2259_v43  ;;  %v2187_v53 = vld [vmem:[%s4723_s1 + $0x1a8] sm:$0xf0] }
  0x86   :  { %1646 = vmatpush.bf16.msra.mxu2 %v2294_v54  ;;  %1615 = vmatmul.bf16.vlgmr.msrb.gmra.mxu3 %v3569_v34  ;;  %v2203_v34 = vld [vmem:[%s4723_s1 + $0x1c8] sm:$0xf0]  ;;  %v2326_v52 = vor.u32 %v3015_v44, %v2323_v45  ;;  %v2997_v54 = vld [vmem:[%s4723_s1 + $0x224] sm:$0xf]  ;;  %v2190_v59 = vor.u32 %v2981_v51, %v2187_v53  ;;  %v2963_v62 = vld [vmem:[%s4723_s1 + $0x114] sm:$0xf] }
  0x87   :  { %1659 = vmatpush.bf16.msra.mxu3 %v2358_v58  ;;  %v2206_v35 = vor.u32 %v2985_v28, %v2203_v34  ;;  %v2251_v55 = vld [vmem:[%s4723_s1 + $0x228] sm:$0xf0]  ;;  %v3013_v56 = vld [vmem:[%s4723_s1 + $0x2a4] sm:$0xf]  ;;  %v2126_v58 = vor.u32 %v2965_v49, %v2123_v50  ;;  %v2115_v3 = vld [vmem:[%s4723_s1 + $0x118] sm:$0xf0] }
  0x88   :  { %1621 = vmatpush.bf16.msra.mxu0 %v2158_v6  ;;  %v2315_v57 = vld [vmem:[%s4723_s1 + $0x2a8] sm:$0xf0]  ;;  %v2254_v61 = vor.u32 %v2997_v54, %v2251_v55  ;;  %v2979_v4 = vld [vmem:[%s4723_s1 + $0x194] sm:$0xf]  ;;  %v2243_v9 = vld [vmem:[%s4723_s1 + $0x218] sm:$0xf0] }
  0x89   :  { %1634 = vmatpush.bf16.msra.mxu1 %v2222_v7  ;;  %v2318_v6 = vor.u32 %v3013_v56, %v2315_v57  ;;  %v2179_v7 = vld [vmem:[%s4723_s1 + $0x198] sm:$0xf0]  ;;  %v3011_v10 = vld [vmem:[%s4723_s1 + $0x294] sm:$0xf]  ;;  %v2961_v14 = vld [vmem:[%s4723_s1 + $0x104] sm:$0xf] }
  0x8a   :  { %1647 = vmatpush.bf16.msra.mxu2 %v2286_v8  ;;  %v2995_v8 = vld [vmem:[%s4723_s1 + $0x214] sm:$0xf]  ;;  %v2307_v11 = vld [vmem:[%s4723_s1 + $0x298] sm:$0xf0]  ;;  %v2107_v15 = vld [vmem:[%s4723_s1 + $0x108] sm:$0xf0]  ;;  %v2182_v17 = vor.u32 %v2979_v4, %v2179_v7 }
  0x8b   :  { %1660 = vmatpush.bf16.msra.mxu3 %v2350_v13  ;;  %v2118_v13 = vor.u32 %v2963_v62, %v2115_v3  ;;  %v2246_v18 = vor.u32 %v2995_v8, %v2243_v9  ;;  %v2977_v19 = vld [vmem:[%s4723_s1 + $0x184] sm:$0xf]  ;;  %v2235_v23 = vld [vmem:[%s4723_s1 + $0x208] sm:$0xf0]  ;;  %v2419_v34 = vld [vmem:[%s4723_s1 + $0x378] sm:$0xf0]  ;;  %v2110_v30 = vor.u32 %v2961_v14, %v2107_v15 }
  0x8c   :  { %1622 = vmatpush.bf16.msra.mxu0 %v2150_v20  ;;  %v2171_v20 = vld [vmem:[%s4723_s1 + $0x188] sm:$0xf0]  ;;  %v3009_v24 = vld [vmem:[%s4723_s1 + $0x284] sm:$0xf]  ;;  %v3055_v26 = vld [vmem:[%s4723_s1 + $0x3f4] sm:$0xf] }
  0x8d   :  { %1635 = vmatpush.bf16.msra.mxu1 %v2214_v21  ;;  %v2993_v21 = vld [vmem:[%s4723_s1 + $0x204] sm:$0xf]  ;;  %v2299_v28 = vld [vmem:[%s4723_s1 + $0x288] sm:$0xf0]  ;;  %v2483_v31 = vld [vmem:[%s4723_s1 + $0x3f8] sm:$0xf0] }
  0x8e   :  { %1648 = vmatpush.bf16.msra.mxu2 %v2278_v22  ;;  %v2310_v22 = vor.u32 %v3011_v10, %v2307_v11  ;;  %v3071_v32 = vld [vmem:[%s4723_s1 + $0x474] sm:$0xf]  ;;  %v2611_v38 = vld [vmem:[%s4723_s1 + $0x4f8] sm:$0xf0]  ;;  %v2302_v39 = vor.u32 %v3009_v24, %v2299_v28  ;;  %v2486_v41 = vor.u32 %v3055_v26, %v2483_v31  ;;  %v3037_v43 = vld [vmem:[%s4723_s1 + $0x364] sm:$0xf] }
  0x8f   :  { %1661 = vmatpush.bf16.msra.mxu3 %v2342_v25  ;;  %v3039_v25 = vld [vmem:[%s4723_s1 + $0x374] sm:$0xf]  ;;  %v2411_v44 = vld [vmem:[%s4723_s1 + $0x368] sm:$0xf0]  ;;  %v3053_v45 = vld [vmem:[%s4723_s1 + $0x3e4] sm:$0xf] }
  0x90   :  { %1623 = vmatpush.bf16.msra.mxu0 %v2142_v33  ;;  %v2547_v33 = vld [vmem:[%s4723_s1 + $0x478] sm:$0xf0]  ;;  %v3087_v37 = vld [vmem:[%s4723_s1 + $0x4f4] sm:$0xf]  ;;  %v2539_v49 = vld [vmem:[%s4723_s1 + $0x468] sm:$0xf0] }
  0x91   :  { %1636 = vmatpush.bf16.msra.mxu1 %v2206_v35  ;;  %v2174_v35 = vor.u32 %v2977_v19, %v2171_v20  ;;  %v2550_v42 = vor.u32 %v3071_v32, %v2547_v33  ;;  %v3085_v50 = vld [vmem:[%s4723_s1 + $0x4e4] sm:$0xf]  ;;  %v2603_v51 = vld [vmem:[%s4723_s1 + $0x4e8] sm:$0xf0]  ;;  %v3035_v55 = vld [vmem:[%s4723_s1 + $0x354] sm:$0xf] }
  0x92   :  { %1649 = vmatpush.bf16.msra.mxu2 %v2270_v36  ;;  %v2238_v36 = vor.u32 %v2993_v21, %v2235_v23  ;;  %v2403_v56 = vld [vmem:[%s4723_s1 + $0x358] sm:$0xf0]  ;;  %v3051_v57 = vld [vmem:[%s4723_s1 + $0x3d4] sm:$0xf]  ;;  %v3033_v8 = vld [vmem:[%s4723_s1 + $0x344] sm:$0xf] }
  0x93   :  { %1662 = vmatpush.bf16.msra.mxu3 %v2334_v40  ;;  %v2422_v40 = vor.u32 %v3039_v25, %v2419_v34  ;;  %v2531_v62 = vld [vmem:[%s4723_s1 + $0x458] sm:$0xf0]  ;;  %v3083_v3 = vld [vmem:[%s4723_s1 + $0x4d4] sm:$0xf]  ;;  %v2406_v4 = vor.u32 %v3035_v55, %v2403_v56  ;;  %v2395_v9 = vld [vmem:[%s4723_s1 + $0x348] sm:$0xf0] }
  0x94   :  { %1624 = vmatpush.bf16.msra.mxu0 %v2134_v46  ;;  %v2614_v46 = vor.u32 %v3087_v37, %v2611_v38  ;;  %v3065_v10 = vld [vmem:[%s4723_s1 + $0x444] sm:$0xf]  ;;  %v2523_v11 = vld [vmem:[%s4723_s1 + $0x448] sm:$0xf0]  ;;  %v2398_v15 = vor.u32 %v3033_v8, %v2395_v9  ;;  %v3031_v19 = vld [vmem:[%s4723_s1 + $0x334] sm:$0xf] }
  0x95   :  { %1637 = vmatpush.bf16.msra.mxu1 %v2198_v47  ;;  %v2475_v47 = vld [vmem:[%s4723_s1 + $0x3e8] sm:$0xf0]  ;;  %v2387_v20 = vld [vmem:[%s4723_s1 + $0x338] sm:$0xf0]  ;;  %v3047_v21 = vld [vmem:[%s4723_s1 + $0x3b4] sm:$0xf] }
  0x96   :  { %1650 = vmatpush.bf16.msra.mxu2 %v2262_v48  ;;  %v3069_v48 = vld [vmem:[%s4723_s1 + $0x464] sm:$0xf]  ;;  %v2478_v53 = vor.u32 %v3053_v45, %v2475_v47  ;;  %v2587_v14 = vld [vmem:[%s4723_s1 + $0x4c8] sm:$0xf0]  ;;  %v2451_v23 = vld [vmem:[%s4723_s1 + $0x3b8] sm:$0xf0]  ;;  %v2390_v26 = vor.u32 %v3031_v19, %v2387_v20 }
  0x97   :  { %1663 = vmatpush.bf16.msra.mxu3 %v2326_v52  ;;  %v2414_v52 = vor.u32 %v3037_v43, %v2411_v44  ;;  %v2542_v54 = vor.u32 %v3069_v48, %v2539_v49  ;;  %v3063_v24 = vld [vmem:[%s4723_s1 + $0x434] sm:$0xf]  ;;  %v2515_v28 = vld [vmem:[%s4723_s1 + $0x438] sm:$0xf0]  ;;  %v3029_v32 = vld [vmem:[%s4723_s1 + $0x324] sm:$0xf] }
  0x98   :  { %1625 = vmatpush.bf16.msra.mxu0 %v2126_v58  ;;  %v2606_v58 = vor.u32 %v3085_v50, %v2603_v51  ;;  %v3079_v25 = vld [vmem:[%s4723_s1 + $0x4b4] sm:$0xf]  ;;  %v2579_v34 = vld [vmem:[%s4723_s1 + $0x4b8] sm:$0xf0]  ;;  %v2518_v31 = vor.u32 %v3063_v24, %v2515_v28  ;;  %v2379_v33 = vld [vmem:[%s4723_s1 + $0x328] sm:$0xf0] }
  0x99   :  { %1638 = vmatpush.bf16.msra.mxu1 %v2190_v59  ;;  %v2467_v59 = vld [vmem:[%s4723_s1 + $0x3d8] sm:$0xf0]  ;;  %v2443_v37 = vld [vmem:[%s4723_s1 + $0x3a8] sm:$0xf0]  ;;  %v3061_v38 = vld [vmem:[%s4723_s1 + $0x424] sm:$0xf] }
  0x9a   :  { %1651 = vmatpush.bf16.msra.mxu2 %v2254_v61  ;;  %v3067_v61 = vld [vmem:[%s4723_s1 + $0x454] sm:$0xf]  ;;  %v2435_v49 = vld [vmem:[%s4723_s1 + $0x398] sm:$0xf0]  ;;  %v3025_v55 = vld [vmem:[%s4723_s1 + $0x304] sm:$0xf] }
  0x9b   :  { %1664 = vmatpush.bf16.msra.mxu3 %v2318_v6  ;;  %v2470_v6 = vor.u32 %v3051_v57, %v2467_v59  ;;  %v2534_v7 = vor.u32 %v3067_v61, %v2531_v62  ;;  %v3027_v45 = vld [vmem:[%s4723_s1 + $0x314] sm:$0xf]  ;;  %v2499_v51 = vld [vmem:[%s4723_s1 + $0x418] sm:$0xf0]  ;;  %v2363_v56 = vld [vmem:[%s4723_s1 + $0x308] sm:$0xf0] }
  0x9c   :  { %1626 = vmatpush.bf16.msra.mxu0 %v2118_v13  ;;  %v3081_v13 = vld [vmem:[%s4723_s1 + $0x4c4] sm:$0xf]  ;;  %v3043_v47 = vld [vmem:[%s4723_s1 + $0x394] sm:$0xf]  ;;  %v2427_v62 = vld [vmem:[%s4723_s1 + $0x388] sm:$0xf0] }
  0x9d   :  { %1639 = vmatpush.bf16.msra.mxu1 %v2182_v17  ;;  %v3059_v50 = vld [vmem:[%s4723_s1 + $0x414] sm:$0xf]  ;;  %v3041_v61 = vld [vmem:[%s4723_s1 + $0x384] sm:$0xf]  ;;  %v2555_v8 = vld [vmem:[%s4723_s1 + $0x488] sm:$0xf0] }
  0x9e   :  { %1652 = vmatpush.bf16.msra.mxu2 %v2246_v18  ;;  %v2526_v18 = vor.u32 %v3065_v10, %v2523_v11  ;;  %v2502_v59 = vor.u32 %v3059_v50, %v2499_v51  ;;  %v3103_v9 = vld [vmem:[%s4723_s1 + $0x574] sm:$0xf]  ;;  %v2739_v10 = vld [vmem:[%s4723_s1 + $0x5f8] sm:$0xf0]  ;;  %v3101_v28 = vld [vmem:[%s4723_s1 + $0x564] sm:$0xf] }
  0x9f   :  { %1665 = vmatpush.bf16.msra.mxu3 %v2310_v22  ;;  %v2590_v22 = vor.u32 %v3081_v13, %v2587_v14  ;;  %v3135_v11 = vld [vmem:[%s4723_s1 + $0x674] sm:$0xf]  ;;  %v2803_v13 = vld [vmem:[%s4723_s1 + $0x678] sm:$0xf0]  ;;  %v2430_v14 = vor.u32 %v3041_v61, %v2427_v62  ;;  %v2843_v61 = vld [vmem:[%s4723_s1 + $0x6c8] sm:$0xf0] }
  0xa0   :  { %1627 = vmatpush.bf16.msra.mxu0 %v2110_v30  ;;  %v2454_v30 = vor.u32 %v3047_v21, %v2451_v23  ;;  %v2806_v24 = vor.u32 %v3135_v11, %v2803_v13  ;;  %v2771_v11 = vld [vmem:[%s4723_s1 + $0x638] sm:$0xf0]  ;;  %v3143_v13 = vld [vmem:[%s4723_s1 + $0x6b4] sm:$0xf]  ;;  %vm1940_vm2 = vcmask 654336   ;;  %s3198_s29 = smov [#allocation2]  }
  0xa1   :  { %1640 = vmatpush.bf16.msra.mxu1 %v2174_v35  ;;  %v3045_v35 = vld [vmem:[%s4723_s1 + $0x3a4] sm:$0xf]  ;;  %s1964_s30 = sshll.u32 %s3198_s29, 4  ;;  %s1966_s8 = sshll.u32 %s4729_s7, 4  ;;  %vm1957_vm3 = vcmask 33792   ;;  %s1965_s30 = int_to_ptr.vmem [resolvable:$true] %s1964_s30  ;;  %s1967_s8 = int_to_ptr.hbm [resolvable:$true] %s1966_s8 }
  0xa2   :  { %1653 = vmatpush.bf16.msra.mxu2 %v2238_v36  ;;  %v2582_v36 = vor.u32 %v3079_v25, %v2579_v34  ;;  %v2446_v43 = vor.u32 %v3045_v35, %v2443_v37  ;;  %v2667_v25 = vld [vmem:[%s4723_s1 + $0x568] sm:$0xf0]  ;;  %v3117_v34 = vld [vmem:[%s4723_s1 + $0x5e4] sm:$0xf] }
  0xa3   :  { %1666 = vmatpush.bf16.msra.mxu3 %v2302_v39  ;;  %1628 = vmatmul.bf16.vlgmr.msra.gmra.mxu0 %v3557_v27  ;;  %v3049_v27 = vld [vmem:[%s4723_s1 + $0x3c4] sm:$0xf]  ;;  %v2507_v39 = vld [vmem:[%s4723_s1 + $0x428] sm:$0xf0] }
  0xa4   :  { %1672 = vmatpush.bf16.msrb.mxu0 %v2422_v40  ;;  %1641 = vmatmul.bf16.vlgmr.msra.gmra.mxu1 %v3561_v29  ;;  %v2459_v29 = vld [vmem:[%s4723_s1 + $0x3c8] sm:$0xf0]  ;;  %v3077_v40 = vld [vmem:[%s4723_s1 + $0x4a4] sm:$0xf]  ;;  %v2510_v44 = vor.u32 %v3061_v38, %v2507_v39  ;;  %v2670_v38 = vor.u32 %v3101_v28, %v2667_v25 }
  0xa5   :  { %1685 = vmatpush.bf16.msrb.mxu1 %v2486_v41  ;;  %1654 = vmatmul.bf16.vlgmr.msra.gmra.mxu2 %v3637_v0  ;;  %v2595_v0 = vld [vmem:[%s4723_s1 + $0x4d8] sm:$0xf0]  ;;  %v2462_v17 = vor.u32 %v3049_v27, %v2459_v29  ;;  %v2571_v41 = vld [vmem:[%s4723_s1 + $0x4a8] sm:$0xf0]  ;;  %v2366_v29 = vor.u32 %v3025_v55, %v2363_v56  ;;  %v3149_v35 = vld [vmem:[%s4723_s1 + $0x6e4] sm:$0xf] }
  0xa6   :  { %1698 = vmatpush.bf16.msrb.mxu2 %v2550_v42  ;;  %1667 = vmatmul.bf16.vlgmr.msra.gmra.mxu3 %v3641_v2  ;;  %v2598_v2 = vor.u32 %v3083_v3, %v2595_v0  ;;  %v2382_v42 = vor.u32 %v3029_v32, %v2379_v33  ;;  %v2574_v48 = vor.u32 %v3077_v40, %v2571_v41  ;;  %v4421_v57 = vpop.f32.mrf.mxu0  ;;  %v3057_v3 = vld [vmem:[%s4723_s1 + $0x404] sm:$0xf]  ;;  %v2675_v27 = vld [vmem:[%s4723_s1 + $0x578] sm:$0xf0]  ;;  %v2795_v32 = vld [vmem:[%s4723_s1 + $0x668] sm:$0xf0] }
  0xa7   :  { %1711 = vmatpush.bf16.msrb.mxu3 %v2614_v46  ;;  %v2371_v46 = vld [vmem:[%s4723_s1 + $0x318] sm:$0xf0]  ;;  %v4432_v0 = vpop.f32.mrf.mxu1  ;;  %v2678_v21 = vor.u32 %v3103_v9, %v2675_v27  ;;  %v3099_v41 = vld [vmem:[%s4723_s1 + $0x554] sm:$0xf]  ;;  %v2715_v55 = vld [vmem:[%s4723_s1 + $0x5c8] sm:$0xf0] }
  0xa8   :  { %1673 = vmatpush.bf16.msrb.mxu0 %v2414_v52  ;;  %v3075_v52 = vld [vmem:[%s4723_s1 + $0x494] sm:$0xf]  ;;  %v3129_v56 = vld [vmem:[%s4723_s1 + $0x644] sm:$0xf]  ;;  %v2699_v25 = vld [vmem:[%s4723_s1 + $0x5a8] sm:$0xf0] }
  0xa9   :  { %1686 = vmatpush.bf16.msrb.mxu1 %v2478_v53  ;;  %v2563_v53 = vld [vmem:[%s4723_s1 + $0x498] sm:$0xf0]  ;;  %v3111_v9 = vld [vmem:[%s4723_s1 + $0x5b4] sm:$0xf] }
  0xaa   :  { %1699 = vmatpush.bf16.msrb.mxu2 %v2542_v54  ;;  %v2374_v54 = vor.u32 %v3027_v45, %v2371_v46  ;;  %v4467_v19 = vpop.f32.mrf.mxu2  ;;  %v2723_v45 = vld [vmem:[%s4723_s1 + $0x5d8] sm:$0xf0]  ;;  %v3131_v46 = vld [vmem:[%s4723_s1 + $0x654] sm:$0xf] }
  0xab   :  { %1712 = vmatpush.bf16.msrb.mxu3 %v2606_v58  ;;  %v2438_v58 = vor.u32 %v3043_v47, %v2435_v49  ;;  %v2787_v47 = vld [vmem:[%s4723_s1 + $0x658] sm:$0xf0] }
  0xac   :  { %1674 = vmatpush.bf16.msrb.mxu0 %v2406_v4  ;;  %v2566_v4 = vor.u32 %v3075_v52, %v2563_v53  ;;  %v2651_v53 = vld [vmem:[%s4723_s1 + $0x548] sm:$0xf0] }
  0xad   :  { %1687 = vmatpush.bf16.msrb.mxu1 %v2470_v6  ;;  %v2491_v6 = vld [vmem:[%s4723_s1 + $0x408] sm:$0xf0] }
  0xae   :  { %1700 = vmatpush.bf16.msrb.mxu2 %v2534_v7  ;;  %v3073_v7 = vld [vmem:[%s4723_s1 + $0x484] sm:$0xf]  ;;  %v1423_v33 = vpop.f32.mrf.mxu0 }
  0xaf   :  { %1713 = vmatpush.bf16.msrb.mxu3 %v2598_v2  ;;  %v3119_v2 = vld [vmem:[%s4723_s1 + $0x5f4] sm:$0xf]  ;;  %v2558_v20 = vor.u32 %v3073_v7, %v2555_v8  ;;  %v1436_v37 = vpop.f32.mrf.mxu1  ;;  %v2643_v8 = vld [vmem:[%s4723_s1 + $0x538] sm:$0xf0]  ;;  %v4606_v33 = vld [vmem:[%s4724_s2] sm:$0x3] }
  0xb0   :  { %1675 = vmatpush.bf16.msrb.mxu0 %v2398_v15  ;;  %v2494_v15 = vor.u32 %v3057_v3, %v2491_v6  ;;  %v2742_v23 = vor.u32 %v3119_v2, %v2739_v10  ;;  %v3095_v7 = vld [vmem:[%s4723_s1 + $0x534] sm:$0xf] }
  0xb1   :  { %1688 = vmatpush.bf16.msrb.mxu1 %v2462_v17  ;;  %v3151_v17 = vld [vmem:[%s4723_s1 + $0x6f4] sm:$0xf] }
  0xb2   :  { %1701 = vmatpush.bf16.msrb.mxu2 %v2526_v18  ;;  %v2867_v18 = vld [vmem:[%s4723_s1 + $0x6f8] sm:$0xf0]  ;;  %v1449_v49 = vpop.f32.mrf.mxu2  ;;  %v3127_v10 = vld [vmem:[%s4723_s1 + $0x634] sm:$0xf] }
  0xb3   :  { %1714 = vmatpush.bf16.msrb.mxu3 %v2590_v22  ;;  %v4469_v22 = vpop.f32.mrf.mxu3 }
  0xb4   :  { %1676 = vmatpush.bf16.msrb.mxu0 %v2390_v26  ;;  %v2870_v26 = vor.u32 %v3151_v17, %v2867_v18  ;;  %v2774_v18 = vor.u32 %v3127_v10, %v2771_v11  ;;  %v3170_v10 = vld [vmem:[#allocation1 + $0x12] sm:$0xff] }
  0xb5   :  { %1689 = vmatpush.bf16.msrb.mxu1 %v2454_v30  ;;  %v2731_v30 = vld [vmem:[%s4723_s1 + $0x5e8] sm:$0xf0] }
  0xb6   :  { %1702 = vmatpush.bf16.msrb.mxu2 %v2518_v31  ;;  %v3133_v31 = vld [vmem:[%s4723_s1 + $0x664] sm:$0xf]  ;;  %v2734_v39 = vor.u32 %v3117_v34, %v2731_v30 }
  0xb7   :  { %1715 = vmatpush.bf16.msrb.mxu3 %v2582_v36  ;;  %v2859_v36 = vld [vmem:[%s4723_s1 + $0x6e8] sm:$0xf0]  ;;  %v2798_v40 = vor.u32 %v3133_v31, %v2795_v32  ;;  %v3125_v34 = vld [vmem:[%s4723_s1 + $0x624] sm:$0xf] }
  0xb8   :  { %1677 = vmatpush.bf16.msrb.mxu0 %v2382_v42  ;;  %v2659_v42 = vld [vmem:[%s4723_s1 + $0x558] sm:$0xf0]  ;;  %v3141_v31 = vld [vmem:[%s4723_s1 + $0x6a4] sm:$0xf]  ;;  %v2827_v32 = vld [vmem:[%s4723_s1 + $0x6a8] sm:$0xf0] }
  0xb9   :  { %1690 = vmatpush.bf16.msrb.mxu1 %v2446_v43  ;;  %v3115_v43 = vld [vmem:[%s4723_s1 + $0x5d4] sm:$0xf]  ;;  %v2662_v50 = vor.u32 %v3099_v41, %v2659_v42 }
  0xba   :  { %1703 = vmatpush.bf16.msrb.mxu2 %v2510_v44  ;;  %v2862_v44 = vor.u32 %v3149_v35, %v2859_v36  ;;  %v2726_v52 = vor.u32 %v3115_v43, %v2723_v45  ;;  %v3107_v41 = vld [vmem:[%s4723_s1 + $0x594] sm:$0xf]  ;;  %v2830_v43 = vor.u32 %v3141_v31, %v2827_v32 }
  0xbb   :  { %1716 = vmatpush.bf16.msrb.mxu3 %v2574_v48  ;;  %v2851_v48 = vld [vmem:[%s4723_s1 + $0x6d8] sm:$0xf0]  ;;  %v1462_v51 = vpop.f32.mrf.mxu3  ;;  %v3123_v45 = vld [vmem:[%s4723_s1 + $0x614] sm:$0xf] }
  0xbc   :  { %1678 = vmatpush.bf16.msrb.mxu0 %v2374_v54  ;;  %v3113_v54 = vld [vmem:[%s4723_s1 + $0x5c4] sm:$0xf] }
  0xbd   :  { %1691 = vmatpush.bf16.msrb.mxu1 %v2438_v58  ;;  %v2779_v58 = vld [vmem:[%s4723_s1 + $0x648] sm:$0xf0] }
  0xbe   :  { %1704 = vmatpush.bf16.msrb.mxu2 %v2502_v59  ;;  %v3145_v59 = vld [vmem:[%s4723_s1 + $0x6c4] sm:$0xf]  ;;  %v2782_v6 = vor.u32 %v3129_v56, %v2779_v58  ;;  %v2747_v56 = vld [vmem:[%s4723_s1 + $0x608] sm:$0xf0] }
  0xbf   :  { %1717 = vmatpush.bf16.msrb.mxu3 %v2566_v4  ;;  %v2718_v4 = vor.u32 %v3113_v54, %v2715_v55  ;;  %v2846_v2 = vor.u32 %v3145_v59, %v2843_v61  ;;  %v3121_v55 = vld [vmem:[%s4723_s1 + $0x604] sm:$0xf]  ;;  %v2811_v61 = vld [vmem:[%s4723_s1 + $0x688] sm:$0xf0] }
  0xc0   :  { %1679 = vmatpush.bf16.msrb.mxu0 %v2366_v29  ;;  %v4547_v3 = vpop.f32.mrf.mxu0  ;;  %v2707_v29 = vld [vmem:[%s4723_s1 + $0x5b8] sm:$0xf0]  ;;  %v3137_v59 = vld [vmem:[%s4723_s1 + $0x684] sm:$0xf] }
  0xc1   :  { %1692 = vmatpush.bf16.msrb.mxu1 %v2430_v14  ;;  %v4558_v27 = vpop.f32.mrf.mxu1  ;;  %v2835_v14 = vld [vmem:[%s4723_s1 + $0x6b8] sm:$0xf0]  ;;  %v2710_v17 = vor.u32 %v3111_v9, %v2707_v29  ;;  %v3159_v29 = vld [vmem:[%s4725_s3 + $0x30] sm:$0xff] }
  0xc2   :  { %1705 = vmatpush.bf16.msrb.mxu2 %v2494_v15  ;;  %v2646_v15 = vor.u32 %v3095_v7, %v2643_v8  ;;  %v2838_v28 = vor.u32 %v3143_v13, %v2835_v14  ;;  %v2814_v8 = vor.u32 %v3137_v59, %v2811_v61  ;;  %v3160_v9 = vld [vmem:[%s4725_s3 + $0x38] sm:$0xff] }
  0xc3   :  { %1718 = vmatpush.bf16.msrb.mxu3 %v2558_v20  ;;  %1680 = vmatmul.bf16.vlgmr.msrb.gmra.mxu0 %v3632_v60  ;;  %v3147_v60 = vld [vmem:[%s4723_s1 + $0x6d4] sm:$0xf]  ;;  %v3093_v20 = vld [vmem:[%s4723_s1 + $0x524] sm:$0xf] }
  0xc4   :  { %1724 = vmatpush.bf16.msra.mxu0 %v2678_v21  ;;  %1693 = vmatmul.bf16.vlgmr.msrb.gmra.mxu1 %v3639_v1  ;;  %v3097_v1 = vld [vmem:[%s4723_s1 + $0x544] sm:$0xf]  ;;  %v2635_v21 = vld [vmem:[%s4723_s1 + $0x528] sm:$0xf0] }
  0xc5   :  { %1737 = vmatpush.bf16.msra.mxu1 %v2742_v23  ;;  %1706 = vmatmul.bf16.vlgmr.msrb.gmra.mxu2 %v3887_v12  ;;  %v2790_v12 = vor.u32 %v3131_v46, %v2787_v47  ;;  %v2654_v62 = vor.u32 %v3097_v1, %v2651_v53  ;;  %v3109_v23 = vld [vmem:[%s4723_s1 + $0x5a4] sm:$0xf]  ;;  %v2638_v35 = vor.u32 %v3093_v20, %v2635_v21  ;;  %v2755_v46 = vld [vmem:[%s4723_s1 + $0x618] sm:$0xf0]  ;;  %v3139_v47 = vld [vmem:[%s4723_s1 + $0x694] sm:$0xf] }
  0xc6   :  { %1750 = vmatpush.bf16.msra.mxu2 %v2806_v24  ;;  %1719 = vmatmul.bf16.vlgmr.msrb.gmra.mxu3 %v3895_v16  ;;  %v2854_v16 = vor.u32 %v3147_v60, %v2851_v48  ;;  %v2702_v37 = vor.u32 %v3109_v23, %v2699_v25  ;;  %v2819_v60 = vld [vmem:[%s4723_s1 + $0x698] sm:$0xf0]  ;;  %v256_v48 = vperm.slane %v4606_v33, 0  ;;  %v2758_v51 = vor.u32 %v3123_v45, %v2755_v46  ;;  %v3105_v1 = vld [vmem:[%s4723_s1 + $0x584] sm:$0xf] }
  0xc7   :  { %1763 = vmatpush.bf16.msra.mxu3 %v2870_v26  ;;  %v2763_v26 = vld [vmem:[%s4723_s1 + $0x628] sm:$0xf0]  ;;  %v2822_v54 = vor.u32 %v3139_v47, %v2819_v60 }
  0xc8   :  { %1725 = vmatpush.bf16.msra.mxu0 %v2670_v38  ;;  %v4584_v24 = vpop.f32.mrf.mxu2  ;;  %v1475_v36 = vpop.f32.mrf.mxu0  ;;  %v2766_v38 = vor.u32 %v3125_v34, %v2763_v26  ;;  %v1422_v7 = vadd.f32 %v4421_v57, %v256_v48  ;;  %v3171_v57 = vld [vmem:[#allocation1 + $0x1b] sm:$0xff] }
  0xc9   :  { %1738 = vmatpush.bf16.msra.mxu1 %v2734_v39  ;;  %v4595_v30 = vpop.f32.mrf.mxu3  ;;  %v3091_v39 = vld [vmem:[%s4723_s1 + $0x514] sm:$0xf]  ;;  %v1488_v42 = vpop.f32.mrf.mxu1 }
  0xca   :  { %1751 = vmatpush.bf16.msra.mxu2 %v2798_v40  ;;  %v2627_v40 = vld [vmem:[%s4723_s1 + $0x518] sm:$0xf0] }
  0xcb   :  { %1764 = vmatpush.bf16.msra.mxu3 %v2862_v44  ;;  %v2691_v44 = vld [vmem:[%s4723_s1 + $0x598] sm:$0xf0]  ;;  %v2630_v49 = vor.u32 %v3091_v39, %v2627_v40  ;;  %v257_v40 = vperm.slane %v4606_v33, 1  ;;  %v1798_v33 = vld [vmem:[%s4725_s3 + $0x48] sm:$0x7] }
  0xcc   :  { %1726 = vmatpush.bf16.msra.mxu0 %v2662_v50  ;;  %v2694_v50 = vor.u32 %v3107_v41, %v2691_v44 }
  0xcd   :  { %1739 = vmatpush.bf16.msra.mxu1 %v2726_v52  ;;  %v3089_v52 = vld [vmem:[%s4723_s1 + $0x504] sm:$0xf] }
  0xce   :  { %1752 = vmatpush.bf16.msra.mxu2 %v2790_v12  ;;  %v2619_v12 = vld [vmem:[%s4723_s1 + $0x508] sm:$0xf0] }
  0xcf   :  { %1765 = vmatpush.bf16.msra.mxu3 %v2854_v16  ;;  %v2683_v16 = vld [vmem:[%s4723_s1 + $0x588] sm:$0xf0] }
  0xd0   :  { %1727 = vmatpush.bf16.msra.mxu0 %v2654_v62  ;;  %v1501_v53 = vpop.f32.mrf.mxu2  ;;  %v2622_v62 = vor.u32 %v3089_v52, %v2619_v12 }
  0xd1   :  { %1740 = vmatpush.bf16.msra.mxu1 %v2718_v4  ;;  %v1514_v58 = vpop.f32.mrf.mxu3  ;;  %v2686_v4 = vor.u32 %v3105_v1, %v2683_v16  ;;  %v1840_v16 = vunpack.c.l.b16 %v1798_v33 }
  0xd2   :  { %1753 = vmatpush.bf16.msra.mxu2 %v2782_v6  ;;  %v2750_v6 = vor.u32 %v3121_v55, %v2747_v56 }
  0xd3   :  { %1766 = vmatpush.bf16.msra.mxu3 %v2846_v2  ;;  %v1435_v2 = vadd.f32 %v4432_v0, %v1422_v7  ;;  %v3158_v0 = vld [vmem:[%s4725_s3 + $0x28] sm:$0xff]  ;;  %v1850_v55 = vpack.c.b16 %v1840_v16, %v1840_v16 }
  0xd4   :  { %1728 = vmatpush.bf16.msra.mxu0 %v2646_v15 }
  0xd5   :  { %1741 = vmatpush.bf16.msra.mxu1 %v2710_v17  ;;  %v1448_v11 = vadd.f32 %v4467_v19, %v1435_v2  ;;  %v3157_v17 = vld [vmem:[%s4725_s3 + $0x20] sm:$0xff]  ;;  %v1866_v56 = vsel %vm1864_vm0, %v1850_v55, 0 }
  0xd6   :  { %1754 = vmatpush.bf16.msra.mxu2 %v2774_v18 }
  0xd7   :  { %1767 = vmatpush.bf16.msra.mxu3 %v2838_v28  ;;  %v1461_v14 = vadd.f32 %v4469_v22, %v1448_v11  ;;  %v3155_v22 = vld [vmem:[%s4725_s3 + $0x10] sm:$0xff] }
  0xd8   :  { %1729 = vmatpush.bf16.msra.mxu0 %v2638_v35 }
  0xd9   :  { %1742 = vmatpush.bf16.msra.mxu1 %v2702_v37 }
  0xda   :  { %1755 = vmatpush.bf16.msra.mxu2 %v2766_v38 }
  0xdb   :  { %1768 = vmatpush.bf16.msra.mxu3 %v2830_v43 }
  0xdc   :  { %1730 = vmatpush.bf16.msra.mxu0 %v2630_v49 }
  0xdd   :  { %1743 = vmatpush.bf16.msra.mxu1 %v2694_v50 }
  0xde   :  { %1756 = vmatpush.bf16.msra.mxu2 %v2758_v51 }
  0xdf   :  { %1769 = vmatpush.bf16.msra.mxu3 %v2822_v54 }
  0xe0   :  { %1731 = vmatpush.bf16.msra.mxu0 %v2622_v62  ;;  %v1525_v13 = vpop.f32.mrf.mxu0 }
  0xe1   :  { %1744 = vmatpush.bf16.msra.mxu1 %v2686_v4  ;;  %v1538_v15 = vpop.f32.mrf.mxu1 }
  0xe2   :  { %1757 = vmatpush.bf16.msra.mxu2 %v2750_v6 }
  0xe3   :  { %1770 = vmatpush.bf16.msra.mxu3 %v2814_v8  ;;  %1732 = vmatmul.bf16.vlgmr.msra.gmra.mxu0 %v3170_v10 }
  0xe4   :  { %1868 = vmatpush.bf16.msrb.mxu0 %v3160_v9  ;;  %1745 = vmatmul.bf16.vlgmr.msra.gmra.mxu1 %v3171_v57  ;;  %v3161_v9 = vld [vmem:[%s4725_s3 + $0x40] sm:$0xff] }
  0xe5   :  { %1758 = vmatmul.bf16.vlgmr.msra.gmra.mxu2 %v4085_v63  ;;  %v1474_v63 = vadd.f32 %v4547_v3, %v1461_v14  ;;  %v3154_v3 = vld [vmem:[%s4725_s3 + $0x8] sm:$0xff]  ;;  %1887 = vmatpush.bf16.msrb.mxu1 %v1866_v56 }
  0xe6   :  { %1771 = vmatmul.bf16.vlgmr.msra.gmra.mxu3 %v4093_v5  ;;  %v3156_v5 = vld [vmem:[%s4725_s3 + $0x18] sm:$0xff] }
  0xe7   :  { %v1487_v21 = vadd.f32 %v4558_v27, %v1474_v63  ;;  %v3153_v27 = vld [vmem:[%s4725_s3] sm:$0xff] }
  0xe8   :  { %1869 = vmatpush.bf16.msrb.mxu0 %v3159_v29  ;;  %v1551_v19 = vpop.f32.mrf.mxu2  ;;  %v1527_v20 = vpop.f32.mrf.mxu0 }
  0xe9   :  { %v1564_v18 = vpop.f32.mrf.mxu3  ;;  %v1540_v23 = vpop.f32.mrf.mxu1  ;;  %v1500_v28 = vadd.f32 %v4584_v24, %v1487_v21  ;;  %1888 = vmatpush.bf16.msrb.mxu1 %v3161_v9 }
  0xeb   :  { %v1513_v26 = vadd.f32 %v4595_v30, %v1500_v28 }
  0xec   :  { %1870 = vmatpush.bf16.msrb.mxu0 %v3158_v0 }
  0xed   :  { %v1526_v31 = vadd.f32 %v1525_v13, %v1513_v26  ;;  %v3166_v26 = vld [vmem:[%s4727_s5 + $0x20] sm:$0xff] }
  0xee   :  { %1947 = vmatpush.bf16.msrb.mxu2 %v3166_v26 }
  0xef   :  { %v1539_v32 = vadd.f32 %v1538_v15, %v1526_v31  ;;  %v3164_v31 = vld [vmem:[%s4727_s5 + $0x10] sm:$0xff] }
  0xf0   :  { %1871 = vmatpush.bf16.msrb.mxu0 %v3157_v17  ;;  %v1553_v25 = vpop.f32.mrf.mxu2 }
  0xf1   :  { %v1566_v34 = vpop.f32.mrf.mxu3  ;;  %v1552_v35 = vadd.f32 %v1551_v19, %v1539_v32 }
  0xf3   :  { %v1565_v36 = vadd.f32 %v1564_v18, %v1552_v35 }
  0xf4   :  { %1872 = vmatpush.bf16.msrb.mxu0 %v3156_v5 }
  0xf8   :  { %1873 = vmatpush.bf16.msrb.mxu0 %v3155_v22 }
  0xfc   :  { %1874 = vmatpush.bf16.msrb.mxu0 %v3154_v3 }
 0x100   :  { %1875 = vmatpush.bf16.msrb.mxu0 %v3153_v27  ;;  %v1577_v24 = vpop.f32.mrf.mxu0  ;;  %v3165_v27 = vld [vmem:[%s4727_s5 + $0x18] sm:$0xff] }
 0x101   :  { %v1578_v37 = vadd.f32 %v1577_v24, %v1565_v36  ;;  %v1590_v38 = vpop.f32.mrf.mxu1  ;;  %1948 = vmatpush.bf16.msrb.mxu2 %v3165_v27  ;;  %v3163_v36 = vld [vmem:[%s4727_s5 + $0x8] sm:$0xff]  ;;  %v3162_v24 = vld [vmem:[%s4727_s5] sm:$0xff] }
 0x103   :  { %v1591_v39 = vadd.f32 %v1590_v38, %v1578_v37  ;;  %v3168_v37 = vld [vmem:[%s4726_s4] ss:$0 sm:$0xff] }
 0x105   :  { %v1776_v41 = vmax.f32 %v1591_v39, 0.0  ;;  %1949 = vmatpush.bf16.msrb.mxu2 %v3164_v31 }
 0x107   :  { %v1778_v42 = vpack.c.bf16 %v1776_v41, %v1776_v41 }
 0x108   :  { %v1603_v43 = vpop.f32.mrf.mxu2  ;;  %v1579_v45 = vpop.f32.mrf.mxu0 }
 0x109   :  { %v1604_v30 = vadd.f32 %v1603_v43, %v257_v40  ;;  %v1616_v44 = vpop.f32.mrf.mxu3  ;;  %1876 = vmatmul.bf16.vlgmr.msrb.gmra.mxu0 %v1778_v42  ;;  %v1592_v46 = vpop.f32.mrf.mxu1  ;;  %1950 = vmatpush.bf16.msrb.mxu2 %v3163_v36 }
 0x10b   :  { %v1617_v47 = vadd.f32 %v1616_v44, %v1604_v30  ;;  %v3169_v30 = vld [vmem:[%s4728_s6] ss:$0 sm:$0xff] }
 0x10d   :  { %1951 = vmatpush.bf16.msrb.mxu2 %v3162_v24 }
 0x110   :  { %v1605_v60 = vpop.f32.mrf.mxu2 }
 0x111   :  { %v1618_v48 = vpop.f32.mrf.mxu3 }
 0x120   :  { %v1629_v49 = vpop.f32.mrf.mxu0 }
 0x121   :  { %v1642_v50 = vpop.f32.mrf.mxu1  ;;  %v1630_v61 = vadd.f32 %v1629_v49, %v1617_v47 }
 0x123   :  { %v1643_v7 = vadd.f32 %v1642_v50, %v1630_v61 }
 0x128   :  { %v1655_v51 = vpop.f32.mrf.mxu2  ;;  %v1631_v12 = vpop.f32.mrf.mxu0 }
 0x129   :  { %v1668_v52 = vpop.f32.mrf.mxu3  ;;  %v1644_v1 = vpop.f32.mrf.mxu1  ;;  %v1656_v2 = vadd.f32 %v1655_v51, %v1643_v7 }
 0x12b   :  { %v1669_v57 = vadd.f32 %v1668_v52, %v1656_v2 }
 0x130   :  { %v1657_v53 = vpop.f32.mrf.mxu2 }
 0x131   :  { %v1670_v54 = vpop.f32.mrf.mxu3 }
 0x140   :  { %v1681_v58 = vpop.f32.mrf.mxu0 }
 0x141   :  { %v1694_v59 = vpop.f32.mrf.mxu1  ;;  %v1682_v11 = vadd.f32 %v1681_v58, %v1669_v57 }
 0x143   :  { %v1695_v0 = vadd.f32 %v1694_v59, %v1682_v11 }
 0x148   :  { %v1707_v62 = vpop.f32.mrf.mxu2  ;;  %v1683_v6 = vpop.f32.mrf.mxu0 }
 0x149   :  { %v1720_v4 = vpop.f32.mrf.mxu3  ;;  %v1696_v8 = vpop.f32.mrf.mxu1  ;;  %v1708_v13 = vadd.f32 %v1707_v62, %v1695_v0 }
 0x14b   :  { %v1721_v14 = vadd.f32 %v1720_v4, %v1708_v13 }
 0x150   :  { %v1709_v29 = vpop.f32.mrf.mxu2 }
 0x151   :  { %v1722_v10 = vpop.f32.mrf.mxu3 }
 0x160   :  { %v1733_v15 = vpop.f32.mrf.mxu0 }
 0x161   :  { %v1746_v17 = vpop.f32.mrf.mxu1  ;;  %v1734_v63 = vadd.f32 %v1733_v15, %v1721_v14 }
 0x163   :  { %v1747_v5 = vadd.f32 %v1746_v17, %v1734_v63 }
 0x168   :  { %v1759_v19 = vpop.f32.mrf.mxu2  ;;  %v1735_v21 = vpop.f32.mrf.mxu0 }
 0x169   :  { %v1760_v18 = vadd.f32 %v1759_v19, %v1747_v5  ;;  %v1772_v20 = vpop.f32.mrf.mxu3  ;;  %v1748_v23 = vpop.f32.mrf.mxu1 }
 0x16b   :  { %v1773_v22 = vadd.f32 %v1772_v20, %v1760_v18 }
 0x16d   :  { %v1777_v28 = vmax.f32 %v1773_v22, 0.0 }
 0x16f   :  { %v1779_v3 = vpack.c.bf16 %v1777_v28, %v1777_v28 }
 0x170   :  { %v1761_v25 = vpop.f32.mrf.mxu2 }
 0x171   :  { %v1774_v34 = vpop.f32.mrf.mxu3  ;;  %2907 = vmatmul.msk.bf16.vlgmr.msrb.gmra.mxu1 %vm1860_vm1, %v1779_v3 }
 0x186   :  { %v1877_v32 = vpop.f32.mrf.mxu0 }
 0x187   :  { %v1878_v38 = vadd.f32 %v3168_v37, %v1877_v32 }
 0x18e   :  { %v1879_v35 = vpop.f32.mrf.mxu0 }
 0x1ee   :  { %v1890_v39 = vpop.f32.mrf.mxu1 }
 0x1ef   :  { %v1891_v40 = vadd.f32 %v1890_v39, %v1878_v38 }
 0x1f1   :  { %v1894_v41 = vmax.f32 %v1891_v40, 0.0 }
 0x1f3   :  { %v1895_v42 = vpack.c.bf16 %v1894_v41, %v1894_v41 }
 0x1f5   :  { %2928 = vmatmul.msk.bf16.vlgmr.msrb.gmra.mxu2 %vm1940_vm2, %v1895_v42 }
 0x1f6   :  { %v1892_v43 = vpop.f32.mrf.mxu1 }
 0x278   :  { %v1953_v44 = vpop.f32.mrf.mxu2 }
 0x279   :  { %v1954_v45 = vadd.f32 %v3169_v30, %v1953_v44 }
 0x27b   :  { %1958 = vst.msk [vmem:[#allocation2] sm:$0x3] %vm1957_vm3, %v1954_v45 }
 0x27c   :  { %1969 = dma.vmem_to_hbm [thread:$0]  %s1965_s30, 32, %s1967_s8, [#allocation3]  }
 0x280   :  { %v1955_v46 = vpop.f32.mrf.mxu2 }
 0x281   :  { %3196 = dma.done.wait [#allocation3], 32  }
 0x282   :  { %3197 = vsyncadd [#allocation3], 4294967264 }
 0x283   :  { %1974 = vsyncpa [#allocation3], 1 }

// kernel: net_forward.5
= control target key start
LH: loop header
LB: loop body
LE: loop exit
PB: predicated region body
PF: predicated region fallthrough
CT: control target
= control target key end

     0   :  { %s7828_s15 = smov 0   ;;  %s9120_s0 = inlined_call_operand.vmem [shape: bf16[2,320,256], index: 0, kind: input, shape index: {}]   ;;  %s9121_s1 = inlined_call_operand.vmem [shape: bf16[2,320,256], index: 1, kind: input, shape index: {}]   ;;  %s9122_s2 = inlined_call_operand.vmem [shape: bf16[5,256,32], index: 2, kind: input, shape index: {}]   ;;  %s9123_s3 = inlined_call_operand.vmem [shape: f32[1,1,32], index: 3, kind: input, shape index: {}]   ;;  %s9124_s4 = inlined_call_operand.vmem [shape: bf16[2,8,14,32], index: 4, kind: output, shape index: {}]  }
   0x1 LB: > { %s5644_s16 = sadd.s32 4294967295, %s7801_s15   ;;  %p5648_p0 = scmp.ge.s32.totalorder %s7801_s15, 1  ;;  %s7801_s15 = sphi %s7828_s15, %s14_s15  }
   0x2   : > { %p172_p1 = scmp.lt.s32.totalorder %s7801_s15, 3 }
   0x4   : > { %p173_p2 = pnand %p5648_p0, %p172_p1 }
   0x5   : > { %p203_p3 = scmp.lt.s32.totalorder (!%p173_p2), %s5644_s16, 1 }
   0x6   : > { %176 = sbr.rel (%p173_p2) target bundleno = 1473 (0x5c1), region = 36 }
   0xb   : > { %v7391_v0 = vld [vmem:[%s9122_s2 + $0x38] sm:$0xff]  ;;  %v7390_v2 = vld [vmem:[%s9122_s2 + $0x30] sm:$0xff]  ;;  %v7389_v4 = vld [vmem:[%s9122_s2 + $0x28] sm:$0xff]  ;;  %s9126_s16 = smov (!%p203_p3, %s5644_s16), 1  ;;  %vm1086_vm0 = vcmask 261120   ;;  %vm5559_vm1 = vcmask 257024  }
   0xc   : > { %v7399_v1 = vld [vmem:[%s9122_s2 + $0x78] sm:$0xff]  ;;  %570 = vmatpush.bf16.msra.mxu0 %v7391_v0  ;;  %v7398_v3 = vld [vmem:[%s9122_s2 + $0x70] sm:$0xff]  ;;  %908 = vmatpush.bf16.msra.mxu2 %v7391_v0  ;;  %v7397_v5 = vld [vmem:[%s9122_s2 + $0x68] sm:$0xff]  ;;  %s7784_s17 = smul.u32 320, %s9126_s16  ;;  %s7383_s30 = sshll.u32 %s9126_s16, 6  ;;  %vm5561_vm2 = vcmask 256000  }
   0xd   : > { %659 = vmatpush.bf16.msra.mxu1 %v7399_v1  ;;  %997 = vmatpush.bf16.msra.mxu3 %v7399_v1  ;;  %v7388_v6 = vld [vmem:[%s9122_s2 + $0x20] sm:$0xff]  ;;  %v7387_v8 = vld [vmem:[%s9122_s2 + $0x18] sm:$0xff]  ;;  %v7386_v10 = vld [vmem:[%s9122_s2 + $0x10] sm:$0xff]  ;;  %s8972_s6 = scalar_lea.vmem %s9124_s4, %s7383_s30 }
   0xe   : > { %v7396_v7 = vld [vmem:[%s9122_s2 + $0x60] sm:$0xff]  ;;  %v7395_v9 = vld [vmem:[%s9122_s2 + $0x58] sm:$0xff]  ;;  %v7394_v11 = vld [vmem:[%s9122_s2 + $0x50] sm:$0xff]  ;;  %s7888_s24 = scalar_lea.vmem %s9120_s0, %s7784_s17  ;;  %s7893_s27 = scalar_lea.vmem %s9121_s1, %s7784_s17 }
   0xf   : > { %v7385_v12 = vld [vmem:[%s9122_s2 + $0x8] sm:$0xff]  ;;  %v7384_v14 = vld [vmem:[%s9122_s2] sm:$0xff]  ;;  %v7471_v24 = vld [vmem:[%s9122_s2 + $0xb8] sm:$0xff] }
  0x10   : > { %571 = vmatpush.bf16.msra.mxu0 %v7390_v2  ;;  %909 = vmatpush.bf16.msra.mxu2 %v7390_v2  ;;  %v7393_v13 = vld [vmem:[%s9122_s2 + $0x48] sm:$0xff]  ;;  %v7392_v15 = vld [vmem:[%s9122_s2 + $0x40] sm:$0xff]  ;;  %v7479_v25 = vld [vmem:[%s9122_s2 + $0xf8] sm:$0xff] }
  0x11   : > { %660 = vmatpush.bf16.msra.mxu1 %v7398_v3  ;;  %998 = vmatpush.bf16.msra.mxu3 %v7398_v3  ;;  %v5655_v16 = vld [vmem:[%s7888_s24] sm:$0xf]  ;;  %v7401_v17 = vld [vmem:[%s7888_s24 + $0x4] sm:$0xf0]  ;;  %v7400_v18 = vld [vmem:[%s7888_s24 + $0x4] sm:$0xf] }
  0x12   : > { %v5657_v19 = vld [vmem:[%s7888_s24 + $0x8] sm:$0xf0]  ;;  %v5847_v20 = vld [vmem:[%s7893_s27] sm:$0xf]  ;;  %v7433_v21 = vld [vmem:[%s7893_s27 + $0x4] sm:$0xf0]  ;;  %v5656_v26 = vor.u32 %v7401_v17, %v5655_v16 }
  0x13   : > { %v7432_v22 = vld [vmem:[%s7893_s27 + $0x4] sm:$0xf]  ;;  %v5849_v23 = vld [vmem:[%s7893_s27 + $0x8] sm:$0xf0]  ;;  %v5660_v27 = vor.u32 %v7400_v18, %v5657_v19  ;;  %v5848_v28 = vor.u32 %v7433_v21, %v5847_v20  ;;  %v7470_v30 = vld [vmem:[%s9122_s2 + $0xb0] sm:$0xff] }
  0x14   : > { %572 = vmatpush.bf16.msra.mxu0 %v7389_v4  ;;  %910 = vmatpush.bf16.msra.mxu2 %v7389_v4  ;;  %v5852_v29 = vor.u32 %v7432_v22, %v5849_v23  ;;  %v7478_v31 = vld [vmem:[%s9122_s2 + $0xf0] sm:$0xff]  ;;  %v7403_v33 = vld [vmem:[%s7888_s24 + $0x14] sm:$0xf0]  ;;  %v5665_v35 = vld [vmem:[%s7888_s24 + $0x18] sm:$0xf0] }
  0x15   : > { %661 = vmatpush.bf16.msra.mxu1 %v7397_v5  ;;  %999 = vmatpush.bf16.msra.mxu3 %v7397_v5  ;;  %v5663_v32 = vld [vmem:[%s7888_s24 + $0x10] sm:$0xf]  ;;  %v7402_v34 = vld [vmem:[%s7888_s24 + $0x14] sm:$0xf]  ;;  %v7435_v37 = vld [vmem:[%s7893_s27 + $0x14] sm:$0xf0] }
  0x16   : > { %v5855_v36 = vld [vmem:[%s7893_s27 + $0x10] sm:$0xf]  ;;  %v7434_v38 = vld [vmem:[%s7893_s27 + $0x14] sm:$0xf]  ;;  %v5857_v39 = vld [vmem:[%s7893_s27 + $0x18] sm:$0xf0]  ;;  %v5664_v40 = vor.u32 %v7403_v33, %v5663_v32  ;;  %v5668_v41 = vor.u32 %v7402_v34, %v5665_v35 }
  0x17   : > { %v5856_v42 = vor.u32 %v7435_v37, %v5855_v36  ;;  %v5860_v43 = vor.u32 %v7434_v38, %v5857_v39  ;;  %v5671_v44 = vld [vmem:[%s7888_s24 + $0x20] sm:$0xf]  ;;  %v7405_v45 = vld [vmem:[%s7888_s24 + $0x24] sm:$0xf0]  ;;  %v7404_v46 = vld [vmem:[%s7888_s24 + $0x24] sm:$0xf] }
  0x18   : > { %573 = vmatpush.bf16.msra.mxu0 %v7388_v6  ;;  %911 = vmatpush.bf16.msra.mxu2 %v7388_v6  ;;  %v5673_v47 = vld [vmem:[%s7888_s24 + $0x28] sm:$0xf0]  ;;  %v5863_v48 = vld [vmem:[%s7893_s27 + $0x20] sm:$0xf]  ;;  %v7437_v49 = vld [vmem:[%s7893_s27 + $0x24] sm:$0xf0]  ;;  %v5672_v52 = vor.u32 %v7405_v45, %v5671_v44 }
  0x19   : > { %662 = vmatpush.bf16.msra.mxu1 %v7396_v7  ;;  %1000 = vmatpush.bf16.msra.mxu3 %v7396_v7  ;;  %v7436_v50 = vld [vmem:[%s7893_s27 + $0x24] sm:$0xf]  ;;  %v5865_v51 = vld [vmem:[%s7893_s27 + $0x28] sm:$0xf0]  ;;  %v5676_v53 = vor.u32 %v7404_v46, %v5673_v47  ;;  %v5864_v54 = vor.u32 %v7437_v49, %v5863_v48  ;;  %v5679_v58 = vld [vmem:[%s7888_s24 + $0x30] sm:$0xf] }
  0x1a   : > { %v5868_v55 = vor.u32 %v7436_v50, %v5865_v51  ;;  %v7469_v56 = vld [vmem:[%s9122_s2 + $0xa8] sm:$0xff]  ;;  %v7407_v59 = vld [vmem:[%s7888_s24 + $0x34] sm:$0xf0]  ;;  %v7406_v60 = vld [vmem:[%s7888_s24 + $0x34] sm:$0xf] }
  0x1b   : > { %v7477_v57 = vld [vmem:[%s9122_s2 + $0xe8] sm:$0xff]  ;;  %v5681_v61 = vld [vmem:[%s7888_s24 + $0x38] sm:$0xf0]  ;;  %v5871_v62 = vld [vmem:[%s7893_s27 + $0x30] sm:$0xf]  ;;  %v5680_v2 = vor.u32 %v7407_v59, %v5679_v58 }
  0x1c   : > { %574 = vmatpush.bf16.msra.mxu0 %v7387_v8  ;;  %912 = vmatpush.bf16.msra.mxu2 %v7387_v8  ;;  %v7439_v63 = vld [vmem:[%s7893_s27 + $0x34] sm:$0xf0]  ;;  %v7438_v0 = vld [vmem:[%s7893_s27 + $0x34] sm:$0xf]  ;;  %v5873_v1 = vld [vmem:[%s7893_s27 + $0x38] sm:$0xf0]  ;;  %v5684_v3 = vor.u32 %v7406_v60, %v5681_v61 }
  0x1d   : > { %663 = vmatpush.bf16.msra.mxu1 %v7395_v9  ;;  %1001 = vmatpush.bf16.msra.mxu3 %v7395_v9  ;;  %v5872_v4 = vor.u32 %v7439_v63, %v5871_v62  ;;  %v5876_v5 = vor.u32 %v7438_v0, %v5873_v1  ;;  %v5687_v6 = vld [vmem:[%s7888_s24 + $0x40] sm:$0xf]  ;;  %v7409_v7 = vld [vmem:[%s7888_s24 + $0x44] sm:$0xf0]  ;;  %v7408_v8 = vld [vmem:[%s7888_s24 + $0x44] sm:$0xf] }
  0x1e   : > { %v5689_v9 = vld [vmem:[%s7888_s24 + $0x48] sm:$0xf0]  ;;  %v7468_v18 = vld [vmem:[%s9122_s2 + $0xa0] sm:$0xff]  ;;  %v5695_v20 = vld [vmem:[%s7888_s24 + $0x50] sm:$0xf] }
  0x1f   : > { %v7476_v19 = vld [vmem:[%s9122_s2 + $0xe0] sm:$0xff]  ;;  %v7411_v21 = vld [vmem:[%s7888_s24 + $0x54] sm:$0xf0]  ;;  %v7410_v22 = vld [vmem:[%s7888_s24 + $0x54] sm:$0xf] }
  0x20   : > { %575 = vmatpush.bf16.msra.mxu0 %v7386_v10  ;;  %913 = vmatpush.bf16.msra.mxu2 %v7386_v10  ;;  %v5879_v10 = vld [vmem:[%s7893_s27 + $0x40] sm:$0xf]  ;;  %v5697_v23 = vld [vmem:[%s7888_s24 + $0x58] sm:$0xf0]  ;;  %v7413_v33 = vld [vmem:[%s7888_s24 + $0x64] sm:$0xf0] }
  0x21   : > { %664 = vmatpush.bf16.msra.mxu1 %v7394_v11  ;;  %1002 = vmatpush.bf16.msra.mxu3 %v7394_v11  ;;  %v7441_v11 = vld [vmem:[%s7893_s27 + $0x44] sm:$0xf0]  ;;  %v5703_v32 = vld [vmem:[%s7888_s24 + $0x60] sm:$0xf]  ;;  %v7412_v34 = vld [vmem:[%s7888_s24 + $0x64] sm:$0xf] }
  0x22   : > { %v5880_v16 = vor.u32 %v7441_v11, %v5879_v10  ;;  %v5705_v35 = vld [vmem:[%s7888_s24 + $0x68] sm:$0xf0]  ;;  %v5895_v36 = vld [vmem:[%s7893_s27 + $0x60] sm:$0xf]  ;;  %v7445_v37 = vld [vmem:[%s7893_s27 + $0x64] sm:$0xf0] }
  0x23   : > { %v7444_v38 = vld [vmem:[%s7893_s27 + $0x64] sm:$0xf]  ;;  %v5897_v39 = vld [vmem:[%s7893_s27 + $0x68] sm:$0xf0]  ;;  %v7467_v44 = vld [vmem:[%s9122_s2 + $0x98] sm:$0xff] }
  0x24   : > { %576 = vmatpush.bf16.msra.mxu0 %v7385_v12  ;;  %914 = vmatpush.bf16.msra.mxu2 %v7385_v12  ;;  %v7440_v12 = vld [vmem:[%s7893_s27 + $0x44] sm:$0xf]  ;;  %v7475_v45 = vld [vmem:[%s9122_s2 + $0xd8] sm:$0xff]  ;;  %v5711_v46 = vld [vmem:[%s7888_s24 + $0x70] sm:$0xf] }
  0x25   : > { %665 = vmatpush.bf16.msra.mxu1 %v7393_v13  ;;  %1003 = vmatpush.bf16.msra.mxu3 %v7393_v13  ;;  %v5881_v13 = vld [vmem:[%s7893_s27 + $0x48] sm:$0xf0]  ;;  %v7415_v47 = vld [vmem:[%s7888_s24 + $0x74] sm:$0xf0]  ;;  %v7414_v48 = vld [vmem:[%s7888_s24 + $0x74] sm:$0xf] }
  0x26   : > { %v5884_v17 = vor.u32 %v7440_v12, %v5881_v13  ;;  %v5713_v49 = vld [vmem:[%s7888_s24 + $0x78] sm:$0xf0]  ;;  %v5903_v50 = vld [vmem:[%s7893_s27 + $0x70] sm:$0xf]  ;;  %v7447_v51 = vld [vmem:[%s7893_s27 + $0x74] sm:$0xf0] }
  0x27   : > { %v5719_v58 = vld [vmem:[%s7888_s24 + $0x80] sm:$0xf]  ;;  %v7417_v59 = vld [vmem:[%s7888_s24 + $0x84] sm:$0xf0]  ;;  %v7416_v60 = vld [vmem:[%s7888_s24 + $0x84] sm:$0xf] }
  0x28   : > { %577 = vmatpush.bf16.msra.mxu0 %v7384_v14  ;;  %915 = vmatpush.bf16.msra.mxu2 %v7384_v14  ;;  %v5688_v14 = vor.u32 %v7409_v7, %v5687_v6  ;;  %v5721_v61 = vld [vmem:[%s7888_s24 + $0x88] sm:$0xf0]  ;;  %v5911_v62 = vld [vmem:[%s7893_s27 + $0x80] sm:$0xf]  ;;  %v7449_v63 = vld [vmem:[%s7893_s27 + $0x84] sm:$0xf0] }
  0x29   : > { %666 = vmatpush.bf16.msra.mxu1 %v7392_v15  ;;  %1004 = vmatpush.bf16.msra.mxu3 %v7392_v15  ;;  %v5692_v15 = vor.u32 %v7408_v8, %v5689_v9  ;;  %v7448_v0 = vld [vmem:[%s7893_s27 + $0x84] sm:$0xf]  ;;  %v5913_v1 = vld [vmem:[%s7893_s27 + $0x88] sm:$0xf0]  ;;  %v5912_v6 = vor.u32 %v7449_v63, %v5911_v62  ;;  %v7466_v9 = vld [vmem:[%s9122_s2 + $0x90] sm:$0xff] }
  0x2a   : > { %v5916_v7 = vor.u32 %v7448_v0, %v5913_v1  ;;  %v7474_v10 = vld [vmem:[%s9122_s2 + $0xd0] sm:$0xff] }
  0x2b   : > { %578 = vmatmul.bf16.vlgmr.msra.gmra.mxu0 %v5656_v26  ;;  %916 = vmatmul.bf16.vlgmr.msra.gmra.mxu2 %v5848_v28  ;;  %v7442_v26 = vld [vmem:[%s7893_s27 + $0x54] sm:$0xf]  ;;  %v5696_v28 = vor.u32 %v7411_v21, %v5695_v20  ;;  %v5729_v20 = vld [vmem:[%s7888_s24 + $0x98] sm:$0xf0]  ;;  %v5919_v21 = vld [vmem:[%s7893_s27 + $0x90] sm:$0xf] }
  0x2c   : > { %1842 = vmatpush.bf16.msrb.mxu2 %v7471_v24  ;;  %667 = vmatmul.bf16.vlgmr.msra.gmra.mxu1 %v5660_v27  ;;  %v5889_v27 = vld [vmem:[%s7893_s27 + $0x58] sm:$0xf0] }
  0x2d   : > { %1931 = vmatpush.bf16.msrb.mxu3 %v7479_v25  ;;  %1504 = vmatpush.bf16.msrb.mxu0 %v7471_v24  ;;  %v5887_v24 = vld [vmem:[%s7893_s27 + $0x50] sm:$0xf] }
  0x2e   : > { %1005 = vmatmul.bf16.vlgmr.msra.gmra.mxu3 %v5852_v29  ;;  %1593 = vmatpush.bf16.msrb.mxu1 %v7479_v25  ;;  %v7443_v25 = vld [vmem:[%s7893_s27 + $0x54] sm:$0xf0]  ;;  %v5700_v29 = vor.u32 %v7410_v22, %v5697_v23  ;;  %v7450_v23 = vld [vmem:[%s7893_s27 + $0x94] sm:$0xf] }
  0x2f   : > { %v7451_v22 = vld [vmem:[%s7893_s27 + $0x94] sm:$0xf0] }
  0x30   : > { %1843 = vmatpush.bf16.msrb.mxu2 %v7470_v30 }
  0x31   : > { %1932 = vmatpush.bf16.msrb.mxu3 %v7478_v31  ;;  %1505 = vmatpush.bf16.msrb.mxu0 %v7470_v30  ;;  %v5888_v30 = vor.u32 %v7443_v25, %v5887_v24  ;;  %v5921_v24 = vld [vmem:[%s7893_s27 + $0x98] sm:$0xf0] }
  0x32   : > { %1594 = vmatpush.bf16.msrb.mxu1 %v7478_v31  ;;  %v5892_v31 = vor.u32 %v7442_v26, %v5889_v27 }
  0x34   : > { %1844 = vmatpush.bf16.msrb.mxu2 %v7469_v56 }
  0x35   : > { %1933 = vmatpush.bf16.msrb.mxu3 %v7477_v57  ;;  %1506 = vmatpush.bf16.msrb.mxu0 %v7469_v56  ;;  %v5904_v56 = vor.u32 %v7447_v51, %v5903_v50 }
  0x36   : > { %1595 = vmatpush.bf16.msrb.mxu1 %v7477_v57 }
  0x38   : > { %1845 = vmatpush.bf16.msrb.mxu2 %v7468_v18 }
  0x39   : > { %1934 = vmatpush.bf16.msrb.mxu3 %v7476_v19  ;;  %1507 = vmatpush.bf16.msrb.mxu0 %v7468_v18  ;;  %v7419_v18 = vld [vmem:[%s7888_s24 + $0x94] sm:$0xf0] }
  0x3a   : > { %1596 = vmatpush.bf16.msrb.mxu1 %v7476_v19  ;;  %v7418_v19 = vld [vmem:[%s7888_s24 + $0x94] sm:$0xf] }
  0x3b   : > { %583 = vmatmul.bf16.gmra.mxu0 %v5664_v40  ;;  %921 = vmatmul.bf16.gmra.mxu2 %v5856_v42  ;;  %v5704_v40 = vor.u32 %v7413_v33, %v5703_v32  ;;  %v5896_v42 = vor.u32 %v7445_v37, %v5895_v36  ;;  %v5920_v32 = vor.u32 %v7451_v22, %v5919_v21 }
  0x3c   : > { %672 = vmatmul.bf16.gmra.mxu1 %v5668_v41  ;;  %v5708_v41 = vor.u32 %v7412_v34, %v5705_v35  ;;  %1846 = vmatpush.bf16.msrb.mxu2 %v7467_v44  ;;  %v5924_v33 = vor.u32 %v7450_v23, %v5921_v24 }
  0x3d   : > { %1935 = vmatpush.bf16.msrb.mxu3 %v7475_v45  ;;  %1508 = vmatpush.bf16.msrb.mxu0 %v7467_v44  ;;  %v5737_v44 = vld [vmem:[%s7888_s24 + $0xa8] sm:$0xf0] }
  0x3e   : > { %1010 = vmatmul.bf16.gmra.mxu3 %v5860_v43  ;;  %v5900_v43 = vor.u32 %v7444_v38, %v5897_v39  ;;  %1597 = vmatpush.bf16.msrb.mxu1 %v7475_v45  ;;  %v5927_v45 = vld [vmem:[%s7893_s27 + $0xa0] sm:$0xf] }
  0x40   : > { %1847 = vmatpush.bf16.msrb.mxu2 %v7466_v9 }
  0x41   : > { %1936 = vmatpush.bf16.msrb.mxu3 %v7474_v10  ;;  %1509 = vmatpush.bf16.msrb.mxu0 %v7466_v9  ;;  %v7454_v9 = vld [vmem:[%s7893_s27 + $0xb4] sm:$0xf] }
  0x42   : > { %1598 = vmatpush.bf16.msrb.mxu1 %v7474_v10  ;;  %v5937_v10 = vld [vmem:[%s7893_s27 + $0xb8] sm:$0xf0] }
  0x4b   : > { %588 = vmatmul.bf16.gmra.mxu0 %v5672_v52  ;;  %926 = vmatmul.bf16.gmra.mxu2 %v5864_v54  ;;  %v7446_v52 = vld [vmem:[%s7893_s27 + $0x74] sm:$0xf]  ;;  %v5712_v54 = vor.u32 %v7415_v47, %v5711_v46  ;;  %v7453_v46 = vld [vmem:[%s7893_s27 + $0xa4] sm:$0xf0]  ;;  %v7452_v47 = vld [vmem:[%s7893_s27 + $0xa4] sm:$0xf] }
  0x4c   : > { %677 = vmatmul.bf16.gmra.mxu1 %v5676_v53  ;;  %v5905_v53 = vld [vmem:[%s7893_s27 + $0x78] sm:$0xf0] }
  0x4d   : > { %v5908_v57 = vor.u32 %v7446_v52, %v5905_v53 }
  0x4e   : > { %1015 = vmatmul.bf16.gmra.mxu3 %v5868_v55  ;;  %v5716_v55 = vor.u32 %v7414_v48, %v5713_v49  ;;  %v5929_v48 = vld [vmem:[%s7893_s27 + $0xa8] sm:$0xf0] }
  0x5b   : > { %593 = vmatmul.bf16.gmra.mxu0 %v5680_v2  ;;  %931 = vmatmul.bf16.gmra.mxu2 %v5872_v4  ;;  %v5720_v2 = vor.u32 %v7417_v59, %v5719_v58  ;;  %v7465_v59 = vld [vmem:[%s9122_s2 + $0x88] sm:$0xff] }
  0x5c   : > { %682 = vmatmul.bf16.gmra.mxu1 %v5684_v3  ;;  %v5724_v3 = vor.u32 %v7416_v60, %v5721_v61  ;;  %v7473_v60 = vld [vmem:[%s9122_s2 + $0xc8] sm:$0xff]  ;;  %1848 = vmatpush.bf16.msrb.mxu2 %v7465_v59 }
  0x5d   : > { %1937 = vmatpush.bf16.msrb.mxu3 %v7473_v60  ;;  %1510 = vmatpush.bf16.msrb.mxu0 %v7465_v59  ;;  %v7458_v59 = vld [vmem:[%s7893_s27 + $0xd4] sm:$0xf] }
  0x5e   : > { %1020 = vmatmul.bf16.gmra.mxu3 %v5876_v5  ;;  %1599 = vmatpush.bf16.msrb.mxu1 %v7473_v60  ;;  %v5953_v60 = vld [vmem:[%s7893_s27 + $0xd8] sm:$0xf0] }
  0x6b   : > { %598 = vmatmul.bf16.gmra.mxu0 %v5688_v14  ;;  %936 = vmatmul.bf16.gmra.mxu2 %v5880_v16 }
  0x6c   : > { %687 = vmatmul.bf16.gmra.mxu1 %v5692_v15 }
  0x6e   : > { %1025 = vmatmul.bf16.gmra.mxu3 %v5884_v17  ;;  %v5727_v17 = vld [vmem:[%s7888_s24 + $0x90] sm:$0xf] }
  0x6f   : > { %v5728_v27 = vor.u32 %v7419_v18, %v5727_v17 }
  0x7b   : > { %603 = vmatmul.bf16.gmra.mxu0 %v5696_v28  ;;  %941 = vmatmul.bf16.gmra.mxu2 %v5888_v30  ;;  %v5732_v28 = vor.u32 %v7418_v19, %v5729_v20  ;;  %v5940_v19 = vor.u32 %v7454_v9, %v5937_v10 }
  0x7c   : > { %692 = vmatmul.bf16.gmra.mxu1 %v5700_v29 }
  0x7e   : > { %1030 = vmatmul.bf16.gmra.mxu3 %v5892_v31 }
  0x8b   : > { %608 = vmatmul.bf16.gmra.mxu0 %v5704_v40  ;;  %946 = vmatmul.bf16.gmra.mxu2 %v5896_v42  ;;  %v7421_v42 = vld [vmem:[%s7888_s24 + $0xa4] sm:$0xf0] }
  0x8c   : > { %697 = vmatmul.bf16.gmra.mxu1 %v5708_v41  ;;  %v5735_v41 = vld [vmem:[%s7888_s24 + $0xa0] sm:$0xf] }
  0x8d   : > { %v5736_v51 = vor.u32 %v7421_v42, %v5735_v41 }
  0x8e   : > { %1035 = vmatmul.bf16.gmra.mxu3 %v5900_v43  ;;  %v7420_v43 = vld [vmem:[%s7888_s24 + $0xa4] sm:$0xf] }
  0x8f   : > { %v5740_v52 = vor.u32 %v7420_v43, %v5737_v44 }
  0x9b   : > { %613 = vmatmul.bf16.gmra.mxu0 %v5712_v54  ;;  %951 = vmatmul.bf16.gmra.mxu2 %v5904_v56  ;;  %v5928_v56 = vor.u32 %v7453_v46, %v5927_v45  ;;  %v7464_v45 = vld [vmem:[%s9122_s2 + $0x80] sm:$0xff] }
  0x9c   : > { %702 = vmatmul.bf16.gmra.mxu1 %v5716_v55  ;;  %v7472_v46 = vld [vmem:[%s9122_s2 + $0xc0] sm:$0xff]  ;;  %1849 = vmatpush.bf16.msrb.mxu2 %v7464_v45 }
  0x9d   : > { %1938 = vmatpush.bf16.msrb.mxu3 %v7472_v46  ;;  %1511 = vmatpush.bf16.msrb.mxu0 %v7464_v45  ;;  %v7462_v45 = vld [vmem:[%s7893_s27 + $0xf4] sm:$0xf] }
  0x9e   : > { %1040 = vmatmul.bf16.gmra.mxu3 %v5908_v57  ;;  %v5932_v57 = vor.u32 %v7452_v47, %v5929_v48  ;;  %1600 = vmatpush.bf16.msrb.mxu1 %v7472_v46  ;;  %v5969_v46 = vld [vmem:[%s7893_s27 + $0xf8] sm:$0xf0] }
  0xa8   : > { %v579_v4 = vpop.f32.mrf.mxu0 }
  0xa9   : > { %v668_v5 = vpop.f32.mrf.mxu1 }
  0xaa   : > { %v669_v8 = vadd.f32 %v668_v5, %v579_v4  ;;  %v7423_v4 = vld [vmem:[%s7888_s24 + $0xb4] sm:$0xf0]  ;;  %v7422_v5 = vld [vmem:[%s7888_s24 + $0xb4] sm:$0xf] }
  0xab   : > { %618 = vmatmul.bf16.gmra.mxu0 %v5720_v2  ;;  %956 = vmatmul.bf16.gmra.mxu2 %v5912_v6  ;;  %v5745_v6 = vld [vmem:[%s7888_s24 + $0xb8] sm:$0xf0] }
  0xac   : > { %1087 = vst.msk [vmem:[#allocation2] sm:$0xff] %vm1086_vm0, %v669_v8  ;;  %707 = vmatmul.bf16.gmra.mxu1 %v5724_v3  ;;  %v5743_v3 = vld [vmem:[%s7888_s24 + $0xb0] sm:$0xf]  ;;  %v7455_v8 = vld [vmem:[%s7893_s27 + $0xb4] sm:$0xf0] }
  0xae   : > { %1045 = vmatmul.bf16.gmra.mxu3 %v5916_v7  ;;  %v917_v11 = vpop.f32.mrf.mxu2  ;;  %v5935_v7 = vld [vmem:[%s7893_s27 + $0xb0] sm:$0xf] }
  0xaf   : > { %v5936_v18 = vor.u32 %v7455_v8, %v5935_v7 }
  0xb0   : > { %v581_v14 = vpop.f32.mrf.mxu0 }
  0xb1   : > { %v1006_v12 = vpop.f32.mrf.mxu3  ;;  %v670_v15 = vpop.f32.mrf.mxu1 }
  0xb2   : > { %v1007_v13 = vadd.f32 %v1006_v12, %v917_v11  ;;  %v671_v16 = vadd.f32 %v670_v15, %v581_v14  ;;  %v5748_v14 = vor.u32 %v7422_v5, %v5745_v6  ;;  %v5956_v5 = vor.u32 %v7458_v59, %v5953_v60 }
  0xb4   : > { %1119 = vst.msk [vmem:[#allocation3] sm:$0xff] %vm1086_vm0, %v1007_v13  ;;  %v5744_v13 = vor.u32 %v7423_v4, %v5743_v3 }
  0xb5   : > { %1088 = vst.msk [vmem:[#allocation2 + $0x8] sm:$0xff] %vm1086_vm0, %v671_v16 }
  0xb6   : > { %v919_v25 = vpop.f32.mrf.mxu2 }
  0xb8   : > { %v584_v30 = vpop.f32.mrf.mxu0 }
  0xb9   : > { %v1008_v26 = vpop.f32.mrf.mxu3  ;;  %v673_v31 = vpop.f32.mrf.mxu1 }
  0xba   : > { %v1009_v29 = vadd.f32 %v1008_v26, %v919_v25  ;;  %v674_v34 = vadd.f32 %v673_v31, %v584_v30  ;;  %v5753_v30 = vld [vmem:[%s7888_s24 + $0xc8] sm:$0xf0]  ;;  %v5943_v31 = vld [vmem:[%s7893_s27 + $0xc0] sm:$0xf] }
  0xbb   : > { %623 = vmatmul.bf16.gmra.mxu0 %v5728_v27  ;;  %961 = vmatmul.bf16.gmra.mxu2 %v5920_v32  ;;  %v5751_v27 = vld [vmem:[%s7888_s24 + $0xc0] sm:$0xf]  ;;  %v7457_v32 = vld [vmem:[%s7893_s27 + $0xc4] sm:$0xf0] }
  0xbc   : > { %1120 = vst.msk [vmem:[#allocation3 + $0x8] sm:$0xff] %vm1086_vm0, %v1009_v29  ;;  %712 = vmatmul.bf16.gmra.mxu1 %v5732_v28  ;;  %v7425_v28 = vld [vmem:[%s7888_s24 + $0xc4] sm:$0xf0]  ;;  %v7424_v29 = vld [vmem:[%s7888_s24 + $0xc4] sm:$0xf]  ;;  %v5944_v42 = vor.u32 %v7457_v32, %v5943_v31  ;;  %v7551_v31 = vld [vmem:[%s9122_s2 + $0x138] sm:$0xff] }
  0xbd   : > { %1089 = vst.msk [vmem:[#allocation2 + $0x10] sm:$0xff] %vm1086_vm0, %v674_v34  ;;  %v5945_v34 = vld [vmem:[%s7893_s27 + $0xc8] sm:$0xf0]  ;;  %v7559_v32 = vld [vmem:[%s9122_s2 + $0x178] sm:$0xff]  ;;  %2903 = vmatpush.bf16.msra.mxu2 %v7551_v31  ;;  %2565 = vmatpush.bf16.msra.mxu0 %v7551_v31  ;;  %v7514_v31 = vld [vmem:[%s7893_s27 + $0x24] sm:$0xf] }
  0xbe   : > { %1050 = vmatmul.bf16.gmra.mxu3 %v5924_v33  ;;  %v922_v35 = vpop.f32.mrf.mxu2  ;;  %v7456_v33 = vld [vmem:[%s7893_s27 + $0xc4] sm:$0xf]  ;;  %2654 = vmatpush.bf16.msra.mxu1 %v7559_v32 }
  0xbf   : > { %v5948_v43 = vor.u32 %v7456_v33, %v5945_v34  ;;  %2992 = vmatpush.bf16.msra.mxu3 %v7559_v32  ;;  %v6209_v32 = vld [vmem:[%s7893_s27 + $0x28] sm:$0xf0] }
  0xc0   : > { %v586_v38 = vpop.f32.mrf.mxu0 }
  0xc1   : > { %v1011_v36 = vpop.f32.mrf.mxu3  ;;  %v675_v39 = vpop.f32.mrf.mxu1 }
  0xc2   : > { %v1012_v37 = vadd.f32 %v1011_v36, %v922_v35  ;;  %v676_v40 = vadd.f32 %v675_v39, %v586_v38  ;;  %v5756_v38 = vor.u32 %v7424_v29, %v5753_v30 }
  0xc4   : > { %1121 = vst.msk [vmem:[#allocation3 + $0x10] sm:$0xff] %vm1086_vm0, %v1012_v37  ;;  %v5752_v37 = vor.u32 %v7425_v28, %v5751_v27 }
  0xc5   : > { %1090 = vst.msk [vmem:[#allocation2 + $0x18] sm:$0xff] %vm1086_vm0, %v676_v40 }
  0xc6   : > { %v924_v49 = vpop.f32.mrf.mxu2 }
  0xc8   : > { %v589_v54 = vpop.f32.mrf.mxu0 }
  0xc9   : > { %v1013_v50 = vpop.f32.mrf.mxu3  ;;  %v678_v55 = vpop.f32.mrf.mxu1 }
  0xca   : > { %v1014_v53 = vadd.f32 %v1013_v50, %v924_v49  ;;  %v679_v58 = vadd.f32 %v678_v55, %v589_v54  ;;  %v7427_v54 = vld [vmem:[%s7888_s24 + $0xd4] sm:$0xf0]  ;;  %v7426_v55 = vld [vmem:[%s7888_s24 + $0xd4] sm:$0xf] }
  0xcb   : > { %628 = vmatmul.bf16.gmra.mxu0 %v5736_v51  ;;  %966 = vmatmul.bf16.gmra.mxu2 %v5928_v56  ;;  %v5761_v56 = vld [vmem:[%s7888_s24 + $0xd8] sm:$0xf0] }
  0xcc   : > { %1122 = vst.msk [vmem:[#allocation3 + $0x18] sm:$0xff] %vm1086_vm0, %v1014_v53  ;;  %717 = vmatmul.bf16.gmra.mxu1 %v5740_v52  ;;  %v5759_v53 = vld [vmem:[%s7888_s24 + $0xd0] sm:$0xf] }
  0xcd   : > { %1091 = vst.msk [vmem:[#allocation2 + $0x20] sm:$0xff] %vm1086_vm0, %v679_v58  ;;  %v7459_v58 = vld [vmem:[%s7893_s27 + $0xd4] sm:$0xf0] }
  0xce   : > { %1055 = vmatmul.bf16.gmra.mxu3 %v5932_v57  ;;  %v927_v61 = vpop.f32.mrf.mxu2  ;;  %v5951_v57 = vld [vmem:[%s7893_s27 + $0xd0] sm:$0xf] }
  0xcf   : > { %v5952_v4 = vor.u32 %v7459_v58, %v5951_v57 }
  0xd0   : > { %v591_v0 = vpop.f32.mrf.mxu0 }
  0xd1   : > { %v1016_v62 = vpop.f32.mrf.mxu3  ;;  %v680_v1 = vpop.f32.mrf.mxu1 }
  0xd2   : > { %v1017_v63 = vadd.f32 %v1016_v62, %v927_v61  ;;  %v681_v2 = vadd.f32 %v680_v1, %v591_v0  ;;  %v5764_v0 = vor.u32 %v7426_v55, %v5761_v56  ;;  %v5972_v55 = vor.u32 %v7462_v45, %v5969_v46 }
  0xd4   : > { %1123 = vst.msk [vmem:[#allocation3 + $0x20] sm:$0xff] %vm1086_vm0, %v1017_v63  ;;  %v5760_v63 = vor.u32 %v7427_v54, %v5759_v53 }
  0xd5   : > { %1092 = vst.msk [vmem:[#allocation2 + $0x28] sm:$0xff] %vm1086_vm0, %v681_v2 }
  0xd6   : > { %v929_v11 = vpop.f32.mrf.mxu2 }
  0xd8   : > { %v594_v16 = vpop.f32.mrf.mxu0 }
  0xd9   : > { %v1018_v12 = vpop.f32.mrf.mxu3  ;;  %v683_v17 = vpop.f32.mrf.mxu1 }
  0xda   : > { %v1019_v15 = vadd.f32 %v1018_v12, %v929_v11  ;;  %v684_v20 = vadd.f32 %v683_v17, %v594_v16  ;;  %v5769_v16 = vld [vmem:[%s7888_s24 + $0xe8] sm:$0xf0]  ;;  %v5959_v17 = vld [vmem:[%s7893_s27 + $0xe0] sm:$0xf] }
  0xdb   : > { %633 = vmatmul.bf16.gmra.mxu0 %v5744_v13  ;;  %971 = vmatmul.bf16.gmra.mxu2 %v5936_v18  ;;  %v5767_v13 = vld [vmem:[%s7888_s24 + $0xe0] sm:$0xf]  ;;  %v7461_v18 = vld [vmem:[%s7893_s27 + $0xe4] sm:$0xf0] }
  0xdc   : > { %1124 = vst.msk [vmem:[#allocation3 + $0x28] sm:$0xff] %vm1086_vm0, %v1019_v15  ;;  %722 = vmatmul.bf16.gmra.mxu1 %v5748_v14  ;;  %v7429_v14 = vld [vmem:[%s7888_s24 + $0xe4] sm:$0xf0]  ;;  %v7428_v15 = vld [vmem:[%s7888_s24 + $0xe4] sm:$0xf]  ;;  %v5960_v28 = vor.u32 %v7461_v18, %v5959_v17  ;;  %v7550_v17 = vld [vmem:[%s9122_s2 + $0x130] sm:$0xff] }
  0xdd   : > { %1093 = vst.msk [vmem:[#allocation2 + $0x30] sm:$0xff] %vm1086_vm0, %v684_v20  ;;  %v5961_v20 = vld [vmem:[%s7893_s27 + $0xe8] sm:$0xf0]  ;;  %v7558_v18 = vld [vmem:[%s9122_s2 + $0x170] sm:$0xff]  ;;  %2904 = vmatpush.bf16.msra.mxu2 %v7550_v17  ;;  %2566 = vmatpush.bf16.msra.mxu0 %v7550_v17  ;;  %v7518_v17 = vld [vmem:[%s7893_s27 + $0x44] sm:$0xf] }
  0xde   : > { %1060 = vmatmul.bf16.gmra.mxu3 %v5940_v19  ;;  %v932_v21 = vpop.f32.mrf.mxu2  ;;  %v7460_v19 = vld [vmem:[%s7893_s27 + $0xe4] sm:$0xf]  ;;  %2655 = vmatpush.bf16.msra.mxu1 %v7558_v18 }
  0xdf   : > { %v5964_v29 = vor.u32 %v7460_v19, %v5961_v20  ;;  %2993 = vmatpush.bf16.msra.mxu3 %v7558_v18  ;;  %v6225_v18 = vld [vmem:[%s7893_s27 + $0x48] sm:$0xf0] }
  0xe0   : > { %v596_v24 = vpop.f32.mrf.mxu0 }
  0xe1   : > { %v1021_v22 = vpop.f32.mrf.mxu3  ;;  %v685_v25 = vpop.f32.mrf.mxu1 }
  0xe2   : > { %v1022_v23 = vadd.f32 %v1021_v22, %v932_v21  ;;  %v686_v26 = vadd.f32 %v685_v25, %v596_v24  ;;  %v5772_v24 = vor.u32 %v7428_v15, %v5769_v16 }
  0xe4   : > { %1125 = vst.msk [vmem:[#allocation3 + $0x30] sm:$0xff] %vm1086_vm0, %v1022_v23  ;;  %v5768_v23 = vor.u32 %v7429_v14, %v5767_v13 }
  0xe5   : > { %1094 = vst.msk [vmem:[#allocation2 + $0x38] sm:$0xff] %vm1086_vm0, %v686_v26 }
  0xe6   : > { %v934_v35 = vpop.f32.mrf.mxu2 }
  0xe8   : > { %v599_v40 = vpop.f32.mrf.mxu0 }
  0xe9   : > { %v1023_v36 = vpop.f32.mrf.mxu3  ;;  %v688_v41 = vpop.f32.mrf.mxu1 }
  0xea   : > { %v1024_v39 = vadd.f32 %v1023_v36, %v934_v35  ;;  %v689_v44 = vadd.f32 %v688_v41, %v599_v40  ;;  %v7431_v40 = vld [vmem:[%s7888_s24 + $0xf4] sm:$0xf0]  ;;  %v7430_v41 = vld [vmem:[%s7888_s24 + $0xf4] sm:$0xf] }
  0xeb   : > { %638 = vmatmul.bf16.gmra.mxu0 %v5752_v37  ;;  %976 = vmatmul.bf16.gmra.mxu2 %v5944_v42  ;;  %v5777_v42 = vld [vmem:[%s7888_s24 + $0xf8] sm:$0xf0] }
  0xec   : > { %1126 = vst.msk [vmem:[#allocation3 + $0x38] sm:$0xff] %vm1086_vm0, %v1024_v39  ;;  %727 = vmatmul.bf16.gmra.mxu1 %v5756_v38  ;;  %v5775_v39 = vld [vmem:[%s7888_s24 + $0xf0] sm:$0xf] }
  0xed   : > { %1095 = vst.msk [vmem:[#allocation2 + $0x40] sm:$0xff] %vm1086_vm0, %v689_v44  ;;  %v7463_v44 = vld [vmem:[%s7893_s27 + $0xf4] sm:$0xf0] }
  0xee   : > { %1065 = vmatmul.bf16.gmra.mxu3 %v5948_v43  ;;  %v937_v47 = vpop.f32.mrf.mxu2  ;;  %v5967_v43 = vld [vmem:[%s7893_s27 + $0xf0] sm:$0xf] }
  0xef   : > { %v5968_v54 = vor.u32 %v7463_v44, %v5967_v43 }
  0xf0   : > { %v601_v50 = vpop.f32.mrf.mxu0 }
  0xf1   : > { %v1026_v48 = vpop.f32.mrf.mxu3  ;;  %v690_v51 = vpop.f32.mrf.mxu1 }
  0xf2   : > { %v1027_v49 = vadd.f32 %v1026_v48, %v937_v47  ;;  %v691_v52 = vadd.f32 %v690_v51, %v601_v50  ;;  %v5780_v50 = vor.u32 %v7430_v41, %v5777_v42  ;;  %v6212_v41 = vor.u32 %v7514_v31, %v6209_v32 }
  0xf4   : > { %1127 = vst.msk [vmem:[#allocation3 + $0x40] sm:$0xff] %vm1086_vm0, %v1027_v49  ;;  %v5776_v49 = vor.u32 %v7431_v40, %v5775_v39 }
  0xf5   : > { %1096 = vst.msk [vmem:[#allocation2 + $0x48] sm:$0xff] %vm1086_vm0, %v691_v52 }
  0xf6   : > { %v939_v61 = vpop.f32.mrf.mxu2 }
  0xf8   : > { %v604_v2 = vpop.f32.mrf.mxu0 }
  0xf9   : > { %v1028_v62 = vpop.f32.mrf.mxu3  ;;  %v693_v3 = vpop.f32.mrf.mxu1 }
  0xfa   : > { %v1029_v1 = vadd.f32 %v1028_v62, %v939_v61  ;;  %v694_v6 = vadd.f32 %v693_v3, %v604_v2  ;;  %v6009_v2 = vld [vmem:[%s7888_s24 + $0x18] sm:$0xf0]  ;;  %v6199_v3 = vld [vmem:[%s7893_s27 + $0x10] sm:$0xf] }
  0xfb   : > { %643 = vmatmul.bf16.gmra.mxu0 %v5760_v63  ;;  %981 = vmatmul.bf16.gmra.mxu2 %v5952_v4  ;;  %v6007_v63 = vld [vmem:[%s7888_s24 + $0x10] sm:$0xf]  ;;  %v7513_v4 = vld [vmem:[%s7893_s27 + $0x14] sm:$0xf0] }
  0xfc   : > { %1128 = vst.msk [vmem:[#allocation3 + $0x48] sm:$0xff] %vm1086_vm0, %v1029_v1  ;;  %732 = vmatmul.bf16.gmra.mxu1 %v5764_v0  ;;  %v7481_v0 = vld [vmem:[%s7888_s24 + $0x14] sm:$0xf0]  ;;  %v7480_v1 = vld [vmem:[%s7888_s24 + $0x14] sm:$0xf]  ;;  %v6200_v14 = vor.u32 %v7513_v4, %v6199_v3  ;;  %v7549_v3 = vld [vmem:[%s9122_s2 + $0x128] sm:$0xff] }
  0xfd   : > { %1097 = vst.msk [vmem:[#allocation2 + $0x50] sm:$0xff] %vm1086_vm0, %v694_v6  ;;  %v6201_v6 = vld [vmem:[%s7893_s27 + $0x18] sm:$0xf0]  ;;  %v7557_v4 = vld [vmem:[%s9122_s2 + $0x168] sm:$0xff]  ;;  %2905 = vmatpush.bf16.msra.mxu2 %v7549_v3  ;;  %2567 = vmatpush.bf16.msra.mxu0 %v7549_v3  ;;  %v7522_v3 = vld [vmem:[%s7893_s27 + $0x64] sm:$0xf] }
  0xfe   : > { %1070 = vmatmul.bf16.gmra.mxu3 %v5956_v5  ;;  %v942_v7 = vpop.f32.mrf.mxu2  ;;  %v7512_v5 = vld [vmem:[%s7893_s27 + $0x14] sm:$0xf]  ;;  %2656 = vmatpush.bf16.msra.mxu1 %v7557_v4 }
  0xff   : > { %v6204_v15 = vor.u32 %v7512_v5, %v6201_v6  ;;  %2994 = vmatpush.bf16.msra.mxu3 %v7557_v4  ;;  %v6241_v4 = vld [vmem:[%s7893_s27 + $0x68] sm:$0xf0] }
 0x100   : > { %v606_v10 = vpop.f32.mrf.mxu0 }
 0x101   : > { %v1031_v8 = vpop.f32.mrf.mxu3  ;;  %v695_v11 = vpop.f32.mrf.mxu1 }
 0x102   : > { %v1032_v9 = vadd.f32 %v1031_v8, %v942_v7  ;;  %v696_v12 = vadd.f32 %v695_v11, %v606_v10  ;;  %v6012_v10 = vor.u32 %v7480_v1, %v6009_v2 }
 0x104   : > { %1129 = vst.msk [vmem:[#allocation3 + $0x50] sm:$0xff] %vm1086_vm0, %v1032_v9  ;;  %v6008_v9 = vor.u32 %v7481_v0, %v6007_v63 }
 0x105   : > { %1098 = vst.msk [vmem:[#allocation2 + $0x58] sm:$0xff] %vm1086_vm0, %v696_v12 }
 0x106   : > { %v944_v21 = vpop.f32.mrf.mxu2 }
 0x108   : > { %v609_v26 = vpop.f32.mrf.mxu0 }
 0x109   : > { %v1033_v22 = vpop.f32.mrf.mxu3  ;;  %v698_v27 = vpop.f32.mrf.mxu1 }
 0x10a   : > { %v1034_v25 = vadd.f32 %v1033_v22, %v944_v21  ;;  %v699_v30 = vadd.f32 %v698_v27, %v609_v26  ;;  %v7483_v26 = vld [vmem:[%s7888_s24 + $0x24] sm:$0xf0]  ;;  %v7482_v27 = vld [vmem:[%s7888_s24 + $0x24] sm:$0xf] }
 0x10b   : > { %648 = vmatmul.bf16.gmra.mxu0 %v5768_v23  ;;  %986 = vmatmul.bf16.gmra.mxu2 %v5960_v28  ;;  %v6017_v28 = vld [vmem:[%s7888_s24 + $0x28] sm:$0xf0] }
 0x10c   : > { %1130 = vst.msk [vmem:[#allocation3 + $0x58] sm:$0xff] %vm1086_vm0, %v1034_v25  ;;  %737 = vmatmul.bf16.gmra.mxu1 %v5772_v24  ;;  %v6015_v25 = vld [vmem:[%s7888_s24 + $0x20] sm:$0xf] }
 0x10d   : > { %1099 = vst.msk [vmem:[#allocation2 + $0x60] sm:$0xff] %vm1086_vm0, %v699_v30  ;;  %v7515_v30 = vld [vmem:[%s7893_s27 + $0x24] sm:$0xf0] }
 0x10e   : > { %1075 = vmatmul.bf16.gmra.mxu3 %v5964_v29  ;;  %v947_v33 = vpop.f32.mrf.mxu2  ;;  %v6207_v29 = vld [vmem:[%s7893_s27 + $0x20] sm:$0xf] }
 0x10f   : > { %v6208_v40 = vor.u32 %v7515_v30, %v6207_v29 }
 0x110   : > { %v611_v36 = vpop.f32.mrf.mxu0 }
 0x111   : > { %v1036_v34 = vpop.f32.mrf.mxu3  ;;  %v700_v37 = vpop.f32.mrf.mxu1 }
 0x112   : > { %v1037_v35 = vadd.f32 %v1036_v34, %v947_v33  ;;  %v701_v38 = vadd.f32 %v700_v37, %v611_v36  ;;  %v6020_v36 = vor.u32 %v7482_v27, %v6017_v28  ;;  %v6228_v27 = vor.u32 %v7518_v17, %v6225_v18 }
 0x114   : > { %1131 = vst.msk [vmem:[#allocation3 + $0x60] sm:$0xff] %vm1086_vm0, %v1037_v35  ;;  %v6016_v35 = vor.u32 %v7483_v26, %v6015_v25 }
 0x115   : > { %1100 = vst.msk [vmem:[#allocation2 + $0x68] sm:$0xff] %vm1086_vm0, %v701_v38 }
 0x116   : > { %v949_v47 = vpop.f32.mrf.mxu2 }
 0x118   : > { %v614_v52 = vpop.f32.mrf.mxu0 }
 0x119   : > { %v1038_v48 = vpop.f32.mrf.mxu3  ;;  %v703_v53 = vpop.f32.mrf.mxu1 }
 0x11a   : > { %v1039_v51 = vadd.f32 %v1038_v48, %v949_v47  ;;  %v704_v56 = vadd.f32 %v703_v53, %v614_v52  ;;  %v6025_v52 = vld [vmem:[%s7888_s24 + $0x38] sm:$0xf0]  ;;  %v6215_v53 = vld [vmem:[%s7893_s27 + $0x30] sm:$0xf] }
 0x11b   : > { %653 = vmatmul.bf16.gmra.mxu0 %v5776_v49  ;;  %991 = vmatmul.bf16.gmra.mxu2 %v5968_v54  ;;  %v6023_v49 = vld [vmem:[%s7888_s24 + $0x30] sm:$0xf]  ;;  %v7517_v54 = vld [vmem:[%s7893_s27 + $0x34] sm:$0xf0] }
 0x11c   : > { %1132 = vst.msk [vmem:[#allocation3 + $0x68] sm:$0xff] %vm1086_vm0, %v1039_v51  ;;  %742 = vmatmul.bf16.gmra.mxu1 %v5780_v50  ;;  %v7485_v50 = vld [vmem:[%s7888_s24 + $0x34] sm:$0xf0]  ;;  %v7484_v51 = vld [vmem:[%s7888_s24 + $0x34] sm:$0xf]  ;;  %v6216_v0 = vor.u32 %v7517_v54, %v6215_v53  ;;  %v7548_v53 = vld [vmem:[%s9122_s2 + $0x120] sm:$0xff] }
 0x11d   : > { %1101 = vst.msk [vmem:[#allocation2 + $0x70] sm:$0xff] %vm1086_vm0, %v704_v56  ;;  %v6217_v56 = vld [vmem:[%s7893_s27 + $0x38] sm:$0xf0]  ;;  %v7556_v54 = vld [vmem:[%s9122_s2 + $0x160] sm:$0xff]  ;;  %2906 = vmatpush.bf16.msra.mxu2 %v7548_v53  ;;  %2568 = vmatpush.bf16.msra.mxu0 %v7548_v53 }
 0x11e   : > { %1080 = vmatmul.bf16.gmra.mxu3 %v5972_v55  ;;  %v952_v57 = vpop.f32.mrf.mxu2  ;;  %v7516_v55 = vld [vmem:[%s7893_s27 + $0x34] sm:$0xf]  ;;  %2657 = vmatpush.bf16.msra.mxu1 %v7556_v54  ;;  %v7526_v53 = vld [vmem:[%s7893_s27 + $0x84] sm:$0xf] }
 0x11f   : > { %v6220_v1 = vor.u32 %v7516_v55, %v6217_v56  ;;  %2995 = vmatpush.bf16.msra.mxu3 %v7556_v54  ;;  %v6257_v54 = vld [vmem:[%s7893_s27 + $0x88] sm:$0xf0] }
 0x120   : > { %v616_v60 = vpop.f32.mrf.mxu0 }
 0x121   : > { %v1041_v58 = vpop.f32.mrf.mxu3  ;;  %v705_v61 = vpop.f32.mrf.mxu1 }
 0x122   : > { %v1042_v59 = vadd.f32 %v1041_v58, %v952_v57  ;;  %v706_v62 = vadd.f32 %v705_v61, %v616_v60  ;;  %v6028_v60 = vor.u32 %v7484_v51, %v6025_v52 }
 0x124   : > { %1133 = vst.msk [vmem:[#allocation3 + $0x70] sm:$0xff] %vm1086_vm0, %v1042_v59  ;;  %v6024_v59 = vor.u32 %v7485_v50, %v6023_v49 }
 0x125   : > { %1102 = vst.msk [vmem:[#allocation2 + $0x78] sm:$0xff] %vm1086_vm0, %v706_v62 }
 0x126   : > { %v954_v7 = vpop.f32.mrf.mxu2 }
 0x128   : > { %v619_v12 = vpop.f32.mrf.mxu0 }
 0x129   : > { %v1043_v8 = vpop.f32.mrf.mxu3  ;;  %v708_v13 = vpop.f32.mrf.mxu1 }
 0x12a   : > { %v1044_v11 = vadd.f32 %v1043_v8, %v954_v7  ;;  %v709_v16 = vadd.f32 %v708_v13, %v619_v12  ;;  %v7487_v12 = vld [vmem:[%s7888_s24 + $0x44] sm:$0xf0]  ;;  %v7486_v13 = vld [vmem:[%s7888_s24 + $0x44] sm:$0xf] }
 0x12b   : > { %1512 = vmatmul.bf16.vlgmr.msrb.gmra.mxu0 %v6008_v9  ;;  %1850 = vmatmul.bf16.vlgmr.msrb.gmra.mxu2 %v6200_v14  ;;  %v6033_v14 = vld [vmem:[%s7888_s24 + $0x48] sm:$0xf0] }
 0x12c   : > { %1134 = vst.msk [vmem:[#allocation3 + $0x78] sm:$0xff] %vm1086_vm0, %v1044_v11  ;;  %1601 = vmatmul.bf16.vlgmr.msrb.gmra.mxu1 %v6012_v10  ;;  %v6031_v11 = vld [vmem:[%s7888_s24 + $0x40] sm:$0xf] }
 0x12d   : > { %1103 = vst.msk [vmem:[#allocation2 + $0x80] sm:$0xff] %vm1086_vm0, %v709_v16  ;;  %v7519_v16 = vld [vmem:[%s7893_s27 + $0x44] sm:$0xf0] }
 0x12e   : > { %1939 = vmatmul.bf16.vlgmr.msrb.gmra.mxu3 %v6204_v15  ;;  %v957_v19 = vpop.f32.mrf.mxu2  ;;  %v6223_v15 = vld [vmem:[%s7893_s27 + $0x40] sm:$0xf] }
 0x12f   : > { %v6224_v26 = vor.u32 %v7519_v16, %v6223_v15 }
 0x130   : > { %v621_v22 = vpop.f32.mrf.mxu0 }
 0x131   : > { %v1046_v20 = vpop.f32.mrf.mxu3  ;;  %v710_v23 = vpop.f32.mrf.mxu1 }
 0x132   : > { %v1047_v21 = vadd.f32 %v1046_v20, %v957_v19  ;;  %v711_v24 = vadd.f32 %v710_v23, %v621_v22  ;;  %v6036_v22 = vor.u32 %v7486_v13, %v6033_v14  ;;  %v6244_v13 = vor.u32 %v7522_v3, %v6241_v4 }
 0x134   : > { %1135 = vst.msk [vmem:[#allocation3 + $0x80] sm:$0xff] %vm1086_vm0, %v1047_v21  ;;  %v6032_v21 = vor.u32 %v7487_v12, %v6031_v11 }
 0x135   : > { %1104 = vst.msk [vmem:[#allocation2 + $0x88] sm:$0xff] %vm1086_vm0, %v711_v24 }
 0x136   : > { %v959_v33 = vpop.f32.mrf.mxu2 }
 0x138   : > { %v624_v38 = vpop.f32.mrf.mxu0 }
 0x139   : > { %v1048_v34 = vpop.f32.mrf.mxu3  ;;  %v713_v39 = vpop.f32.mrf.mxu1 }
 0x13a   : > { %v1049_v37 = vadd.f32 %v1048_v34, %v959_v33  ;;  %v714_v42 = vadd.f32 %v713_v39, %v624_v38  ;;  %v6041_v38 = vld [vmem:[%s7888_s24 + $0x58] sm:$0xf0]  ;;  %v6231_v39 = vld [vmem:[%s7893_s27 + $0x50] sm:$0xf] }
 0x13b   : > { %1517 = vmatmul.bf16.gmra.mxu0 %v6016_v35  ;;  %1855 = vmatmul.bf16.gmra.mxu2 %v6208_v40  ;;  %v6039_v35 = vld [vmem:[%s7888_s24 + $0x50] sm:$0xf]  ;;  %v7521_v40 = vld [vmem:[%s7893_s27 + $0x54] sm:$0xf0] }
 0x13c   : > { %1136 = vst.msk [vmem:[#allocation3 + $0x88] sm:$0xff] %vm1086_vm0, %v1049_v37  ;;  %1606 = vmatmul.bf16.gmra.mxu1 %v6020_v36  ;;  %v7489_v36 = vld [vmem:[%s7888_s24 + $0x54] sm:$0xf0]  ;;  %v7488_v37 = vld [vmem:[%s7888_s24 + $0x54] sm:$0xf]  ;;  %v6232_v50 = vor.u32 %v7521_v40, %v6231_v39 }
 0x13d   : > { %1105 = vst.msk [vmem:[#allocation2 + $0x90] sm:$0xff] %vm1086_vm0, %v714_v42  ;;  %v6233_v42 = vld [vmem:[%s7893_s27 + $0x58] sm:$0xf0] }
 0x13e   : > { %1944 = vmatmul.bf16.gmra.mxu3 %v6212_v41  ;;  %v962_v43 = vpop.f32.mrf.mxu2  ;;  %v7520_v41 = vld [vmem:[%s7893_s27 + $0x54] sm:$0xf]  ;;  %v7547_v39 = vld [vmem:[%s9122_s2 + $0x118] sm:$0xff] }
 0x13f   : > { %v6236_v51 = vor.u32 %v7520_v41, %v6233_v42  ;;  %v7555_v40 = vld [vmem:[%s9122_s2 + $0x158] sm:$0xff]  ;;  %2907 = vmatpush.bf16.msra.mxu2 %v7547_v39  ;;  %2569 = vmatpush.bf16.msra.mxu0 %v7547_v39 }
 0x140   : > { %v626_v46 = vpop.f32.mrf.mxu0  ;;  %2996 = vmatpush.bf16.msra.mxu3 %v7555_v40  ;;  %2658 = vmatpush.bf16.msra.mxu1 %v7555_v40  ;;  %v7499_v40 = vld [vmem:[%s7888_s24 + $0xa4] sm:$0xf0] }
 0x141   : > { %v1051_v44 = vpop.f32.mrf.mxu3  ;;  %v715_v47 = vpop.f32.mrf.mxu1 }
 0x142   : > { %v1052_v45 = vadd.f32 %v1051_v44, %v962_v43  ;;  %v716_v48 = vadd.f32 %v715_v47, %v626_v46  ;;  %v6044_v46 = vor.u32 %v7488_v37, %v6041_v38 }
 0x144   : > { %1137 = vst.msk [vmem:[#allocation3 + $0x90] sm:$0xff] %vm1086_vm0, %v1052_v45  ;;  %v6040_v45 = vor.u32 %v7489_v36, %v6039_v35 }
 0x145   : > { %1106 = vst.msk [vmem:[#allocation2 + $0x98] sm:$0xff] %vm1086_vm0, %v716_v48 }
 0x146   : > { %v964_v57 = vpop.f32.mrf.mxu2 }
 0x148   : > { %v629_v62 = vpop.f32.mrf.mxu0 }
 0x149   : > { %v1053_v58 = vpop.f32.mrf.mxu3  ;;  %v718_v63 = vpop.f32.mrf.mxu1 }
 0x14a   : > { %v1054_v61 = vadd.f32 %v1053_v58, %v964_v57  ;;  %v719_v2 = vadd.f32 %v718_v63, %v629_v62  ;;  %v7491_v62 = vld [vmem:[%s7888_s24 + $0x64] sm:$0xf0]  ;;  %v7490_v63 = vld [vmem:[%s7888_s24 + $0x64] sm:$0xf] }
 0x14b   : > { %1522 = vmatmul.bf16.gmra.mxu0 %v6024_v59  ;;  %1860 = vmatmul.bf16.gmra.mxu2 %v6216_v0  ;;  %v6049_v0 = vld [vmem:[%s7888_s24 + $0x68] sm:$0xf0] }
 0x14c   : > { %1138 = vst.msk [vmem:[#allocation3 + $0x98] sm:$0xff] %vm1086_vm0, %v1054_v61  ;;  %1611 = vmatmul.bf16.gmra.mxu1 %v6028_v60  ;;  %v6047_v61 = vld [vmem:[%s7888_s24 + $0x60] sm:$0xf] }
 0x14d   : > { %1107 = vst.msk [vmem:[#allocation2 + $0xa0] sm:$0xff] %vm1086_vm0, %v719_v2  ;;  %v7523_v2 = vld [vmem:[%s7893_s27 + $0x64] sm:$0xf0] }
 0x14e   : > { %1949 = vmatmul.bf16.gmra.mxu3 %v6220_v1  ;;  %v967_v5 = vpop.f32.mrf.mxu2  ;;  %v6239_v1 = vld [vmem:[%s7893_s27 + $0x60] sm:$0xf] }
 0x14f   : > { %v6240_v12 = vor.u32 %v7523_v2, %v6239_v1 }
 0x150   : > { %v631_v8 = vpop.f32.mrf.mxu0 }
 0x151   : > { %v1056_v6 = vpop.f32.mrf.mxu3  ;;  %v720_v9 = vpop.f32.mrf.mxu1 }
 0x152   : > { %v1057_v7 = vadd.f32 %v1056_v6, %v967_v5  ;;  %v721_v10 = vadd.f32 %v720_v9, %v631_v8  ;;  %v6052_v8 = vor.u32 %v7490_v63, %v6049_v0  ;;  %v6260_v63 = vor.u32 %v7526_v53, %v6257_v54 }
 0x154   : > { %1139 = vst.msk [vmem:[#allocation3 + $0xa0] sm:$0xff] %vm1086_vm0, %v1057_v7  ;;  %v6048_v7 = vor.u32 %v7491_v62, %v6047_v61 }
 0x155   : > { %1108 = vst.msk [vmem:[#allocation2 + $0xa8] sm:$0xff] %vm1086_vm0, %v721_v10 }
 0x156   : > { %v969_v19 = vpop.f32.mrf.mxu2 }
 0x158   : > { %v634_v24 = vpop.f32.mrf.mxu0 }
 0x159   : > { %v1058_v20 = vpop.f32.mrf.mxu3  ;;  %v723_v25 = vpop.f32.mrf.mxu1 }
 0x15a   : > { %v1059_v23 = vadd.f32 %v1058_v20, %v969_v19  ;;  %v724_v28 = vadd.f32 %v723_v25, %v634_v24  ;;  %v6057_v24 = vld [vmem:[%s7888_s24 + $0x78] sm:$0xf0]  ;;  %v6247_v25 = vld [vmem:[%s7893_s27 + $0x70] sm:$0xf] }
 0x15b   : > { %1527 = vmatmul.bf16.gmra.mxu0 %v6032_v21  ;;  %1865 = vmatmul.bf16.gmra.mxu2 %v6224_v26  ;;  %v6055_v21 = vld [vmem:[%s7888_s24 + $0x70] sm:$0xf]  ;;  %v7525_v26 = vld [vmem:[%s7893_s27 + $0x74] sm:$0xf0] }
 0x15c   : > { %1140 = vst.msk [vmem:[#allocation3 + $0xa8] sm:$0xff] %vm1086_vm0, %v1059_v23  ;;  %1616 = vmatmul.bf16.gmra.mxu1 %v6036_v22  ;;  %v7493_v22 = vld [vmem:[%s7888_s24 + $0x74] sm:$0xf0]  ;;  %v7492_v23 = vld [vmem:[%s7888_s24 + $0x74] sm:$0xf]  ;;  %v6248_v36 = vor.u32 %v7525_v26, %v6247_v25  ;;  %v2020_v25 = vld [vmem:[#allocation2] sm:$0xff] }
 0x15d   : > { %1109 = vst.msk [vmem:[#allocation2 + $0xb0] sm:$0xff] %vm1086_vm0, %v724_v28  ;;  %v6249_v28 = vld [vmem:[%s7893_s27 + $0x78] sm:$0xf0] }
 0x15e   : > { %1954 = vmatmul.bf16.gmra.mxu3 %v6228_v27  ;;  %v972_v29 = vpop.f32.mrf.mxu2  ;;  %v7524_v27 = vld [vmem:[%s7893_s27 + $0x74] sm:$0xf] }
 0x15f   : > { %v6252_v37 = vor.u32 %v7524_v27, %v6249_v28  ;;  %v7546_v27 = vld [vmem:[%s9122_s2 + $0x110] sm:$0xff] }
 0x160   : > { %v636_v32 = vpop.f32.mrf.mxu0  ;;  %v7554_v28 = vld [vmem:[%s9122_s2 + $0x150] sm:$0xff]  ;;  %2908 = vmatpush.bf16.msra.mxu2 %v7546_v27  ;;  %2570 = vmatpush.bf16.msra.mxu0 %v7546_v27  ;;  %v2024_v27 = vld [vmem:[#allocation2 + $0x20] sm:$0xff] }
 0x161   : > { %v1061_v30 = vpop.f32.mrf.mxu3  ;;  %v725_v33 = vpop.f32.mrf.mxu1  ;;  %2997 = vmatpush.bf16.msra.mxu3 %v7554_v28  ;;  %2659 = vmatpush.bf16.msra.mxu1 %v7554_v28 }
 0x162   : > { %v1062_v31 = vadd.f32 %v1061_v30, %v972_v29  ;;  %v726_v34 = vadd.f32 %v725_v33, %v636_v32  ;;  %v6060_v32 = vor.u32 %v7492_v23, %v6057_v24 }
 0x164   : > { %1141 = vst.msk [vmem:[#allocation3 + $0xb0] sm:$0xff] %vm1086_vm0, %v1062_v31  ;;  %v6056_v31 = vor.u32 %v7493_v22, %v6055_v21 }
 0x165   : > { %1110 = vst.msk [vmem:[#allocation2 + $0xb8] sm:$0xff] %vm1086_vm0, %v726_v34 }
 0x166   : > { %v974_v43 = vpop.f32.mrf.mxu2 }
 0x168   : > { %v639_v48 = vpop.f32.mrf.mxu0 }
 0x169   : > { %v1063_v44 = vpop.f32.mrf.mxu3  ;;  %v728_v49 = vpop.f32.mrf.mxu1 }
 0x16a   : > { %v1064_v47 = vadd.f32 %v1063_v44, %v974_v43  ;;  %v729_v52 = vadd.f32 %v728_v49, %v639_v48  ;;  %v7495_v48 = vld [vmem:[%s7888_s24 + $0x84] sm:$0xf0]  ;;  %v7494_v49 = vld [vmem:[%s7888_s24 + $0x84] sm:$0xf] }
 0x16b   : > { %1532 = vmatmul.bf16.gmra.mxu0 %v6040_v45  ;;  %1870 = vmatmul.bf16.gmra.mxu2 %v6232_v50  ;;  %v6065_v50 = vld [vmem:[%s7888_s24 + $0x88] sm:$0xf0] }
 0x16c   : > { %1142 = vst.msk [vmem:[#allocation3 + $0xb8] sm:$0xff] %vm1086_vm0, %v1064_v47  ;;  %1621 = vmatmul.bf16.gmra.mxu1 %v6044_v46  ;;  %v6063_v47 = vld [vmem:[%s7888_s24 + $0x80] sm:$0xf] }
 0x16d   : > { %1111 = vst.msk [vmem:[#allocation2 + $0xc0] sm:$0xff] %vm1086_vm0, %v729_v52  ;;  %v7527_v52 = vld [vmem:[%s7893_s27 + $0x84] sm:$0xf0] }
 0x16e   : > { %1959 = vmatmul.bf16.gmra.mxu3 %v6236_v51  ;;  %v977_v55 = vpop.f32.mrf.mxu2  ;;  %v6255_v51 = vld [vmem:[%s7893_s27 + $0x80] sm:$0xf] }
 0x16f   : > { %v6256_v62 = vor.u32 %v7527_v52, %v6255_v51 }
 0x170   : > { %v641_v58 = vpop.f32.mrf.mxu0 }
 0x171   : > { %v1066_v56 = vpop.f32.mrf.mxu3  ;;  %v730_v59 = vpop.f32.mrf.mxu1 }
 0x172   : > { %v1067_v57 = vadd.f32 %v1066_v56, %v977_v55  ;;  %v731_v60 = vadd.f32 %v730_v59, %v641_v58  ;;  %v6068_v58 = vor.u32 %v7494_v49, %v6065_v50 }
 0x174   : > { %1143 = vst.msk [vmem:[#allocation3 + $0xc0] sm:$0xff] %vm1086_vm0, %v1067_v57  ;;  %v6064_v57 = vor.u32 %v7495_v48, %v6063_v47 }
 0x175   : > { %1112 = vst.msk [vmem:[#allocation2 + $0xc8] sm:$0xff] %vm1086_vm0, %v731_v60 }
 0x176   : > { %v979_v5 = vpop.f32.mrf.mxu2 }
 0x178   : > { %v644_v10 = vpop.f32.mrf.mxu0 }
 0x179   : > { %v1068_v6 = vpop.f32.mrf.mxu3  ;;  %v733_v11 = vpop.f32.mrf.mxu1 }
 0x17a   : > { %v1069_v9 = vadd.f32 %v1068_v6, %v979_v5  ;;  %v734_v14 = vadd.f32 %v733_v11, %v644_v10  ;;  %v6073_v10 = vld [vmem:[%s7888_s24 + $0x98] sm:$0xf0]  ;;  %v6263_v11 = vld [vmem:[%s7893_s27 + $0x90] sm:$0xf] }
 0x17b   : > { %1537 = vmatmul.bf16.gmra.mxu0 %v6048_v7  ;;  %1875 = vmatmul.bf16.gmra.mxu2 %v6240_v12  ;;  %v6071_v7 = vld [vmem:[%s7888_s24 + $0x90] sm:$0xf]  ;;  %v7529_v12 = vld [vmem:[%s7893_s27 + $0x94] sm:$0xf0] }
 0x17c   : > { %1144 = vst.msk [vmem:[#allocation3 + $0xc8] sm:$0xff] %vm1086_vm0, %v1069_v9  ;;  %1626 = vmatmul.bf16.gmra.mxu1 %v6052_v8  ;;  %v7497_v8 = vld [vmem:[%s7888_s24 + $0x94] sm:$0xf0]  ;;  %v7496_v9 = vld [vmem:[%s7888_s24 + $0x94] sm:$0xf]  ;;  %v6264_v22 = vor.u32 %v7529_v12, %v6263_v11 }
 0x17d   : > { %1113 = vst.msk [vmem:[#allocation2 + $0xd0] sm:$0xff] %vm1086_vm0, %v734_v14  ;;  %v6265_v14 = vld [vmem:[%s7893_s27 + $0x98] sm:$0xf0]  ;;  %v6279_v11 = vld [vmem:[%s7893_s27 + $0xb0] sm:$0xf] }
 0x17e   : > { %1964 = vmatmul.bf16.gmra.mxu3 %v6244_v13  ;;  %v982_v15 = vpop.f32.mrf.mxu2  ;;  %v7528_v13 = vld [vmem:[%s7893_s27 + $0x94] sm:$0xf]  ;;  %v7533_v12 = vld [vmem:[%s7893_s27 + $0xb4] sm:$0xf0] }
 0x17f   : > { %v6268_v23 = vor.u32 %v7528_v13, %v6265_v14  ;;  %v7532_v13 = vld [vmem:[%s7893_s27 + $0xb4] sm:$0xf]  ;;  %v6281_v14 = vld [vmem:[%s7893_s27 + $0xb8] sm:$0xf0] }
 0x180   : > { %v646_v18 = vpop.f32.mrf.mxu0 }
 0x181   : > { %v1071_v16 = vpop.f32.mrf.mxu3  ;;  %v735_v19 = vpop.f32.mrf.mxu1 }
 0x182   : > { %v1072_v17 = vadd.f32 %v1071_v16, %v982_v15  ;;  %v736_v20 = vadd.f32 %v735_v19, %v646_v18  ;;  %v6076_v18 = vor.u32 %v7496_v9, %v6073_v10  ;;  %v7500_v9 = vld [vmem:[%s7888_s24 + $0xb4] sm:$0xf]  ;;  %v6089_v10 = vld [vmem:[%s7888_s24 + $0xb8] sm:$0xf0] }
 0x184   : > { %1145 = vst.msk [vmem:[#allocation3 + $0xd0] sm:$0xff] %vm1086_vm0, %v1072_v17  ;;  %v6072_v17 = vor.u32 %v7497_v8, %v6071_v7  ;;  %v7501_v8 = vld [vmem:[%s7888_s24 + $0xb4] sm:$0xf0] }
 0x185   : > { %1114 = vst.msk [vmem:[#allocation2 + $0xd8] sm:$0xff] %vm1086_vm0, %v736_v20 }
 0x186   : > { %v984_v29 = vpop.f32.mrf.mxu2 }
 0x188   : > { %v649_v34 = vpop.f32.mrf.mxu0 }
 0x189   : > { %v1073_v30 = vpop.f32.mrf.mxu3  ;;  %v738_v35 = vpop.f32.mrf.mxu1 }
 0x18a   : > { %v1074_v33 = vadd.f32 %v1073_v30, %v984_v29  ;;  %v739_v38 = vadd.f32 %v738_v35, %v649_v34  ;;  %v2116_v34 = vld [vmem:[#allocation3] sm:$0xff] }
 0x18b   : > { %1542 = vmatmul.bf16.gmra.mxu0 %v6056_v31  ;;  %1880 = vmatmul.bf16.gmra.mxu2 %v6248_v36 }
 0x18c   : > { %1146 = vst.msk [vmem:[#allocation3 + $0xd8] sm:$0xff] %vm1086_vm0, %v1074_v33  ;;  %1631 = vmatmul.bf16.gmra.mxu1 %v6060_v32 }
 0x18d   : > { %1115 = vst.msk [vmem:[#allocation2 + $0xe0] sm:$0xff] %vm1086_vm0, %v739_v38  ;;  %v6079_v38 = vld [vmem:[%s7888_s24 + $0xa0] sm:$0xf] }
 0x18e   : > { %1969 = vmatmul.bf16.gmra.mxu3 %v6252_v37  ;;  %v987_v41 = vpop.f32.mrf.mxu2  ;;  %v2021_v37 = vld [vmem:[#allocation2 + $0x8] sm:$0xff]  ;;  %v6080_v49 = vor.u32 %v7499_v40, %v6079_v38  ;;  %v6095_v40 = vld [vmem:[%s7888_s24 + $0xc0] sm:$0xf] }
 0x190   : > { %v651_v44 = vpop.f32.mrf.mxu0 }
 0x191   : > { %v1076_v42 = vpop.f32.mrf.mxu3  ;;  %v740_v45 = vpop.f32.mrf.mxu1 }
 0x192   : > { %v1077_v43 = vadd.f32 %v1076_v42, %v987_v41  ;;  %v741_v46 = vadd.f32 %v740_v45, %v651_v44  ;;  %v7498_v41 = vld [vmem:[%s7888_s24 + $0xa4] sm:$0xf]  ;;  %v6081_v42 = vld [vmem:[%s7888_s24 + $0xa8] sm:$0xf0]  ;;  %v7531_v44 = vld [vmem:[%s7893_s27 + $0xa4] sm:$0xf0] }
 0x193   : > { %v7530_v45 = vld [vmem:[%s7893_s27 + $0xa4] sm:$0xf]  ;;  %v6084_v50 = vor.u32 %v7498_v41, %v6081_v42  ;;  %v7503_v42 = vld [vmem:[%s7888_s24 + $0xc4] sm:$0xf0] }
 0x194   : > { %1147 = vst.msk [vmem:[#allocation3 + $0xe0] sm:$0xff] %vm1086_vm0, %v1077_v43  ;;  %v6271_v43 = vld [vmem:[%s7893_s27 + $0xa0] sm:$0xf] }
 0x195   : > { %1116 = vst.msk [vmem:[#allocation2 + $0xe8] sm:$0xff] %vm1086_vm0, %v741_v46  ;;  %v6273_v46 = vld [vmem:[%s7893_s27 + $0xa8] sm:$0xf0]  ;;  %v6272_v54 = vor.u32 %v7531_v44, %v6271_v43  ;;  %v7502_v43 = vld [vmem:[%s7888_s24 + $0xc4] sm:$0xf] }
 0x196   : > { %v989_v55 = vpop.f32.mrf.mxu2  ;;  %v6097_v44 = vld [vmem:[%s7888_s24 + $0xc8] sm:$0xf0] }
 0x198   : > { %v654_v60 = vpop.f32.mrf.mxu0 }
 0x199   : > { %v1078_v56 = vpop.f32.mrf.mxu3  ;;  %v743_v61 = vpop.f32.mrf.mxu1 }
 0x19a   : > { %v1079_v59 = vadd.f32 %v1078_v56, %v989_v55  ;;  %v744_v0 = vadd.f32 %v743_v61, %v654_v60  ;;  %v6276_v55 = vor.u32 %v7530_v45, %v6273_v46  ;;  %v2117_v56 = vld [vmem:[#allocation3 + $0x8] sm:$0xff]  ;;  %v6287_v45 = vld [vmem:[%s7893_s27 + $0xc0] sm:$0xf] }
 0x19b   : > { %1547 = vmatmul.bf16.gmra.mxu0 %v6064_v57  ;;  %1885 = vmatmul.bf16.gmra.mxu2 %v6256_v62  ;;  %v7535_v46 = vld [vmem:[%s7893_s27 + $0xc4] sm:$0xf0] }
 0x19c   : > { %1148 = vst.msk [vmem:[#allocation3 + $0xe8] sm:$0xff] %vm1086_vm0, %v1079_v59  ;;  %1636 = vmatmul.bf16.gmra.mxu1 %v6068_v58  ;;  %v2022_v59 = vld [vmem:[#allocation2 + $0x10] sm:$0xff] }
 0x19d   : > { %1117 = vst.msk [vmem:[#allocation2 + $0xf0] sm:$0xff] %vm1086_vm0, %v744_v0 }
 0x19e   : > { %1974 = vmatmul.bf16.gmra.mxu3 %v6260_v63  ;;  %v992_v1 = vpop.f32.mrf.mxu2 }
 0x1a0   : > { %v656_v4 = vpop.f32.mrf.mxu0 }
 0x1a1   : > { %v1081_v2 = vpop.f32.mrf.mxu3  ;;  %v745_v5 = vpop.f32.mrf.mxu1 }
 0x1a2   : > { %v1082_v3 = vadd.f32 %v1081_v2, %v992_v1  ;;  %v746_v6 = vadd.f32 %v745_v5, %v656_v4  ;;  %v2118_v2 = vld [vmem:[#allocation3 + $0x10] sm:$0xff]  ;;  %v2023_v5 = vld [vmem:[#allocation2 + $0x18] sm:$0xff] }
 0x1a4   : > { %1149 = vst.msk [vmem:[#allocation3 + $0xf0] sm:$0xff] %vm1086_vm0, %v1082_v3 }
 0x1a5   : > { %1118 = vst.msk [vmem:[#allocation2 + $0xf8] sm:$0xff] %vm1086_vm0, %v746_v6  ;;  %v6087_v6 = vld [vmem:[%s7888_s24 + $0xb0] sm:$0xf] }
 0x1a6   : > { %v994_v15 = vpop.f32.mrf.mxu2 }
 0x1a8   : > { %v1513_v20 = vpop.f32.mrf.mxu0 }
 0x1a9   : > { %v1083_v16 = vpop.f32.mrf.mxu3  ;;  %v1602_v21 = vpop.f32.mrf.mxu1 }
 0x1aa   : > { %v1084_v19 = vadd.f32 %v1083_v16, %v994_v15  ;;  %v1603_v24 = vadd.f32 %v1602_v21, %v1513_v20 }
 0x1ab   : > { %1552 = vmatmul.bf16.gmra.mxu0 %v6072_v17  ;;  %1890 = vmatmul.bf16.gmra.mxu2 %v6264_v22  ;;  %v6088_v17 = vor.u32 %v7501_v8, %v6087_v6  ;;  %v6280_v22 = vor.u32 %v7533_v12, %v6279_v11  ;;  %v6103_v8 = vld [vmem:[%s7888_s24 + $0xd0] sm:$0xf]  ;;  %v7504_v11 = vld [vmem:[%s7888_s24 + $0xd4] sm:$0xf]  ;;  %v6105_v12 = vld [vmem:[%s7888_s24 + $0xd8] sm:$0xf0] }
 0x1ac   : > { %1150 = vst.msk [vmem:[#allocation3 + $0xf8] sm:$0xff] %vm1086_vm0, %v1084_v19  ;;  %v2052_v26 = vadd.f32 %v2020_v25, %v1603_v24  ;;  %1641 = vmatmul.bf16.gmra.mxu1 %v6076_v18  ;;  %v6092_v18 = vor.u32 %v7500_v9, %v6089_v10  ;;  %v2119_v24 = vld [vmem:[#allocation3 + $0x18] sm:$0xff] }
 0x1ad   : > { %v7505_v10 = vld [vmem:[%s7888_s24 + $0xd4] sm:$0xf0] }
 0x1ae   : > { %1979 = vmatmul.bf16.gmra.mxu3 %v6268_v23  ;;  %2084 = vst.msk [vmem:[#allocation2] sm:$0xff] %vm1086_vm0, %v2052_v26  ;;  %v1851_v29 = vpop.f32.mrf.mxu2  ;;  %v6284_v23 = vor.u32 %v7532_v13, %v6281_v14  ;;  %v6295_v13 = vld [vmem:[%s7893_s27 + $0xd0] sm:$0xf]  ;;  %v7537_v14 = vld [vmem:[%s7893_s27 + $0xd4] sm:$0xf0] }
 0x1b0   : > { %v1515_v32 = vpop.f32.mrf.mxu0 }
 0x1b1   : > { %v1940_v30 = vpop.f32.mrf.mxu3  ;;  %v1604_v33 = vpop.f32.mrf.mxu1 }
 0x1b2   : > { %v1941_v31 = vadd.f32 %v1940_v30, %v1851_v29  ;;  %v1605_v35 = vadd.f32 %v1604_v33, %v1515_v32  ;;  %v7545_v29 = vld [vmem:[%s9122_s2 + $0x108] sm:$0xff] }
 0x1b3   : > { %v7553_v30 = vld [vmem:[%s9122_s2 + $0x148] sm:$0xff]  ;;  %2909 = vmatpush.bf16.msra.mxu2 %v7545_v29  ;;  %2571 = vmatpush.bf16.msra.mxu0 %v7545_v29  ;;  %v2028_v29 = vld [vmem:[#allocation2 + $0x40] sm:$0xff] }
 0x1b4   : > { %v2148_v36 = vadd.f32 %v2116_v34, %v1941_v31  ;;  %v2053_v39 = vadd.f32 %v2021_v37, %v1605_v35  ;;  %2998 = vmatpush.bf16.msra.mxu3 %v7553_v30  ;;  %2660 = vmatpush.bf16.msra.mxu1 %v7553_v30 }
 0x1b6   : > { %2180 = vst.msk [vmem:[#allocation3] sm:$0xff] %vm1086_vm0, %v2148_v36  ;;  %v1853_v47 = vpop.f32.mrf.mxu2  ;;  %v2120_v36 = vld [vmem:[#allocation3 + $0x20] sm:$0xff] }
 0x1b7   : > { %2085 = vst.msk [vmem:[#allocation2 + $0x8] sm:$0xff] %vm1086_vm0, %v2053_v39  ;;  %v2025_v39 = vld [vmem:[#allocation2 + $0x28] sm:$0xff] }
 0x1b8   : > { %v1518_v52 = vpop.f32.mrf.mxu0 }
 0x1b9   : > { %v1942_v48 = vpop.f32.mrf.mxu3  ;;  %v1607_v53 = vpop.f32.mrf.mxu1 }
 0x1ba   : > { %v1943_v51 = vadd.f32 %v1942_v48, %v1853_v47  ;;  %v1608_v57 = vadd.f32 %v1607_v53, %v1518_v52  ;;  %v7534_v47 = vld [vmem:[%s7893_s27 + $0xc4] sm:$0xf]  ;;  %v6289_v48 = vld [vmem:[%s7893_s27 + $0xc8] sm:$0xf0]  ;;  %v6100_v52 = vor.u32 %v7502_v43, %v6097_v44  ;;  %v7507_v44 = vld [vmem:[%s7888_s24 + $0xe4] sm:$0xf0] }
 0x1bb   : > { %1557 = vmatmul.bf16.gmra.mxu0 %v6080_v49  ;;  %1895 = vmatmul.bf16.gmra.mxu2 %v6272_v54 }
 0x1bc   : > { %v2149_v58 = vadd.f32 %v2117_v56, %v1943_v51  ;;  %v2054_v60 = vadd.f32 %v2022_v59, %v1608_v57  ;;  %1646 = vmatmul.bf16.gmra.mxu1 %v6084_v50  ;;  %v6096_v51 = vor.u32 %v7503_v42, %v6095_v40  ;;  %v6288_v56 = vor.u32 %v7535_v46, %v6287_v45  ;;  %v6111_v42 = vld [vmem:[%s7888_s24 + $0xe0] sm:$0xf]  ;;  %v7506_v45 = vld [vmem:[%s7888_s24 + $0xe4] sm:$0xf]  ;;  %v6113_v46 = vld [vmem:[%s7888_s24 + $0xe8] sm:$0xf0] }
 0x1bd   : > { %v6292_v57 = vor.u32 %v7534_v47, %v6289_v48  ;;  %v6303_v47 = vld [vmem:[%s7893_s27 + $0xe0] sm:$0xf]  ;;  %v7539_v48 = vld [vmem:[%s7893_s27 + $0xe4] sm:$0xf0] }
 0x1be   : > { %2181 = vst.msk [vmem:[#allocation3 + $0x8] sm:$0xff] %vm1086_vm0, %v2149_v58  ;;  %1984 = vmatmul.bf16.gmra.mxu3 %v6276_v55  ;;  %v1856_v61 = vpop.f32.mrf.mxu2  ;;  %v2121_v58 = vld [vmem:[#allocation3 + $0x28] sm:$0xff] }
 0x1bf   : > { %2086 = vst.msk [vmem:[#allocation2 + $0x10] sm:$0xff] %vm1086_vm0, %v2054_v60 }
 0x1c0   : > { %v1520_v0 = vpop.f32.mrf.mxu0 }
 0x1c1   : > { %v1945_v62 = vpop.f32.mrf.mxu3  ;;  %v1609_v1 = vpop.f32.mrf.mxu1 }
 0x1c2   : > { %v1946_v63 = vadd.f32 %v1945_v62, %v1856_v61  ;;  %v1610_v3 = vadd.f32 %v1609_v1, %v1520_v0  ;;  %v2026_v61 = vld [vmem:[#allocation2 + $0x30] sm:$0xff] }
 0x1c4   : > { %v2150_v4 = vadd.f32 %v2118_v2, %v1946_v63  ;;  %v2055_v7 = vadd.f32 %v2023_v5, %v1610_v3 }
 0x1c6   : > { %2182 = vst.msk [vmem:[#allocation3 + $0x10] sm:$0xff] %vm1086_vm0, %v2150_v4  ;;  %v1858_v15 = vpop.f32.mrf.mxu2  ;;  %v2122_v4 = vld [vmem:[#allocation3 + $0x30] sm:$0xff] }
 0x1c7   : > { %2087 = vst.msk [vmem:[#allocation2 + $0x18] sm:$0xff] %vm1086_vm0, %v2055_v7  ;;  %v2027_v7 = vld [vmem:[#allocation2 + $0x38] sm:$0xff] }
 0x1c8   : > { %v1523_v20 = vpop.f32.mrf.mxu0 }
 0x1c9   : > { %v1947_v16 = vpop.f32.mrf.mxu3  ;;  %v1612_v21 = vpop.f32.mrf.mxu1 }
 0x1ca   : > { %v1948_v19 = vadd.f32 %v1947_v16, %v1858_v15  ;;  %v1613_v25 = vadd.f32 %v1612_v21, %v1523_v20  ;;  %v7536_v15 = vld [vmem:[%s7893_s27 + $0xd4] sm:$0xf]  ;;  %v6297_v16 = vld [vmem:[%s7893_s27 + $0xd8] sm:$0xf0]  ;;  %v6108_v20 = vor.u32 %v7504_v11, %v6105_v12  ;;  %v7509_v12 = vld [vmem:[%s7888_s24 + $0xf4] sm:$0xf0] }
 0x1cb   : > { %1562 = vmatmul.bf16.gmra.mxu0 %v6088_v17  ;;  %1900 = vmatmul.bf16.gmra.mxu2 %v6280_v22 }
 0x1cc   : > { %v2151_v26 = vadd.f32 %v2119_v24, %v1948_v19  ;;  %v2056_v28 = vadd.f32 %v2024_v27, %v1613_v25  ;;  %1651 = vmatmul.bf16.gmra.mxu1 %v6092_v18  ;;  %v6104_v19 = vor.u32 %v7505_v10, %v6103_v8  ;;  %v6296_v24 = vor.u32 %v7537_v14, %v6295_v13  ;;  %v6119_v10 = vld [vmem:[%s7888_s24 + $0xf0] sm:$0xf]  ;;  %v7508_v13 = vld [vmem:[%s7888_s24 + $0xf4] sm:$0xf]  ;;  %v6121_v14 = vld [vmem:[%s7888_s24 + $0xf8] sm:$0xf0] }
 0x1cd   : > { %v6300_v25 = vor.u32 %v7536_v15, %v6297_v16  ;;  %v6311_v15 = vld [vmem:[%s7893_s27 + $0xf0] sm:$0xf]  ;;  %v7541_v16 = vld [vmem:[%s7893_s27 + $0xf4] sm:$0xf0] }
 0x1ce   : > { %2183 = vst.msk [vmem:[#allocation3 + $0x18] sm:$0xff] %vm1086_vm0, %v2151_v26  ;;  %1989 = vmatmul.bf16.gmra.mxu3 %v6284_v23  ;;  %v1861_v31 = vpop.f32.mrf.mxu2  ;;  %v2123_v26 = vld [vmem:[#allocation3 + $0x38] sm:$0xff] }
 0x1cf   : > { %2088 = vst.msk [vmem:[#allocation2 + $0x20] sm:$0xff] %vm1086_vm0, %v2056_v28 }
 0x1d0   : > { %v1525_v34 = vpop.f32.mrf.mxu0 }
 0x1d1   : > { %v1950_v32 = vpop.f32.mrf.mxu3  ;;  %v1614_v35 = vpop.f32.mrf.mxu1 }
 0x1d2   : > { %v1951_v33 = vadd.f32 %v1950_v32, %v1861_v31  ;;  %v1615_v37 = vadd.f32 %v1614_v35, %v1525_v34  ;;  %v7544_v31 = vld [vmem:[%s9122_s2 + $0x100] sm:$0xff] }
 0x1d3   : > { %v7552_v32 = vld [vmem:[%s9122_s2 + $0x140] sm:$0xff]  ;;  %2910 = vmatpush.bf16.msra.mxu2 %v7544_v31  ;;  %2572 = vmatpush.bf16.msra.mxu0 %v7544_v31 }
 0x1d4   : > { %v2152_v38 = vadd.f32 %v2120_v36, %v1951_v33  ;;  %v2057_v41 = vadd.f32 %v2025_v39, %v1615_v37  ;;  %2999 = vmatpush.bf16.msra.mxu3 %v7552_v32  ;;  %2661 = vmatpush.bf16.msra.mxu1 %v7552_v32  ;;  %v2032_v31 = vld [vmem:[#allocation2 + $0x60] sm:$0xff] }
 0x1d6   : > { %2184 = vst.msk [vmem:[#allocation3 + $0x20] sm:$0xff] %vm1086_vm0, %v2152_v38  ;;  %v1863_v49 = vpop.f32.mrf.mxu2  ;;  %v2124_v38 = vld [vmem:[#allocation3 + $0x40] sm:$0xff] }
 0x1d7   : > { %2089 = vst.msk [vmem:[#allocation2 + $0x28] sm:$0xff] %vm1086_vm0, %v2057_v41  ;;  %v2029_v41 = vld [vmem:[#allocation2 + $0x48] sm:$0xff] }
 0x1d8   : > { %v1528_v54 = vpop.f32.mrf.mxu0 }
 0x1d9   : > { %v1952_v50 = vpop.f32.mrf.mxu3  ;;  %v1617_v55 = vpop.f32.mrf.mxu1 }
 0x1da   : > { %v1953_v53 = vadd.f32 %v1952_v50, %v1863_v49  ;;  %v1618_v59 = vadd.f32 %v1617_v55, %v1528_v54  ;;  %v7538_v49 = vld [vmem:[%s7893_s27 + $0xe4] sm:$0xf]  ;;  %v6305_v50 = vld [vmem:[%s7893_s27 + $0xe8] sm:$0xf0]  ;;  %v6116_v54 = vor.u32 %v7506_v45, %v6113_v46  ;;  %v7511_v46 = vld [vmem:[%s7888_s24 + $0x104] sm:$0xf0] }
 0x1db   : > { %1567 = vmatmul.bf16.gmra.mxu0 %v6096_v51  ;;  %1905 = vmatmul.bf16.gmra.mxu2 %v6288_v56 }
 0x1dc   : > { %v2153_v60 = vadd.f32 %v2121_v58, %v1953_v53  ;;  %v2058_v62 = vadd.f32 %v2026_v61, %v1618_v59  ;;  %1656 = vmatmul.bf16.gmra.mxu1 %v6100_v52  ;;  %v6112_v53 = vor.u32 %v7507_v44, %v6111_v42  ;;  %v6304_v58 = vor.u32 %v7539_v48, %v6303_v47  ;;  %v6127_v44 = vld [vmem:[%s7888_s24 + $0x100] sm:$0xf]  ;;  %v7510_v47 = vld [vmem:[%s7888_s24 + $0x104] sm:$0xf]  ;;  %v6129_v48 = vld [vmem:[%s7888_s24 + $0x108] sm:$0xf0] }
 0x1dd   : > { %v6308_v59 = vor.u32 %v7538_v49, %v6305_v50  ;;  %v6319_v49 = vld [vmem:[%s7893_s27 + $0x100] sm:$0xf]  ;;  %v7543_v50 = vld [vmem:[%s7893_s27 + $0x104] sm:$0xf0] }
 0x1de   : > { %2185 = vst.msk [vmem:[#allocation3 + $0x28] sm:$0xff] %vm1086_vm0, %v2153_v60  ;;  %1994 = vmatmul.bf16.gmra.mxu3 %v6292_v57  ;;  %v1866_v63 = vpop.f32.mrf.mxu2  ;;  %v2125_v60 = vld [vmem:[#allocation3 + $0x48] sm:$0xff] }
 0x1df   : > { %2090 = vst.msk [vmem:[#allocation2 + $0x30] sm:$0xff] %vm1086_vm0, %v2058_v62 }
 0x1e0   : > { %v1530_v2 = vpop.f32.mrf.mxu0 }
 0x1e1   : > { %v1955_v0 = vpop.f32.mrf.mxu3  ;;  %v1619_v3 = vpop.f32.mrf.mxu1 }
 0x1e2   : > { %v1956_v1 = vadd.f32 %v1955_v0, %v1866_v63  ;;  %v1620_v5 = vadd.f32 %v1619_v3, %v1530_v2  ;;  %v2030_v63 = vld [vmem:[#allocation2 + $0x50] sm:$0xff] }
 0x1e4   : > { %v2154_v6 = vadd.f32 %v2122_v4, %v1956_v1  ;;  %v2059_v9 = vadd.f32 %v2027_v7, %v1620_v5 }
 0x1e6   : > { %2186 = vst.msk [vmem:[#allocation3 + $0x30] sm:$0xff] %vm1086_vm0, %v2154_v6  ;;  %v1868_v17 = vpop.f32.mrf.mxu2  ;;  %v2126_v6 = vld [vmem:[#allocation3 + $0x50] sm:$0xff] }
 0x1e7   : > { %2091 = vst.msk [vmem:[#allocation2 + $0x38] sm:$0xff] %vm1086_vm0, %v2059_v9  ;;  %v2031_v9 = vld [vmem:[#allocation2 + $0x58] sm:$0xff] }
 0x1e8   : > { %v1533_v22 = vpop.f32.mrf.mxu0 }
 0x1e9   : > { %v1957_v18 = vpop.f32.mrf.mxu3  ;;  %v1622_v23 = vpop.f32.mrf.mxu1 }
 0x1ea   : > { %v1958_v21 = vadd.f32 %v1957_v18, %v1868_v17  ;;  %v1623_v27 = vadd.f32 %v1622_v23, %v1533_v22  ;;  %v7540_v17 = vld [vmem:[%s7893_s27 + $0xf4] sm:$0xf]  ;;  %v6313_v18 = vld [vmem:[%s7893_s27 + $0xf8] sm:$0xf0]  ;;  %v6124_v22 = vor.u32 %v7508_v13, %v6121_v14  ;;  %v7561_v14 = vld [vmem:[%s7888_s24 + $0x24] sm:$0xf0] }
 0x1eb   : > { %1572 = vmatmul.bf16.gmra.mxu0 %v6104_v19  ;;  %1910 = vmatmul.bf16.gmra.mxu2 %v6296_v24 }
 0x1ec   : > { %v2155_v28 = vadd.f32 %v2123_v26, %v1958_v21  ;;  %v2060_v30 = vadd.f32 %v2028_v29, %v1623_v27  ;;  %1661 = vmatmul.bf16.gmra.mxu1 %v6108_v20  ;;  %v6120_v21 = vor.u32 %v7509_v12, %v6119_v10  ;;  %v6312_v26 = vor.u32 %v7541_v16, %v6311_v15  ;;  %v6359_v12 = vld [vmem:[%s7888_s24 + $0x20] sm:$0xf]  ;;  %v7560_v15 = vld [vmem:[%s7888_s24 + $0x24] sm:$0xf]  ;;  %v6361_v16 = vld [vmem:[%s7888_s24 + $0x28] sm:$0xf0] }
 0x1ed   : > { %v6316_v27 = vor.u32 %v7540_v17, %v6313_v18  ;;  %v6551_v17 = vld [vmem:[%s7893_s27 + $0x20] sm:$0xf]  ;;  %v7593_v18 = vld [vmem:[%s7893_s27 + $0x24] sm:$0xf0] }
 0x1ee   : > { %2187 = vst.msk [vmem:[#allocation3 + $0x38] sm:$0xff] %vm1086_vm0, %v2155_v28  ;;  %1999 = vmatmul.bf16.gmra.mxu3 %v6300_v25  ;;  %v1871_v33 = vpop.f32.mrf.mxu2  ;;  %v2127_v28 = vld [vmem:[#allocation3 + $0x58] sm:$0xff] }
 0x1ef   : > { %2092 = vst.msk [vmem:[#allocation2 + $0x40] sm:$0xff] %vm1086_vm0, %v2060_v30 }
 0x1f0   : > { %v1535_v36 = vpop.f32.mrf.mxu0 }
 0x1f1   : > { %v1960_v34 = vpop.f32.mrf.mxu3  ;;  %v1624_v37 = vpop.f32.mrf.mxu1 }
 0x1f2   : > { %v1961_v35 = vadd.f32 %v1960_v34, %v1871_v33  ;;  %v1625_v39 = vadd.f32 %v1624_v37, %v1535_v36  ;;  %v7631_v33 = vld [vmem:[%s9122_s2 + $0x1b8] sm:$0xff] }
 0x1f3   : > { %v7639_v34 = vld [vmem:[%s9122_s2 + $0x1f8] sm:$0xff]  ;;  %3964 = vmatpush.bf16.msrb.mxu2 %v7631_v33  ;;  %3626 = vmatpush.bf16.msrb.mxu0 %v7631_v33  ;;  %v2036_v33 = vld [vmem:[#allocation2 + $0x80] sm:$0xff] }
 0x1f4   : > { %v2156_v40 = vadd.f32 %v2124_v38, %v1961_v35  ;;  %v2061_v43 = vadd.f32 %v2029_v41, %v1625_v39  ;;  %4053 = vmatpush.bf16.msrb.mxu3 %v7639_v34  ;;  %3715 = vmatpush.bf16.msrb.mxu1 %v7639_v34 }
 0x1f6   : > { %2188 = vst.msk [vmem:[#allocation3 + $0x40] sm:$0xff] %vm1086_vm0, %v2156_v40  ;;  %v1873_v51 = vpop.f32.mrf.mxu2  ;;  %v2128_v40 = vld [vmem:[#allocation3 + $0x60] sm:$0xff] }
 0x1f7   : > { %2093 = vst.msk [vmem:[#allocation2 + $0x48] sm:$0xff] %vm1086_vm0, %v2061_v43  ;;  %v2033_v43 = vld [vmem:[#allocation2 + $0x68] sm:$0xff] }
 0x1f8   : > { %v1538_v56 = vpop.f32.mrf.mxu0 }
 0x1f9   : > { %v1962_v52 = vpop.f32.mrf.mxu3  ;;  %v1627_v57 = vpop.f32.mrf.mxu1 }
 0x1fa   : > { %v1963_v55 = vadd.f32 %v1962_v52, %v1873_v51  ;;  %v1628_v61 = vadd.f32 %v1627_v57, %v1538_v56  ;;  %v7542_v51 = vld [vmem:[%s7893_s27 + $0x104] sm:$0xf]  ;;  %v6321_v52 = vld [vmem:[%s7893_s27 + $0x108] sm:$0xf0]  ;;  %v6132_v56 = vor.u32 %v7510_v47, %v6129_v48  ;;  %v7563_v48 = vld [vmem:[%s7888_s24 + $0x34] sm:$0xf0] }
 0x1fb   : > { %1577 = vmatmul.bf16.gmra.mxu0 %v6112_v53  ;;  %1915 = vmatmul.bf16.gmra.mxu2 %v6304_v58 }
 0x1fc   : > { %v2157_v62 = vadd.f32 %v2125_v60, %v1963_v55  ;;  %v2062_v0 = vadd.f32 %v2030_v63, %v1628_v61  ;;  %1666 = vmatmul.bf16.gmra.mxu1 %v6116_v54  ;;  %v6128_v55 = vor.u32 %v7511_v46, %v6127_v44  ;;  %v6320_v60 = vor.u32 %v7543_v50, %v6319_v49  ;;  %v6367_v46 = vld [vmem:[%s7888_s24 + $0x30] sm:$0xf]  ;;  %v7562_v49 = vld [vmem:[%s7888_s24 + $0x34] sm:$0xf]  ;;  %v6369_v50 = vld [vmem:[%s7888_s24 + $0x38] sm:$0xf0] }
 0x1fd   : > { %v6324_v61 = vor.u32 %v7542_v51, %v6321_v52  ;;  %v6559_v51 = vld [vmem:[%s7893_s27 + $0x30] sm:$0xf]  ;;  %v7595_v52 = vld [vmem:[%s7893_s27 + $0x34] sm:$0xf0] }
 0x1fe   : > { %2189 = vst.msk [vmem:[#allocation3 + $0x48] sm:$0xff] %vm1086_vm0, %v2157_v62  ;;  %2004 = vmatmul.bf16.gmra.mxu3 %v6308_v59  ;;  %v1876_v1 = vpop.f32.mrf.mxu2  ;;  %v2129_v62 = vld [vmem:[#allocation3 + $0x68] sm:$0xff] }
 0x1ff   : > { %2094 = vst.msk [vmem:[#allocation2 + $0x50] sm:$0xff] %vm1086_vm0, %v2062_v0 }
 0x200   : > { %v1540_v4 = vpop.f32.mrf.mxu0 }
 0x201   : > { %v1965_v2 = vpop.f32.mrf.mxu3  ;;  %v1629_v5 = vpop.f32.mrf.mxu1 }
 0x202   : > { %v1966_v3 = vadd.f32 %v1965_v2, %v1876_v1  ;;  %v1630_v7 = vadd.f32 %v1629_v5, %v1540_v4  ;;  %v2034_v1 = vld [vmem:[#allocation2 + $0x70] sm:$0xff] }
 0x204   : > { %v2158_v8 = vadd.f32 %v2126_v6, %v1966_v3  ;;  %v2063_v11 = vadd.f32 %v2031_v9, %v1630_v7 }
 0x206   : > { %2190 = vst.msk [vmem:[#allocation3 + $0x50] sm:$0xff] %vm1086_vm0, %v2158_v8  ;;  %v1878_v19 = vpop.f32.mrf.mxu2  ;;  %v2130_v8 = vld [vmem:[#allocation3 + $0x70] sm:$0xff] }
 0x207   : > { %2095 = vst.msk [vmem:[#allocation2 + $0x58] sm:$0xff] %vm1086_vm0, %v2063_v11  ;;  %v2035_v11 = vld [vmem:[#allocation2 + $0x78] sm:$0xff] }
 0x208   : > { %v1543_v24 = vpop.f32.mrf.mxu0 }
 0x209   : > { %v1967_v20 = vpop.f32.mrf.mxu3  ;;  %v1632_v25 = vpop.f32.mrf.mxu1 }
 0x20a   : > { %v1968_v23 = vadd.f32 %v1967_v20, %v1878_v19  ;;  %v1633_v29 = vadd.f32 %v1632_v25, %v1543_v24  ;;  %v7592_v19 = vld [vmem:[%s7893_s27 + $0x24] sm:$0xf]  ;;  %v6553_v20 = vld [vmem:[%s7893_s27 + $0x28] sm:$0xf0]  ;;  %v6364_v24 = vor.u32 %v7560_v15, %v6361_v16  ;;  %v7565_v16 = vld [vmem:[%s7888_s24 + $0x44] sm:$0xf0] }
 0x20b   : > { %1582 = vmatmul.bf16.gmra.mxu0 %v6120_v21  ;;  %1920 = vmatmul.bf16.gmra.mxu2 %v6312_v26 }
 0x20c   : > { %v2159_v30 = vadd.f32 %v2127_v28, %v1968_v23  ;;  %v2064_v32 = vadd.f32 %v2032_v31, %v1633_v29  ;;  %1671 = vmatmul.bf16.gmra.mxu1 %v6124_v22  ;;  %v6360_v23 = vor.u32 %v7561_v14, %v6359_v12  ;;  %v6552_v28 = vor.u32 %v7593_v18, %v6551_v17  ;;  %v6375_v14 = vld [vmem:[%s7888_s24 + $0x40] sm:$0xf]  ;;  %v7564_v17 = vld [vmem:[%s7888_s24 + $0x44] sm:$0xf]  ;;  %v6377_v18 = vld [vmem:[%s7888_s24 + $0x48] sm:$0xf0] }
 0x20d   : > { %v6556_v29 = vor.u32 %v7592_v19, %v6553_v20  ;;  %v6567_v19 = vld [vmem:[%s7893_s27 + $0x40] sm:$0xf]  ;;  %v7597_v20 = vld [vmem:[%s7893_s27 + $0x44] sm:$0xf0] }
 0x20e   : > { %2191 = vst.msk [vmem:[#allocation3 + $0x58] sm:$0xff] %vm1086_vm0, %v2159_v30  ;;  %2009 = vmatmul.bf16.gmra.mxu3 %v6316_v27  ;;  %v1881_v35 = vpop.f32.mrf.mxu2  ;;  %v2131_v30 = vld [vmem:[#allocation3 + $0x78] sm:$0xff] }
 0x20f   : > { %2096 = vst.msk [vmem:[#allocation2 + $0x60] sm:$0xff] %vm1086_vm0, %v2064_v32 }
 0x210   : > { %v1545_v38 = vpop.f32.mrf.mxu0 }
 0x211   : > { %v1970_v36 = vpop.f32.mrf.mxu3  ;;  %v1634_v39 = vpop.f32.mrf.mxu1 }
 0x212   : > { %v1971_v37 = vadd.f32 %v1970_v36, %v1881_v35  ;;  %v1635_v41 = vadd.f32 %v1634_v39, %v1545_v38  ;;  %v7630_v35 = vld [vmem:[%s9122_s2 + $0x1b0] sm:$0xff] }
 0x213   : > { %v7638_v36 = vld [vmem:[%s9122_s2 + $0x1f0] sm:$0xff]  ;;  %3965 = vmatpush.bf16.msrb.mxu2 %v7630_v35  ;;  %3627 = vmatpush.bf16.msrb.mxu0 %v7630_v35  ;;  %v2040_v35 = vld [vmem:[#allocation2 + $0xa0] sm:$0xff] }
 0x214   : > { %v2160_v42 = vadd.f32 %v2128_v40, %v1971_v37  ;;  %v2065_v45 = vadd.f32 %v2033_v43, %v1635_v41  ;;  %4054 = vmatpush.bf16.msrb.mxu3 %v7638_v36  ;;  %3716 = vmatpush.bf16.msrb.mxu1 %v7638_v36 }
 0x216   : > { %2192 = vst.msk [vmem:[#allocation3 + $0x60] sm:$0xff] %vm1086_vm0, %v2160_v42  ;;  %v1883_v53 = vpop.f32.mrf.mxu2  ;;  %v2132_v42 = vld [vmem:[#allocation3 + $0x80] sm:$0xff] }
 0x217   : > { %2097 = vst.msk [vmem:[#allocation2 + $0x68] sm:$0xff] %vm1086_vm0, %v2065_v45  ;;  %v2037_v45 = vld [vmem:[#allocation2 + $0x88] sm:$0xff] }
 0x218   : > { %v1548_v58 = vpop.f32.mrf.mxu0 }
 0x219   : > { %v1972_v54 = vpop.f32.mrf.mxu3  ;;  %v1637_v59 = vpop.f32.mrf.mxu1 }
 0x21a   : > { %v1973_v57 = vadd.f32 %v1972_v54, %v1883_v53  ;;  %v1638_v63 = vadd.f32 %v1637_v59, %v1548_v58  ;;  %v7594_v53 = vld [vmem:[%s7893_s27 + $0x34] sm:$0xf]  ;;  %v6561_v54 = vld [vmem:[%s7893_s27 + $0x38] sm:$0xf0]  ;;  %v6372_v58 = vor.u32 %v7562_v49, %v6369_v50  ;;  %v7567_v50 = vld [vmem:[%s7888_s24 + $0x54] sm:$0xf0] }
 0x21b   : > { %1587 = vmatmul.bf16.gmra.mxu0 %v6128_v55  ;;  %1925 = vmatmul.bf16.gmra.mxu2 %v6320_v60 }
 0x21c   : > { %v2161_v0 = vadd.f32 %v2129_v62, %v1973_v57  ;;  %v2066_v2 = vadd.f32 %v2034_v1, %v1638_v63  ;;  %1676 = vmatmul.bf16.gmra.mxu1 %v6132_v56  ;;  %v6368_v57 = vor.u32 %v7563_v48, %v6367_v46  ;;  %v6560_v62 = vor.u32 %v7595_v52, %v6559_v51  ;;  %v6383_v48 = vld [vmem:[%s7888_s24 + $0x50] sm:$0xf]  ;;  %v7566_v51 = vld [vmem:[%s7888_s24 + $0x54] sm:$0xf]  ;;  %v6385_v52 = vld [vmem:[%s7888_s24 + $0x58] sm:$0xf0] }
 0x21d   : > { %v6564_v63 = vor.u32 %v7594_v53, %v6561_v54  ;;  %v6575_v53 = vld [vmem:[%s7893_s27 + $0x50] sm:$0xf]  ;;  %v7599_v54 = vld [vmem:[%s7893_s27 + $0x54] sm:$0xf0] }
 0x21e   : > { %2193 = vst.msk [vmem:[#allocation3 + $0x68] sm:$0xff] %vm1086_vm0, %v2161_v0  ;;  %2014 = vmatmul.bf16.gmra.mxu3 %v6324_v61  ;;  %v1886_v3 = vpop.f32.mrf.mxu2  ;;  %v2133_v0 = vld [vmem:[#allocation3 + $0x88] sm:$0xff] }
 0x21f   : > { %2098 = vst.msk [vmem:[#allocation2 + $0x70] sm:$0xff] %vm1086_vm0, %v2066_v2 }
 0x220   : > { %v1550_v6 = vpop.f32.mrf.mxu0 }
 0x221   : > { %v1975_v4 = vpop.f32.mrf.mxu3  ;;  %v1639_v7 = vpop.f32.mrf.mxu1 }
 0x222   : > { %v1976_v5 = vadd.f32 %v1975_v4, %v1886_v3  ;;  %v1640_v9 = vadd.f32 %v1639_v7, %v1550_v6  ;;  %v2038_v3 = vld [vmem:[#allocation2 + $0x90] sm:$0xff] }
 0x224   : > { %v2162_v10 = vadd.f32 %v2130_v8, %v1976_v5  ;;  %v2067_v13 = vadd.f32 %v2035_v11, %v1640_v9 }
 0x226   : > { %2194 = vst.msk [vmem:[#allocation3 + $0x70] sm:$0xff] %vm1086_vm0, %v2162_v10  ;;  %v1888_v21 = vpop.f32.mrf.mxu2  ;;  %v2134_v10 = vld [vmem:[#allocation3 + $0x90] sm:$0xff] }
 0x227   : > { %2099 = vst.msk [vmem:[#allocation2 + $0x78] sm:$0xff] %vm1086_vm0, %v2067_v13  ;;  %v2039_v13 = vld [vmem:[#allocation2 + $0x98] sm:$0xff] }
 0x228   : > { %v1553_v26 = vpop.f32.mrf.mxu0 }
 0x229   : > { %v1977_v22 = vpop.f32.mrf.mxu3  ;;  %v1642_v27 = vpop.f32.mrf.mxu1 }
 0x22a   : > { %v1978_v25 = vadd.f32 %v1977_v22, %v1888_v21  ;;  %v1643_v31 = vadd.f32 %v1642_v27, %v1553_v26  ;;  %v7596_v21 = vld [vmem:[%s7893_s27 + $0x44] sm:$0xf]  ;;  %v6569_v22 = vld [vmem:[%s7893_s27 + $0x48] sm:$0xf0]  ;;  %v6380_v26 = vor.u32 %v7564_v17, %v6377_v18  ;;  %v7569_v18 = vld [vmem:[%s7888_s24 + $0x64] sm:$0xf0] }
 0x22b   : > { %2573 = vmatmul.bf16.vlgmr.msra.gmra.mxu0 %v6360_v23  ;;  %2911 = vmatmul.bf16.vlgmr.msra.gmra.mxu2 %v6552_v28 }
 0x22c   : > { %v2163_v32 = vadd.f32 %v2131_v30, %v1978_v25  ;;  %v2068_v34 = vadd.f32 %v2036_v33, %v1643_v31  ;;  %2662 = vmatmul.bf16.vlgmr.msra.gmra.mxu1 %v6364_v24  ;;  %v6376_v25 = vor.u32 %v7565_v16, %v6375_v14  ;;  %v6568_v30 = vor.u32 %v7597_v20, %v6567_v19  ;;  %v6391_v16 = vld [vmem:[%s7888_s24 + $0x60] sm:$0xf]  ;;  %v7568_v19 = vld [vmem:[%s7888_s24 + $0x64] sm:$0xf]  ;;  %v6393_v20 = vld [vmem:[%s7888_s24 + $0x68] sm:$0xf0] }
 0x22d   : > { %v6572_v31 = vor.u32 %v7596_v21, %v6569_v22  ;;  %v6583_v21 = vld [vmem:[%s7893_s27 + $0x60] sm:$0xf]  ;;  %v7601_v22 = vld [vmem:[%s7893_s27 + $0x64] sm:$0xf0] }
 0x22e   : > { %2195 = vst.msk [vmem:[#allocation3 + $0x78] sm:$0xff] %vm1086_vm0, %v2163_v32  ;;  %3000 = vmatmul.bf16.vlgmr.msra.gmra.mxu3 %v6556_v29  ;;  %v1891_v37 = vpop.f32.mrf.mxu2  ;;  %v2135_v32 = vld [vmem:[#allocation3 + $0x98] sm:$0xff] }
 0x22f   : > { %2100 = vst.msk [vmem:[#allocation2 + $0x80] sm:$0xff] %vm1086_vm0, %v2068_v34 }
 0x230   : > { %v1555_v40 = vpop.f32.mrf.mxu0 }
 0x231   : > { %v1980_v38 = vpop.f32.mrf.mxu3  ;;  %v1644_v41 = vpop.f32.mrf.mxu1 }
 0x232   : > { %v1981_v39 = vadd.f32 %v1980_v38, %v1891_v37  ;;  %v1645_v43 = vadd.f32 %v1644_v41, %v1555_v40  ;;  %v7629_v37 = vld [vmem:[%s9122_s2 + $0x1a8] sm:$0xff] }
 0x233   : > { %v7637_v38 = vld [vmem:[%s9122_s2 + $0x1e8] sm:$0xff]  ;;  %3966 = vmatpush.bf16.msrb.mxu2 %v7629_v37  ;;  %3628 = vmatpush.bf16.msrb.mxu0 %v7629_v37  ;;  %v2044_v37 = vld [vmem:[#allocation2 + $0xc0] sm:$0xff] }
 0x234   : > { %v2164_v44 = vadd.f32 %v2132_v42, %v1981_v39  ;;  %v2069_v47 = vadd.f32 %v2037_v45, %v1645_v43  ;;  %4055 = vmatpush.bf16.msrb.mxu3 %v7637_v38  ;;  %3717 = vmatpush.bf16.msrb.mxu1 %v7637_v38 }
 0x236   : > { %2196 = vst.msk [vmem:[#allocation3 + $0x80] sm:$0xff] %vm1086_vm0, %v2164_v44  ;;  %v1893_v55 = vpop.f32.mrf.mxu2  ;;  %v2136_v44 = vld [vmem:[#allocation3 + $0xa0] sm:$0xff] }
 0x237   : > { %2101 = vst.msk [vmem:[#allocation2 + $0x88] sm:$0xff] %vm1086_vm0, %v2069_v47  ;;  %v2041_v47 = vld [vmem:[#allocation2 + $0xa8] sm:$0xff] }
 0x238   : > { %v1558_v60 = vpop.f32.mrf.mxu0 }
 0x239   : > { %v1982_v56 = vpop.f32.mrf.mxu3  ;;  %v1647_v61 = vpop.f32.mrf.mxu1 }
 0x23a   : > { %v1983_v59 = vadd.f32 %v1982_v56, %v1893_v55  ;;  %v1648_v1 = vadd.f32 %v1647_v61, %v1558_v60  ;;  %v7598_v55 = vld [vmem:[%s7893_s27 + $0x54] sm:$0xf]  ;;  %v6577_v56 = vld [vmem:[%s7893_s27 + $0x58] sm:$0xf0]  ;;  %v6388_v60 = vor.u32 %v7566_v51, %v6385_v52  ;;  %v7571_v52 = vld [vmem:[%s7888_s24 + $0x74] sm:$0xf0] }
 0x23b   : > { %2578 = vmatmul.bf16.gmra.mxu0 %v6368_v57  ;;  %2916 = vmatmul.bf16.gmra.mxu2 %v6560_v62 }
 0x23c   : > { %v2165_v2 = vadd.f32 %v2133_v0, %v1983_v59  ;;  %v2070_v4 = vadd.f32 %v2038_v3, %v1648_v1  ;;  %2667 = vmatmul.bf16.gmra.mxu1 %v6372_v58  ;;  %v6384_v59 = vor.u32 %v7567_v50, %v6383_v48  ;;  %v6576_v0 = vor.u32 %v7599_v54, %v6575_v53  ;;  %v6399_v50 = vld [vmem:[%s7888_s24 + $0x70] sm:$0xf]  ;;  %v7570_v53 = vld [vmem:[%s7888_s24 + $0x74] sm:$0xf]  ;;  %v6401_v54 = vld [vmem:[%s7888_s24 + $0x78] sm:$0xf0] }
 0x23d   : > { %v6580_v1 = vor.u32 %v7598_v55, %v6577_v56  ;;  %v6591_v55 = vld [vmem:[%s7893_s27 + $0x70] sm:$0xf]  ;;  %v7603_v56 = vld [vmem:[%s7893_s27 + $0x74] sm:$0xf0] }
 0x23e   : > { %2197 = vst.msk [vmem:[#allocation3 + $0x88] sm:$0xff] %vm1086_vm0, %v2165_v2  ;;  %3005 = vmatmul.bf16.gmra.mxu3 %v6564_v63  ;;  %v1896_v5 = vpop.f32.mrf.mxu2  ;;  %v2137_v2 = vld [vmem:[#allocation3 + $0xa8] sm:$0xff] }
 0x23f   : > { %2102 = vst.msk [vmem:[#allocation2 + $0x90] sm:$0xff] %vm1086_vm0, %v2070_v4 }
 0x240   : > { %v1560_v8 = vpop.f32.mrf.mxu0 }
 0x241   : > { %v1985_v6 = vpop.f32.mrf.mxu3  ;;  %v1649_v9 = vpop.f32.mrf.mxu1 }
 0x242   : > { %v1986_v7 = vadd.f32 %v1985_v6, %v1896_v5  ;;  %v1650_v11 = vadd.f32 %v1649_v9, %v1560_v8  ;;  %v2042_v5 = vld [vmem:[#allocation2 + $0xb0] sm:$0xff] }
 0x244   : > { %v2166_v12 = vadd.f32 %v2134_v10, %v1986_v7  ;;  %v2071_v15 = vadd.f32 %v2039_v13, %v1650_v11 }
 0x246   : > { %2198 = vst.msk [vmem:[#allocation3 + $0x90] sm:$0xff] %vm1086_vm0, %v2166_v12  ;;  %v1898_v23 = vpop.f32.mrf.mxu2  ;;  %v2138_v12 = vld [vmem:[#allocation3 + $0xb0] sm:$0xff] }
 0x247   : > { %2103 = vst.msk [vmem:[#allocation2 + $0x98] sm:$0xff] %vm1086_vm0, %v2071_v15  ;;  %v2043_v15 = vld [vmem:[#allocation2 + $0xb8] sm:$0xff] }
 0x248   : > { %v1563_v28 = vpop.f32.mrf.mxu0 }
 0x249   : > { %v1987_v24 = vpop.f32.mrf.mxu3  ;;  %v1652_v29 = vpop.f32.mrf.mxu1 }
 0x24a   : > { %v1988_v27 = vadd.f32 %v1987_v24, %v1898_v23  ;;  %v1653_v33 = vadd.f32 %v1652_v29, %v1563_v28  ;;  %v7600_v23 = vld [vmem:[%s7893_s27 + $0x64] sm:$0xf]  ;;  %v6585_v24 = vld [vmem:[%s7893_s27 + $0x68] sm:$0xf0]  ;;  %v6396_v28 = vor.u32 %v7568_v19, %v6393_v20  ;;  %v7573_v20 = vld [vmem:[%s7888_s24 + $0x84] sm:$0xf0] }
 0x24b   : > { %2583 = vmatmul.bf16.gmra.mxu0 %v6376_v25  ;;  %2921 = vmatmul.bf16.gmra.mxu2 %v6568_v30 }
 0x24c   : > { %v2167_v34 = vadd.f32 %v2135_v32, %v1988_v27  ;;  %v2072_v36 = vadd.f32 %v2040_v35, %v1653_v33  ;;  %2672 = vmatmul.bf16.gmra.mxu1 %v6380_v26  ;;  %v6392_v27 = vor.u32 %v7569_v18, %v6391_v16  ;;  %v6584_v32 = vor.u32 %v7601_v22, %v6583_v21  ;;  %v6407_v18 = vld [vmem:[%s7888_s24 + $0x80] sm:$0xf]  ;;  %v7572_v21 = vld [vmem:[%s7888_s24 + $0x84] sm:$0xf]  ;;  %v6409_v22 = vld [vmem:[%s7888_s24 + $0x88] sm:$0xf0] }
 0x24d   : > { %v6588_v33 = vor.u32 %v7600_v23, %v6585_v24  ;;  %v6599_v23 = vld [vmem:[%s7893_s27 + $0x80] sm:$0xf]  ;;  %v7605_v24 = vld [vmem:[%s7893_s27 + $0x84] sm:$0xf0] }
 0x24e   : > { %2199 = vst.msk [vmem:[#allocation3 + $0x98] sm:$0xff] %vm1086_vm0, %v2167_v34  ;;  %3010 = vmatmul.bf16.gmra.mxu3 %v6572_v31  ;;  %v1901_v39 = vpop.f32.mrf.mxu2  ;;  %v2139_v34 = vld [vmem:[#allocation3 + $0xb8] sm:$0xff] }
 0x24f   : > { %2104 = vst.msk [vmem:[#allocation2 + $0xa0] sm:$0xff] %vm1086_vm0, %v2072_v36 }
 0x250   : > { %v1565_v42 = vpop.f32.mrf.mxu0 }
 0x251   : > { %v1990_v40 = vpop.f32.mrf.mxu3  ;;  %v1654_v43 = vpop.f32.mrf.mxu1 }
 0x252   : > { %v1991_v41 = vadd.f32 %v1990_v40, %v1901_v39  ;;  %v1655_v45 = vadd.f32 %v1654_v43, %v1565_v42  ;;  %v7628_v39 = vld [vmem:[%s9122_s2 + $0x1a0] sm:$0xff] }
 0x253   : > { %v7636_v40 = vld [vmem:[%s9122_s2 + $0x1e0] sm:$0xff]  ;;  %3967 = vmatpush.bf16.msrb.mxu2 %v7628_v39  ;;  %3629 = vmatpush.bf16.msrb.mxu0 %v7628_v39 }
 0x254   : > { %v2168_v46 = vadd.f32 %v2136_v44, %v1991_v41  ;;  %v2073_v49 = vadd.f32 %v2041_v47, %v1655_v45  ;;  %4056 = vmatpush.bf16.msrb.mxu3 %v7636_v40  ;;  %3718 = vmatpush.bf16.msrb.mxu1 %v7636_v40  ;;  %v2048_v39 = vld [vmem:[#allocation2 + $0xe0] sm:$0xff] }
 0x256   : > { %2200 = vst.msk [vmem:[#allocation3 + $0xa0] sm:$0xff] %vm1086_vm0, %v2168_v46  ;;  %v1903_v57 = vpop.f32.mrf.mxu2  ;;  %v2140_v46 = vld [vmem:[#allocation3 + $0xc0] sm:$0xff] }
 0x257   : > { %2105 = vst.msk [vmem:[#allocation2 + $0xa8] sm:$0xff] %vm1086_vm0, %v2073_v49  ;;  %v2045_v49 = vld [vmem:[#allocation2 + $0xc8] sm:$0xff] }
 0x258   : > { %v1568_v62 = vpop.f32.mrf.mxu0 }
 0x259   : > { %v1992_v58 = vpop.f32.mrf.mxu3  ;;  %v1657_v63 = vpop.f32.mrf.mxu1 }
 0x25a   : > { %v1993_v61 = vadd.f32 %v1992_v58, %v1903_v57  ;;  %v1658_v3 = vadd.f32 %v1657_v63, %v1568_v62  ;;  %v7602_v57 = vld [vmem:[%s7893_s27 + $0x74] sm:$0xf]  ;;  %v6593_v58 = vld [vmem:[%s7893_s27 + $0x78] sm:$0xf0]  ;;  %v6404_v62 = vor.u32 %v7570_v53, %v6401_v54  ;;  %v7575_v54 = vld [vmem:[%s7888_s24 + $0x94] sm:$0xf0] }
 0x25b   : > { %2588 = vmatmul.bf16.gmra.mxu0 %v6384_v59  ;;  %2926 = vmatmul.bf16.gmra.mxu2 %v6576_v0 }
 0x25c   : > { %v2169_v4 = vadd.f32 %v2137_v2, %v1993_v61  ;;  %v2074_v6 = vadd.f32 %v2042_v5, %v1658_v3  ;;  %2677 = vmatmul.bf16.gmra.mxu1 %v6388_v60  ;;  %v6400_v61 = vor.u32 %v7571_v52, %v6399_v50  ;;  %v6592_v2 = vor.u32 %v7603_v56, %v6591_v55  ;;  %v6415_v52 = vld [vmem:[%s7888_s24 + $0x90] sm:$0xf]  ;;  %v7574_v55 = vld [vmem:[%s7888_s24 + $0x94] sm:$0xf]  ;;  %v6417_v56 = vld [vmem:[%s7888_s24 + $0x98] sm:$0xf0] }
 0x25d   : > { %v6596_v3 = vor.u32 %v7602_v57, %v6593_v58  ;;  %v6607_v57 = vld [vmem:[%s7893_s27 + $0x90] sm:$0xf]  ;;  %v7607_v58 = vld [vmem:[%s7893_s27 + $0x94] sm:$0xf0] }
 0x25e   : > { %2201 = vst.msk [vmem:[#allocation3 + $0xa8] sm:$0xff] %vm1086_vm0, %v2169_v4  ;;  %3015 = vmatmul.bf16.gmra.mxu3 %v6580_v1  ;;  %v1906_v7 = vpop.f32.mrf.mxu2  ;;  %v2141_v4 = vld [vmem:[#allocation3 + $0xc8] sm:$0xff] }
 0x25f   : > { %2106 = vst.msk [vmem:[#allocation2 + $0xb0] sm:$0xff] %vm1086_vm0, %v2074_v6 }
 0x260   : > { %v1570_v10 = vpop.f32.mrf.mxu0 }
 0x261   : > { %v1995_v8 = vpop.f32.mrf.mxu3  ;;  %v1659_v11 = vpop.f32.mrf.mxu1 }
 0x262   : > { %v1996_v9 = vadd.f32 %v1995_v8, %v1906_v7  ;;  %v1660_v13 = vadd.f32 %v1659_v11, %v1570_v10  ;;  %v2046_v7 = vld [vmem:[#allocation2 + $0xd0] sm:$0xff] }
 0x264   : > { %v2170_v14 = vadd.f32 %v2138_v12, %v1996_v9  ;;  %v2075_v17 = vadd.f32 %v2043_v15, %v1660_v13 }
 0x266   : > { %2202 = vst.msk [vmem:[#allocation3 + $0xb0] sm:$0xff] %vm1086_vm0, %v2170_v14  ;;  %v1908_v25 = vpop.f32.mrf.mxu2  ;;  %v2142_v14 = vld [vmem:[#allocation3 + $0xd0] sm:$0xff] }
 0x267   : > { %2107 = vst.msk [vmem:[#allocation2 + $0xb8] sm:$0xff] %vm1086_vm0, %v2075_v17  ;;  %v2047_v17 = vld [vmem:[#allocation2 + $0xd8] sm:$0xff] }
 0x268   : > { %v1573_v30 = vpop.f32.mrf.mxu0 }
 0x269   : > { %v1997_v26 = vpop.f32.mrf.mxu3  ;;  %v1662_v31 = vpop.f32.mrf.mxu1 }
 0x26a   : > { %v1998_v29 = vadd.f32 %v1997_v26, %v1908_v25  ;;  %v1663_v35 = vadd.f32 %v1662_v31, %v1573_v30  ;;  %v7604_v25 = vld [vmem:[%s7893_s27 + $0x84] sm:$0xf]  ;;  %v6601_v26 = vld [vmem:[%s7893_s27 + $0x88] sm:$0xf0]  ;;  %v6412_v30 = vor.u32 %v7572_v21, %v6409_v22  ;;  %v7577_v22 = vld [vmem:[%s7888_s24 + $0xa4] sm:$0xf0] }
 0x26b   : > { %2593 = vmatmul.bf16.gmra.mxu0 %v6392_v27  ;;  %2931 = vmatmul.bf16.gmra.mxu2 %v6584_v32 }
 0x26c   : > { %v2171_v36 = vadd.f32 %v2139_v34, %v1998_v29  ;;  %v2076_v38 = vadd.f32 %v2044_v37, %v1663_v35  ;;  %2682 = vmatmul.bf16.gmra.mxu1 %v6396_v28  ;;  %v6408_v29 = vor.u32 %v7573_v20, %v6407_v18  ;;  %v6600_v34 = vor.u32 %v7605_v24, %v6599_v23  ;;  %v6423_v20 = vld [vmem:[%s7888_s24 + $0xa0] sm:$0xf]  ;;  %v7576_v23 = vld [vmem:[%s7888_s24 + $0xa4] sm:$0xf]  ;;  %v6425_v24 = vld [vmem:[%s7888_s24 + $0xa8] sm:$0xf0] }
 0x26d   : > { %v6604_v35 = vor.u32 %v7604_v25, %v6601_v26  ;;  %v6615_v25 = vld [vmem:[%s7893_s27 + $0xa0] sm:$0xf]  ;;  %v7609_v26 = vld [vmem:[%s7893_s27 + $0xa4] sm:$0xf0] }
 0x26e   : > { %2203 = vst.msk [vmem:[#allocation3 + $0xb8] sm:$0xff] %vm1086_vm0, %v2171_v36  ;;  %3020 = vmatmul.bf16.gmra.mxu3 %v6588_v33  ;;  %v1911_v41 = vpop.f32.mrf.mxu2  ;;  %v2143_v36 = vld [vmem:[#allocation3 + $0xd8] sm:$0xff] }
 0x26f   : > { %2108 = vst.msk [vmem:[#allocation2 + $0xc0] sm:$0xff] %vm1086_vm0, %v2076_v38 }
 0x270   : > { %v1575_v44 = vpop.f32.mrf.mxu0 }
 0x271   : > { %v2000_v42 = vpop.f32.mrf.mxu3  ;;  %v1664_v45 = vpop.f32.mrf.mxu1 }
 0x272   : > { %v2001_v43 = vadd.f32 %v2000_v42, %v1911_v41  ;;  %v1665_v47 = vadd.f32 %v1664_v45, %v1575_v44  ;;  %v7627_v41 = vld [vmem:[%s9122_s2 + $0x198] sm:$0xff] }
 0x273   : > { %v7635_v42 = vld [vmem:[%s9122_s2 + $0x1d8] sm:$0xff]  ;;  %3968 = vmatpush.bf16.msrb.mxu2 %v7627_v41  ;;  %3630 = vmatpush.bf16.msrb.mxu0 %v7627_v41  ;;  %v3081_v41 = vld [vmem:[#allocation2] sm:$0xff] }
 0x274   : > { %v2172_v48 = vadd.f32 %v2140_v46, %v2001_v43  ;;  %v2077_v51 = vadd.f32 %v2045_v49, %v1665_v47  ;;  %4057 = vmatpush.bf16.msrb.mxu3 %v7635_v42  ;;  %3719 = vmatpush.bf16.msrb.mxu1 %v7635_v42 }
 0x276   : > { %2204 = vst.msk [vmem:[#allocation3 + $0xc0] sm:$0xff] %vm1086_vm0, %v2172_v48  ;;  %v1913_v59 = vpop.f32.mrf.mxu2  ;;  %v2144_v48 = vld [vmem:[#allocation3 + $0xe0] sm:$0xff] }
 0x277   : > { %2109 = vst.msk [vmem:[#allocation2 + $0xc8] sm:$0xff] %vm1086_vm0, %v2077_v51  ;;  %v2049_v51 = vld [vmem:[#allocation2 + $0xe8] sm:$0xff] }
 0x278   : > { %v1578_v0 = vpop.f32.mrf.mxu0 }
 0x279   : > { %v2002_v60 = vpop.f32.mrf.mxu3  ;;  %v1667_v1 = vpop.f32.mrf.mxu1 }
 0x27a   : > { %v2003_v63 = vadd.f32 %v2002_v60, %v1913_v59  ;;  %v1668_v5 = vadd.f32 %v1667_v1, %v1578_v0  ;;  %v7606_v59 = vld [vmem:[%s7893_s27 + $0x94] sm:$0xf]  ;;  %v6609_v60 = vld [vmem:[%s7893_s27 + $0x98] sm:$0xf0]  ;;  %v6420_v0 = vor.u32 %v7574_v55, %v6417_v56  ;;  %v7579_v56 = vld [vmem:[%s7888_s24 + $0xb4] sm:$0xf0] }
 0x27b   : > { %2598 = vmatmul.bf16.gmra.mxu0 %v6400_v61  ;;  %2936 = vmatmul.bf16.gmra.mxu2 %v6592_v2 }
 0x27c   : > { %v2173_v6 = vadd.f32 %v2141_v4, %v2003_v63  ;;  %v2078_v8 = vadd.f32 %v2046_v7, %v1668_v5  ;;  %2687 = vmatmul.bf16.gmra.mxu1 %v6404_v62  ;;  %v6416_v63 = vor.u32 %v7575_v54, %v6415_v52  ;;  %v6608_v4 = vor.u32 %v7607_v58, %v6607_v57  ;;  %v6431_v54 = vld [vmem:[%s7888_s24 + $0xb0] sm:$0xf]  ;;  %v7578_v57 = vld [vmem:[%s7888_s24 + $0xb4] sm:$0xf]  ;;  %v6433_v58 = vld [vmem:[%s7888_s24 + $0xb8] sm:$0xf0] }
 0x27d   : > { %v6612_v5 = vor.u32 %v7606_v59, %v6609_v60  ;;  %v6623_v59 = vld [vmem:[%s7893_s27 + $0xb0] sm:$0xf]  ;;  %v7611_v60 = vld [vmem:[%s7893_s27 + $0xb4] sm:$0xf0] }
 0x27e   : > { %2205 = vst.msk [vmem:[#allocation3 + $0xc8] sm:$0xff] %vm1086_vm0, %v2173_v6  ;;  %3025 = vmatmul.bf16.gmra.mxu3 %v6596_v3  ;;  %v1916_v9 = vpop.f32.mrf.mxu2  ;;  %v2145_v6 = vld [vmem:[#allocation3 + $0xe8] sm:$0xff] }
 0x27f   : > { %2110 = vst.msk [vmem:[#allocation2 + $0xd0] sm:$0xff] %vm1086_vm0, %v2078_v8 }
 0x280   : > { %v1580_v12 = vpop.f32.mrf.mxu0 }
 0x281   : > { %v2005_v10 = vpop.f32.mrf.mxu3  ;;  %v1669_v13 = vpop.f32.mrf.mxu1 }
 0x282   : > { %v2006_v11 = vadd.f32 %v2005_v10, %v1916_v9  ;;  %v1670_v15 = vadd.f32 %v1669_v13, %v1580_v12  ;;  %v2050_v9 = vld [vmem:[#allocation2 + $0xf0] sm:$0xff] }
 0x284   : > { %v2174_v16 = vadd.f32 %v2142_v14, %v2006_v11  ;;  %v2079_v19 = vadd.f32 %v2047_v17, %v1670_v15 }
 0x286   : > { %2206 = vst.msk [vmem:[#allocation3 + $0xd0] sm:$0xff] %vm1086_vm0, %v2174_v16  ;;  %v1918_v27 = vpop.f32.mrf.mxu2  ;;  %v2146_v16 = vld [vmem:[#allocation3 + $0xf0] sm:$0xff] }
 0x287   : > { %2111 = vst.msk [vmem:[#allocation2 + $0xd8] sm:$0xff] %vm1086_vm0, %v2079_v19  ;;  %v2051_v19 = vld [vmem:[#allocation2 + $0xf8] sm:$0xff] }
 0x288   : > { %v1583_v32 = vpop.f32.mrf.mxu0 }
 0x289   : > { %v2007_v28 = vpop.f32.mrf.mxu3  ;;  %v1672_v33 = vpop.f32.mrf.mxu1 }
 0x28a   : > { %v2008_v31 = vadd.f32 %v2007_v28, %v1918_v27  ;;  %v1673_v37 = vadd.f32 %v1672_v33, %v1583_v32  ;;  %v7608_v27 = vld [vmem:[%s7893_s27 + $0xa4] sm:$0xf]  ;;  %v6617_v28 = vld [vmem:[%s7893_s27 + $0xa8] sm:$0xf0]  ;;  %v6428_v32 = vor.u32 %v7576_v23, %v6425_v24  ;;  %v7581_v24 = vld [vmem:[%s7888_s24 + $0xc4] sm:$0xf0] }
 0x28b   : > { %2603 = vmatmul.bf16.gmra.mxu0 %v6408_v29  ;;  %2941 = vmatmul.bf16.gmra.mxu2 %v6600_v34 }
 0x28c   : > { %v2175_v38 = vadd.f32 %v2143_v36, %v2008_v31  ;;  %v2080_v40 = vadd.f32 %v2048_v39, %v1673_v37  ;;  %2692 = vmatmul.bf16.gmra.mxu1 %v6412_v30  ;;  %v6424_v31 = vor.u32 %v7577_v22, %v6423_v20  ;;  %v6616_v36 = vor.u32 %v7609_v26, %v6615_v25  ;;  %v6439_v22 = vld [vmem:[%s7888_s24 + $0xc0] sm:$0xf]  ;;  %v7580_v25 = vld [vmem:[%s7888_s24 + $0xc4] sm:$0xf]  ;;  %v6441_v26 = vld [vmem:[%s7888_s24 + $0xc8] sm:$0xf0] }
 0x28d   : > { %v6620_v37 = vor.u32 %v7608_v27, %v6617_v28  ;;  %v6631_v27 = vld [vmem:[%s7893_s27 + $0xc0] sm:$0xf]  ;;  %v7613_v28 = vld [vmem:[%s7893_s27 + $0xc4] sm:$0xf0] }
 0x28e   : > { %2207 = vst.msk [vmem:[#allocation3 + $0xd8] sm:$0xff] %vm1086_vm0, %v2175_v38  ;;  %3030 = vmatmul.bf16.gmra.mxu3 %v6604_v35  ;;  %v1921_v43 = vpop.f32.mrf.mxu2  ;;  %v2147_v38 = vld [vmem:[#allocation3 + $0xf8] sm:$0xff] }
 0x28f   : > { %2112 = vst.msk [vmem:[#allocation2 + $0xe0] sm:$0xff] %vm1086_vm0, %v2080_v40 }
 0x290   : > { %v1585_v46 = vpop.f32.mrf.mxu0 }
 0x291   : > { %v2010_v44 = vpop.f32.mrf.mxu3  ;;  %v1674_v47 = vpop.f32.mrf.mxu1 }
 0x292   : > { %v2011_v45 = vadd.f32 %v2010_v44, %v1921_v43  ;;  %v1675_v49 = vadd.f32 %v1674_v47, %v1585_v46  ;;  %v7626_v43 = vld [vmem:[%s9122_s2 + $0x190] sm:$0xff] }
 0x293   : > { %v7634_v44 = vld [vmem:[%s9122_s2 + $0x1d0] sm:$0xff]  ;;  %3969 = vmatpush.bf16.msrb.mxu2 %v7626_v43  ;;  %3631 = vmatpush.bf16.msrb.mxu0 %v7626_v43  ;;  %v3085_v43 = vld [vmem:[#allocation2 + $0x20] sm:$0xff] }
 0x294   : > { %v2176_v50 = vadd.f32 %v2144_v48, %v2011_v45  ;;  %v2081_v53 = vadd.f32 %v2049_v51, %v1675_v49  ;;  %4058 = vmatpush.bf16.msrb.mxu3 %v7634_v44  ;;  %3720 = vmatpush.bf16.msrb.mxu1 %v7634_v44 }
 0x296   : > { %2208 = vst.msk [vmem:[#allocation3 + $0xe0] sm:$0xff] %vm1086_vm0, %v2176_v50  ;;  %v1923_v61 = vpop.f32.mrf.mxu2  ;;  %v3177_v50 = vld [vmem:[#allocation3] sm:$0xff] }
 0x297   : > { %2113 = vst.msk [vmem:[#allocation2 + $0xe8] sm:$0xff] %vm1086_vm0, %v2081_v53  ;;  %v3082_v53 = vld [vmem:[#allocation2 + $0x8] sm:$0xff] }
 0x298   : > { %v1588_v2 = vpop.f32.mrf.mxu0 }
 0x299   : > { %v2012_v62 = vpop.f32.mrf.mxu3  ;;  %v1677_v3 = vpop.f32.mrf.mxu1 }
 0x29a   : > { %v2013_v1 = vadd.f32 %v2012_v62, %v1923_v61  ;;  %v1678_v7 = vadd.f32 %v1677_v3, %v1588_v2  ;;  %v7610_v61 = vld [vmem:[%s7893_s27 + $0xb4] sm:$0xf]  ;;  %v6625_v62 = vld [vmem:[%s7893_s27 + $0xb8] sm:$0xf0]  ;;  %v6436_v2 = vor.u32 %v7578_v57, %v6433_v58  ;;  %v7583_v58 = vld [vmem:[%s7888_s24 + $0xd4] sm:$0xf0] }
 0x29b   : > { %2608 = vmatmul.bf16.gmra.mxu0 %v6416_v63  ;;  %2946 = vmatmul.bf16.gmra.mxu2 %v6608_v4 }
 0x29c   : > { %v2177_v8 = vadd.f32 %v2145_v6, %v2013_v1  ;;  %v2082_v10 = vadd.f32 %v2050_v9, %v1678_v7  ;;  %2697 = vmatmul.bf16.gmra.mxu1 %v6420_v0  ;;  %v6432_v1 = vor.u32 %v7579_v56, %v6431_v54  ;;  %v6624_v6 = vor.u32 %v7611_v60, %v6623_v59  ;;  %v6447_v56 = vld [vmem:[%s7888_s24 + $0xd0] sm:$0xf]  ;;  %v7582_v59 = vld [vmem:[%s7888_s24 + $0xd4] sm:$0xf]  ;;  %v6449_v60 = vld [vmem:[%s7888_s24 + $0xd8] sm:$0xf0] }
 0x29d   : > { %v6628_v7 = vor.u32 %v7610_v61, %v6625_v62  ;;  %v6639_v61 = vld [vmem:[%s7893_s27 + $0xd0] sm:$0xf]  ;;  %v7615_v62 = vld [vmem:[%s7893_s27 + $0xd4] sm:$0xf0] }
 0x29e   : > { %2209 = vst.msk [vmem:[#allocation3 + $0xe8] sm:$0xff] %vm1086_vm0, %v2177_v8  ;;  %3035 = vmatmul.bf16.gmra.mxu3 %v6612_v5  ;;  %v1926_v11 = vpop.f32.mrf.mxu2  ;;  %v3178_v8 = vld [vmem:[#allocation3 + $0x8] sm:$0xff] }
 0x29f   : > { %2114 = vst.msk [vmem:[#allocation2 + $0xf0] sm:$0xff] %vm1086_vm0, %v2082_v10 }
 0x2a0   : > { %v1590_v14 = vpop.f32.mrf.mxu0 }
 0x2a1   : > { %v2015_v12 = vpop.f32.mrf.mxu3  ;;  %v1679_v15 = vpop.f32.mrf.mxu1 }
 0x2a2   : > { %v2016_v13 = vadd.f32 %v2015_v12, %v1926_v11  ;;  %v1680_v17 = vadd.f32 %v1679_v15, %v1590_v14  ;;  %v3083_v11 = vld [vmem:[#allocation2 + $0x10] sm:$0xff] }
 0x2a4   : > { %v2178_v18 = vadd.f32 %v2146_v16, %v2016_v13  ;;  %v2083_v21 = vadd.f32 %v2051_v19, %v1680_v17 }
 0x2a6   : > { %2210 = vst.msk [vmem:[#allocation3 + $0xf0] sm:$0xff] %vm1086_vm0, %v2178_v18  ;;  %v1928_v29 = vpop.f32.mrf.mxu2  ;;  %v3179_v18 = vld [vmem:[#allocation3 + $0x10] sm:$0xff] }
 0x2a7   : > { %2115 = vst.msk [vmem:[#allocation2 + $0xf8] sm:$0xff] %vm1086_vm0, %v2083_v21  ;;  %v3084_v21 = vld [vmem:[#allocation2 + $0x18] sm:$0xff] }
 0x2a8   : > { %v2574_v34 = vpop.f32.mrf.mxu0 }
 0x2a9   : > { %v2017_v30 = vpop.f32.mrf.mxu3  ;;  %v2663_v35 = vpop.f32.mrf.mxu1 }
 0x2aa   : > { %v2018_v33 = vadd.f32 %v2017_v30, %v1928_v29  ;;  %v2664_v39 = vadd.f32 %v2663_v35, %v2574_v34  ;;  %v7612_v29 = vld [vmem:[%s7893_s27 + $0xc4] sm:$0xf]  ;;  %v6633_v30 = vld [vmem:[%s7893_s27 + $0xc8] sm:$0xf0]  ;;  %v6444_v34 = vor.u32 %v7580_v25, %v6441_v26  ;;  %v7585_v26 = vld [vmem:[%s7888_s24 + $0xe4] sm:$0xf0] }
 0x2ab   : > { %2613 = vmatmul.bf16.gmra.mxu0 %v6424_v31  ;;  %2951 = vmatmul.bf16.gmra.mxu2 %v6616_v36 }
 0x2ac   : > { %v2179_v40 = vadd.f32 %v2147_v38, %v2018_v33  ;;  %v3113_v42 = vadd.f32 %v3081_v41, %v2664_v39  ;;  %2702 = vmatmul.bf16.gmra.mxu1 %v6428_v32  ;;  %v6440_v33 = vor.u32 %v7581_v24, %v6439_v22  ;;  %v6632_v38 = vor.u32 %v7613_v28, %v6631_v27  ;;  %v6455_v24 = vld [vmem:[%s7888_s24 + $0xe0] sm:$0xf]  ;;  %v7584_v27 = vld [vmem:[%s7888_s24 + $0xe4] sm:$0xf]  ;;  %v6457_v28 = vld [vmem:[%s7888_s24 + $0xe8] sm:$0xf0] }
 0x2ad   : > { %v6636_v39 = vor.u32 %v7612_v29, %v6633_v30  ;;  %v6647_v29 = vld [vmem:[%s7893_s27 + $0xe0] sm:$0xf]  ;;  %v7617_v30 = vld [vmem:[%s7893_s27 + $0xe4] sm:$0xf0] }
 0x2ae   : > { %2211 = vst.msk [vmem:[#allocation3 + $0xf8] sm:$0xff] %vm1086_vm0, %v2179_v40  ;;  %3040 = vmatmul.bf16.gmra.mxu3 %v6620_v37  ;;  %v2912_v45 = vpop.f32.mrf.mxu2  ;;  %v3180_v40 = vld [vmem:[#allocation3 + $0x18] sm:$0xff] }
 0x2af   : > { %3145 = vst.msk [vmem:[#allocation2] sm:$0xff] %vm1086_vm0, %v3113_v42 }
 0x2b0   : > { %v2576_v48 = vpop.f32.mrf.mxu0 }
 0x2b1   : > { %v3001_v46 = vpop.f32.mrf.mxu3  ;;  %v2665_v49 = vpop.f32.mrf.mxu1 }
 0x2b2   : > { %v3002_v47 = vadd.f32 %v3001_v46, %v2912_v45  ;;  %v2666_v51 = vadd.f32 %v2665_v49, %v2576_v48  ;;  %v7625_v45 = vld [vmem:[%s9122_s2 + $0x188] sm:$0xff] }
 0x2b3   : > { %v7633_v46 = vld [vmem:[%s9122_s2 + $0x1c8] sm:$0xff]  ;;  %3970 = vmatpush.bf16.msrb.mxu2 %v7625_v45  ;;  %3632 = vmatpush.bf16.msrb.mxu0 %v7625_v45  ;;  %v3089_v45 = vld [vmem:[#allocation2 + $0x40] sm:$0xff] }
 0x2b4   : > { %v3209_v52 = vadd.f32 %v3177_v50, %v3002_v47  ;;  %v3114_v55 = vadd.f32 %v3082_v53, %v2666_v51  ;;  %4059 = vmatpush.bf16.msrb.mxu3 %v7633_v46  ;;  %3721 = vmatpush.bf16.msrb.mxu1 %v7633_v46 }
 0x2b6   : > { %3241 = vst.msk [vmem:[#allocation3] sm:$0xff] %vm1086_vm0, %v3209_v52  ;;  %v2914_v63 = vpop.f32.mrf.mxu2  ;;  %v3181_v52 = vld [vmem:[#allocation3 + $0x20] sm:$0xff] }
 0x2b7   : > { %3146 = vst.msk [vmem:[#allocation2 + $0x8] sm:$0xff] %vm1086_vm0, %v3114_v55  ;;  %v3086_v55 = vld [vmem:[#allocation2 + $0x28] sm:$0xff] }
 0x2b8   : > { %v2579_v4 = vpop.f32.mrf.mxu0 }
 0x2b9   : > { %v3003_v0 = vpop.f32.mrf.mxu3  ;;  %v2668_v5 = vpop.f32.mrf.mxu1 }
 0x2ba   : > { %v3004_v3 = vadd.f32 %v3003_v0, %v2914_v63  ;;  %v2669_v9 = vadd.f32 %v2668_v5, %v2579_v4  ;;  %v7614_v63 = vld [vmem:[%s7893_s27 + $0xd4] sm:$0xf]  ;;  %v6641_v0 = vld [vmem:[%s7893_s27 + $0xd8] sm:$0xf0]  ;;  %v6452_v4 = vor.u32 %v7582_v59, %v6449_v60  ;;  %v7587_v60 = vld [vmem:[%s7888_s24 + $0xf4] sm:$0xf0] }
 0x2bb   : > { %2618 = vmatmul.bf16.gmra.mxu0 %v6432_v1  ;;  %2956 = vmatmul.bf16.gmra.mxu2 %v6624_v6 }
 0x2bc   : > { %v3210_v10 = vadd.f32 %v3178_v8, %v3004_v3  ;;  %v3115_v12 = vadd.f32 %v3083_v11, %v2669_v9  ;;  %2707 = vmatmul.bf16.gmra.mxu1 %v6436_v2  ;;  %v6448_v3 = vor.u32 %v7583_v58, %v6447_v56  ;;  %v6640_v8 = vor.u32 %v7615_v62, %v6639_v61  ;;  %v6463_v58 = vld [vmem:[%s7888_s24 + $0xf0] sm:$0xf]  ;;  %v7586_v61 = vld [vmem:[%s7888_s24 + $0xf4] sm:$0xf]  ;;  %v6465_v62 = vld [vmem:[%s7888_s24 + $0xf8] sm:$0xf0] }
 0x2bd   : > { %v6644_v9 = vor.u32 %v7614_v63, %v6641_v0  ;;  %v6655_v63 = vld [vmem:[%s7893_s27 + $0xf0] sm:$0xf]  ;;  %v7619_v0 = vld [vmem:[%s7893_s27 + $0xf4] sm:$0xf0] }
 0x2be   : > { %3242 = vst.msk [vmem:[#allocation3 + $0x8] sm:$0xff] %vm1086_vm0, %v3210_v10  ;;  %3045 = vmatmul.bf16.gmra.mxu3 %v6628_v7  ;;  %v2917_v13 = vpop.f32.mrf.mxu2  ;;  %v3182_v10 = vld [vmem:[#allocation3 + $0x28] sm:$0xff] }
 0x2bf   : > { %3147 = vst.msk [vmem:[#allocation2 + $0x10] sm:$0xff] %vm1086_vm0, %v3115_v12 }
 0x2c0   : > { %v2581_v16 = vpop.f32.mrf.mxu0 }
 0x2c1   : > { %v3006_v14 = vpop.f32.mrf.mxu3  ;;  %v2670_v17 = vpop.f32.mrf.mxu1 }
 0x2c2   : > { %v3007_v15 = vadd.f32 %v3006_v14, %v2917_v13  ;;  %v2671_v19 = vadd.f32 %v2670_v17, %v2581_v16  ;;  %v3087_v13 = vld [vmem:[#allocation2 + $0x30] sm:$0xff] }
 0x2c4   : > { %v3211_v20 = vadd.f32 %v3179_v18, %v3007_v15  ;;  %v3116_v23 = vadd.f32 %v3084_v21, %v2671_v19 }
 0x2c6   : > { %3243 = vst.msk [vmem:[#allocation3 + $0x10] sm:$0xff] %vm1086_vm0, %v3211_v20  ;;  %v2919_v31 = vpop.f32.mrf.mxu2  ;;  %v3183_v20 = vld [vmem:[#allocation3 + $0x30] sm:$0xff] }
 0x2c7   : > { %3148 = vst.msk [vmem:[#allocation2 + $0x18] sm:$0xff] %vm1086_vm0, %v3116_v23  ;;  %v3088_v23 = vld [vmem:[#allocation2 + $0x38] sm:$0xff] }
 0x2c8   : > { %v2584_v36 = vpop.f32.mrf.mxu0 }
 0x2c9   : > { %v3008_v32 = vpop.f32.mrf.mxu3  ;;  %v2673_v37 = vpop.f32.mrf.mxu1 }
 0x2ca   : > { %v3009_v35 = vadd.f32 %v3008_v32, %v2919_v31  ;;  %v2674_v41 = vadd.f32 %v2673_v37, %v2584_v36  ;;  %v7616_v31 = vld [vmem:[%s7893_s27 + $0xe4] sm:$0xf]  ;;  %v6649_v32 = vld [vmem:[%s7893_s27 + $0xe8] sm:$0xf0]  ;;  %v6460_v36 = vor.u32 %v7584_v27, %v6457_v28  ;;  %v7589_v28 = vld [vmem:[%s7888_s24 + $0x104] sm:$0xf0] }
 0x2cb   : > { %2623 = vmatmul.bf16.gmra.mxu0 %v6440_v33  ;;  %2961 = vmatmul.bf16.gmra.mxu2 %v6632_v38 }
 0x2cc   : > { %v3212_v42 = vadd.f32 %v3180_v40, %v3009_v35  ;;  %v3117_v44 = vadd.f32 %v3085_v43, %v2674_v41  ;;  %2712 = vmatmul.bf16.gmra.mxu1 %v6444_v34  ;;  %v6456_v35 = vor.u32 %v7585_v26, %v6455_v24  ;;  %v6648_v40 = vor.u32 %v7617_v30, %v6647_v29  ;;  %v6471_v26 = vld [vmem:[%s7888_s24 + $0x100] sm:$0xf]  ;;  %v7588_v29 = vld [vmem:[%s7888_s24 + $0x104] sm:$0xf]  ;;  %v6473_v30 = vld [vmem:[%s7888_s24 + $0x108] sm:$0xf0] }
 0x2cd   : > { %v6652_v41 = vor.u32 %v7616_v31, %v6649_v32  ;;  %v6663_v31 = vld [vmem:[%s7893_s27 + $0x100] sm:$0xf]  ;;  %v7621_v32 = vld [vmem:[%s7893_s27 + $0x104] sm:$0xf0] }
 0x2ce   : > { %3244 = vst.msk [vmem:[#allocation3 + $0x18] sm:$0xff] %vm1086_vm0, %v3212_v42  ;;  %3050 = vmatmul.bf16.gmra.mxu3 %v6636_v39  ;;  %v2922_v47 = vpop.f32.mrf.mxu2  ;;  %v3184_v42 = vld [vmem:[#allocation3 + $0x38] sm:$0xff] }
 0x2cf   : > { %3149 = vst.msk [vmem:[#allocation2 + $0x20] sm:$0xff] %vm1086_vm0, %v3117_v44 }
 0x2d0   : > { %v2586_v50 = vpop.f32.mrf.mxu0 }
 0x2d1   : > { %v3011_v48 = vpop.f32.mrf.mxu3  ;;  %v2675_v51 = vpop.f32.mrf.mxu1 }
 0x2d2   : > { %v3012_v49 = vadd.f32 %v3011_v48, %v2922_v47  ;;  %v2676_v53 = vadd.f32 %v2675_v51, %v2586_v50  ;;  %v7624_v47 = vld [vmem:[%s9122_s2 + $0x180] sm:$0xff] }
 0x2d3   : > { %v7632_v48 = vld [vmem:[%s9122_s2 + $0x1c0] sm:$0xff]  ;;  %3971 = vmatpush.bf16.msrb.mxu2 %v7624_v47  ;;  %3633 = vmatpush.bf16.msrb.mxu0 %v7624_v47 }
 0x2d4   : > { %v3213_v54 = vadd.f32 %v3181_v52, %v3012_v49  ;;  %v3118_v57 = vadd.f32 %v3086_v55, %v2676_v53  ;;  %4060 = vmatpush.bf16.msrb.mxu3 %v7632_v48  ;;  %3722 = vmatpush.bf16.msrb.mxu1 %v7632_v48  ;;  %v3093_v47 = vld [vmem:[#allocation2 + $0x60] sm:$0xff] }
 0x2d6   : > { %3245 = vst.msk [vmem:[#allocation3 + $0x20] sm:$0xff] %vm1086_vm0, %v3213_v54  ;;  %v2924_v1 = vpop.f32.mrf.mxu2  ;;  %v3185_v54 = vld [vmem:[#allocation3 + $0x40] sm:$0xff] }
 0x2d7   : > { %3150 = vst.msk [vmem:[#allocation2 + $0x28] sm:$0xff] %vm1086_vm0, %v3118_v57  ;;  %v3090_v57 = vld [vmem:[#allocation2 + $0x48] sm:$0xff] }
 0x2d8   : > { %v2589_v6 = vpop.f32.mrf.mxu0 }
 0x2d9   : > { %v3013_v2 = vpop.f32.mrf.mxu3  ;;  %v2678_v7 = vpop.f32.mrf.mxu1 }
 0x2da   : > { %v3014_v5 = vadd.f32 %v3013_v2, %v2924_v1  ;;  %v2679_v11 = vadd.f32 %v2678_v7, %v2589_v6  ;;  %v7618_v1 = vld [vmem:[%s7893_s27 + $0xf4] sm:$0xf]  ;;  %v6657_v2 = vld [vmem:[%s7893_s27 + $0xf8] sm:$0xf0]  ;;  %v6468_v6 = vor.u32 %v7586_v61, %v6465_v62  ;;  %v7591_v62 = vld [vmem:[%s7888_s24 + $0x114] sm:$0xf0] }
 0x2db   : > { %2628 = vmatmul.bf16.gmra.mxu0 %v6448_v3  ;;  %2966 = vmatmul.bf16.gmra.mxu2 %v6640_v8 }
 0x2dc   : > { %v3214_v12 = vadd.f32 %v3182_v10, %v3014_v5  ;;  %v3119_v14 = vadd.f32 %v3087_v13, %v2679_v11  ;;  %2717 = vmatmul.bf16.gmra.mxu1 %v6452_v4  ;;  %v6464_v5 = vor.u32 %v7587_v60, %v6463_v58  ;;  %v6656_v10 = vor.u32 %v7619_v0, %v6655_v63  ;;  %v6479_v60 = vld [vmem:[%s7888_s24 + $0x110] sm:$0xf]  ;;  %v7590_v63 = vld [vmem:[%s7888_s24 + $0x114] sm:$0xf]  ;;  %v6481_v0 = vld [vmem:[%s7888_s24 + $0x118] sm:$0xf0] }
 0x2dd   : > { %v6660_v11 = vor.u32 %v7618_v1, %v6657_v2  ;;  %v6671_v1 = vld [vmem:[%s7893_s27 + $0x110] sm:$0xf]  ;;  %v7623_v2 = vld [vmem:[%s7893_s27 + $0x114] sm:$0xf0] }
 0x2de   : > { %3246 = vst.msk [vmem:[#allocation3 + $0x28] sm:$0xff] %vm1086_vm0, %v3214_v12  ;;  %3055 = vmatmul.bf16.gmra.mxu3 %v6644_v9  ;;  %v2927_v15 = vpop.f32.mrf.mxu2  ;;  %v3186_v12 = vld [vmem:[#allocation3 + $0x48] sm:$0xff] }
 0x2df   : > { %3151 = vst.msk [vmem:[#allocation2 + $0x30] sm:$0xff] %vm1086_vm0, %v3119_v14 }
 0x2e0   : > { %v2591_v18 = vpop.f32.mrf.mxu0 }
 0x2e1   : > { %v3016_v16 = vpop.f32.mrf.mxu3  ;;  %v2680_v19 = vpop.f32.mrf.mxu1 }
 0x2e2   : > { %v3017_v17 = vadd.f32 %v3016_v16, %v2927_v15  ;;  %v2681_v21 = vadd.f32 %v2680_v19, %v2591_v18  ;;  %v3091_v15 = vld [vmem:[#allocation2 + $0x50] sm:$0xff] }
 0x2e4   : > { %v3215_v22 = vadd.f32 %v3183_v20, %v3017_v17  ;;  %v3120_v25 = vadd.f32 %v3088_v23, %v2681_v21 }
 0x2e6   : > { %3247 = vst.msk [vmem:[#allocation3 + $0x30] sm:$0xff] %vm1086_vm0, %v3215_v22  ;;  %v2929_v33 = vpop.f32.mrf.mxu2  ;;  %v3187_v22 = vld [vmem:[#allocation3 + $0x50] sm:$0xff] }
 0x2e7   : > { %3152 = vst.msk [vmem:[#allocation2 + $0x38] sm:$0xff] %vm1086_vm0, %v3120_v25  ;;  %v3092_v25 = vld [vmem:[#allocation2 + $0x58] sm:$0xff] }
 0x2e8   : > { %v2594_v38 = vpop.f32.mrf.mxu0 }
 0x2e9   : > { %v3018_v34 = vpop.f32.mrf.mxu3  ;;  %v2683_v39 = vpop.f32.mrf.mxu1 }
 0x2ea   : > { %v3019_v37 = vadd.f32 %v3018_v34, %v2929_v33  ;;  %v2684_v43 = vadd.f32 %v2683_v39, %v2594_v38  ;;  %v7620_v33 = vld [vmem:[%s7893_s27 + $0x104] sm:$0xf]  ;;  %v6665_v34 = vld [vmem:[%s7893_s27 + $0x108] sm:$0xf0]  ;;  %v6476_v38 = vor.u32 %v7588_v29, %v6473_v30  ;;  %v7641_v30 = vld [vmem:[%s7888_s24 + $0x34] sm:$0xf0] }
 0x2eb   : > { %2633 = vmatmul.bf16.gmra.mxu0 %v6456_v35  ;;  %2971 = vmatmul.bf16.gmra.mxu2 %v6648_v40 }
 0x2ec   : > { %v3216_v44 = vadd.f32 %v3184_v42, %v3019_v37  ;;  %v3121_v46 = vadd.f32 %v3089_v45, %v2684_v43  ;;  %2722 = vmatmul.bf16.gmra.mxu1 %v6460_v36  ;;  %v6472_v37 = vor.u32 %v7589_v28, %v6471_v26  ;;  %v6664_v42 = vor.u32 %v7621_v32, %v6663_v31  ;;  %v6711_v28 = vld [vmem:[%s7888_s24 + $0x30] sm:$0xf]  ;;  %v7640_v31 = vld [vmem:[%s7888_s24 + $0x34] sm:$0xf]  ;;  %v6713_v32 = vld [vmem:[%s7888_s24 + $0x38] sm:$0xf0] }
 0x2ed   : > { %v6668_v43 = vor.u32 %v7620_v33, %v6665_v34  ;;  %v6903_v33 = vld [vmem:[%s7893_s27 + $0x30] sm:$0xf]  ;;  %v7673_v34 = vld [vmem:[%s7893_s27 + $0x34] sm:$0xf0] }
 0x2ee   : > { %3248 = vst.msk [vmem:[#allocation3 + $0x38] sm:$0xff] %vm1086_vm0, %v3216_v44  ;;  %3060 = vmatmul.bf16.gmra.mxu3 %v6652_v41  ;;  %v2932_v49 = vpop.f32.mrf.mxu2  ;;  %v3188_v44 = vld [vmem:[#allocation3 + $0x58] sm:$0xff] }
 0x2ef   : > { %3153 = vst.msk [vmem:[#allocation2 + $0x40] sm:$0xff] %vm1086_vm0, %v3121_v46 }
 0x2f0   : > { %v2596_v52 = vpop.f32.mrf.mxu0 }
 0x2f1   : > { %v3021_v50 = vpop.f32.mrf.mxu3  ;;  %v2685_v53 = vpop.f32.mrf.mxu1 }
 0x2f2   : > { %v3022_v51 = vadd.f32 %v3021_v50, %v2932_v49  ;;  %v2686_v55 = vadd.f32 %v2685_v53, %v2596_v52  ;;  %v7711_v49 = vld [vmem:[%s9122_s2 + $0x238] sm:$0xff] }
 0x2f3   : > { %v7719_v50 = vld [vmem:[%s9122_s2 + $0x278] sm:$0xff]  ;;  %5025 = vmatpush.bf16.msra.mxu2 %v7711_v49  ;;  %4687 = vmatpush.bf16.msra.mxu0 %v7711_v49  ;;  %v3097_v49 = vld [vmem:[#allocation2 + $0x80] sm:$0xff] }
 0x2f4   : > { %v3217_v56 = vadd.f32 %v3185_v54, %v3022_v51  ;;  %v3122_v59 = vadd.f32 %v3090_v57, %v2686_v55  ;;  %5114 = vmatpush.bf16.msra.mxu3 %v7719_v50  ;;  %4776 = vmatpush.bf16.msra.mxu1 %v7719_v50 }
 0x2f6   : > { %3249 = vst.msk [vmem:[#allocation3 + $0x40] sm:$0xff] %vm1086_vm0, %v3217_v56  ;;  %v2934_v3 = vpop.f32.mrf.mxu2  ;;  %v3189_v56 = vld [vmem:[#allocation3 + $0x60] sm:$0xff] }
 0x2f7   : > { %3154 = vst.msk [vmem:[#allocation2 + $0x48] sm:$0xff] %vm1086_vm0, %v3122_v59  ;;  %v3094_v59 = vld [vmem:[#allocation2 + $0x68] sm:$0xff] }
 0x2f8   : > { %v2599_v8 = vpop.f32.mrf.mxu0 }
 0x2f9   : > { %v3023_v4 = vpop.f32.mrf.mxu3  ;;  %v2688_v9 = vpop.f32.mrf.mxu1 }
 0x2fa   : > { %v3024_v7 = vadd.f32 %v3023_v4, %v2934_v3  ;;  %v2689_v13 = vadd.f32 %v2688_v9, %v2599_v8  ;;  %v7622_v3 = vld [vmem:[%s7893_s27 + $0x114] sm:$0xf]  ;;  %v6673_v4 = vld [vmem:[%s7893_s27 + $0x118] sm:$0xf0]  ;;  %v6484_v8 = vor.u32 %v7590_v63, %v6481_v0  ;;  %v7643_v0 = vld [vmem:[%s7888_s24 + $0x44] sm:$0xf0] }
 0x2fb   : > { %2638 = vmatmul.bf16.gmra.mxu0 %v6464_v5  ;;  %2976 = vmatmul.bf16.gmra.mxu2 %v6656_v10 }
 0x2fc   : > { %v3218_v14 = vadd.f32 %v3186_v12, %v3024_v7  ;;  %v3123_v16 = vadd.f32 %v3091_v15, %v2689_v13  ;;  %2727 = vmatmul.bf16.gmra.mxu1 %v6468_v6  ;;  %v6480_v7 = vor.u32 %v7591_v62, %v6479_v60  ;;  %v6672_v12 = vor.u32 %v7623_v2, %v6671_v1  ;;  %v6719_v62 = vld [vmem:[%s7888_s24 + $0x40] sm:$0xf]  ;;  %v7642_v1 = vld [vmem:[%s7888_s24 + $0x44] sm:$0xf]  ;;  %v6721_v2 = vld [vmem:[%s7888_s24 + $0x48] sm:$0xf0] }
 0x2fd   : > { %v6676_v13 = vor.u32 %v7622_v3, %v6673_v4  ;;  %v6911_v3 = vld [vmem:[%s7893_s27 + $0x40] sm:$0xf]  ;;  %v7675_v4 = vld [vmem:[%s7893_s27 + $0x44] sm:$0xf0] }
 0x2fe   : > { %3250 = vst.msk [vmem:[#allocation3 + $0x48] sm:$0xff] %vm1086_vm0, %v3218_v14  ;;  %3065 = vmatmul.bf16.gmra.mxu3 %v6660_v11  ;;  %v2937_v17 = vpop.f32.mrf.mxu2  ;;  %v3190_v14 = vld [vmem:[#allocation3 + $0x68] sm:$0xff] }
 0x2ff   : > { %3155 = vst.msk [vmem:[#allocation2 + $0x50] sm:$0xff] %vm1086_vm0, %v3123_v16 }
 0x300   : > { %v2601_v20 = vpop.f32.mrf.mxu0 }
 0x301   : > { %v3026_v18 = vpop.f32.mrf.mxu3  ;;  %v2690_v21 = vpop.f32.mrf.mxu1 }
 0x302   : > { %v3027_v19 = vadd.f32 %v3026_v18, %v2937_v17  ;;  %v2691_v23 = vadd.f32 %v2690_v21, %v2601_v20  ;;  %v3095_v17 = vld [vmem:[#allocation2 + $0x70] sm:$0xff] }
 0x304   : > { %v3219_v24 = vadd.f32 %v3187_v22, %v3027_v19  ;;  %v3124_v27 = vadd.f32 %v3092_v25, %v2691_v23 }
 0x306   : > { %3251 = vst.msk [vmem:[#allocation3 + $0x50] sm:$0xff] %vm1086_vm0, %v3219_v24  ;;  %v2939_v35 = vpop.f32.mrf.mxu2  ;;  %v3191_v24 = vld [vmem:[#allocation3 + $0x70] sm:$0xff] }
 0x307   : > { %3156 = vst.msk [vmem:[#allocation2 + $0x58] sm:$0xff] %vm1086_vm0, %v3124_v27  ;;  %v3096_v27 = vld [vmem:[#allocation2 + $0x78] sm:$0xff] }
 0x308   : > { %v2604_v40 = vpop.f32.mrf.mxu0 }
 0x309   : > { %v3028_v36 = vpop.f32.mrf.mxu3  ;;  %v2693_v41 = vpop.f32.mrf.mxu1 }
 0x30a   : > { %v3029_v39 = vadd.f32 %v3028_v36, %v2939_v35  ;;  %v2694_v45 = vadd.f32 %v2693_v41, %v2604_v40  ;;  %v7672_v35 = vld [vmem:[%s7893_s27 + $0x34] sm:$0xf]  ;;  %v6905_v36 = vld [vmem:[%s7893_s27 + $0x38] sm:$0xf0]  ;;  %v6716_v40 = vor.u32 %v7640_v31, %v6713_v32  ;;  %v7645_v32 = vld [vmem:[%s7888_s24 + $0x54] sm:$0xf0] }
 0x30b   : > { %2643 = vmatmul.bf16.gmra.mxu0 %v6472_v37  ;;  %2981 = vmatmul.bf16.gmra.mxu2 %v6664_v42 }
 0x30c   : > { %v3220_v46 = vadd.f32 %v3188_v44, %v3029_v39  ;;  %v3125_v48 = vadd.f32 %v3093_v47, %v2694_v45  ;;  %2732 = vmatmul.bf16.gmra.mxu1 %v6476_v38  ;;  %v6712_v39 = vor.u32 %v7641_v30, %v6711_v28  ;;  %v6904_v44 = vor.u32 %v7673_v34, %v6903_v33  ;;  %v6727_v30 = vld [vmem:[%s7888_s24 + $0x50] sm:$0xf]  ;;  %v7644_v33 = vld [vmem:[%s7888_s24 + $0x54] sm:$0xf]  ;;  %v6729_v34 = vld [vmem:[%s7888_s24 + $0x58] sm:$0xf0] }
 0x30d   : > { %v6908_v45 = vor.u32 %v7672_v35, %v6905_v36  ;;  %v6919_v35 = vld [vmem:[%s7893_s27 + $0x50] sm:$0xf]  ;;  %v7677_v36 = vld [vmem:[%s7893_s27 + $0x54] sm:$0xf0] }
 0x30e   : > { %3252 = vst.msk [vmem:[#allocation3 + $0x58] sm:$0xff] %vm1086_vm0, %v3220_v46  ;;  %3070 = vmatmul.bf16.gmra.mxu3 %v6668_v43  ;;  %v2942_v51 = vpop.f32.mrf.mxu2  ;;  %v3192_v46 = vld [vmem:[#allocation3 + $0x78] sm:$0xff] }
 0x30f   : > { %3157 = vst.msk [vmem:[#allocation2 + $0x60] sm:$0xff] %vm1086_vm0, %v3125_v48 }
 0x310   : > { %v2606_v54 = vpop.f32.mrf.mxu0 }
 0x311   : > { %v3031_v52 = vpop.f32.mrf.mxu3  ;;  %v2695_v55 = vpop.f32.mrf.mxu1 }
 0x312   : > { %v3032_v53 = vadd.f32 %v3031_v52, %v2942_v51  ;;  %v2696_v57 = vadd.f32 %v2695_v55, %v2606_v54  ;;  %v7710_v51 = vld [vmem:[%s9122_s2 + $0x230] sm:$0xff] }
 0x313   : > { %v7718_v52 = vld [vmem:[%s9122_s2 + $0x270] sm:$0xff]  ;;  %5026 = vmatpush.bf16.msra.mxu2 %v7710_v51  ;;  %4688 = vmatpush.bf16.msra.mxu0 %v7710_v51  ;;  %v3101_v51 = vld [vmem:[#allocation2 + $0xa0] sm:$0xff] }
 0x314   : > { %v3221_v58 = vadd.f32 %v3189_v56, %v3032_v53  ;;  %v3126_v61 = vadd.f32 %v3094_v59, %v2696_v57  ;;  %5115 = vmatpush.bf16.msra.mxu3 %v7718_v52  ;;  %4777 = vmatpush.bf16.msra.mxu1 %v7718_v52 }
 0x316   : > { %3253 = vst.msk [vmem:[#allocation3 + $0x60] sm:$0xff] %vm1086_vm0, %v3221_v58  ;;  %v2944_v5 = vpop.f32.mrf.mxu2  ;;  %v3193_v58 = vld [vmem:[#allocation3 + $0x80] sm:$0xff] }
 0x317   : > { %3158 = vst.msk [vmem:[#allocation2 + $0x68] sm:$0xff] %vm1086_vm0, %v3126_v61  ;;  %v3098_v61 = vld [vmem:[#allocation2 + $0x88] sm:$0xff] }
 0x318   : > { %v2609_v10 = vpop.f32.mrf.mxu0 }
 0x319   : > { %v3033_v6 = vpop.f32.mrf.mxu3  ;;  %v2698_v11 = vpop.f32.mrf.mxu1 }
 0x31a   : > { %v3034_v9 = vadd.f32 %v3033_v6, %v2944_v5  ;;  %v2699_v15 = vadd.f32 %v2698_v11, %v2609_v10  ;;  %v7674_v5 = vld [vmem:[%s7893_s27 + $0x44] sm:$0xf]  ;;  %v6913_v6 = vld [vmem:[%s7893_s27 + $0x48] sm:$0xf0]  ;;  %v6724_v10 = vor.u32 %v7642_v1, %v6721_v2  ;;  %v7647_v2 = vld [vmem:[%s7888_s24 + $0x64] sm:$0xf0] }
 0x31b   : > { %2648 = vmatmul.bf16.gmra.mxu0 %v6480_v7  ;;  %2986 = vmatmul.bf16.gmra.mxu2 %v6672_v12 }
 0x31c   : > { %v3222_v16 = vadd.f32 %v3190_v14, %v3034_v9  ;;  %v3127_v18 = vadd.f32 %v3095_v17, %v2699_v15  ;;  %2737 = vmatmul.bf16.gmra.mxu1 %v6484_v8  ;;  %v6720_v9 = vor.u32 %v7643_v0, %v6719_v62  ;;  %v6912_v14 = vor.u32 %v7675_v4, %v6911_v3  ;;  %v6735_v0 = vld [vmem:[%s7888_s24 + $0x60] sm:$0xf]  ;;  %v7646_v3 = vld [vmem:[%s7888_s24 + $0x64] sm:$0xf]  ;;  %v6737_v4 = vld [vmem:[%s7888_s24 + $0x68] sm:$0xf0] }
 0x31d   : > { %v6916_v15 = vor.u32 %v7674_v5, %v6913_v6  ;;  %v6927_v5 = vld [vmem:[%s7893_s27 + $0x60] sm:$0xf]  ;;  %v7679_v6 = vld [vmem:[%s7893_s27 + $0x64] sm:$0xf0] }
 0x31e   : > { %3254 = vst.msk [vmem:[#allocation3 + $0x68] sm:$0xff] %vm1086_vm0, %v3222_v16  ;;  %3075 = vmatmul.bf16.gmra.mxu3 %v6676_v13  ;;  %v2947_v19 = vpop.f32.mrf.mxu2  ;;  %v3194_v16 = vld [vmem:[#allocation3 + $0x88] sm:$0xff] }
 0x31f   : > { %3159 = vst.msk [vmem:[#allocation2 + $0x70] sm:$0xff] %vm1086_vm0, %v3127_v18 }
 0x320   : > { %v2611_v22 = vpop.f32.mrf.mxu0 }
 0x321   : > { %v3036_v20 = vpop.f32.mrf.mxu3  ;;  %v2700_v23 = vpop.f32.mrf.mxu1 }
 0x322   : > { %v3037_v21 = vadd.f32 %v3036_v20, %v2947_v19  ;;  %v2701_v25 = vadd.f32 %v2700_v23, %v2611_v22  ;;  %v3099_v19 = vld [vmem:[#allocation2 + $0x90] sm:$0xff] }
 0x324   : > { %v3223_v26 = vadd.f32 %v3191_v24, %v3037_v21  ;;  %v3128_v29 = vadd.f32 %v3096_v27, %v2701_v25 }
 0x326   : > { %3255 = vst.msk [vmem:[#allocation3 + $0x70] sm:$0xff] %vm1086_vm0, %v3223_v26  ;;  %v2949_v37 = vpop.f32.mrf.mxu2  ;;  %v3195_v26 = vld [vmem:[#allocation3 + $0x90] sm:$0xff] }
 0x327   : > { %3160 = vst.msk [vmem:[#allocation2 + $0x78] sm:$0xff] %vm1086_vm0, %v3128_v29  ;;  %v3100_v29 = vld [vmem:[#allocation2 + $0x98] sm:$0xff] }
 0x328   : > { %v2614_v42 = vpop.f32.mrf.mxu0 }
 0x329   : > { %v3038_v38 = vpop.f32.mrf.mxu3  ;;  %v2703_v43 = vpop.f32.mrf.mxu1 }
 0x32a   : > { %v3039_v41 = vadd.f32 %v3038_v38, %v2949_v37  ;;  %v2704_v47 = vadd.f32 %v2703_v43, %v2614_v42  ;;  %v7676_v37 = vld [vmem:[%s7893_s27 + $0x54] sm:$0xf]  ;;  %v6921_v38 = vld [vmem:[%s7893_s27 + $0x58] sm:$0xf0]  ;;  %v6732_v42 = vor.u32 %v7644_v33, %v6729_v34  ;;  %v7649_v34 = vld [vmem:[%s7888_s24 + $0x74] sm:$0xf0] }
 0x32b   : > { %3634 = vmatmul.bf16.vlgmr.msrb.gmra.mxu0 %v6712_v39  ;;  %3972 = vmatmul.bf16.vlgmr.msrb.gmra.mxu2 %v6904_v44 }
 0x32c   : > { %v3224_v48 = vadd.f32 %v3192_v46, %v3039_v41  ;;  %v3129_v50 = vadd.f32 %v3097_v49, %v2704_v47  ;;  %3723 = vmatmul.bf16.vlgmr.msrb.gmra.mxu1 %v6716_v40  ;;  %v6728_v41 = vor.u32 %v7645_v32, %v6727_v30  ;;  %v6920_v46 = vor.u32 %v7677_v36, %v6919_v35  ;;  %v6743_v32 = vld [vmem:[%s7888_s24 + $0x70] sm:$0xf]  ;;  %v7648_v35 = vld [vmem:[%s7888_s24 + $0x74] sm:$0xf]  ;;  %v6745_v36 = vld [vmem:[%s7888_s24 + $0x78] sm:$0xf0] }
 0x32d   : > { %v6924_v47 = vor.u32 %v7676_v37, %v6921_v38  ;;  %v6935_v37 = vld [vmem:[%s7893_s27 + $0x70] sm:$0xf]  ;;  %v7681_v38 = vld [vmem:[%s7893_s27 + $0x74] sm:$0xf0] }
 0x32e   : > { %3256 = vst.msk [vmem:[#allocation3 + $0x78] sm:$0xff] %vm1086_vm0, %v3224_v48  ;;  %4061 = vmatmul.bf16.vlgmr.msrb.gmra.mxu3 %v6908_v45  ;;  %v2952_v53 = vpop.f32.mrf.mxu2  ;;  %v3196_v48 = vld [vmem:[#allocation3 + $0x98] sm:$0xff] }
 0x32f   : > { %3161 = vst.msk [vmem:[#allocation2 + $0x80] sm:$0xff] %vm1086_vm0, %v3129_v50 }
 0x330   : > { %v2616_v56 = vpop.f32.mrf.mxu0 }
 0x331   : > { %v3041_v54 = vpop.f32.mrf.mxu3  ;;  %v2705_v57 = vpop.f32.mrf.mxu1 }
 0x332   : > { %v3042_v55 = vadd.f32 %v3041_v54, %v2952_v53  ;;  %v2706_v59 = vadd.f32 %v2705_v57, %v2616_v56  ;;  %v7709_v53 = vld [vmem:[%s9122_s2 + $0x228] sm:$0xff] }
 0x333   : > { %v7717_v54 = vld [vmem:[%s9122_s2 + $0x268] sm:$0xff]  ;;  %5027 = vmatpush.bf16.msra.mxu2 %v7709_v53  ;;  %4689 = vmatpush.bf16.msra.mxu0 %v7709_v53  ;;  %v3105_v53 = vld [vmem:[#allocation2 + $0xc0] sm:$0xff] }
 0x334   : > { %v3225_v60 = vadd.f32 %v3193_v58, %v3042_v55  ;;  %v3130_v63 = vadd.f32 %v3098_v61, %v2706_v59  ;;  %5116 = vmatpush.bf16.msra.mxu3 %v7717_v54  ;;  %4778 = vmatpush.bf16.msra.mxu1 %v7717_v54 }
 0x336   : > { %3257 = vst.msk [vmem:[#allocation3 + $0x80] sm:$0xff] %vm1086_vm0, %v3225_v60  ;;  %v2954_v7 = vpop.f32.mrf.mxu2  ;;  %v3197_v60 = vld [vmem:[#allocation3 + $0xa0] sm:$0xff] }
 0x337   : > { %3162 = vst.msk [vmem:[#allocation2 + $0x88] sm:$0xff] %vm1086_vm0, %v3130_v63  ;;  %v3102_v63 = vld [vmem:[#allocation2 + $0xa8] sm:$0xff] }
 0x338   : > { %v2619_v12 = vpop.f32.mrf.mxu0 }
 0x339   : > { %v3043_v8 = vpop.f32.mrf.mxu3  ;;  %v2708_v13 = vpop.f32.mrf.mxu1 }
 0x33a   : > { %v3044_v11 = vadd.f32 %v3043_v8, %v2954_v7  ;;  %v2709_v17 = vadd.f32 %v2708_v13, %v2619_v12  ;;  %v7678_v7 = vld [vmem:[%s7893_s27 + $0x64] sm:$0xf]  ;;  %v6929_v8 = vld [vmem:[%s7893_s27 + $0x68] sm:$0xf0]  ;;  %v6740_v12 = vor.u32 %v7646_v3, %v6737_v4  ;;  %v7651_v4 = vld [vmem:[%s7888_s24 + $0x84] sm:$0xf0] }
 0x33b   : > { %3639 = vmatmul.bf16.gmra.mxu0 %v6720_v9  ;;  %3977 = vmatmul.bf16.gmra.mxu2 %v6912_v14 }
 0x33c   : > { %v3226_v18 = vadd.f32 %v3194_v16, %v3044_v11  ;;  %v3131_v20 = vadd.f32 %v3099_v19, %v2709_v17  ;;  %3728 = vmatmul.bf16.gmra.mxu1 %v6724_v10  ;;  %v6736_v11 = vor.u32 %v7647_v2, %v6735_v0  ;;  %v6928_v16 = vor.u32 %v7679_v6, %v6927_v5  ;;  %v6751_v2 = vld [vmem:[%s7888_s24 + $0x80] sm:$0xf]  ;;  %v7650_v5 = vld [vmem:[%s7888_s24 + $0x84] sm:$0xf]  ;;  %v6753_v6 = vld [vmem:[%s7888_s24 + $0x88] sm:$0xf0] }
 0x33d   : > { %v6932_v17 = vor.u32 %v7678_v7, %v6929_v8  ;;  %v6943_v7 = vld [vmem:[%s7893_s27 + $0x80] sm:$0xf]  ;;  %v7683_v8 = vld [vmem:[%s7893_s27 + $0x84] sm:$0xf0] }
 0x33e   : > { %3258 = vst.msk [vmem:[#allocation3 + $0x88] sm:$0xff] %vm1086_vm0, %v3226_v18  ;;  %4066 = vmatmul.bf16.gmra.mxu3 %v6916_v15  ;;  %v2957_v21 = vpop.f32.mrf.mxu2  ;;  %v3198_v18 = vld [vmem:[#allocation3 + $0xa8] sm:$0xff] }
 0x33f   : > { %3163 = vst.msk [vmem:[#allocation2 + $0x90] sm:$0xff] %vm1086_vm0, %v3131_v20 }
 0x340   : > { %v2621_v24 = vpop.f32.mrf.mxu0 }
 0x341   : > { %v3046_v22 = vpop.f32.mrf.mxu3  ;;  %v2710_v25 = vpop.f32.mrf.mxu1 }
 0x342   : > { %v3047_v23 = vadd.f32 %v3046_v22, %v2957_v21  ;;  %v2711_v27 = vadd.f32 %v2710_v25, %v2621_v24  ;;  %v3103_v21 = vld [vmem:[#allocation2 + $0xb0] sm:$0xff] }
 0x344   : > { %v3227_v28 = vadd.f32 %v3195_v26, %v3047_v23  ;;  %v3132_v31 = vadd.f32 %v3100_v29, %v2711_v27 }
 0x346   : > { %3259 = vst.msk [vmem:[#allocation3 + $0x90] sm:$0xff] %vm1086_vm0, %v3227_v28  ;;  %v2959_v39 = vpop.f32.mrf.mxu2  ;;  %v3199_v28 = vld [vmem:[#allocation3 + $0xb0] sm:$0xff] }
 0x347   : > { %3164 = vst.msk [vmem:[#allocation2 + $0x98] sm:$0xff] %vm1086_vm0, %v3132_v31  ;;  %v3104_v31 = vld [vmem:[#allocation2 + $0xb8] sm:$0xff] }
 0x348   : > { %v2624_v44 = vpop.f32.mrf.mxu0 }
 0x349   : > { %v3048_v40 = vpop.f32.mrf.mxu3  ;;  %v2713_v45 = vpop.f32.mrf.mxu1 }
 0x34a   : > { %v3049_v43 = vadd.f32 %v3048_v40, %v2959_v39  ;;  %v2714_v49 = vadd.f32 %v2713_v45, %v2624_v44  ;;  %v7680_v39 = vld [vmem:[%s7893_s27 + $0x74] sm:$0xf]  ;;  %v6937_v40 = vld [vmem:[%s7893_s27 + $0x78] sm:$0xf0]  ;;  %v6748_v44 = vor.u32 %v7648_v35, %v6745_v36  ;;  %v7653_v36 = vld [vmem:[%s7888_s24 + $0x94] sm:$0xf0] }
 0x34b   : > { %3644 = vmatmul.bf16.gmra.mxu0 %v6728_v41  ;;  %3982 = vmatmul.bf16.gmra.mxu2 %v6920_v46 }
 0x34c   : > { %v3228_v50 = vadd.f32 %v3196_v48, %v3049_v43  ;;  %v3133_v52 = vadd.f32 %v3101_v51, %v2714_v49  ;;  %3733 = vmatmul.bf16.gmra.mxu1 %v6732_v42  ;;  %v6744_v43 = vor.u32 %v7649_v34, %v6743_v32  ;;  %v6936_v48 = vor.u32 %v7681_v38, %v6935_v37  ;;  %v6759_v34 = vld [vmem:[%s7888_s24 + $0x90] sm:$0xf]  ;;  %v7652_v37 = vld [vmem:[%s7888_s24 + $0x94] sm:$0xf]  ;;  %v6761_v38 = vld [vmem:[%s7888_s24 + $0x98] sm:$0xf0] }
 0x34d   : > { %v6940_v49 = vor.u32 %v7680_v39, %v6937_v40  ;;  %v6951_v39 = vld [vmem:[%s7893_s27 + $0x90] sm:$0xf]  ;;  %v7685_v40 = vld [vmem:[%s7893_s27 + $0x94] sm:$0xf0] }
 0x34e   : > { %3260 = vst.msk [vmem:[#allocation3 + $0x98] sm:$0xff] %vm1086_vm0, %v3228_v50  ;;  %4071 = vmatmul.bf16.gmra.mxu3 %v6924_v47  ;;  %v2962_v55 = vpop.f32.mrf.mxu2  ;;  %v3200_v50 = vld [vmem:[#allocation3 + $0xb8] sm:$0xff] }
 0x34f   : > { %3165 = vst.msk [vmem:[#allocation2 + $0xa0] sm:$0xff] %vm1086_vm0, %v3133_v52 }
 0x350   : > { %v2626_v58 = vpop.f32.mrf.mxu0 }
 0x351   : > { %v3051_v56 = vpop.f32.mrf.mxu3  ;;  %v2715_v59 = vpop.f32.mrf.mxu1 }
 0x352   : > { %v3052_v57 = vadd.f32 %v3051_v56, %v2962_v55  ;;  %v2716_v61 = vadd.f32 %v2715_v59, %v2626_v58  ;;  %v7708_v55 = vld [vmem:[%s9122_s2 + $0x220] sm:$0xff] }
 0x353   : > { %v7716_v56 = vld [vmem:[%s9122_s2 + $0x260] sm:$0xff]  ;;  %5028 = vmatpush.bf16.msra.mxu2 %v7708_v55  ;;  %4690 = vmatpush.bf16.msra.mxu0 %v7708_v55 }
 0x354   : > { %v3229_v62 = vadd.f32 %v3197_v60, %v3052_v57  ;;  %v3134_v1 = vadd.f32 %v3102_v63, %v2716_v61  ;;  %5117 = vmatpush.bf16.msra.mxu3 %v7716_v56  ;;  %4779 = vmatpush.bf16.msra.mxu1 %v7716_v56  ;;  %v3109_v55 = vld [vmem:[#allocation2 + $0xe0] sm:$0xff] }
 0x356   : > { %3261 = vst.msk [vmem:[#allocation3 + $0xa0] sm:$0xff] %vm1086_vm0, %v3229_v62  ;;  %v2964_v9 = vpop.f32.mrf.mxu2  ;;  %v3201_v62 = vld [vmem:[#allocation3 + $0xc0] sm:$0xff] }
 0x357   : > { %3166 = vst.msk [vmem:[#allocation2 + $0xa8] sm:$0xff] %vm1086_vm0, %v3134_v1  ;;  %v3106_v1 = vld [vmem:[#allocation2 + $0xc8] sm:$0xff] }
 0x358   : > { %v2629_v14 = vpop.f32.mrf.mxu0 }
 0x359   : > { %v3053_v10 = vpop.f32.mrf.mxu3  ;;  %v2718_v15 = vpop.f32.mrf.mxu1 }
 0x35a   : > { %v3054_v13 = vadd.f32 %v3053_v10, %v2964_v9  ;;  %v2719_v19 = vadd.f32 %v2718_v15, %v2629_v14  ;;  %v7682_v9 = vld [vmem:[%s7893_s27 + $0x84] sm:$0xf]  ;;  %v6945_v10 = vld [vmem:[%s7893_s27 + $0x88] sm:$0xf0]  ;;  %v6756_v14 = vor.u32 %v7650_v5, %v6753_v6  ;;  %v7655_v6 = vld [vmem:[%s7888_s24 + $0xa4] sm:$0xf0] }
 0x35b   : > { %3649 = vmatmul.bf16.gmra.mxu0 %v6736_v11  ;;  %3987 = vmatmul.bf16.gmra.mxu2 %v6928_v16 }
 0x35c   : > { %v3230_v20 = vadd.f32 %v3198_v18, %v3054_v13  ;;  %v3135_v22 = vadd.f32 %v3103_v21, %v2719_v19  ;;  %3738 = vmatmul.bf16.gmra.mxu1 %v6740_v12  ;;  %v6752_v13 = vor.u32 %v7651_v4, %v6751_v2  ;;  %v6944_v18 = vor.u32 %v7683_v8, %v6943_v7  ;;  %v6767_v4 = vld [vmem:[%s7888_s24 + $0xa0] sm:$0xf]  ;;  %v7654_v7 = vld [vmem:[%s7888_s24 + $0xa4] sm:$0xf]  ;;  %v6769_v8 = vld [vmem:[%s7888_s24 + $0xa8] sm:$0xf0] }
 0x35d   : > { %v6948_v19 = vor.u32 %v7682_v9, %v6945_v10  ;;  %v6959_v9 = vld [vmem:[%s7893_s27 + $0xa0] sm:$0xf]  ;;  %v7687_v10 = vld [vmem:[%s7893_s27 + $0xa4] sm:$0xf0] }
 0x35e   : > { %3262 = vst.msk [vmem:[#allocation3 + $0xa8] sm:$0xff] %vm1086_vm0, %v3230_v20  ;;  %4076 = vmatmul.bf16.gmra.mxu3 %v6932_v17  ;;  %v2967_v23 = vpop.f32.mrf.mxu2  ;;  %v3202_v20 = vld [vmem:[#allocation3 + $0xc8] sm:$0xff] }
 0x35f   : > { %3167 = vst.msk [vmem:[#allocation2 + $0xb0] sm:$0xff] %vm1086_vm0, %v3135_v22 }
 0x360   : > { %v2631_v26 = vpop.f32.mrf.mxu0 }
 0x361   : > { %v3056_v24 = vpop.f32.mrf.mxu3  ;;  %v2720_v27 = vpop.f32.mrf.mxu1 }
 0x362   : > { %v3057_v25 = vadd.f32 %v3056_v24, %v2967_v23  ;;  %v2721_v29 = vadd.f32 %v2720_v27, %v2631_v26  ;;  %v3107_v23 = vld [vmem:[#allocation2 + $0xd0] sm:$0xff] }
 0x364   : > { %v3231_v30 = vadd.f32 %v3199_v28, %v3057_v25  ;;  %v3136_v33 = vadd.f32 %v3104_v31, %v2721_v29 }
 0x366   : > { %3263 = vst.msk [vmem:[#allocation3 + $0xb0] sm:$0xff] %vm1086_vm0, %v3231_v30  ;;  %v2969_v41 = vpop.f32.mrf.mxu2  ;;  %v3203_v30 = vld [vmem:[#allocation3 + $0xd0] sm:$0xff] }
 0x367   : > { %3168 = vst.msk [vmem:[#allocation2 + $0xb8] sm:$0xff] %vm1086_vm0, %v3136_v33  ;;  %v3108_v33 = vld [vmem:[#allocation2 + $0xd8] sm:$0xff] }
 0x368   : > { %v2634_v46 = vpop.f32.mrf.mxu0 }
 0x369   : > { %v3058_v42 = vpop.f32.mrf.mxu3  ;;  %v2723_v47 = vpop.f32.mrf.mxu1 }
 0x36a   : > { %v3059_v45 = vadd.f32 %v3058_v42, %v2969_v41  ;;  %v2724_v51 = vadd.f32 %v2723_v47, %v2634_v46  ;;  %v7684_v41 = vld [vmem:[%s7893_s27 + $0x94] sm:$0xf]  ;;  %v6953_v42 = vld [vmem:[%s7893_s27 + $0x98] sm:$0xf0]  ;;  %v6764_v46 = vor.u32 %v7652_v37, %v6761_v38  ;;  %v7657_v38 = vld [vmem:[%s7888_s24 + $0xb4] sm:$0xf0] }
 0x36b   : > { %3654 = vmatmul.bf16.gmra.mxu0 %v6744_v43  ;;  %3992 = vmatmul.bf16.gmra.mxu2 %v6936_v48 }
 0x36c   : > { %v3232_v52 = vadd.f32 %v3200_v50, %v3059_v45  ;;  %v3137_v54 = vadd.f32 %v3105_v53, %v2724_v51  ;;  %3743 = vmatmul.bf16.gmra.mxu1 %v6748_v44  ;;  %v6760_v45 = vor.u32 %v7653_v36, %v6759_v34  ;;  %v6952_v50 = vor.u32 %v7685_v40, %v6951_v39  ;;  %v6775_v36 = vld [vmem:[%s7888_s24 + $0xb0] sm:$0xf]  ;;  %v7656_v39 = vld [vmem:[%s7888_s24 + $0xb4] sm:$0xf]  ;;  %v6777_v40 = vld [vmem:[%s7888_s24 + $0xb8] sm:$0xf0] }
 0x36d   : > { %v6956_v51 = vor.u32 %v7684_v41, %v6953_v42  ;;  %v6967_v41 = vld [vmem:[%s7893_s27 + $0xb0] sm:$0xf]  ;;  %v7689_v42 = vld [vmem:[%s7893_s27 + $0xb4] sm:$0xf0] }
 0x36e   : > { %3264 = vst.msk [vmem:[#allocation3 + $0xb8] sm:$0xff] %vm1086_vm0, %v3232_v52  ;;  %4081 = vmatmul.bf16.gmra.mxu3 %v6940_v49  ;;  %v2972_v57 = vpop.f32.mrf.mxu2  ;;  %v3204_v52 = vld [vmem:[#allocation3 + $0xd8] sm:$0xff] }
 0x36f   : > { %3169 = vst.msk [vmem:[#allocation2 + $0xc0] sm:$0xff] %vm1086_vm0, %v3137_v54 }
 0x370   : > { %v2636_v60 = vpop.f32.mrf.mxu0 }
 0x371   : > { %v3061_v58 = vpop.f32.mrf.mxu3  ;;  %v2725_v61 = vpop.f32.mrf.mxu1 }
 0x372   : > { %v3062_v59 = vadd.f32 %v3061_v58, %v2972_v57  ;;  %v2726_v63 = vadd.f32 %v2725_v61, %v2636_v60  ;;  %v7707_v57 = vld [vmem:[%s9122_s2 + $0x218] sm:$0xff] }
 0x373   : > { %v7715_v58 = vld [vmem:[%s9122_s2 + $0x258] sm:$0xff]  ;;  %5029 = vmatpush.bf16.msra.mxu2 %v7707_v57  ;;  %4691 = vmatpush.bf16.msra.mxu0 %v7707_v57  ;;  %v4142_v57 = vld [vmem:[#allocation2] sm:$0xff] }
 0x374   : > { %v3233_v0 = vadd.f32 %v3201_v62, %v3062_v59  ;;  %v3138_v3 = vadd.f32 %v3106_v1, %v2726_v63  ;;  %5118 = vmatpush.bf16.msra.mxu3 %v7715_v58  ;;  %4780 = vmatpush.bf16.msra.mxu1 %v7715_v58 }
 0x376   : > { %3265 = vst.msk [vmem:[#allocation3 + $0xc0] sm:$0xff] %vm1086_vm0, %v3233_v0  ;;  %v2974_v11 = vpop.f32.mrf.mxu2  ;;  %v3205_v0 = vld [vmem:[#allocation3 + $0xe0] sm:$0xff] }
 0x377   : > { %3170 = vst.msk [vmem:[#allocation2 + $0xc8] sm:$0xff] %vm1086_vm0, %v3138_v3  ;;  %v3110_v3 = vld [vmem:[#allocation2 + $0xe8] sm:$0xff] }
 0x378   : > { %v2639_v16 = vpop.f32.mrf.mxu0 }
 0x379   : > { %v3063_v12 = vpop.f32.mrf.mxu3  ;;  %v2728_v17 = vpop.f32.mrf.mxu1 }
 0x37a   : > { %v3064_v15 = vadd.f32 %v3063_v12, %v2974_v11  ;;  %v2729_v21 = vadd.f32 %v2728_v17, %v2639_v16  ;;  %v7686_v11 = vld [vmem:[%s7893_s27 + $0xa4] sm:$0xf]  ;;  %v6961_v12 = vld [vmem:[%s7893_s27 + $0xa8] sm:$0xf0]  ;;  %v6772_v16 = vor.u32 %v7654_v7, %v6769_v8  ;;  %v7659_v8 = vld [vmem:[%s7888_s24 + $0xc4] sm:$0xf0] }
 0x37b   : > { %3659 = vmatmul.bf16.gmra.mxu0 %v6752_v13  ;;  %3997 = vmatmul.bf16.gmra.mxu2 %v6944_v18 }
 0x37c   : > { %v3234_v22 = vadd.f32 %v3202_v20, %v3064_v15  ;;  %v3139_v24 = vadd.f32 %v3107_v23, %v2729_v21  ;;  %3748 = vmatmul.bf16.gmra.mxu1 %v6756_v14  ;;  %v6768_v15 = vor.u32 %v7655_v6, %v6767_v4  ;;  %v6960_v20 = vor.u32 %v7687_v10, %v6959_v9  ;;  %v6783_v6 = vld [vmem:[%s7888_s24 + $0xc0] sm:$0xf]  ;;  %v7658_v9 = vld [vmem:[%s7888_s24 + $0xc4] sm:$0xf]  ;;  %v6785_v10 = vld [vmem:[%s7888_s24 + $0xc8] sm:$0xf0] }
 0x37d   : > { %v6964_v21 = vor.u32 %v7686_v11, %v6961_v12  ;;  %v6975_v11 = vld [vmem:[%s7893_s27 + $0xc0] sm:$0xf]  ;;  %v7691_v12 = vld [vmem:[%s7893_s27 + $0xc4] sm:$0xf0] }
 0x37e   : > { %3266 = vst.msk [vmem:[#allocation3 + $0xc8] sm:$0xff] %vm1086_vm0, %v3234_v22  ;;  %4086 = vmatmul.bf16.gmra.mxu3 %v6948_v19  ;;  %v2977_v25 = vpop.f32.mrf.mxu2  ;;  %v3206_v22 = vld [vmem:[#allocation3 + $0xe8] sm:$0xff] }
 0x37f   : > { %3171 = vst.msk [vmem:[#allocation2 + $0xd0] sm:$0xff] %vm1086_vm0, %v3139_v24 }
 0x380   : > { %v2641_v28 = vpop.f32.mrf.mxu0 }
 0x381   : > { %v3066_v26 = vpop.f32.mrf.mxu3  ;;  %v2730_v29 = vpop.f32.mrf.mxu1 }
 0x382   : > { %v3067_v27 = vadd.f32 %v3066_v26, %v2977_v25  ;;  %v2731_v31 = vadd.f32 %v2730_v29, %v2641_v28  ;;  %v3111_v25 = vld [vmem:[#allocation2 + $0xf0] sm:$0xff] }
 0x384   : > { %v3235_v32 = vadd.f32 %v3203_v30, %v3067_v27  ;;  %v3140_v35 = vadd.f32 %v3108_v33, %v2731_v31 }
 0x386   : > { %3267 = vst.msk [vmem:[#allocation3 + $0xd0] sm:$0xff] %vm1086_vm0, %v3235_v32  ;;  %v2979_v43 = vpop.f32.mrf.mxu2  ;;  %v3207_v32 = vld [vmem:[#allocation3 + $0xf0] sm:$0xff] }
 0x387   : > { %3172 = vst.msk [vmem:[#allocation2 + $0xd8] sm:$0xff] %vm1086_vm0, %v3140_v35  ;;  %v3112_v35 = vld [vmem:[#allocation2 + $0xf8] sm:$0xff] }
 0x388   : > { %v2644_v48 = vpop.f32.mrf.mxu0 }
 0x389   : > { %v3068_v44 = vpop.f32.mrf.mxu3  ;;  %v2733_v49 = vpop.f32.mrf.mxu1 }
 0x38a   : > { %v3069_v47 = vadd.f32 %v3068_v44, %v2979_v43  ;;  %v2734_v53 = vadd.f32 %v2733_v49, %v2644_v48  ;;  %v7688_v43 = vld [vmem:[%s7893_s27 + $0xb4] sm:$0xf]  ;;  %v6969_v44 = vld [vmem:[%s7893_s27 + $0xb8] sm:$0xf0]  ;;  %v6780_v48 = vor.u32 %v7656_v39, %v6777_v40  ;;  %v7661_v40 = vld [vmem:[%s7888_s24 + $0xd4] sm:$0xf0] }
 0x38b   : > { %3664 = vmatmul.bf16.gmra.mxu0 %v6760_v45  ;;  %4002 = vmatmul.bf16.gmra.mxu2 %v6952_v50 }
 0x38c   : > { %v3236_v54 = vadd.f32 %v3204_v52, %v3069_v47  ;;  %v3141_v56 = vadd.f32 %v3109_v55, %v2734_v53  ;;  %3753 = vmatmul.bf16.gmra.mxu1 %v6764_v46  ;;  %v6776_v47 = vor.u32 %v7657_v38, %v6775_v36  ;;  %v6968_v52 = vor.u32 %v7689_v42, %v6967_v41  ;;  %v6791_v38 = vld [vmem:[%s7888_s24 + $0xd0] sm:$0xf]  ;;  %v7660_v41 = vld [vmem:[%s7888_s24 + $0xd4] sm:$0xf]  ;;  %v6793_v42 = vld [vmem:[%s7888_s24 + $0xd8] sm:$0xf0] }
 0x38d   : > { %v6972_v53 = vor.u32 %v7688_v43, %v6969_v44  ;;  %v6983_v43 = vld [vmem:[%s7893_s27 + $0xd0] sm:$0xf]  ;;  %v7693_v44 = vld [vmem:[%s7893_s27 + $0xd4] sm:$0xf0] }
 0x38e   : > { %3268 = vst.msk [vmem:[#allocation3 + $0xd8] sm:$0xff] %vm1086_vm0, %v3236_v54  ;;  %4091 = vmatmul.bf16.gmra.mxu3 %v6956_v51  ;;  %v2982_v59 = vpop.f32.mrf.mxu2  ;;  %v3208_v54 = vld [vmem:[#allocation3 + $0xf8] sm:$0xff] }
 0x38f   : > { %3173 = vst.msk [vmem:[#allocation2 + $0xe0] sm:$0xff] %vm1086_vm0, %v3141_v56 }
 0x390   : > { %v2646_v62 = vpop.f32.mrf.mxu0 }
 0x391   : > { %v3071_v60 = vpop.f32.mrf.mxu3  ;;  %v2735_v63 = vpop.f32.mrf.mxu1 }
 0x392   : > { %v3072_v61 = vadd.f32 %v3071_v60, %v2982_v59  ;;  %v2736_v1 = vadd.f32 %v2735_v63, %v2646_v62  ;;  %v7706_v59 = vld [vmem:[%s9122_s2 + $0x210] sm:$0xff] }
 0x393   : > { %v7714_v60 = vld [vmem:[%s9122_s2 + $0x250] sm:$0xff]  ;;  %5030 = vmatpush.bf16.msra.mxu2 %v7706_v59  ;;  %4692 = vmatpush.bf16.msra.mxu0 %v7706_v59  ;;  %v4146_v59 = vld [vmem:[#allocation2 + $0x20] sm:$0xff] }
 0x394   : > { %v3237_v2 = vadd.f32 %v3205_v0, %v3072_v61  ;;  %v3142_v5 = vadd.f32 %v3110_v3, %v2736_v1  ;;  %5119 = vmatpush.bf16.msra.mxu3 %v7714_v60  ;;  %4781 = vmatpush.bf16.msra.mxu1 %v7714_v60 }
 0x396   : > { %3269 = vst.msk [vmem:[#allocation3 + $0xe0] sm:$0xff] %vm1086_vm0, %v3237_v2  ;;  %v2984_v13 = vpop.f32.mrf.mxu2  ;;  %v4238_v2 = vld [vmem:[#allocation3] sm:$0xff] }
 0x397   : > { %3174 = vst.msk [vmem:[#allocation2 + $0xe8] sm:$0xff] %vm1086_vm0, %v3142_v5  ;;  %v4143_v5 = vld [vmem:[#allocation2 + $0x8] sm:$0xff] }
 0x398   : > { %v2649_v18 = vpop.f32.mrf.mxu0 }
 0x399   : > { %v3073_v14 = vpop.f32.mrf.mxu3  ;;  %v2738_v19 = vpop.f32.mrf.mxu1 }
 0x39a   : > { %v3074_v17 = vadd.f32 %v3073_v14, %v2984_v13  ;;  %v2739_v23 = vadd.f32 %v2738_v19, %v2649_v18  ;;  %v7690_v13 = vld [vmem:[%s7893_s27 + $0xc4] sm:$0xf]  ;;  %v6977_v14 = vld [vmem:[%s7893_s27 + $0xc8] sm:$0xf0]  ;;  %v6788_v18 = vor.u32 %v7658_v9, %v6785_v10  ;;  %v7663_v10 = vld [vmem:[%s7888_s24 + $0xe4] sm:$0xf0] }
 0x39b   : > { %3669 = vmatmul.bf16.gmra.mxu0 %v6768_v15  ;;  %4007 = vmatmul.bf16.gmra.mxu2 %v6960_v20 }
 0x39c   : > { %v3238_v24 = vadd.f32 %v3206_v22, %v3074_v17  ;;  %v3143_v26 = vadd.f32 %v3111_v25, %v2739_v23  ;;  %3758 = vmatmul.bf16.gmra.mxu1 %v6772_v16  ;;  %v6784_v17 = vor.u32 %v7659_v8, %v6783_v6  ;;  %v6976_v22 = vor.u32 %v7691_v12, %v6975_v11  ;;  %v6799_v8 = vld [vmem:[%s7888_s24 + $0xe0] sm:$0xf]  ;;  %v7662_v11 = vld [vmem:[%s7888_s24 + $0xe4] sm:$0xf]  ;;  %v6801_v12 = vld [vmem:[%s7888_s24 + $0xe8] sm:$0xf0] }
 0x39d   : > { %v6980_v23 = vor.u32 %v7690_v13, %v6977_v14  ;;  %v6991_v13 = vld [vmem:[%s7893_s27 + $0xe0] sm:$0xf]  ;;  %v7695_v14 = vld [vmem:[%s7893_s27 + $0xe4] sm:$0xf0] }
 0x39e   : > { %3270 = vst.msk [vmem:[#allocation3 + $0xe8] sm:$0xff] %vm1086_vm0, %v3238_v24  ;;  %4096 = vmatmul.bf16.gmra.mxu3 %v6964_v21  ;;  %v2987_v27 = vpop.f32.mrf.mxu2  ;;  %v4239_v24 = vld [vmem:[#allocation3 + $0x8] sm:$0xff] }
 0x39f   : > { %3175 = vst.msk [vmem:[#allocation2 + $0xf0] sm:$0xff] %vm1086_vm0, %v3143_v26 }
 0x3a0   : > { %v2651_v30 = vpop.f32.mrf.mxu0 }
 0x3a1   : > { %v3076_v28 = vpop.f32.mrf.mxu3  ;;  %v2740_v31 = vpop.f32.mrf.mxu1 }
 0x3a2   : > { %v3077_v29 = vadd.f32 %v3076_v28, %v2987_v27  ;;  %v2741_v33 = vadd.f32 %v2740_v31, %v2651_v30  ;;  %v4144_v27 = vld [vmem:[#allocation2 + $0x10] sm:$0xff] }
 0x3a4   : > { %v3239_v34 = vadd.f32 %v3207_v32, %v3077_v29  ;;  %v3144_v37 = vadd.f32 %v3112_v35, %v2741_v33 }
 0x3a6   : > { %3271 = vst.msk [vmem:[#allocation3 + $0xf0] sm:$0xff] %vm1086_vm0, %v3239_v34  ;;  %v2989_v45 = vpop.f32.mrf.mxu2  ;;  %v4240_v34 = vld [vmem:[#allocation3 + $0x10] sm:$0xff] }
 0x3a7   : > { %3176 = vst.msk [vmem:[#allocation2 + $0xf8] sm:$0xff] %vm1086_vm0, %v3144_v37  ;;  %v4145_v37 = vld [vmem:[#allocation2 + $0x18] sm:$0xff] }
 0x3a8   : > { %v3635_v50 = vpop.f32.mrf.mxu0 }
 0x3a9   : > { %v3078_v46 = vpop.f32.mrf.mxu3  ;;  %v3724_v51 = vpop.f32.mrf.mxu1 }
 0x3aa   : > { %v3079_v49 = vadd.f32 %v3078_v46, %v2989_v45  ;;  %v3725_v55 = vadd.f32 %v3724_v51, %v3635_v50  ;;  %v7692_v45 = vld [vmem:[%s7893_s27 + $0xd4] sm:$0xf]  ;;  %v6985_v46 = vld [vmem:[%s7893_s27 + $0xd8] sm:$0xf0]  ;;  %v6796_v50 = vor.u32 %v7660_v41, %v6793_v42  ;;  %v7665_v42 = vld [vmem:[%s7888_s24 + $0xf4] sm:$0xf0] }
 0x3ab   : > { %3674 = vmatmul.bf16.gmra.mxu0 %v6776_v47  ;;  %4012 = vmatmul.bf16.gmra.mxu2 %v6968_v52 }
 0x3ac   : > { %v3240_v56 = vadd.f32 %v3208_v54, %v3079_v49  ;;  %v4174_v58 = vadd.f32 %v4142_v57, %v3725_v55  ;;  %3763 = vmatmul.bf16.gmra.mxu1 %v6780_v48  ;;  %v6792_v49 = vor.u32 %v7661_v40, %v6791_v38  ;;  %v6984_v54 = vor.u32 %v7693_v44, %v6983_v43  ;;  %v6807_v40 = vld [vmem:[%s7888_s24 + $0xf0] sm:$0xf]  ;;  %v7664_v43 = vld [vmem:[%s7888_s24 + $0xf4] sm:$0xf]  ;;  %v6809_v44 = vld [vmem:[%s7888_s24 + $0xf8] sm:$0xf0] }
 0x3ad   : > { %v6988_v55 = vor.u32 %v7692_v45, %v6985_v46  ;;  %v6999_v45 = vld [vmem:[%s7893_s27 + $0xf0] sm:$0xf]  ;;  %v7697_v46 = vld [vmem:[%s7893_s27 + $0xf4] sm:$0xf0] }
 0x3ae   : > { %3272 = vst.msk [vmem:[#allocation3 + $0xf8] sm:$0xff] %vm1086_vm0, %v3240_v56  ;;  %4101 = vmatmul.bf16.gmra.mxu3 %v6972_v53  ;;  %v3973_v61 = vpop.f32.mrf.mxu2  ;;  %v4241_v56 = vld [vmem:[#allocation3 + $0x18] sm:$0xff] }
 0x3af   : > { %4206 = vst.msk [vmem:[#allocation2] sm:$0xff] %vm1086_vm0, %v4174_v58 }
 0x3b0   : > { %v3637_v0 = vpop.f32.mrf.mxu0 }
 0x3b1   : > { %v4062_v62 = vpop.f32.mrf.mxu3  ;;  %v3726_v1 = vpop.f32.mrf.mxu1 }
 0x3b2   : > { %v4063_v63 = vadd.f32 %v4062_v62, %v3973_v61  ;;  %v3727_v3 = vadd.f32 %v3726_v1, %v3637_v0  ;;  %v7705_v61 = vld [vmem:[%s9122_s2 + $0x208] sm:$0xff] }
 0x3b3   : > { %v7713_v62 = vld [vmem:[%s9122_s2 + $0x248] sm:$0xff]  ;;  %5031 = vmatpush.bf16.msra.mxu2 %v7705_v61  ;;  %4693 = vmatpush.bf16.msra.mxu0 %v7705_v61  ;;  %v4150_v61 = vld [vmem:[#allocation2 + $0x40] sm:$0xff] }
 0x3b4   : > { %v4270_v4 = vadd.f32 %v4238_v2, %v4063_v63  ;;  %v4175_v7 = vadd.f32 %v4143_v5, %v3727_v3  ;;  %5120 = vmatpush.bf16.msra.mxu3 %v7713_v62  ;;  %4782 = vmatpush.bf16.msra.mxu1 %v7713_v62 }
 0x3b6   : > { %4302 = vst.msk [vmem:[#allocation3] sm:$0xff] %vm1086_vm0, %v4270_v4  ;;  %v3975_v15 = vpop.f32.mrf.mxu2  ;;  %v4242_v4 = vld [vmem:[#allocation3 + $0x20] sm:$0xff] }
 0x3b7   : > { %4207 = vst.msk [vmem:[#allocation2 + $0x8] sm:$0xff] %vm1086_vm0, %v4175_v7  ;;  %v4147_v7 = vld [vmem:[#allocation2 + $0x28] sm:$0xff] }
 0x3b8   : > { %v3640_v20 = vpop.f32.mrf.mxu0 }
 0x3b9   : > { %v4064_v16 = vpop.f32.mrf.mxu3  ;;  %v3729_v21 = vpop.f32.mrf.mxu1 }
 0x3ba   : > { %v4065_v19 = vadd.f32 %v4064_v16, %v3975_v15  ;;  %v3730_v25 = vadd.f32 %v3729_v21, %v3640_v20  ;;  %v7694_v15 = vld [vmem:[%s7893_s27 + $0xe4] sm:$0xf]  ;;  %v6993_v16 = vld [vmem:[%s7893_s27 + $0xe8] sm:$0xf0]  ;;  %v6804_v20 = vor.u32 %v7662_v11, %v6801_v12  ;;  %v7667_v12 = vld [vmem:[%s7888_s24 + $0x104] sm:$0xf0] }
 0x3bb   : > { %3679 = vmatmul.bf16.gmra.mxu0 %v6784_v17  ;;  %4017 = vmatmul.bf16.gmra.mxu2 %v6976_v22 }
 0x3bc   : > { %v4271_v26 = vadd.f32 %v4239_v24, %v4065_v19  ;;  %v4176_v28 = vadd.f32 %v4144_v27, %v3730_v25  ;;  %3768 = vmatmul.bf16.gmra.mxu1 %v6788_v18  ;;  %v6800_v19 = vor.u32 %v7663_v10, %v6799_v8  ;;  %v6992_v24 = vor.u32 %v7695_v14, %v6991_v13  ;;  %v6815_v10 = vld [vmem:[%s7888_s24 + $0x100] sm:$0xf]  ;;  %v7666_v13 = vld [vmem:[%s7888_s24 + $0x104] sm:$0xf]  ;;  %v6817_v14 = vld [vmem:[%s7888_s24 + $0x108] sm:$0xf0] }
 0x3bd   : > { %v6996_v25 = vor.u32 %v7694_v15, %v6993_v16  ;;  %v7007_v15 = vld [vmem:[%s7893_s27 + $0x100] sm:$0xf]  ;;  %v7699_v16 = vld [vmem:[%s7893_s27 + $0x104] sm:$0xf0] }
 0x3be   : > { %4303 = vst.msk [vmem:[#allocation3 + $0x8] sm:$0xff] %vm1086_vm0, %v4271_v26  ;;  %4106 = vmatmul.bf16.gmra.mxu3 %v6980_v23  ;;  %v3978_v29 = vpop.f32.mrf.mxu2  ;;  %v4243_v26 = vld [vmem:[#allocation3 + $0x28] sm:$0xff] }
 0x3bf   : > { %4208 = vst.msk [vmem:[#allocation2 + $0x10] sm:$0xff] %vm1086_vm0, %v4176_v28 }
 0x3c0   : > { %v3642_v32 = vpop.f32.mrf.mxu0 }
 0x3c1   : > { %v4067_v30 = vpop.f32.mrf.mxu3  ;;  %v3731_v33 = vpop.f32.mrf.mxu1 }
 0x3c2   : > { %v4068_v31 = vadd.f32 %v4067_v30, %v3978_v29  ;;  %v3732_v35 = vadd.f32 %v3731_v33, %v3642_v32  ;;  %v4148_v29 = vld [vmem:[#allocation2 + $0x30] sm:$0xff] }
 0x3c4   : > { %v4272_v36 = vadd.f32 %v4240_v34, %v4068_v31  ;;  %v4177_v39 = vadd.f32 %v4145_v37, %v3732_v35 }
 0x3c6   : > { %4304 = vst.msk [vmem:[#allocation3 + $0x10] sm:$0xff] %vm1086_vm0, %v4272_v36  ;;  %v3980_v47 = vpop.f32.mrf.mxu2  ;;  %v4244_v36 = vld [vmem:[#allocation3 + $0x30] sm:$0xff] }
 0x3c7   : > { %4209 = vst.msk [vmem:[#allocation2 + $0x18] sm:$0xff] %vm1086_vm0, %v4177_v39  ;;  %v4149_v39 = vld [vmem:[#allocation2 + $0x38] sm:$0xff] }
 0x3c8   : > { %v3645_v52 = vpop.f32.mrf.mxu0 }
 0x3c9   : > { %v4069_v48 = vpop.f32.mrf.mxu3  ;;  %v3734_v53 = vpop.f32.mrf.mxu1 }
 0x3ca   : > { %v4070_v51 = vadd.f32 %v4069_v48, %v3980_v47  ;;  %v3735_v57 = vadd.f32 %v3734_v53, %v3645_v52  ;;  %v7696_v47 = vld [vmem:[%s7893_s27 + $0xf4] sm:$0xf]  ;;  %v7001_v48 = vld [vmem:[%s7893_s27 + $0xf8] sm:$0xf0]  ;;  %v6812_v52 = vor.u32 %v7664_v43, %v6809_v44  ;;  %v7669_v44 = vld [vmem:[%s7888_s24 + $0x114] sm:$0xf0] }
 0x3cb   : > { %3684 = vmatmul.bf16.gmra.mxu0 %v6792_v49  ;;  %4022 = vmatmul.bf16.gmra.mxu2 %v6984_v54 }
 0x3cc   : > { %v4273_v58 = vadd.f32 %v4241_v56, %v4070_v51  ;;  %v4178_v60 = vadd.f32 %v4146_v59, %v3735_v57  ;;  %3773 = vmatmul.bf16.gmra.mxu1 %v6796_v50  ;;  %v6808_v51 = vor.u32 %v7665_v42, %v6807_v40  ;;  %v7000_v56 = vor.u32 %v7697_v46, %v6999_v45  ;;  %v6823_v42 = vld [vmem:[%s7888_s24 + $0x110] sm:$0xf]  ;;  %v7668_v45 = vld [vmem:[%s7888_s24 + $0x114] sm:$0xf]  ;;  %v6825_v46 = vld [vmem:[%s7888_s24 + $0x118] sm:$0xf0] }
 0x3cd   : > { %v7004_v57 = vor.u32 %v7696_v47, %v7001_v48  ;;  %v7015_v47 = vld [vmem:[%s7893_s27 + $0x110] sm:$0xf]  ;;  %v7701_v48 = vld [vmem:[%s7893_s27 + $0x114] sm:$0xf0] }
 0x3ce   : > { %4305 = vst.msk [vmem:[#allocation3 + $0x18] sm:$0xff] %vm1086_vm0, %v4273_v58  ;;  %4111 = vmatmul.bf16.gmra.mxu3 %v6988_v55  ;;  %v3983_v63 = vpop.f32.mrf.mxu2  ;;  %v4245_v58 = vld [vmem:[#allocation3 + $0x38] sm:$0xff] }
 0x3cf   : > { %4210 = vst.msk [vmem:[#allocation2 + $0x20] sm:$0xff] %vm1086_vm0, %v4178_v60 }
 0x3d0   : > { %v3647_v2 = vpop.f32.mrf.mxu0 }
 0x3d1   : > { %v4072_v0 = vpop.f32.mrf.mxu3  ;;  %v3736_v3 = vpop.f32.mrf.mxu1 }
 0x3d2   : > { %v4073_v1 = vadd.f32 %v4072_v0, %v3983_v63  ;;  %v3737_v5 = vadd.f32 %v3736_v3, %v3647_v2  ;;  %v7704_v63 = vld [vmem:[%s9122_s2 + $0x200] sm:$0xff] }
 0x3d3   : > { %v7712_v0 = vld [vmem:[%s9122_s2 + $0x240] sm:$0xff]  ;;  %5032 = vmatpush.bf16.msra.mxu2 %v7704_v63  ;;  %4694 = vmatpush.bf16.msra.mxu0 %v7704_v63 }
 0x3d4   : > { %v4274_v6 = vadd.f32 %v4242_v4, %v4073_v1  ;;  %v4179_v9 = vadd.f32 %v4147_v7, %v3737_v5  ;;  %5121 = vmatpush.bf16.msra.mxu3 %v7712_v0  ;;  %4783 = vmatpush.bf16.msra.mxu1 %v7712_v0  ;;  %v4154_v63 = vld [vmem:[#allocation2 + $0x60] sm:$0xff] }
 0x3d6   : > { %4306 = vst.msk [vmem:[#allocation3 + $0x20] sm:$0xff] %vm1086_vm0, %v4274_v6  ;;  %v3985_v17 = vpop.f32.mrf.mxu2  ;;  %v4246_v6 = vld [vmem:[#allocation3 + $0x40] sm:$0xff] }
 0x3d7   : > { %4211 = vst.msk [vmem:[#allocation2 + $0x28] sm:$0xff] %vm1086_vm0, %v4179_v9  ;;  %v4151_v9 = vld [vmem:[#allocation2 + $0x48] sm:$0xff] }
 0x3d8   : > { %v3650_v22 = vpop.f32.mrf.mxu0 }
 0x3d9   : > { %v4074_v18 = vpop.f32.mrf.mxu3  ;;  %v3739_v23 = vpop.f32.mrf.mxu1 }
 0x3da   : > { %v4075_v21 = vadd.f32 %v4074_v18, %v3985_v17  ;;  %v3740_v27 = vadd.f32 %v3739_v23, %v3650_v22  ;;  %v7698_v17 = vld [vmem:[%s7893_s27 + $0x104] sm:$0xf]  ;;  %v7009_v18 = vld [vmem:[%s7893_s27 + $0x108] sm:$0xf0]  ;;  %v6820_v22 = vor.u32 %v7666_v13, %v6817_v14 }
 0x3db   : > { %3689 = vmatmul.bf16.gmra.mxu0 %v6800_v19  ;;  %4027 = vmatmul.bf16.gmra.mxu2 %v6992_v24  ;;  %v7670_v13 = vld [vmem:[%s7888_s24 + $0x124] sm:$0xf]  ;;  %v6833_v14 = vld [vmem:[%s7888_s24 + $0x128] sm:$0xf0] }
 0x3dc   : > { %v4275_v28 = vadd.f32 %v4243_v26, %v4075_v21  ;;  %v4180_v30 = vadd.f32 %v4148_v29, %v3740_v27  ;;  %3778 = vmatmul.bf16.gmra.mxu1 %v6804_v20  ;;  %v6816_v21 = vor.u32 %v7667_v12, %v6815_v10  ;;  %v7008_v26 = vor.u32 %v7699_v16, %v7007_v15  ;;  %v6831_v10 = vld [vmem:[%s7888_s24 + $0x120] sm:$0xf]  ;;  %v7671_v12 = vld [vmem:[%s7888_s24 + $0x124] sm:$0xf0] }
 0x3dd   : > { %v7012_v27 = vor.u32 %v7698_v17, %v7009_v18  ;;  %v7023_v15 = vld [vmem:[%s7893_s27 + $0x120] sm:$0xf]  ;;  %v7703_v16 = vld [vmem:[%s7893_s27 + $0x124] sm:$0xf0]  ;;  %v7702_v17 = vld [vmem:[%s7893_s27 + $0x124] sm:$0xf] }
 0x3de   : > { %4307 = vst.msk [vmem:[#allocation3 + $0x28] sm:$0xff] %vm1086_vm0, %v4275_v28  ;;  %4116 = vmatmul.bf16.gmra.mxu3 %v6996_v25  ;;  %v3988_v31 = vpop.f32.mrf.mxu2  ;;  %v4247_v28 = vld [vmem:[#allocation3 + $0x48] sm:$0xff] }
 0x3df   : > { %4212 = vst.msk [vmem:[#allocation2 + $0x30] sm:$0xff] %vm1086_vm0, %v4180_v30  ;;  %v7025_v18 = vld [vmem:[%s7893_s27 + $0x128] sm:$0xf0] }
 0x3e0   : > { %v3652_v34 = vpop.f32.mrf.mxu0 }
 0x3e1   : > { %v4077_v32 = vpop.f32.mrf.mxu3  ;;  %v3741_v35 = vpop.f32.mrf.mxu1 }
 0x3e2   : > { %v4078_v33 = vadd.f32 %v4077_v32, %v3988_v31  ;;  %v3742_v37 = vadd.f32 %v3741_v35, %v3652_v34  ;;  %v4152_v31 = vld [vmem:[#allocation2 + $0x50] sm:$0xff] }
 0x3e4   : > { %v4276_v38 = vadd.f32 %v4244_v36, %v4078_v33  ;;  %v4181_v41 = vadd.f32 %v4149_v39, %v3742_v37 }
 0x3e6   : > { %4308 = vst.msk [vmem:[#allocation3 + $0x30] sm:$0xff] %vm1086_vm0, %v4276_v38  ;;  %v3990_v49 = vpop.f32.mrf.mxu2  ;;  %v4248_v38 = vld [vmem:[#allocation3 + $0x50] sm:$0xff] }
 0x3e7   : > { %4213 = vst.msk [vmem:[#allocation2 + $0x38] sm:$0xff] %vm1086_vm0, %v4181_v41  ;;  %v4153_v41 = vld [vmem:[#allocation2 + $0x58] sm:$0xff] }
 0x3e8   : > { %v3655_v54 = vpop.f32.mrf.mxu0 }
 0x3e9   : > { %v4079_v50 = vpop.f32.mrf.mxu3  ;;  %v3744_v55 = vpop.f32.mrf.mxu1 }
 0x3ea   : > { %v4080_v53 = vadd.f32 %v4079_v50, %v3990_v49  ;;  %v3745_v59 = vadd.f32 %v3744_v55, %v3655_v54  ;;  %v7700_v49 = vld [vmem:[%s7893_s27 + $0x114] sm:$0xf]  ;;  %v7017_v50 = vld [vmem:[%s7893_s27 + $0x118] sm:$0xf0]  ;;  %v6828_v54 = vor.u32 %v7668_v45, %v6825_v46  ;;  %v7720_v45 = vld [vmem:[%s7888_s24 + $0x44] sm:$0xf] }
 0x3eb   : > { %3694 = vmatmul.bf16.gmra.mxu0 %v6808_v51  ;;  %4032 = vmatmul.bf16.gmra.mxu2 %v7000_v56  ;;  %v7065_v46 = vld [vmem:[%s7888_s24 + $0x48] sm:$0xf0] }
 0x3ec   : > { %v4277_v60 = vadd.f32 %v4245_v58, %v4080_v53  ;;  %v4182_v62 = vadd.f32 %v4150_v61, %v3745_v59  ;;  %3783 = vmatmul.bf16.gmra.mxu1 %v6812_v52  ;;  %v6824_v53 = vor.u32 %v7669_v44, %v6823_v42  ;;  %v7016_v58 = vor.u32 %v7701_v48, %v7015_v47  ;;  %v7063_v42 = vld [vmem:[%s7888_s24 + $0x40] sm:$0xf]  ;;  %v7721_v44 = vld [vmem:[%s7888_s24 + $0x44] sm:$0xf0] }
 0x3ed   : > { %v7020_v59 = vor.u32 %v7700_v49, %v7017_v50  ;;  %v7255_v47 = vld [vmem:[%s7893_s27 + $0x40] sm:$0xf]  ;;  %v7753_v48 = vld [vmem:[%s7893_s27 + $0x44] sm:$0xf0]  ;;  %v7752_v49 = vld [vmem:[%s7893_s27 + $0x44] sm:$0xf] }
 0x3ee   : > { %4309 = vst.msk [vmem:[#allocation3 + $0x38] sm:$0xff] %vm1086_vm0, %v4277_v60  ;;  %4121 = vmatmul.bf16.gmra.mxu3 %v7004_v57  ;;  %v3993_v1 = vpop.f32.mrf.mxu2  ;;  %v4249_v60 = vld [vmem:[#allocation3 + $0x58] sm:$0xff]  ;;  %v7257_v50 = vld [vmem:[%s7893_s27 + $0x48] sm:$0xf0] }
 0x3ef   : > { %4214 = vst.msk [vmem:[#allocation2 + $0x40] sm:$0xff] %vm1086_vm0, %v4182_v62 }
 0x3f0   : > { %v3657_v4 = vpop.f32.mrf.mxu0 }
 0x3f1   : > { %v4082_v2 = vpop.f32.mrf.mxu3  ;;  %v3746_v5 = vpop.f32.mrf.mxu1 }
 0x3f2   : > { %v4083_v3 = vadd.f32 %v4082_v2, %v3993_v1  ;;  %v3747_v7 = vadd.f32 %v3746_v5, %v3657_v4 }
 0x3f4   : > { %v4278_v8 = vadd.f32 %v4246_v6, %v4083_v3  ;;  %v4183_v11 = vadd.f32 %v4151_v9, %v3747_v7  ;;  %v4250_v6 = vld [vmem:[#allocation3 + $0x60] sm:$0xff]  ;;  %v4155_v9 = vld [vmem:[#allocation2 + $0x68] sm:$0xff] }
 0x3f6   : > { %4310 = vst.msk [vmem:[#allocation3 + $0x40] sm:$0xff] %vm1086_vm0, %v4278_v8  ;;  %v3995_v19 = vpop.f32.mrf.mxu2 }
 0x3f7   : > { %4215 = vst.msk [vmem:[#allocation2 + $0x48] sm:$0xff] %vm1086_vm0, %v4183_v11 }
 0x3f8   : > { %v3660_v24 = vpop.f32.mrf.mxu0 }
 0x3f9   : > { %v4084_v20 = vpop.f32.mrf.mxu3  ;;  %v3749_v25 = vpop.f32.mrf.mxu1 }
 0x3fa   : > { %v4085_v23 = vadd.f32 %v4084_v20, %v3995_v19  ;;  %v3750_v29 = vadd.f32 %v3749_v25, %v3660_v24 }
 0x3fb   : > { %3699 = vmatmul.bf16.gmra.mxu0 %v6816_v21  ;;  %4037 = vmatmul.bf16.gmra.mxu2 %v7008_v26  ;;  %v6832_v21 = vor.u32 %v7671_v12, %v6831_v10  ;;  %v7024_v26 = vor.u32 %v7703_v16, %v7023_v15  ;;  %v7071_v10 = vld [vmem:[%s7888_s24 + $0x50] sm:$0xf]  ;;  %v7723_v12 = vld [vmem:[%s7888_s24 + $0x54] sm:$0xf0] }
 0x3fc   : > { %v4279_v30 = vadd.f32 %v4247_v28, %v4085_v23  ;;  %v4184_v32 = vadd.f32 %v4152_v31, %v3750_v29  ;;  %3788 = vmatmul.bf16.gmra.mxu1 %v6820_v22  ;;  %v6836_v22 = vor.u32 %v7670_v13, %v6833_v14  ;;  %v4251_v28 = vld [vmem:[#allocation3 + $0x68] sm:$0xff]  ;;  %v4156_v31 = vld [vmem:[#allocation2 + $0x70] sm:$0xff]  ;;  %v7073_v14 = vld [vmem:[%s7888_s24 + $0x58] sm:$0xf0] }
 0x3fd   : > { %v7722_v13 = vld [vmem:[%s7888_s24 + $0x54] sm:$0xf]  ;;  %v7263_v15 = vld [vmem:[%s7893_s27 + $0x50] sm:$0xf]  ;;  %v7755_v16 = vld [vmem:[%s7893_s27 + $0x54] sm:$0xf0] }
 0x3fe   : > { %4311 = vst.msk [vmem:[#allocation3 + $0x48] sm:$0xff] %vm1086_vm0, %v4279_v30  ;;  %4126 = vmatmul.bf16.gmra.mxu3 %v7012_v27  ;;  %v3998_v33 = vpop.f32.mrf.mxu2  ;;  %v7028_v27 = vor.u32 %v7702_v17, %v7025_v18  ;;  %v7754_v17 = vld [vmem:[%s7893_s27 + $0x54] sm:$0xf]  ;;  %v7265_v18 = vld [vmem:[%s7893_s27 + $0x58] sm:$0xf0] }
 0x3ff   : > { %4216 = vst.msk [vmem:[#allocation2 + $0x50] sm:$0xff] %vm1086_vm0, %v4184_v32 }
 0x400   : > { %v3662_v36 = vpop.f32.mrf.mxu0 }
 0x401   : > { %v4087_v34 = vpop.f32.mrf.mxu3  ;;  %v3751_v37 = vpop.f32.mrf.mxu1 }
 0x402   : > { %v4088_v35 = vadd.f32 %v4087_v34, %v3998_v33  ;;  %v3752_v39 = vadd.f32 %v3751_v37, %v3662_v36 }
 0x404   : > { %v4280_v40 = vadd.f32 %v4248_v38, %v4088_v35  ;;  %v4185_v43 = vadd.f32 %v4153_v41, %v3752_v39  ;;  %v4252_v38 = vld [vmem:[#allocation3 + $0x70] sm:$0xff]  ;;  %v4157_v41 = vld [vmem:[#allocation2 + $0x78] sm:$0xff] }
 0x406   : > { %4312 = vst.msk [vmem:[#allocation3 + $0x50] sm:$0xff] %vm1086_vm0, %v4280_v40  ;;  %v4000_v51 = vpop.f32.mrf.mxu2 }
 0x407   : > { %4217 = vst.msk [vmem:[#allocation2 + $0x58] sm:$0xff] %vm1086_vm0, %v4185_v43 }
 0x408   : > { %v3665_v56 = vpop.f32.mrf.mxu0 }
 0x409   : > { %v4089_v52 = vpop.f32.mrf.mxu3  ;;  %v3754_v57 = vpop.f32.mrf.mxu1 }
 0x40a   : > { %v4090_v55 = vadd.f32 %v4089_v52, %v4000_v51  ;;  %v3755_v61 = vadd.f32 %v3754_v57, %v3665_v56 }
 0x40b   : > { %3704 = vmatmul.bf16.gmra.mxu0 %v6824_v53  ;;  %4042 = vmatmul.bf16.gmra.mxu2 %v7016_v58  ;;  %v7064_v53 = vor.u32 %v7721_v44, %v7063_v42  ;;  %v7256_v58 = vor.u32 %v7753_v48, %v7255_v47  ;;  %v7079_v42 = vld [vmem:[%s7888_s24 + $0x60] sm:$0xf]  ;;  %v7725_v44 = vld [vmem:[%s7888_s24 + $0x64] sm:$0xf0] }
 0x40c   : > { %v4281_v62 = vadd.f32 %v4249_v60, %v4090_v55  ;;  %v4186_v0 = vadd.f32 %v4154_v63, %v3755_v61  ;;  %3793 = vmatmul.bf16.gmra.mxu1 %v6828_v54  ;;  %v7068_v54 = vor.u32 %v7720_v45, %v7065_v46  ;;  %v4253_v60 = vld [vmem:[#allocation3 + $0x78] sm:$0xff]  ;;  %v4158_v63 = vld [vmem:[#allocation2 + $0x80] sm:$0xff]  ;;  %v7081_v46 = vld [vmem:[%s7888_s24 + $0x68] sm:$0xf0] }
 0x40d   : > { %v7724_v45 = vld [vmem:[%s7888_s24 + $0x64] sm:$0xf]  ;;  %v7271_v47 = vld [vmem:[%s7893_s27 + $0x60] sm:$0xf]  ;;  %v7757_v48 = vld [vmem:[%s7893_s27 + $0x64] sm:$0xf0] }
 0x40e   : > { %4313 = vst.msk [vmem:[#allocation3 + $0x58] sm:$0xff] %vm1086_vm0, %v4281_v62  ;;  %4131 = vmatmul.bf16.gmra.mxu3 %v7020_v59  ;;  %v4003_v1 = vpop.f32.mrf.mxu2  ;;  %v7260_v59 = vor.u32 %v7752_v49, %v7257_v50  ;;  %v7756_v49 = vld [vmem:[%s7893_s27 + $0x64] sm:$0xf]  ;;  %v7273_v50 = vld [vmem:[%s7893_s27 + $0x68] sm:$0xf0] }
 0x40f   : > { %4218 = vst.msk [vmem:[#allocation2 + $0x60] sm:$0xff] %vm1086_vm0, %v4186_v0 }
 0x410   : > { %v3667_v4 = vpop.f32.mrf.mxu0 }
 0x411   : > { %v4092_v2 = vpop.f32.mrf.mxu3  ;;  %v3756_v5 = vpop.f32.mrf.mxu1 }
 0x412   : > { %v4093_v3 = vadd.f32 %v4092_v2, %v4003_v1  ;;  %v3757_v7 = vadd.f32 %v3756_v5, %v3667_v4 }
 0x414   : > { %v4282_v8 = vadd.f32 %v4250_v6, %v4093_v3  ;;  %v4187_v11 = vadd.f32 %v4155_v9, %v3757_v7  ;;  %v4254_v6 = vld [vmem:[#allocation3 + $0x80] sm:$0xff]  ;;  %v4159_v9 = vld [vmem:[#allocation2 + $0x88] sm:$0xff] }
 0x416   : > { %4314 = vst.msk [vmem:[#allocation3 + $0x60] sm:$0xff] %vm1086_vm0, %v4282_v8  ;;  %v4005_v19 = vpop.f32.mrf.mxu2 }
 0x417   : > { %4219 = vst.msk [vmem:[#allocation2 + $0x68] sm:$0xff] %vm1086_vm0, %v4187_v11 }
 0x418   : > { %v3670_v24 = vpop.f32.mrf.mxu0 }
 0x419   : > { %v4094_v20 = vpop.f32.mrf.mxu3  ;;  %v3759_v25 = vpop.f32.mrf.mxu1 }
 0x41a   : > { %v4095_v23 = vadd.f32 %v4094_v20, %v4005_v19  ;;  %v3760_v29 = vadd.f32 %v3759_v25, %v3670_v24 }
 0x41b   : > { %3709 = vmatmul.bf16.gmra.mxu0 %v6832_v21  ;;  %4047 = vmatmul.bf16.gmra.mxu2 %v7024_v26  ;;  %v7072_v21 = vor.u32 %v7723_v12, %v7071_v10  ;;  %v7264_v26 = vor.u32 %v7755_v16, %v7263_v15  ;;  %v7087_v10 = vld [vmem:[%s7888_s24 + $0x70] sm:$0xf]  ;;  %v7727_v12 = vld [vmem:[%s7888_s24 + $0x74] sm:$0xf0] }
 0x41c   : > { %v4283_v30 = vadd.f32 %v4251_v28, %v4095_v23  ;;  %v4188_v32 = vadd.f32 %v4156_v31, %v3760_v29  ;;  %3798 = vmatmul.bf16.gmra.mxu1 %v6836_v22  ;;  %v7076_v22 = vor.u32 %v7722_v13, %v7073_v14  ;;  %v4255_v28 = vld [vmem:[#allocation3 + $0x88] sm:$0xff]  ;;  %v4160_v31 = vld [vmem:[#allocation2 + $0x90] sm:$0xff]  ;;  %v7089_v14 = vld [vmem:[%s7888_s24 + $0x78] sm:$0xf0] }
 0x41d   : > { %v7726_v13 = vld [vmem:[%s7888_s24 + $0x74] sm:$0xf]  ;;  %v7279_v15 = vld [vmem:[%s7893_s27 + $0x70] sm:$0xf]  ;;  %v7759_v16 = vld [vmem:[%s7893_s27 + $0x74] sm:$0xf0] }
 0x41e   : > { %4315 = vst.msk [vmem:[#allocation3 + $0x68] sm:$0xff] %vm1086_vm0, %v4283_v30  ;;  %4136 = vmatmul.bf16.gmra.mxu3 %v7028_v27  ;;  %v4008_v33 = vpop.f32.mrf.mxu2  ;;  %v7268_v27 = vor.u32 %v7754_v17, %v7265_v18  ;;  %v7758_v17 = vld [vmem:[%s7893_s27 + $0x74] sm:$0xf]  ;;  %v7281_v18 = vld [vmem:[%s7893_s27 + $0x78] sm:$0xf0] }
 0x41f   : > { %4220 = vst.msk [vmem:[#allocation2 + $0x70] sm:$0xff] %vm1086_vm0, %v4188_v32 }
 0x420   : > { %v3672_v36 = vpop.f32.mrf.mxu0 }
 0x421   : > { %v4097_v34 = vpop.f32.mrf.mxu3  ;;  %v3761_v37 = vpop.f32.mrf.mxu1 }
 0x422   : > { %v4098_v35 = vadd.f32 %v4097_v34, %v4008_v33  ;;  %v3762_v39 = vadd.f32 %v3761_v37, %v3672_v36 }
 0x424   : > { %v4284_v40 = vadd.f32 %v4252_v38, %v4098_v35  ;;  %v4189_v43 = vadd.f32 %v4157_v41, %v3762_v39  ;;  %v4256_v38 = vld [vmem:[#allocation3 + $0x90] sm:$0xff]  ;;  %v4161_v41 = vld [vmem:[#allocation2 + $0x98] sm:$0xff] }
 0x426   : > { %4316 = vst.msk [vmem:[#allocation3 + $0x70] sm:$0xff] %vm1086_vm0, %v4284_v40  ;;  %v4010_v51 = vpop.f32.mrf.mxu2 }
 0x427   : > { %4221 = vst.msk [vmem:[#allocation2 + $0x78] sm:$0xff] %vm1086_vm0, %v4189_v43 }
 0x428   : > { %v3675_v56 = vpop.f32.mrf.mxu0 }
 0x429   : > { %v4099_v52 = vpop.f32.mrf.mxu3  ;;  %v3764_v57 = vpop.f32.mrf.mxu1 }
 0x42a   : > { %v4100_v55 = vadd.f32 %v4099_v52, %v4010_v51  ;;  %v3765_v61 = vadd.f32 %v3764_v57, %v3675_v56 }
 0x42b   : > { %4695 = vmatmul.bf16.vlgmr.msra.gmra.mxu0 %v7064_v53  ;;  %5033 = vmatmul.bf16.vlgmr.msra.gmra.mxu2 %v7256_v58  ;;  %v7080_v53 = vor.u32 %v7725_v44, %v7079_v42  ;;  %v7272_v58 = vor.u32 %v7757_v48, %v7271_v47  ;;  %v7095_v42 = vld [vmem:[%s7888_s24 + $0x80] sm:$0xf]  ;;  %v7729_v44 = vld [vmem:[%s7888_s24 + $0x84] sm:$0xf0] }
 0x42c   : > { %v4285_v62 = vadd.f32 %v4253_v60, %v4100_v55  ;;  %v4190_v0 = vadd.f32 %v4158_v63, %v3765_v61  ;;  %4784 = vmatmul.bf16.vlgmr.msra.gmra.mxu1 %v7068_v54  ;;  %v7084_v54 = vor.u32 %v7724_v45, %v7081_v46  ;;  %v4257_v60 = vld [vmem:[#allocation3 + $0x98] sm:$0xff]  ;;  %v4162_v63 = vld [vmem:[#allocation2 + $0xa0] sm:$0xff]  ;;  %v7097_v46 = vld [vmem:[%s7888_s24 + $0x88] sm:$0xf0] }
 0x42d   : > { %v7728_v45 = vld [vmem:[%s7888_s24 + $0x84] sm:$0xf]  ;;  %v7287_v47 = vld [vmem:[%s7893_s27 + $0x80] sm:$0xf]  ;;  %v7761_v48 = vld [vmem:[%s7893_s27 + $0x84] sm:$0xf0] }
 0x42e   : > { %4317 = vst.msk [vmem:[#allocation3 + $0x78] sm:$0xff] %vm1086_vm0, %v4285_v62  ;;  %5122 = vmatmul.bf16.vlgmr.msra.gmra.mxu3 %v7260_v59  ;;  %v4013_v1 = vpop.f32.mrf.mxu2  ;;  %v7276_v59 = vor.u32 %v7756_v49, %v7273_v50  ;;  %v7760_v49 = vld [vmem:[%s7893_s27 + $0x84] sm:$0xf]  ;;  %v7289_v50 = vld [vmem:[%s7893_s27 + $0x88] sm:$0xf0] }
 0x42f   : > { %4222 = vst.msk [vmem:[#allocation2 + $0x80] sm:$0xff] %vm1086_vm0, %v4190_v0 }
 0x430   : > { %v3677_v4 = vpop.f32.mrf.mxu0 }
 0x431   : > { %v4102_v2 = vpop.f32.mrf.mxu3  ;;  %v3766_v5 = vpop.f32.mrf.mxu1 }
 0x432   : > { %v4103_v3 = vadd.f32 %v4102_v2, %v4013_v1  ;;  %v3767_v7 = vadd.f32 %v3766_v5, %v3677_v4 }
 0x434   : > { %v4286_v8 = vadd.f32 %v4254_v6, %v4103_v3  ;;  %v4191_v11 = vadd.f32 %v4159_v9, %v3767_v7  ;;  %v4258_v6 = vld [vmem:[#allocation3 + $0xa0] sm:$0xff]  ;;  %v4163_v9 = vld [vmem:[#allocation2 + $0xa8] sm:$0xff] }
 0x436   : > { %4318 = vst.msk [vmem:[#allocation3 + $0x80] sm:$0xff] %vm1086_vm0, %v4286_v8  ;;  %v4015_v19 = vpop.f32.mrf.mxu2 }
 0x437   : > { %4223 = vst.msk [vmem:[#allocation2 + $0x88] sm:$0xff] %vm1086_vm0, %v4191_v11 }
 0x438   : > { %v3680_v24 = vpop.f32.mrf.mxu0 }
 0x439   : > { %v4104_v20 = vpop.f32.mrf.mxu3  ;;  %v3769_v25 = vpop.f32.mrf.mxu1 }
 0x43a   : > { %v4105_v23 = vadd.f32 %v4104_v20, %v4015_v19  ;;  %v3770_v29 = vadd.f32 %v3769_v25, %v3680_v24 }
 0x43b   : > { %4700 = vmatmul.bf16.gmra.mxu0 %v7072_v21  ;;  %5038 = vmatmul.bf16.gmra.mxu2 %v7264_v26  ;;  %v7088_v21 = vor.u32 %v7727_v12, %v7087_v10  ;;  %v7280_v26 = vor.u32 %v7759_v16, %v7279_v15  ;;  %v7103_v10 = vld [vmem:[%s7888_s24 + $0x90] sm:$0xf]  ;;  %v7731_v12 = vld [vmem:[%s7888_s24 + $0x94] sm:$0xf0] }
 0x43c   : > { %v4287_v30 = vadd.f32 %v4255_v28, %v4105_v23  ;;  %v4192_v32 = vadd.f32 %v4160_v31, %v3770_v29  ;;  %4789 = vmatmul.bf16.gmra.mxu1 %v7076_v22  ;;  %v7092_v22 = vor.u32 %v7726_v13, %v7089_v14  ;;  %v4259_v28 = vld [vmem:[#allocation3 + $0xa8] sm:$0xff]  ;;  %v4164_v31 = vld [vmem:[#allocation2 + $0xb0] sm:$0xff]  ;;  %v7105_v14 = vld [vmem:[%s7888_s24 + $0x98] sm:$0xf0] }
 0x43d   : > { %v7730_v13 = vld [vmem:[%s7888_s24 + $0x94] sm:$0xf]  ;;  %v7295_v15 = vld [vmem:[%s7893_s27 + $0x90] sm:$0xf]  ;;  %v7763_v16 = vld [vmem:[%s7893_s27 + $0x94] sm:$0xf0] }
 0x43e   : > { %4319 = vst.msk [vmem:[#allocation3 + $0x88] sm:$0xff] %vm1086_vm0, %v4287_v30  ;;  %5127 = vmatmul.bf16.gmra.mxu3 %v7268_v27  ;;  %v4018_v33 = vpop.f32.mrf.mxu2  ;;  %v7284_v27 = vor.u32 %v7758_v17, %v7281_v18  ;;  %v7762_v17 = vld [vmem:[%s7893_s27 + $0x94] sm:$0xf]  ;;  %v7297_v18 = vld [vmem:[%s7893_s27 + $0x98] sm:$0xf0] }
 0x43f   : > { %4224 = vst.msk [vmem:[#allocation2 + $0x90] sm:$0xff] %vm1086_vm0, %v4192_v32 }
 0x440   : > { %v3682_v36 = vpop.f32.mrf.mxu0 }
 0x441   : > { %v4107_v34 = vpop.f32.mrf.mxu3  ;;  %v3771_v37 = vpop.f32.mrf.mxu1 }
 0x442   : > { %v4108_v35 = vadd.f32 %v4107_v34, %v4018_v33  ;;  %v3772_v39 = vadd.f32 %v3771_v37, %v3682_v36 }
 0x444   : > { %v4288_v40 = vadd.f32 %v4256_v38, %v4108_v35  ;;  %v4193_v43 = vadd.f32 %v4161_v41, %v3772_v39  ;;  %v4260_v38 = vld [vmem:[#allocation3 + $0xb0] sm:$0xff]  ;;  %v4165_v41 = vld [vmem:[#allocation2 + $0xb8] sm:$0xff] }
 0x446   : > { %4320 = vst.msk [vmem:[#allocation3 + $0x90] sm:$0xff] %vm1086_vm0, %v4288_v40  ;;  %v4020_v51 = vpop.f32.mrf.mxu2 }
 0x447   : > { %4225 = vst.msk [vmem:[#allocation2 + $0x98] sm:$0xff] %vm1086_vm0, %v4193_v43 }
 0x448   : > { %v3685_v56 = vpop.f32.mrf.mxu0 }
 0x449   : > { %v4109_v52 = vpop.f32.mrf.mxu3  ;;  %v3774_v57 = vpop.f32.mrf.mxu1 }
 0x44a   : > { %v4110_v55 = vadd.f32 %v4109_v52, %v4020_v51  ;;  %v3775_v61 = vadd.f32 %v3774_v57, %v3685_v56 }
 0x44b   : > { %4705 = vmatmul.bf16.gmra.mxu0 %v7080_v53  ;;  %5043 = vmatmul.bf16.gmra.mxu2 %v7272_v58  ;;  %v7096_v53 = vor.u32 %v7729_v44, %v7095_v42  ;;  %v7288_v58 = vor.u32 %v7761_v48, %v7287_v47  ;;  %v7111_v42 = vld [vmem:[%s7888_s24 + $0xa0] sm:$0xf]  ;;  %v7733_v44 = vld [vmem:[%s7888_s24 + $0xa4] sm:$0xf0] }
 0x44c   : > { %v4289_v62 = vadd.f32 %v4257_v60, %v4110_v55  ;;  %v4194_v0 = vadd.f32 %v4162_v63, %v3775_v61  ;;  %4794 = vmatmul.bf16.gmra.mxu1 %v7084_v54  ;;  %v7100_v54 = vor.u32 %v7728_v45, %v7097_v46  ;;  %v4261_v60 = vld [vmem:[#allocation3 + $0xb8] sm:$0xff]  ;;  %v4166_v63 = vld [vmem:[#allocation2 + $0xc0] sm:$0xff]  ;;  %v7113_v46 = vld [vmem:[%s7888_s24 + $0xa8] sm:$0xf0] }
 0x44d   : > { %v7732_v45 = vld [vmem:[%s7888_s24 + $0xa4] sm:$0xf]  ;;  %v7303_v47 = vld [vmem:[%s7893_s27 + $0xa0] sm:$0xf]  ;;  %v7765_v48 = vld [vmem:[%s7893_s27 + $0xa4] sm:$0xf0] }
 0x44e   : > { %4321 = vst.msk [vmem:[#allocation3 + $0x98] sm:$0xff] %vm1086_vm0, %v4289_v62  ;;  %5132 = vmatmul.bf16.gmra.mxu3 %v7276_v59  ;;  %v4023_v1 = vpop.f32.mrf.mxu2  ;;  %v7292_v59 = vor.u32 %v7760_v49, %v7289_v50  ;;  %v7764_v49 = vld [vmem:[%s7893_s27 + $0xa4] sm:$0xf]  ;;  %v7305_v50 = vld [vmem:[%s7893_s27 + $0xa8] sm:$0xf0] }
 0x44f   : > { %4226 = vst.msk [vmem:[#allocation2 + $0xa0] sm:$0xff] %vm1086_vm0, %v4194_v0 }
 0x450   : > { %v3687_v4 = vpop.f32.mrf.mxu0 }
 0x451   : > { %v4112_v2 = vpop.f32.mrf.mxu3  ;;  %v3776_v5 = vpop.f32.mrf.mxu1 }
 0x452   : > { %v4113_v3 = vadd.f32 %v4112_v2, %v4023_v1  ;;  %v3777_v7 = vadd.f32 %v3776_v5, %v3687_v4 }
 0x454   : > { %v4290_v8 = vadd.f32 %v4258_v6, %v4113_v3  ;;  %v4195_v11 = vadd.f32 %v4163_v9, %v3777_v7  ;;  %v4262_v6 = vld [vmem:[#allocation3 + $0xc0] sm:$0xff]  ;;  %v4167_v9 = vld [vmem:[#allocation2 + $0xc8] sm:$0xff] }
 0x456   : > { %4322 = vst.msk [vmem:[#allocation3 + $0xa0] sm:$0xff] %vm1086_vm0, %v4290_v8  ;;  %v4025_v19 = vpop.f32.mrf.mxu2 }
 0x457   : > { %4227 = vst.msk [vmem:[#allocation2 + $0xa8] sm:$0xff] %vm1086_vm0, %v4195_v11 }
 0x458   : > { %v3690_v24 = vpop.f32.mrf.mxu0 }
 0x459   : > { %v4114_v20 = vpop.f32.mrf.mxu3  ;;  %v3779_v25 = vpop.f32.mrf.mxu1 }
 0x45a   : > { %v4115_v23 = vadd.f32 %v4114_v20, %v4025_v19  ;;  %v3780_v29 = vadd.f32 %v3779_v25, %v3690_v24 }
 0x45b   : > { %4710 = vmatmul.bf16.gmra.mxu0 %v7088_v21  ;;  %5048 = vmatmul.bf16.gmra.mxu2 %v7280_v26  ;;  %v7104_v21 = vor.u32 %v7731_v12, %v7103_v10  ;;  %v7296_v26 = vor.u32 %v7763_v16, %v7295_v15  ;;  %v7119_v10 = vld [vmem:[%s7888_s24 + $0xb0] sm:$0xf]  ;;  %v7735_v12 = vld [vmem:[%s7888_s24 + $0xb4] sm:$0xf0] }
 0x45c   : > { %v4291_v30 = vadd.f32 %v4259_v28, %v4115_v23  ;;  %v4196_v32 = vadd.f32 %v4164_v31, %v3780_v29  ;;  %4799 = vmatmul.bf16.gmra.mxu1 %v7092_v22  ;;  %v7108_v22 = vor.u32 %v7730_v13, %v7105_v14  ;;  %v4263_v28 = vld [vmem:[#allocation3 + $0xc8] sm:$0xff]  ;;  %v4168_v31 = vld [vmem:[#allocation2 + $0xd0] sm:$0xff]  ;;  %v7121_v14 = vld [vmem:[%s7888_s24 + $0xb8] sm:$0xf0] }
 0x45d   : > { %v7734_v13 = vld [vmem:[%s7888_s24 + $0xb4] sm:$0xf]  ;;  %v7311_v15 = vld [vmem:[%s7893_s27 + $0xb0] sm:$0xf]  ;;  %v7767_v16 = vld [vmem:[%s7893_s27 + $0xb4] sm:$0xf0] }
 0x45e   : > { %4323 = vst.msk [vmem:[#allocation3 + $0xa8] sm:$0xff] %vm1086_vm0, %v4291_v30  ;;  %5137 = vmatmul.bf16.gmra.mxu3 %v7284_v27  ;;  %v4028_v33 = vpop.f32.mrf.mxu2  ;;  %v7300_v27 = vor.u32 %v7762_v17, %v7297_v18  ;;  %v7766_v17 = vld [vmem:[%s7893_s27 + $0xb4] sm:$0xf]  ;;  %v7313_v18 = vld [vmem:[%s7893_s27 + $0xb8] sm:$0xf0] }
 0x45f   : > { %4228 = vst.msk [vmem:[#allocation2 + $0xb0] sm:$0xff] %vm1086_vm0, %v4196_v32 }
 0x460   : > { %v3692_v36 = vpop.f32.mrf.mxu0 }
 0x461   : > { %v4117_v34 = vpop.f32.mrf.mxu3  ;;  %v3781_v37 = vpop.f32.mrf.mxu1 }
 0x462   : > { %v4118_v35 = vadd.f32 %v4117_v34, %v4028_v33  ;;  %v3782_v39 = vadd.f32 %v3781_v37, %v3692_v36 }
 0x464   : > { %v4292_v40 = vadd.f32 %v4260_v38, %v4118_v35  ;;  %v4197_v43 = vadd.f32 %v4165_v41, %v3782_v39  ;;  %v4264_v38 = vld [vmem:[#allocation3 + $0xd0] sm:$0xff]  ;;  %v4169_v41 = vld [vmem:[#allocation2 + $0xd8] sm:$0xff] }
 0x466   : > { %4324 = vst.msk [vmem:[#allocation3 + $0xb0] sm:$0xff] %vm1086_vm0, %v4292_v40  ;;  %v4030_v51 = vpop.f32.mrf.mxu2 }
 0x467   : > { %4229 = vst.msk [vmem:[#allocation2 + $0xb8] sm:$0xff] %vm1086_vm0, %v4197_v43 }
 0x468   : > { %v3695_v56 = vpop.f32.mrf.mxu0 }
 0x469   : > { %v4119_v52 = vpop.f32.mrf.mxu3  ;;  %v3784_v57 = vpop.f32.mrf.mxu1 }
 0x46a   : > { %v4120_v55 = vadd.f32 %v4119_v52, %v4030_v51  ;;  %v3785_v61 = vadd.f32 %v3784_v57, %v3695_v56 }
 0x46b   : > { %4715 = vmatmul.bf16.gmra.mxu0 %v7096_v53  ;;  %5053 = vmatmul.bf16.gmra.mxu2 %v7288_v58  ;;  %v7112_v53 = vor.u32 %v7733_v44, %v7111_v42  ;;  %v7304_v58 = vor.u32 %v7765_v48, %v7303_v47  ;;  %v7127_v42 = vld [vmem:[%s7888_s24 + $0xc0] sm:$0xf]  ;;  %v7737_v44 = vld [vmem:[%s7888_s24 + $0xc4] sm:$0xf0] }
 0x46c   : > { %v4293_v62 = vadd.f32 %v4261_v60, %v4120_v55  ;;  %v4198_v0 = vadd.f32 %v4166_v63, %v3785_v61  ;;  %4804 = vmatmul.bf16.gmra.mxu1 %v7100_v54  ;;  %v7116_v54 = vor.u32 %v7732_v45, %v7113_v46  ;;  %v4265_v60 = vld [vmem:[#allocation3 + $0xd8] sm:$0xff]  ;;  %v4170_v63 = vld [vmem:[#allocation2 + $0xe0] sm:$0xff]  ;;  %v7129_v46 = vld [vmem:[%s7888_s24 + $0xc8] sm:$0xf0] }
 0x46d   : > { %v7736_v45 = vld [vmem:[%s7888_s24 + $0xc4] sm:$0xf]  ;;  %v7319_v47 = vld [vmem:[%s7893_s27 + $0xc0] sm:$0xf]  ;;  %v7769_v48 = vld [vmem:[%s7893_s27 + $0xc4] sm:$0xf0] }
 0x46e   : > { %4325 = vst.msk [vmem:[#allocation3 + $0xb8] sm:$0xff] %vm1086_vm0, %v4293_v62  ;;  %5142 = vmatmul.bf16.gmra.mxu3 %v7292_v59  ;;  %v4033_v1 = vpop.f32.mrf.mxu2  ;;  %v7308_v59 = vor.u32 %v7764_v49, %v7305_v50  ;;  %v7768_v49 = vld [vmem:[%s7893_s27 + $0xc4] sm:$0xf]  ;;  %v7321_v50 = vld [vmem:[%s7893_s27 + $0xc8] sm:$0xf0] }
 0x46f   : > { %4230 = vst.msk [vmem:[#allocation2 + $0xc0] sm:$0xff] %vm1086_vm0, %v4198_v0 }
 0x470   : > { %v3697_v4 = vpop.f32.mrf.mxu0 }
 0x471   : > { %v4122_v2 = vpop.f32.mrf.mxu3  ;;  %v3786_v5 = vpop.f32.mrf.mxu1 }
 0x472   : > { %v4123_v3 = vadd.f32 %v4122_v2, %v4033_v1  ;;  %v3787_v7 = vadd.f32 %v3786_v5, %v3697_v4 }
 0x474   : > { %v4294_v8 = vadd.f32 %v4262_v6, %v4123_v3  ;;  %v4199_v11 = vadd.f32 %v4167_v9, %v3787_v7  ;;  %v4266_v6 = vld [vmem:[#allocation3 + $0xe0] sm:$0xff]  ;;  %v4171_v9 = vld [vmem:[#allocation2 + $0xe8] sm:$0xff] }
 0x476   : > { %4326 = vst.msk [vmem:[#allocation3 + $0xc0] sm:$0xff] %vm1086_vm0, %v4294_v8  ;;  %v4035_v19 = vpop.f32.mrf.mxu2 }
 0x477   : > { %4231 = vst.msk [vmem:[#allocation2 + $0xc8] sm:$0xff] %vm1086_vm0, %v4199_v11 }
 0x478   : > { %v3700_v24 = vpop.f32.mrf.mxu0 }
 0x479   : > { %v4124_v20 = vpop.f32.mrf.mxu3  ;;  %v3789_v25 = vpop.f32.mrf.mxu1 }
 0x47a   : > { %v4125_v23 = vadd.f32 %v4124_v20, %v4035_v19  ;;  %v3790_v29 = vadd.f32 %v3789_v25, %v3700_v24 }
 0x47b   : > { %4720 = vmatmul.bf16.gmra.mxu0 %v7104_v21  ;;  %5058 = vmatmul.bf16.gmra.mxu2 %v7296_v26  ;;  %v7120_v21 = vor.u32 %v7735_v12, %v7119_v10  ;;  %v7312_v26 = vor.u32 %v7767_v16, %v7311_v15  ;;  %v7135_v10 = vld [vmem:[%s7888_s24 + $0xd0] sm:$0xf]  ;;  %v7739_v12 = vld [vmem:[%s7888_s24 + $0xd4] sm:$0xf0] }
 0x47c   : > { %v4295_v30 = vadd.f32 %v4263_v28, %v4125_v23  ;;  %v4200_v32 = vadd.f32 %v4168_v31, %v3790_v29  ;;  %4809 = vmatmul.bf16.gmra.mxu1 %v7108_v22  ;;  %v7124_v22 = vor.u32 %v7734_v13, %v7121_v14  ;;  %v4267_v28 = vld [vmem:[#allocation3 + $0xe8] sm:$0xff]  ;;  %v4172_v31 = vld [vmem:[#allocation2 + $0xf0] sm:$0xff]  ;;  %v7137_v14 = vld [vmem:[%s7888_s24 + $0xd8] sm:$0xf0] }
 0x47d   : > { %v7738_v13 = vld [vmem:[%s7888_s24 + $0xd4] sm:$0xf]  ;;  %v7327_v15 = vld [vmem:[%s7893_s27 + $0xd0] sm:$0xf]  ;;  %v7771_v16 = vld [vmem:[%s7893_s27 + $0xd4] sm:$0xf0] }
 0x47e   : > { %4327 = vst.msk [vmem:[#allocation3 + $0xc8] sm:$0xff] %vm1086_vm0, %v4295_v30  ;;  %5147 = vmatmul.bf16.gmra.mxu3 %v7300_v27  ;;  %v4038_v33 = vpop.f32.mrf.mxu2  ;;  %v7316_v27 = vor.u32 %v7766_v17, %v7313_v18  ;;  %v7770_v17 = vld [vmem:[%s7893_s27 + $0xd4] sm:$0xf]  ;;  %v7329_v18 = vld [vmem:[%s7893_s27 + $0xd8] sm:$0xf0] }
 0x47f   : > { %4232 = vst.msk [vmem:[#allocation2 + $0xd0] sm:$0xff] %vm1086_vm0, %v4200_v32 }
 0x480   : > { %v3702_v36 = vpop.f32.mrf.mxu0 }
 0x481   : > { %v4127_v34 = vpop.f32.mrf.mxu3  ;;  %v3791_v37 = vpop.f32.mrf.mxu1 }
 0x482   : > { %v4128_v35 = vadd.f32 %v4127_v34, %v4038_v33  ;;  %v3792_v39 = vadd.f32 %v3791_v37, %v3702_v36 }
 0x484   : > { %v4296_v40 = vadd.f32 %v4264_v38, %v4128_v35  ;;  %v4201_v43 = vadd.f32 %v4169_v41, %v3792_v39  ;;  %v4268_v38 = vld [vmem:[#allocation3 + $0xf0] sm:$0xff]  ;;  %v4173_v41 = vld [vmem:[#allocation2 + $0xf8] sm:$0xff] }
 0x486   : > { %4328 = vst.msk [vmem:[#allocation3 + $0xd0] sm:$0xff] %vm1086_vm0, %v4296_v40  ;;  %v4040_v51 = vpop.f32.mrf.mxu2 }
 0x487   : > { %4233 = vst.msk [vmem:[#allocation2 + $0xd8] sm:$0xff] %vm1086_vm0, %v4201_v43 }
 0x488   : > { %v3705_v56 = vpop.f32.mrf.mxu0 }
 0x489   : > { %v4129_v52 = vpop.f32.mrf.mxu3  ;;  %v3794_v57 = vpop.f32.mrf.mxu1 }
 0x48a   : > { %v4130_v55 = vadd.f32 %v4129_v52, %v4040_v51  ;;  %v3795_v61 = vadd.f32 %v3794_v57, %v3705_v56 }
 0x48b   : > { %4725 = vmatmul.bf16.gmra.mxu0 %v7112_v53  ;;  %5063 = vmatmul.bf16.gmra.mxu2 %v7304_v58  ;;  %v7128_v53 = vor.u32 %v7737_v44, %v7127_v42  ;;  %v7320_v58 = vor.u32 %v7769_v48, %v7319_v47  ;;  %v7143_v42 = vld [vmem:[%s7888_s24 + $0xe0] sm:$0xf]  ;;  %v7741_v44 = vld [vmem:[%s7888_s24 + $0xe4] sm:$0xf0] }
 0x48c   : > { %v4297_v62 = vadd.f32 %v4265_v60, %v4130_v55  ;;  %v4202_v0 = vadd.f32 %v4170_v63, %v3795_v61  ;;  %4814 = vmatmul.bf16.gmra.mxu1 %v7116_v54  ;;  %v7132_v54 = vor.u32 %v7736_v45, %v7129_v46  ;;  %v4269_v60 = vld [vmem:[#allocation3 + $0xf8] sm:$0xff]  ;;  %v5203_v63 = vld [vmem:[#allocation2] sm:$0xff]  ;;  %v7145_v46 = vld [vmem:[%s7888_s24 + $0xe8] sm:$0xf0] }
 0x48d   : > { %v7740_v45 = vld [vmem:[%s7888_s24 + $0xe4] sm:$0xf]  ;;  %v7335_v47 = vld [vmem:[%s7893_s27 + $0xe0] sm:$0xf]  ;;  %v7773_v48 = vld [vmem:[%s7893_s27 + $0xe4] sm:$0xf0] }
 0x48e   : > { %4329 = vst.msk [vmem:[#allocation3 + $0xd8] sm:$0xff] %vm1086_vm0, %v4297_v62  ;;  %5152 = vmatmul.bf16.gmra.mxu3 %v7308_v59  ;;  %v4043_v1 = vpop.f32.mrf.mxu2  ;;  %v7324_v59 = vor.u32 %v7768_v49, %v7321_v50  ;;  %v7772_v49 = vld [vmem:[%s7893_s27 + $0xe4] sm:$0xf]  ;;  %v7337_v50 = vld [vmem:[%s7893_s27 + $0xe8] sm:$0xf0] }
 0x48f   : > { %4234 = vst.msk [vmem:[#allocation2 + $0xe0] sm:$0xff] %vm1086_vm0, %v4202_v0 }
 0x490   : > { %v3707_v4 = vpop.f32.mrf.mxu0 }
 0x491   : > { %v4132_v2 = vpop.f32.mrf.mxu3  ;;  %v3796_v5 = vpop.f32.mrf.mxu1 }
 0x492   : > { %v4133_v3 = vadd.f32 %v4132_v2, %v4043_v1  ;;  %v3797_v7 = vadd.f32 %v3796_v5, %v3707_v4 }
 0x494   : > { %v4298_v8 = vadd.f32 %v4266_v6, %v4133_v3  ;;  %v4203_v11 = vadd.f32 %v4171_v9, %v3797_v7  ;;  %v5299_v6 = vld [vmem:[#allocation3] sm:$0xff]  ;;  %v5204_v9 = vld [vmem:[#allocation2 + $0x8] sm:$0xff] }
 0x496   : > { %4330 = vst.msk [vmem:[#allocation3 + $0xe0] sm:$0xff] %vm1086_vm0, %v4298_v8  ;;  %v4045_v19 = vpop.f32.mrf.mxu2 }
 0x497   : > { %4235 = vst.msk [vmem:[#allocation2 + $0xe8] sm:$0xff] %vm1086_vm0, %v4203_v11 }
 0x498   : > { %v3710_v24 = vpop.f32.mrf.mxu0 }
 0x499   : > { %v4134_v20 = vpop.f32.mrf.mxu3  ;;  %v3799_v25 = vpop.f32.mrf.mxu1 }
 0x49a   : > { %v4135_v23 = vadd.f32 %v4134_v20, %v4045_v19  ;;  %v3800_v29 = vadd.f32 %v3799_v25, %v3710_v24 }
 0x49b   : > { %4730 = vmatmul.bf16.gmra.mxu0 %v7120_v21  ;;  %5068 = vmatmul.bf16.gmra.mxu2 %v7312_v26  ;;  %v7136_v21 = vor.u32 %v7739_v12, %v7135_v10  ;;  %v7328_v26 = vor.u32 %v7771_v16, %v7327_v15  ;;  %v5303_v16 = vld [vmem:[#allocation3 + $0x20] sm:$0xff] }
 0x49c   : > { %v4299_v30 = vadd.f32 %v4267_v28, %v4135_v23  ;;  %v4204_v32 = vadd.f32 %v4172_v31, %v3800_v29  ;;  %4819 = vmatmul.bf16.gmra.mxu1 %v7124_v22  ;;  %v7140_v22 = vor.u32 %v7738_v13, %v7137_v14  ;;  %v5300_v28 = vld [vmem:[#allocation3 + $0x8] sm:$0xff]  ;;  %v5205_v31 = vld [vmem:[#allocation2 + $0x10] sm:$0xff] }
 0x49e   : > { %4331 = vst.msk [vmem:[#allocation3 + $0xe8] sm:$0xff] %vm1086_vm0, %v4299_v30  ;;  %5157 = vmatmul.bf16.gmra.mxu3 %v7316_v27  ;;  %v4048_v33 = vpop.f32.mrf.mxu2  ;;  %v7332_v27 = vor.u32 %v7770_v17, %v7329_v18 }
 0x49f   : > { %4236 = vst.msk [vmem:[#allocation2 + $0xf0] sm:$0xff] %vm1086_vm0, %v4204_v32 }
 0x4a0   : > { %v3712_v36 = vpop.f32.mrf.mxu0 }
 0x4a1   : > { %v4137_v34 = vpop.f32.mrf.mxu3  ;;  %v3801_v37 = vpop.f32.mrf.mxu1 }
 0x4a2   : > { %v4138_v35 = vadd.f32 %v4137_v34, %v4048_v33  ;;  %v3802_v39 = vadd.f32 %v3801_v37, %v3712_v36 }
 0x4a4   : > { %v4300_v40 = vadd.f32 %v4268_v38, %v4138_v35  ;;  %v4205_v43 = vadd.f32 %v4173_v41, %v3802_v39  ;;  %v5301_v38 = vld [vmem:[#allocation3 + $0x10] sm:$0xff]  ;;  %v5206_v41 = vld [vmem:[#allocation2 + $0x18] sm:$0xff] }
 0x4a6   : > { %4332 = vst.msk [vmem:[#allocation3 + $0xf0] sm:$0xff] %vm1086_vm0, %v4300_v40  ;;  %v4050_v51 = vpop.f32.mrf.mxu2 }
 0x4a7   : > { %4237 = vst.msk [vmem:[#allocation2 + $0xf8] sm:$0xff] %vm1086_vm0, %v4205_v43 }
 0x4a8   : > { %v4696_v56 = vpop.f32.mrf.mxu0 }
 0x4a9   : > { %v4139_v52 = vpop.f32.mrf.mxu3  ;;  %v4785_v57 = vpop.f32.mrf.mxu1 }
 0x4aa   : > { %v4140_v55 = vadd.f32 %v4139_v52, %v4050_v51  ;;  %v4786_v61 = vadd.f32 %v4785_v57, %v4696_v56 }
 0x4ab   : > { %4735 = vmatmul.bf16.gmra.mxu0 %v7128_v53  ;;  %5073 = vmatmul.bf16.gmra.mxu2 %v7320_v58  ;;  %v7144_v53 = vor.u32 %v7741_v44, %v7143_v42  ;;  %v7336_v58 = vor.u32 %v7773_v48, %v7335_v47  ;;  %v5304_v47 = vld [vmem:[#allocation3 + $0x28] sm:$0xff] }
 0x4ac   : > { %v4301_v62 = vadd.f32 %v4269_v60, %v4140_v55  ;;  %v5235_v0 = vadd.f32 %v5203_v63, %v4786_v61  ;;  %4824 = vmatmul.bf16.gmra.mxu1 %v7132_v54  ;;  %v7148_v54 = vor.u32 %v7740_v45, %v7145_v46  ;;  %v5302_v61 = vld [vmem:[#allocation3 + $0x18] sm:$0xff] }
 0x4ae   : > { %4333 = vst.msk [vmem:[#allocation3 + $0xf8] sm:$0xff] %vm1086_vm0, %v4301_v62  ;;  %5162 = vmatmul.bf16.gmra.mxu3 %v7324_v59  ;;  %v5034_v1 = vpop.f32.mrf.mxu2  ;;  %v7340_v59 = vor.u32 %v7772_v49, %v7337_v50 }
 0x4af   : > { %5267 = vst.msk [vmem:[#allocation2] sm:$0xff] %vm1086_vm0, %v5235_v0  ;;  %v5207_v0 = vld [vmem:[#allocation2 + $0x20] sm:$0xff] }
 0x4b0   : > { %v4698_v4 = vpop.f32.mrf.mxu0 }
 0x4b1   : > { %v5123_v2 = vpop.f32.mrf.mxu3  ;;  %v4787_v5 = vpop.f32.mrf.mxu1 }
 0x4b2   : > { %v5124_v3 = vadd.f32 %v5123_v2, %v5034_v1  ;;  %v4788_v7 = vadd.f32 %v4787_v5, %v4698_v4 }
 0x4b4   : > { %v5331_v8 = vadd.f32 %v5299_v6, %v5124_v3  ;;  %v5236_v11 = vadd.f32 %v5204_v9, %v4788_v7  ;;  %v8959_v7 = vld [vmem:[%s9123_s3] ss:$0 sm:$0xff] }
 0x4b6   : > { %5363 = vst.msk [vmem:[#allocation3] sm:$0xff] %vm1086_vm0, %v5331_v8  ;;  %v5036_v19 = vpop.f32.mrf.mxu2  ;;  %v5395_v1 = vld [vmem:[#allocation2] sm:$0xff] }
 0x4b7   : > { %5268 = vst.msk [vmem:[#allocation2 + $0x8] sm:$0xff] %vm1086_vm0, %v5236_v11 }
 0x4b8   : > { %v4701_v24 = vpop.f32.mrf.mxu0 }
 0x4b9   : > { %v5125_v20 = vpop.f32.mrf.mxu3  ;;  %v4790_v25 = vpop.f32.mrf.mxu1 }
 0x4ba   : > { %v5126_v23 = vadd.f32 %v5125_v20, %v5036_v19  ;;  %v4791_v29 = vadd.f32 %v4790_v25, %v4701_v24  ;;  %v5208_v20 = vld [vmem:[#allocation2 + $0x28] sm:$0xff]  ;;  %v7153_v24 = vld [vmem:[%s7888_s24 + $0xf8] sm:$0xf0] }
 0x4bb   : > { %4740 = vmatmul.bf16.gmra.mxu0 %v7136_v21  ;;  %5078 = vmatmul.bf16.gmra.mxu2 %v7328_v26  ;;  %v7151_v21 = vld [vmem:[%s7888_s24 + $0xf0] sm:$0xf] }
 0x4bc   : > { %v5332_v30 = vadd.f32 %v5300_v28, %v5126_v23  ;;  %v5237_v32 = vadd.f32 %v5205_v31, %v4791_v29  ;;  %4829 = vmatmul.bf16.gmra.mxu1 %v7140_v22  ;;  %v7743_v22 = vld [vmem:[%s7888_s24 + $0xf4] sm:$0xf0]  ;;  %v7742_v23 = vld [vmem:[%s7888_s24 + $0xf4] sm:$0xf] }
 0x4bd   : > { %v5427_v60 = vld [vmem:[#allocation3] sm:$0xff] }
 0x4be   : > { %5364 = vst.msk [vmem:[#allocation3 + $0x8] sm:$0xff] %vm1086_vm0, %v5332_v30  ;;  %5167 = vmatmul.bf16.gmra.mxu3 %v7332_v27  ;;  %v5039_v33 = vpop.f32.mrf.mxu2  ;;  %v5459_v5 = vmax.f32 %v5395_v1, %v5427_v60  ;;  %v5396_v25 = vld [vmem:[#allocation2 + $0x8] sm:$0xff] }
 0x4bf   : > { %5269 = vst.msk [vmem:[#allocation2 + $0x10] sm:$0xff] %vm1086_vm0, %v5237_v32  ;;  %v7343_v32 = vld [vmem:[%s7893_s27 + $0xf0] sm:$0xf]  ;;  %v7745_v1 = vld [vmem:[%s7888_s24 + $0x104] sm:$0xf0] }
 0x4c0   : > { %v4703_v36 = vpop.f32.mrf.mxu0 }
 0x4c1   : > { %v5128_v34 = vpop.f32.mrf.mxu3  ;;  %v4792_v37 = vpop.f32.mrf.mxu1 }
 0x4c2   : > { %v5129_v35 = vadd.f32 %v5128_v34, %v5039_v33  ;;  %v4793_v39 = vadd.f32 %v4792_v37, %v4703_v36  ;;  %v7775_v33 = vld [vmem:[%s7893_s27 + $0xf4] sm:$0xf0]  ;;  %v7774_v34 = vld [vmem:[%s7893_s27 + $0xf4] sm:$0xf] }
 0x4c3   : > { %v7344_v45 = vor.u32 %v7775_v33, %v7343_v32 }
 0x4c4   : > { %v5333_v40 = vadd.f32 %v5301_v38, %v5129_v35  ;;  %v5238_v43 = vadd.f32 %v5206_v41, %v4793_v39  ;;  %v7345_v35 = vld [vmem:[%s7893_s27 + $0xf8] sm:$0xf0]  ;;  %v7152_v39 = vor.u32 %v7743_v22, %v7151_v21  ;;  %v5211_v22 = vld [vmem:[#allocation2 + $0x40] sm:$0xff] }
 0x4c5   : > { %v5428_v15 = vld [vmem:[#allocation3 + $0x8] sm:$0xff]  ;;  %v7348_v46 = vor.u32 %v7774_v34, %v7345_v35 }
 0x4c6   : > { %5365 = vst.msk [vmem:[#allocation3 + $0x10] sm:$0xff] %vm1086_vm0, %v5333_v40  ;;  %v5041_v51 = vpop.f32.mrf.mxu2  ;;  %v5397_v2 = vld [vmem:[#allocation2 + $0x10] sm:$0xff]  ;;  %v5460_v29 = vmax.f32 %v5396_v25, %v5428_v15  ;;  %v7156_v40 = vor.u32 %v7742_v23, %v7153_v24 }
 0x4c7   : > { %5270 = vst.msk [vmem:[#allocation2 + $0x18] sm:$0xff] %vm1086_vm0, %v5238_v43 }
 0x4c8   : > { %v4706_v56 = vpop.f32.mrf.mxu0 }
 0x4c9   : > { %v5130_v52 = vpop.f32.mrf.mxu3  ;;  %v4795_v57 = vpop.f32.mrf.mxu1 }
 0x4ca   : > { %v5131_v55 = vadd.f32 %v5130_v52, %v5041_v51  ;;  %v4796_v62 = vadd.f32 %v4795_v57, %v4706_v56  ;;  %v5209_v51 = vld [vmem:[#allocation2 + $0x30] sm:$0xff] }
 0x4cb   : > { %4745 = vmatmul.bf16.gmra.mxu0 %v7144_v53  ;;  %5083 = vmatmul.bf16.gmra.mxu2 %v7336_v58 }
 0x4cc   : > { %v5334_v63 = vadd.f32 %v5302_v61, %v5131_v55  ;;  %v5239_v4 = vadd.f32 %v5207_v0, %v4796_v62  ;;  %4834 = vmatmul.bf16.gmra.mxu1 %v7148_v54  ;;  %v5210_v62 = vld [vmem:[#allocation2 + $0x38] sm:$0xff] }
 0x4cd   : > { %v5429_v3 = vld [vmem:[#allocation3 + $0x10] sm:$0xff] }
 0x4ce   : > { %v5461_v6 = vmax.f32 %v5397_v2, %v5429_v3  ;;  %5366 = vst.msk [vmem:[#allocation3 + $0x18] sm:$0xff] %vm1086_vm0, %v5334_v63  ;;  %5172 = vmatmul.bf16.gmra.mxu3 %v7340_v59  ;;  %v5044_v9 = vpop.f32.mrf.mxu2  ;;  %v5398_v26 = vld [vmem:[#allocation2 + $0x18] sm:$0xff]  ;;  %v5305_v59 = vld [vmem:[#allocation3 + $0x30] sm:$0xff]  ;;  %v7159_v63 = vld [vmem:[%s7888_s24 + $0x100] sm:$0xf] }
 0x4cf   : > { %5271 = vst.msk [vmem:[#allocation2 + $0x20] sm:$0xff] %vm1086_vm0, %v5239_v4  ;;  %v7744_v2 = vld [vmem:[%s7888_s24 + $0x104] sm:$0xf]  ;;  %v7161_v3 = vld [vmem:[%s7888_s24 + $0x108] sm:$0xf0] }
 0x4d0   : > { %v5491_v8 = vmax.f32 %v5459_v5, %v5461_v6  ;;  %v4708_v13 = vpop.f32.mrf.mxu0  ;;  %v7351_v4 = vld [vmem:[%s7893_s27 + $0x100] sm:$0xf]  ;;  %v7777_v5 = vld [vmem:[%s7893_s27 + $0x104] sm:$0xf0]  ;;  %v7776_v6 = vld [vmem:[%s7893_s27 + $0x104] sm:$0xf] }
 0x4d1   : > { %v5133_v10 = vpop.f32.mrf.mxu3  ;;  %v4797_v14 = vpop.f32.mrf.mxu1 }
 0x4d2   : > { %v5511_v11 = vadd.f32 %v8959_v7, %v5491_v8  ;;  %v5134_v12 = vadd.f32 %v5133_v10, %v5044_v9  ;;  %v4798_v17 = vadd.f32 %v4797_v14, %v4708_v13  ;;  %v7353_v8 = vld [vmem:[%s7893_s27 + $0x108] sm:$0xf0] }
 0x4d4   : > { %v5527_v18 = vmax.f32 %v5511_v11, 0.0  ;;  %v5335_v19 = vadd.f32 %v5303_v16, %v5134_v12  ;;  %v5240_v28 = vadd.f32 %v5208_v20, %v4798_v17  ;;  %v7160_v11 = vor.u32 %v7745_v1, %v7159_v63 }
 0x4d5   : > { %v5430_v27 = vld [vmem:[#allocation3 + $0x18] sm:$0xff]  ;;  %v7164_v12 = vor.u32 %v7744_v2, %v7161_v3  ;;  %v7352_v16 = vor.u32 %v7777_v5, %v7351_v4  ;;  %v7356_v17 = vor.u32 %v7776_v6, %v7353_v8  ;;  %v5308_v4 = vld [vmem:[#allocation3 + $0x48] sm:$0xff] }
 0x4d6   : > { %v5543_v30 = vpack.c.bf16 %v5527_v18, %v5527_v18  ;;  %v5462_v31 = vmax.f32 %v5398_v26, %v5430_v27  ;;  %5367 = vst.msk [vmem:[#allocation3 + $0x20] sm:$0xff] %vm1086_vm0, %v5335_v19  ;;  %v5046_v37 = vpop.f32.mrf.mxu2  ;;  %v5306_v19 = vld [vmem:[#allocation3 + $0x38] sm:$0xff]  ;;  %v5399_v23 = vld [vmem:[#allocation2 + $0x20] sm:$0xff] }
 0x4d7   : > { %5272 = vst.msk [vmem:[#allocation2 + $0x28] sm:$0xff] %vm1086_vm0, %v5240_v28 }
 0x4d8   : > { %5560 = vst.msk [vmem:[%s8972_s6] sm:$0xf] %vm5559_vm1, %v5543_v30  ;;  %v5492_v36 = vmax.f32 %v5460_v29, %v5462_v31  ;;  %v4711_v43 = vpop.f32.mrf.mxu0 }
 0x4d9   : > { %v5135_v38 = vpop.f32.mrf.mxu3  ;;  %v4800_v44 = vpop.f32.mrf.mxu1 }
 0x4da   : > { %v5512_v41 = vadd.f32 %v8959_v7, %v5492_v36  ;;  %v5136_v42 = vadd.f32 %v5135_v38, %v5046_v37  ;;  %v4801_v48 = vadd.f32 %v4800_v44, %v4711_v43  ;;  %v5307_v37 = vld [vmem:[#allocation3 + $0x40] sm:$0xff]  ;;  %v7747_v43 = vld [vmem:[%s7888_s24 + $0x114] sm:$0xf0]  ;;  %v7746_v44 = vld [vmem:[%s7888_s24 + $0x114] sm:$0xf] }
 0x4db   : > { %4750 = vmatmul.bf16.gmra.mxu0 %v7152_v39  ;;  %5088 = vmatmul.bf16.gmra.mxu2 %v7344_v45  ;;  %v7169_v45 = vld [vmem:[%s7888_s24 + $0x118] sm:$0xf0] }
 0x4dc   : > { %v5528_v49 = vmax.f32 %v5512_v41, 0.0  ;;  %v5336_v50 = vadd.f32 %v5304_v47, %v5136_v42  ;;  %v5241_v52 = vadd.f32 %v5209_v51, %v4801_v48  ;;  %4839 = vmatmul.bf16.gmra.mxu1 %v7156_v40  ;;  %v5212_v41 = vld [vmem:[#allocation2 + $0x48] sm:$0xff]  ;;  %v7167_v42 = vld [vmem:[%s7888_s24 + $0x110] sm:$0xf] }
 0x4dd   : > { %v5431_v18 = vld [vmem:[#allocation3 + $0x20] sm:$0xff] }
 0x4de   : > { %v5544_v53 = vpack.c.bf16 %v5528_v49, %v5528_v49  ;;  %5368 = vst.msk [vmem:[#allocation3 + $0x28] sm:$0xff] %vm1086_vm0, %v5336_v50  ;;  %5177 = vmatmul.bf16.gmra.mxu3 %v7348_v46  ;;  %v5049_v54 = vpop.f32.mrf.mxu2  ;;  %v5463_v27 = vmax.f32 %v5399_v23, %v5431_v18  ;;  %v5400_v46 = vld [vmem:[#allocation2 + $0x28] sm:$0xff] }
 0x4df   : > { %5273 = vst.msk [vmem:[#allocation2 + $0x30] sm:$0xff] %vm1086_vm0, %v5241_v52  ;;  %v7749_v23 = vld [vmem:[%s7888_s24 + $0x124] sm:$0xf0] }
 0x4e0   : > { %5562 = vst.msk [vmem:[%s8972_s6 + $0x4] sm:$0x7] %vm5561_vm2, %v5544_v53  ;;  %v4713_v57 = vpop.f32.mrf.mxu0  ;;  %v7359_v53 = vld [vmem:[%s7893_s27 + $0x110] sm:$0xf] }
 0x4e1   : > { %v5138_v55 = vpop.f32.mrf.mxu3  ;;  %v4802_v58 = vpop.f32.mrf.mxu1 }
 0x4e2   : > { %v5139_v56 = vadd.f32 %v5138_v55, %v5049_v54  ;;  %v4803_v60 = vadd.f32 %v4802_v58, %v4713_v57  ;;  %v7779_v54 = vld [vmem:[%s7893_s27 + $0x114] sm:$0xf0]  ;;  %v7778_v55 = vld [vmem:[%s7893_s27 + $0x114] sm:$0xf] }
 0x4e3   : > { %v7360_v2 = vor.u32 %v7779_v54, %v7359_v53 }
 0x4e4   : > { %v5337_v61 = vadd.f32 %v5305_v59, %v5139_v56  ;;  %v5242_v0 = vadd.f32 %v5210_v62, %v4803_v60  ;;  %v7361_v56 = vld [vmem:[%s7893_s27 + $0x118] sm:$0xf0]  ;;  %v7168_v60 = vor.u32 %v7747_v43, %v7167_v42  ;;  %v5215_v43 = vld [vmem:[#allocation2 + $0x60] sm:$0xff] }
 0x4e5   : > { %v5432_v36 = vld [vmem:[#allocation3 + $0x28] sm:$0xff]  ;;  %v7364_v3 = vor.u32 %v7778_v55, %v7361_v56 }
 0x4e6   : > { %5369 = vst.msk [vmem:[#allocation3 + $0x30] sm:$0xff] %vm1086_vm0, %v5337_v61  ;;  %v5051_v9 = vpop.f32.mrf.mxu2  ;;  %v5401_v24 = vld [vmem:[#allocation2 + $0x30] sm:$0xff]  ;;  %v5464_v50 = vmax.f32 %v5400_v46, %v5432_v36  ;;  %v7172_v61 = vor.u32 %v7746_v44, %v7169_v45 }
 0x4e7   : > { %5274 = vst.msk [vmem:[#allocation2 + $0x38] sm:$0xff] %vm1086_vm0, %v5242_v0 }
 0x4e8   : > { %v4716_v14 = vpop.f32.mrf.mxu0 }
 0x4e9   : > { %v5140_v10 = vpop.f32.mrf.mxu3  ;;  %v4805_v15 = vpop.f32.mrf.mxu1 }
 0x4ea   : > { %v5141_v13 = vadd.f32 %v5140_v10, %v5051_v9  ;;  %v4806_v20 = vadd.f32 %v4805_v15, %v4716_v14  ;;  %v5213_v9 = vld [vmem:[#allocation2 + $0x50] sm:$0xff] }
 0x4eb   : > { %4755 = vmatmul.bf16.gmra.mxu0 %v7160_v11  ;;  %5093 = vmatmul.bf16.gmra.mxu2 %v7352_v16 }
 0x4ec   : > { %v5338_v21 = vadd.f32 %v5306_v19, %v5141_v13  ;;  %v5243_v26 = vadd.f32 %v5211_v22, %v4806_v20  ;;  %4844 = vmatmul.bf16.gmra.mxu1 %v7164_v12  ;;  %v5214_v20 = vld [vmem:[#allocation2 + $0x58] sm:$0xff] }
 0x4ed   : > { %v5433_v25 = vld [vmem:[#allocation3 + $0x30] sm:$0xff] }
 0x4ee   : > { %v5465_v28 = vmax.f32 %v5401_v24, %v5433_v25  ;;  %5370 = vst.msk [vmem:[#allocation3 + $0x38] sm:$0xff] %vm1086_vm0, %v5338_v21  ;;  %5182 = vmatmul.bf16.gmra.mxu3 %v7356_v17  ;;  %v5054_v30 = vpop.f32.mrf.mxu2  ;;  %v5402_v47 = vld [vmem:[#allocation2 + $0x38] sm:$0xff]  ;;  %v5309_v17 = vld [vmem:[#allocation3 + $0x50] sm:$0xff]  ;;  %v7175_v21 = vld [vmem:[%s7888_s24 + $0x120] sm:$0xf] }
 0x4ef   : > { %5275 = vst.msk [vmem:[#allocation2 + $0x40] sm:$0xff] %vm1086_vm0, %v5243_v26  ;;  %v7748_v24 = vld [vmem:[%s7888_s24 + $0x124] sm:$0xf]  ;;  %v7177_v25 = vld [vmem:[%s7888_s24 + $0x128] sm:$0xf0] }
 0x4f0   : > { %v5493_v29 = vmax.f32 %v5463_v27, %v5465_v28  ;;  %v4718_v34 = vpop.f32.mrf.mxu0  ;;  %v7367_v26 = vld [vmem:[%s7893_s27 + $0x120] sm:$0xf]  ;;  %v7781_v27 = vld [vmem:[%s7893_s27 + $0x124] sm:$0xf0]  ;;  %v7780_v28 = vld [vmem:[%s7893_s27 + $0x124] sm:$0xf] }
 0x4f1   : > { %v5143_v31 = vpop.f32.mrf.mxu3  ;;  %v4807_v35 = vpop.f32.mrf.mxu1 }
 0x4f2   : > { %v5513_v32 = vadd.f32 %v8959_v7, %v5493_v29  ;;  %v5144_v33 = vadd.f32 %v5143_v31, %v5054_v30  ;;  %v4808_v38 = vadd.f32 %v4807_v35, %v4718_v34  ;;  %v7369_v29 = vld [vmem:[%s7893_s27 + $0x128] sm:$0xf0] }
 0x4f4   : > { %v5529_v39 = vmax.f32 %v5513_v32, 0.0  ;;  %v5339_v40 = vadd.f32 %v5307_v37, %v5144_v33  ;;  %v5244_v49 = vadd.f32 %v5212_v41, %v4808_v38  ;;  %v7176_v32 = vor.u32 %v7749_v23, %v7175_v21 }
 0x4f5   : > { %v5434_v48 = vld [vmem:[#allocation3 + $0x38] sm:$0xff]  ;;  %v7180_v33 = vor.u32 %v7748_v24, %v7177_v25  ;;  %v7368_v37 = vor.u32 %v7781_v27, %v7367_v26  ;;  %v7372_v38 = vor.u32 %v7780_v28, %v7369_v29  ;;  %v5312_v26 = vld [vmem:[#allocation3 + $0x68] sm:$0xff] }
 0x4f6   : > { %v5545_v51 = vpack.c.bf16 %v5529_v39, %v5529_v39  ;;  %v5466_v52 = vmax.f32 %v5402_v47, %v5434_v48  ;;  %5371 = vst.msk [vmem:[#allocation3 + $0x40] sm:$0xff] %vm1086_vm0, %v5339_v40  ;;  %v5056_v58 = vpop.f32.mrf.mxu2  ;;  %v5310_v40 = vld [vmem:[#allocation3 + $0x58] sm:$0xff]  ;;  %v5403_v44 = vld [vmem:[#allocation2 + $0x40] sm:$0xff] }
 0x4f7   : > { %5276 = vst.msk [vmem:[#allocation2 + $0x48] sm:$0xff] %vm1086_vm0, %v5244_v49 }
 0x4f8   : > { %5563 = vst.msk [vmem:[%s8972_s6 + $0x8] sm:$0xf] %vm5559_vm1, %v5545_v51  ;;  %v5494_v57 = vmax.f32 %v5464_v50, %v5466_v52  ;;  %v4721_v0 = vpop.f32.mrf.mxu0 }
 0x4f9   : > { %v5145_v59 = vpop.f32.mrf.mxu3  ;;  %v4810_v1 = vpop.f32.mrf.mxu1 }
 0x4fa   : > { %v5514_v62 = vadd.f32 %v8959_v7, %v5494_v57  ;;  %v5146_v63 = vadd.f32 %v5145_v59, %v5056_v58  ;;  %v4811_v5 = vadd.f32 %v4810_v1, %v4721_v0  ;;  %v5311_v58 = vld [vmem:[#allocation3 + $0x60] sm:$0xff]  ;;  %v7751_v0 = vld [vmem:[%s7888_s24 + $0x134] sm:$0xf0]  ;;  %v7750_v1 = vld [vmem:[%s7888_s24 + $0x134] sm:$0xf] }
 0x4fb   : > { %4760 = vmatmul.bf16.gmra.mxu0 %v7168_v60  ;;  %5098 = vmatmul.bf16.gmra.mxu2 %v7360_v2  ;;  %v7185_v2 = vld [vmem:[%s7888_s24 + $0x138] sm:$0xf0] }
 0x4fc   : > { %v5530_v6 = vmax.f32 %v5514_v62, 0.0  ;;  %v5340_v8 = vadd.f32 %v5308_v4, %v5146_v63  ;;  %v5245_v10 = vadd.f32 %v5213_v9, %v4811_v5  ;;  %4849 = vmatmul.bf16.gmra.mxu1 %v7172_v61  ;;  %v5216_v62 = vld [vmem:[#allocation2 + $0x68] sm:$0xff]  ;;  %v7183_v63 = vld [vmem:[%s7888_s24 + $0x130] sm:$0xf] }
 0x4fd   : > { %v5435_v39 = vld [vmem:[#allocation3 + $0x40] sm:$0xff] }
 0x4fe   : > { %v5546_v11 = vpack.c.bf16 %v5530_v6, %v5530_v6  ;;  %5372 = vst.msk [vmem:[#allocation3 + $0x48] sm:$0xff] %vm1086_vm0, %v5340_v8  ;;  %5187 = vmatmul.bf16.gmra.mxu3 %v7364_v3  ;;  %v5059_v12 = vpop.f32.mrf.mxu2  ;;  %v5467_v48 = vmax.f32 %v5403_v44, %v5435_v39  ;;  %v5404_v3 = vld [vmem:[#allocation2 + $0x48] sm:$0xff] }
 0x4ff   : > { %5277 = vst.msk [vmem:[#allocation2 + $0x50] sm:$0xff] %vm1086_vm0, %v5245_v10 }
 0x500   : > { %5564 = vst.msk [vmem:[%s8972_s6 + $0xc] sm:$0x7] %vm5561_vm2, %v5546_v11  ;;  %v4723_v15 = vpop.f32.mrf.mxu0  ;;  %v7375_v11 = vld [vmem:[%s7893_s27 + $0x130] sm:$0xf] }
 0x501   : > { %v5148_v13 = vpop.f32.mrf.mxu3  ;;  %v4812_v16 = vpop.f32.mrf.mxu1 }
 0x502   : > { %v5149_v14 = vadd.f32 %v5148_v13, %v5059_v12  ;;  %v4813_v18 = vadd.f32 %v4812_v16, %v4723_v15  ;;  %v7783_v12 = vld [vmem:[%s7893_s27 + $0x134] sm:$0xf0]  ;;  %v7782_v13 = vld [vmem:[%s7893_s27 + $0x134] sm:$0xf] }
 0x503   : > { %v7376_v24 = vor.u32 %v7783_v12, %v7375_v11 }
 0x504   : > { %v5341_v19 = vadd.f32 %v5309_v17, %v5149_v14  ;;  %v5246_v22 = vadd.f32 %v5214_v20, %v4813_v18  ;;  %v7377_v14 = vld [vmem:[%s7893_s27 + $0x138] sm:$0xf0]  ;;  %v7184_v18 = vor.u32 %v7751_v0, %v7183_v63 }
 0x505   : > { %v5436_v57 = vld [vmem:[#allocation3 + $0x48] sm:$0xff]  ;;  %v7380_v25 = vor.u32 %v7782_v13, %v7377_v14 }
 0x506   : > { %5373 = vst.msk [vmem:[#allocation3 + $0x50] sm:$0xff] %vm1086_vm0, %v5341_v19  ;;  %v5061_v30 = vpop.f32.mrf.mxu2  ;;  %v5405_v45 = vld [vmem:[#allocation2 + $0x50] sm:$0xff]  ;;  %v5468_v8 = vmax.f32 %v5404_v3, %v5436_v57  ;;  %v7188_v19 = vor.u32 %v7750_v1, %v7185_v2  ;;  %v5315_v3 = vld [vmem:[#allocation3 + $0x80] sm:$0xff] }
 0x507   : > { %5278 = vst.msk [vmem:[#allocation2 + $0x58] sm:$0xff] %vm1086_vm0, %v5246_v22 }
 0x508   : > { %v4726_v35 = vpop.f32.mrf.mxu0 }
 0x509   : > { %v5150_v31 = vpop.f32.mrf.mxu3  ;;  %v4815_v36 = vpop.f32.mrf.mxu1 }
 0x50a   : > { %v5151_v34 = vadd.f32 %v5150_v31, %v5061_v30  ;;  %v4816_v41 = vadd.f32 %v4815_v36, %v4726_v35  ;;  %v5217_v30 = vld [vmem:[#allocation2 + $0x70] sm:$0xff] }
 0x50b   : > { %4765 = vmatmul.bf16.gmra.mxu0 %v7176_v32  ;;  %5103 = vmatmul.bf16.gmra.mxu2 %v7368_v37 }
 0x50c   : > { %v5342_v42 = vadd.f32 %v5310_v40, %v5151_v34  ;;  %v5247_v47 = vadd.f32 %v5215_v43, %v4816_v41  ;;  %4854 = vmatmul.bf16.gmra.mxu1 %v7180_v33  ;;  %v5218_v41 = vld [vmem:[#allocation2 + $0x78] sm:$0xff] }
 0x50d   : > { %v5437_v46 = vld [vmem:[#allocation3 + $0x50] sm:$0xff] }
 0x50e   : > { %v5469_v49 = vmax.f32 %v5405_v45, %v5437_v46  ;;  %5374 = vst.msk [vmem:[#allocation3 + $0x58] sm:$0xff] %vm1086_vm0, %v5342_v42  ;;  %5192 = vmatmul.bf16.gmra.mxu3 %v7372_v38  ;;  %v5064_v51 = vpop.f32.mrf.mxu2  ;;  %v5406_v4 = vld [vmem:[#allocation2 + $0x58] sm:$0xff]  ;;  %v5313_v38 = vld [vmem:[#allocation3 + $0x70] sm:$0xff] }
 0x50f   : > { %5279 = vst.msk [vmem:[#allocation2 + $0x60] sm:$0xff] %vm1086_vm0, %v5247_v47 }
 0x510   : > { %v5495_v50 = vmax.f32 %v5467_v48, %v5469_v49  ;;  %v4728_v55 = vpop.f32.mrf.mxu0  ;;  %v5314_v49 = vld [vmem:[#allocation3 + $0x78] sm:$0xff] }
 0x511   : > { %v5153_v52 = vpop.f32.mrf.mxu3  ;;  %v4817_v56 = vpop.f32.mrf.mxu1 }
 0x512   : > { %v5515_v53 = vadd.f32 %v8959_v7, %v5495_v50  ;;  %v5154_v54 = vadd.f32 %v5153_v52, %v5064_v51  ;;  %v4818_v59 = vadd.f32 %v4817_v56, %v4728_v55  ;;  %v5219_v52 = vld [vmem:[#allocation2 + $0x80] sm:$0xff] }
 0x514   : > { %v5531_v60 = vmax.f32 %v5515_v53, 0.0  ;;  %v5343_v61 = vadd.f32 %v5311_v58, %v5154_v54  ;;  %v5248_v6 = vadd.f32 %v5216_v62, %v4818_v59 }
 0x515   : > { %v5438_v5 = vld [vmem:[#allocation3 + $0x58] sm:$0xff] }
 0x516   : > { %v5547_v9 = vpack.c.bf16 %v5531_v60, %v5531_v60  ;;  %v5470_v10 = vmax.f32 %v5406_v4, %v5438_v5  ;;  %5375 = vst.msk [vmem:[#allocation3 + $0x60] sm:$0xff] %vm1086_vm0, %v5343_v61  ;;  %v5066_v16 = vpop.f32.mrf.mxu2  ;;  %v5407_v53 = vld [vmem:[#allocation2 + $0x60] sm:$0xff] }
 0x517   : > { %5280 = vst.msk [vmem:[#allocation2 + $0x68] sm:$0xff] %vm1086_vm0, %v5248_v6 }
 0x518   : > { %5565 = vst.msk [vmem:[%s8972_s6 + $0x10] sm:$0xf] %vm5559_vm1, %v5547_v9  ;;  %v5496_v15 = vmax.f32 %v5468_v8, %v5470_v10  ;;  %v4731_v22 = vpop.f32.mrf.mxu0  ;;  %v5220_v8 = vld [vmem:[#allocation2 + $0x88] sm:$0xff] }
 0x519   : > { %v5155_v17 = vpop.f32.mrf.mxu3  ;;  %v4820_v23 = vpop.f32.mrf.mxu1 }
 0x51a   : > { %v5516_v20 = vadd.f32 %v8959_v7, %v5496_v15  ;;  %v5156_v21 = vadd.f32 %v5155_v17, %v5066_v16  ;;  %v4821_v27 = vadd.f32 %v4820_v23, %v4731_v22  ;;  %v5316_v23 = vld [vmem:[#allocation3 + $0x88] sm:$0xff] }
 0x51b   : > { %4770 = vmatmul.bf16.gmra.mxu0 %v7184_v18  ;;  %5108 = vmatmul.bf16.gmra.mxu2 %v7376_v24 }
 0x51c   : > { %v5532_v28 = vmax.f32 %v5516_v20, 0.0  ;;  %v5344_v29 = vadd.f32 %v5312_v26, %v5156_v21  ;;  %v5249_v31 = vadd.f32 %v5217_v30, %v4821_v27  ;;  %4859 = vmatmul.bf16.gmra.mxu1 %v7188_v19  ;;  %v5221_v27 = vld [vmem:[#allocation2 + $0x90] sm:$0xff] }
 0x51d   : > { %v5439_v48 = vld [vmem:[#allocation3 + $0x60] sm:$0xff] }
 0x51e   : > { %v5548_v32 = vpack.c.bf16 %v5532_v28, %v5532_v28  ;;  %5376 = vst.msk [vmem:[#allocation3 + $0x68] sm:$0xff] %vm1086_vm0, %v5344_v29  ;;  %5197 = vmatmul.bf16.gmra.mxu3 %v7380_v25  ;;  %v5069_v33 = vpop.f32.mrf.mxu2  ;;  %v5471_v57 = vmax.f32 %v5407_v53, %v5439_v48  ;;  %v5408_v9 = vld [vmem:[#allocation2 + $0x68] sm:$0xff] }
 0x51f   : > { %5281 = vst.msk [vmem:[#allocation2 + $0x70] sm:$0xff] %vm1086_vm0, %v5249_v31 }
 0x520   : > { %5566 = vst.msk [vmem:[%s8972_s6 + $0x14] sm:$0x7] %vm5561_vm2, %v5548_v32  ;;  %v4733_v36 = vpop.f32.mrf.mxu0 }
 0x521   : > { %v5158_v34 = vpop.f32.mrf.mxu3  ;;  %v4822_v37 = vpop.f32.mrf.mxu1 }
 0x522   : > { %v5159_v35 = vadd.f32 %v5158_v34, %v5069_v33  ;;  %v4823_v39 = vadd.f32 %v4822_v37, %v4733_v36 }
 0x524   : > { %v5345_v40 = vadd.f32 %v5313_v38, %v5159_v35  ;;  %v5250_v42 = vadd.f32 %v5218_v41, %v4823_v39  ;;  %v5317_v35 = vld [vmem:[#allocation3 + $0x90] sm:$0xff]  ;;  %v5222_v38 = vld [vmem:[#allocation2 + $0x98] sm:$0xff] }
 0x525   : > { %v5440_v2 = vld [vmem:[#allocation3 + $0x68] sm:$0xff] }
 0x526   : > { %5377 = vst.msk [vmem:[#allocation3 + $0x70] sm:$0xff] %vm1086_vm0, %v5345_v40  ;;  %v5071_v43 = vpop.f32.mrf.mxu2  ;;  %v5409_v54 = vld [vmem:[#allocation2 + $0x70] sm:$0xff]  ;;  %v5472_v13 = vmax.f32 %v5408_v9, %v5440_v2 }
 0x527   : > { %5282 = vst.msk [vmem:[#allocation2 + $0x78] sm:$0xff] %vm1086_vm0, %v5250_v42 }
 0x528   : > { %v4736_v46 = vpop.f32.mrf.mxu0 }
 0x529   : > { %v5160_v44 = vpop.f32.mrf.mxu3  ;;  %v4825_v47 = vpop.f32.mrf.mxu1 }
 0x52a   : > { %v5161_v45 = vadd.f32 %v5160_v44, %v5071_v43  ;;  %v4826_v50 = vadd.f32 %v4825_v47, %v4736_v46  ;;  %v5318_v46 = vld [vmem:[#allocation3 + $0x98] sm:$0xff] }
 0x52c   : > { %v5346_v51 = vadd.f32 %v5314_v49, %v5161_v45  ;;  %v5251_v56 = vadd.f32 %v5219_v52, %v4826_v50  ;;  %v5223_v49 = vld [vmem:[#allocation2 + $0xa0] sm:$0xff] }
 0x52d   : > { %v5441_v55 = vld [vmem:[#allocation3 + $0x70] sm:$0xff] }
 0x52e   : > { %v5473_v58 = vmax.f32 %v5409_v54, %v5441_v55  ;;  %5378 = vst.msk [vmem:[#allocation3 + $0x78] sm:$0xff] %vm1086_vm0, %v5346_v51  ;;  %v5074_v60 = vpop.f32.mrf.mxu2  ;;  %v5410_v10 = vld [vmem:[#allocation2 + $0x78] sm:$0xff] }
 0x52f   : > { %5283 = vst.msk [vmem:[#allocation2 + $0x80] sm:$0xff] %vm1086_vm0, %v5251_v56 }
 0x530   : > { %v5497_v59 = vmax.f32 %v5471_v57, %v5473_v58  ;;  %v4738_v0 = vpop.f32.mrf.mxu0 }
 0x531   : > { %v5163_v61 = vpop.f32.mrf.mxu3  ;;  %v4827_v1 = vpop.f32.mrf.mxu1 }
 0x532   : > { %v5517_v62 = vadd.f32 %v8959_v7, %v5497_v59  ;;  %v5164_v63 = vadd.f32 %v5163_v61, %v5074_v60  ;;  %v4828_v4 = vadd.f32 %v4827_v1, %v4738_v0  ;;  %v5319_v0 = vld [vmem:[#allocation3 + $0xa0] sm:$0xff] }
 0x534   : > { %v5533_v5 = vmax.f32 %v5517_v62, 0.0  ;;  %v5347_v6 = vadd.f32 %v5315_v3, %v5164_v63  ;;  %v5252_v12 = vadd.f32 %v5220_v8, %v4828_v4  ;;  %v5224_v4 = vld [vmem:[#allocation2 + $0xa8] sm:$0xff] }
 0x535   : > { %v5442_v11 = vld [vmem:[#allocation3 + $0x78] sm:$0xff] }
 0x536   : > { %v5549_v14 = vpack.c.bf16 %v5533_v5, %v5533_v5  ;;  %v5474_v15 = vmax.f32 %v5410_v10, %v5442_v11  ;;  %5379 = vst.msk [vmem:[#allocation3 + $0x80] sm:$0xff] %vm1086_vm0, %v5347_v6  ;;  %v5076_v17 = vpop.f32.mrf.mxu2  ;;  %v5411_v50 = vld [vmem:[#allocation2 + $0x80] sm:$0xff] }
 0x537   : > { %5284 = vst.msk [vmem:[#allocation2 + $0x88] sm:$0xff] %vm1086_vm0, %v5252_v12 }
 0x538   : > { %5567 = vst.msk [vmem:[%s8972_s6 + $0x18] sm:$0xf] %vm5559_vm1, %v5549_v14  ;;  %v5498_v16 = vmax.f32 %v5472_v13, %v5474_v15  ;;  %v4741_v21 = vpop.f32.mrf.mxu0 }
 0x539   : > { %v5165_v18 = vpop.f32.mrf.mxu3  ;;  %v4830_v22 = vpop.f32.mrf.mxu1 }
 0x53a   : > { %v5518_v19 = vadd.f32 %v8959_v7, %v5498_v16  ;;  %v5166_v20 = vadd.f32 %v5165_v18, %v5076_v17  ;;  %v4831_v24 = vadd.f32 %v4830_v22, %v4741_v21 }
 0x53c   : > { %v5534_v25 = vmax.f32 %v5518_v19, 0.0  ;;  %v5348_v26 = vadd.f32 %v5316_v23, %v5166_v20  ;;  %v5253_v28 = vadd.f32 %v5221_v27, %v4831_v24  ;;  %v5320_v20 = vld [vmem:[#allocation3 + $0xa8] sm:$0xff]  ;;  %v5225_v24 = vld [vmem:[#allocation2 + $0xb0] sm:$0xff] }
 0x53d   : > { %v5443_v45 = vld [vmem:[#allocation3 + $0x80] sm:$0xff] }
 0x53e   : > { %v5550_v29 = vpack.c.bf16 %v5534_v25, %v5534_v25  ;;  %5380 = vst.msk [vmem:[#allocation3 + $0x88] sm:$0xff] %vm1086_vm0, %v5348_v26  ;;  %v5079_v30 = vpop.f32.mrf.mxu2  ;;  %v5475_v54 = vmax.f32 %v5411_v50, %v5443_v45  ;;  %v5412_v5 = vld [vmem:[#allocation2 + $0x88] sm:$0xff] }
 0x53f   : > { %5285 = vst.msk [vmem:[#allocation2 + $0x90] sm:$0xff] %vm1086_vm0, %v5253_v28 }
 0x540   : > { %5568 = vst.msk [vmem:[%s8972_s6 + $0x1c] sm:$0x7] %vm5561_vm2, %v5550_v29  ;;  %v4743_v33 = vpop.f32.mrf.mxu0 }
 0x541   : > { %v5168_v31 = vpop.f32.mrf.mxu3  ;;  %v4832_v34 = vpop.f32.mrf.mxu1 }
 0x542   : > { %v5169_v32 = vadd.f32 %v5168_v31, %v5079_v30  ;;  %v4833_v36 = vadd.f32 %v4832_v34, %v4743_v33 }
 0x544   : > { %v5349_v37 = vadd.f32 %v5317_v35, %v5169_v32  ;;  %v5254_v39 = vadd.f32 %v5222_v38, %v4833_v36  ;;  %v5321_v32 = vld [vmem:[#allocation3 + $0xb0] sm:$0xff]  ;;  %v5226_v35 = vld [vmem:[#allocation2 + $0xb8] sm:$0xff] }
 0x545   : > { %v5444_v63 = vld [vmem:[#allocation3 + $0x88] sm:$0xff] }
 0x546   : > { %5381 = vst.msk [vmem:[#allocation3 + $0x90] sm:$0xff] %vm1086_vm0, %v5349_v37  ;;  %v5081_v40 = vpop.f32.mrf.mxu2  ;;  %v5413_v51 = vld [vmem:[#allocation2 + $0x90] sm:$0xff]  ;;  %v5476_v10 = vmax.f32 %v5412_v5, %v5444_v63 }
 0x547   : > { %5286 = vst.msk [vmem:[#allocation2 + $0x98] sm:$0xff] %vm1086_vm0, %v5254_v39 }
 0x548   : > { %v4746_v43 = vpop.f32.mrf.mxu0 }
 0x549   : > { %v5170_v41 = vpop.f32.mrf.mxu3  ;;  %v4835_v44 = vpop.f32.mrf.mxu1 }
 0x54a   : > { %v5171_v42 = vadd.f32 %v5170_v41, %v5081_v40  ;;  %v4836_v47 = vadd.f32 %v4835_v44, %v4746_v43  ;;  %v5322_v43 = vld [vmem:[#allocation3 + $0xb8] sm:$0xff] }
 0x54c   : > { %v5350_v48 = vadd.f32 %v5318_v46, %v5171_v42  ;;  %v5255_v53 = vadd.f32 %v5223_v49, %v4836_v47  ;;  %v5227_v46 = vld [vmem:[#allocation2 + $0xc0] sm:$0xff] }
 0x54d   : > { %v5445_v52 = vld [vmem:[#allocation3 + $0x90] sm:$0xff] }
 0x54e   : > { %v5477_v55 = vmax.f32 %v5413_v51, %v5445_v52  ;;  %5382 = vst.msk [vmem:[#allocation3 + $0x98] sm:$0xff] %vm1086_vm0, %v5350_v48  ;;  %v5084_v57 = vpop.f32.mrf.mxu2  ;;  %v5414_v6 = vld [vmem:[#allocation2 + $0x98] sm:$0xff] }
 0x54f   : > { %5287 = vst.msk [vmem:[#allocation2 + $0xa0] sm:$0xff] %vm1086_vm0, %v5255_v53 }
 0x550   : > { %v5499_v56 = vmax.f32 %v5475_v54, %v5477_v55  ;;  %v4748_v61 = vpop.f32.mrf.mxu0 }
 0x551   : > { %v5173_v58 = vpop.f32.mrf.mxu3  ;;  %v4837_v62 = vpop.f32.mrf.mxu1 }
 0x552   : > { %v5519_v59 = vadd.f32 %v8959_v7, %v5499_v56  ;;  %v5174_v60 = vadd.f32 %v5173_v58, %v5084_v57  ;;  %v4838_v1 = vadd.f32 %v4837_v62, %v4748_v61  ;;  %v5323_v61 = vld [vmem:[#allocation3 + $0xc0] sm:$0xff] }
 0x554   : > { %v5535_v2 = vmax.f32 %v5519_v59, 0.0  ;;  %v5351_v3 = vadd.f32 %v5319_v0, %v5174_v60  ;;  %v5256_v9 = vadd.f32 %v5224_v4, %v4838_v1  ;;  %v5228_v1 = vld [vmem:[#allocation2 + $0xc8] sm:$0xff] }
 0x555   : > { %v5446_v8 = vld [vmem:[#allocation3 + $0x98] sm:$0xff] }
 0x556   : > { %v5551_v11 = vpack.c.bf16 %v5535_v2, %v5535_v2  ;;  %v5478_v12 = vmax.f32 %v5414_v6, %v5446_v8  ;;  %5383 = vst.msk [vmem:[#allocation3 + $0xa0] sm:$0xff] %vm1086_vm0, %v5351_v3  ;;  %v5086_v14 = vpop.f32.mrf.mxu2  ;;  %v5415_v47 = vld [vmem:[#allocation2 + $0xa0] sm:$0xff] }
 0x557   : > { %5288 = vst.msk [vmem:[#allocation2 + $0xa8] sm:$0xff] %vm1086_vm0, %v5256_v9 }
 0x558   : > { %5569 = vst.msk [vmem:[%s8972_s6 + $0x20] sm:$0xf] %vm5559_vm1, %v5551_v11  ;;  %v5500_v13 = vmax.f32 %v5476_v10, %v5478_v12  ;;  %v4751_v18 = vpop.f32.mrf.mxu0 }
 0x559   : > { %v5175_v15 = vpop.f32.mrf.mxu3  ;;  %v4840_v19 = vpop.f32.mrf.mxu1 }
 0x55a   : > { %v5520_v16 = vadd.f32 %v8959_v7, %v5500_v13  ;;  %v5176_v17 = vadd.f32 %v5175_v15, %v5086_v14  ;;  %v4841_v21 = vadd.f32 %v4840_v19, %v4751_v18 }
 0x55c   : > { %v5536_v22 = vmax.f32 %v5520_v16, 0.0  ;;  %v5352_v23 = vadd.f32 %v5320_v20, %v5176_v17  ;;  %v5257_v25 = vadd.f32 %v5225_v24, %v4841_v21  ;;  %v5324_v17 = vld [vmem:[#allocation3 + $0xc8] sm:$0xff]  ;;  %v5229_v21 = vld [vmem:[#allocation2 + $0xd0] sm:$0xff] }
 0x55d   : > { %v5447_v42 = vld [vmem:[#allocation3 + $0xa0] sm:$0xff] }
 0x55e   : > { %v5552_v26 = vpack.c.bf16 %v5536_v22, %v5536_v22  ;;  %5384 = vst.msk [vmem:[#allocation3 + $0xa8] sm:$0xff] %vm1086_vm0, %v5352_v23  ;;  %v5089_v27 = vpop.f32.mrf.mxu2  ;;  %v5479_v51 = vmax.f32 %v5415_v47, %v5447_v42  ;;  %v5416_v2 = vld [vmem:[#allocation2 + $0xa8] sm:$0xff]  ;;  %v5231_v42 = vld [vmem:[#allocation2 + $0xe0] sm:$0xff] }
 0x55f   : > { %5289 = vst.msk [vmem:[#allocation2 + $0xb0] sm:$0xff] %vm1086_vm0, %v5257_v25 }
 0x560   : > { %5570 = vst.msk [vmem:[%s8972_s6 + $0x24] sm:$0x7] %vm5561_vm2, %v5552_v26  ;;  %v4753_v30 = vpop.f32.mrf.mxu0 }
 0x561   : > { %v5178_v28 = vpop.f32.mrf.mxu3  ;;  %v4842_v31 = vpop.f32.mrf.mxu1 }
 0x562   : > { %v5179_v29 = vadd.f32 %v5178_v28, %v5089_v27  ;;  %v4843_v33 = vadd.f32 %v4842_v31, %v4753_v30  ;;  %v5325_v28 = vld [vmem:[#allocation3 + $0xd0] sm:$0xff]  ;;  %v5230_v31 = vld [vmem:[#allocation2 + $0xd8] sm:$0xff] }
 0x564   : > { %v5353_v34 = vadd.f32 %v5321_v32, %v5179_v29  ;;  %v5258_v36 = vadd.f32 %v5226_v35, %v4843_v33 }
 0x565   : > { %v5448_v60 = vld [vmem:[#allocation3 + $0xa8] sm:$0xff] }
 0x566   : > { %5385 = vst.msk [vmem:[#allocation3 + $0xb0] sm:$0xff] %vm1086_vm0, %v5353_v34  ;;  %v5091_v37 = vpop.f32.mrf.mxu2  ;;  %v5417_v48 = vld [vmem:[#allocation2 + $0xb0] sm:$0xff]  ;;  %v5480_v6 = vmax.f32 %v5416_v2, %v5448_v60 }
 0x567   : > { %5290 = vst.msk [vmem:[#allocation2 + $0xb8] sm:$0xff] %vm1086_vm0, %v5258_v36 }
 0x568   : > { %v4756_v40 = vpop.f32.mrf.mxu0 }
 0x569   : > { %v5180_v38 = vpop.f32.mrf.mxu3  ;;  %v4845_v41 = vpop.f32.mrf.mxu1 }
 0x56a   : > { %v5181_v39 = vadd.f32 %v5180_v38, %v5091_v37  ;;  %v4846_v44 = vadd.f32 %v4845_v41, %v4756_v40 }
 0x56c   : > { %v5354_v45 = vadd.f32 %v5322_v43, %v5181_v39  ;;  %v5259_v50 = vadd.f32 %v5227_v46, %v4846_v44  ;;  %v5326_v39 = vld [vmem:[#allocation3 + $0xd8] sm:$0xff] }
 0x56d   : > { %v5449_v49 = vld [vmem:[#allocation3 + $0xb0] sm:$0xff] }
 0x56e   : > { %v5481_v52 = vmax.f32 %v5417_v48, %v5449_v49  ;;  %5386 = vst.msk [vmem:[#allocation3 + $0xb8] sm:$0xff] %vm1086_vm0, %v5354_v45  ;;  %v5094_v54 = vpop.f32.mrf.mxu2  ;;  %v5418_v3 = vld [vmem:[#allocation2 + $0xb8] sm:$0xff] }
 0x56f   : > { %5291 = vst.msk [vmem:[#allocation2 + $0xc0] sm:$0xff] %vm1086_vm0, %v5259_v50 }
 0x570   : > { %v5501_v53 = vmax.f32 %v5479_v51, %v5481_v52  ;;  %v4758_v58 = vpop.f32.mrf.mxu0  ;;  %v9096_v52 = vld [vmem:[%s9123_s3] ss:$0 sm:$0xff] }
 0x571   : > { %v5183_v55 = vpop.f32.mrf.mxu3  ;;  %v4847_v59 = vpop.f32.mrf.mxu1 }
 0x572   : > { %v5521_v56 = vadd.f32 %v8959_v7, %v5501_v53  ;;  %v5184_v57 = vadd.f32 %v5183_v55, %v5094_v54  ;;  %v4848_v62 = vadd.f32 %v4847_v59, %v4758_v58  ;;  %v5327_v58 = vld [vmem:[#allocation3 + $0xe0] sm:$0xff] }
 0x574   : > { %v5537_v63 = vmax.f32 %v5521_v56, 0.0  ;;  %v5355_v0 = vadd.f32 %v5323_v61, %v5184_v57  ;;  %v5260_v5 = vadd.f32 %v5228_v1, %v4848_v62  ;;  %v5232_v62 = vld [vmem:[#allocation2 + $0xe8] sm:$0xff] }
 0x575   : > { %v5450_v4 = vld [vmem:[#allocation3 + $0xb8] sm:$0xff] }
 0x576   : > { %v5553_v8 = vpack.c.bf16 %v5537_v63, %v5537_v63  ;;  %v5482_v9 = vmax.f32 %v5418_v3, %v5450_v4  ;;  %5387 = vst.msk [vmem:[#allocation3 + $0xc0] sm:$0xff] %vm1086_vm0, %v5355_v0  ;;  %v5096_v11 = vpop.f32.mrf.mxu2  ;;  %v5419_v43 = vld [vmem:[#allocation2 + $0xc0] sm:$0xff] }
 0x577   : > { %5292 = vst.msk [vmem:[#allocation2 + $0xc8] sm:$0xff] %vm1086_vm0, %v5260_v5 }
 0x578   : > { %5571 = vst.msk [vmem:[%s8972_s6 + $0x28] sm:$0xf] %vm5559_vm1, %v5553_v8  ;;  %v5502_v10 = vmax.f32 %v5480_v6, %v5482_v9  ;;  %v4761_v15 = vpop.f32.mrf.mxu0 }
 0x579   : > { %v5185_v12 = vpop.f32.mrf.mxu3  ;;  %v4850_v16 = vpop.f32.mrf.mxu1 }
 0x57a   : > { %v5522_v13 = vadd.f32 %v8959_v7, %v5502_v10  ;;  %v5186_v14 = vadd.f32 %v5185_v12, %v5096_v11  ;;  %v4851_v18 = vadd.f32 %v4850_v16, %v4761_v15 }
 0x57c   : > { %v5538_v19 = vmax.f32 %v5522_v13, 0.0  ;;  %v5356_v20 = vadd.f32 %v5324_v17, %v5186_v14  ;;  %v5261_v22 = vadd.f32 %v5229_v21, %v4851_v18  ;;  %v5328_v14 = vld [vmem:[#allocation3 + $0xe8] sm:$0xff]  ;;  %v5233_v18 = vld [vmem:[#allocation2 + $0xf0] sm:$0xff] }
 0x57d   : > { %v5451_v38 = vld [vmem:[#allocation3 + $0xc0] sm:$0xff] }
 0x57e   : > { %v5554_v23 = vpack.c.bf16 %v5538_v19, %v5538_v19  ;;  %5388 = vst.msk [vmem:[#allocation3 + $0xc8] sm:$0xff] %vm1086_vm0, %v5356_v20  ;;  %v5099_v24 = vpop.f32.mrf.mxu2  ;;  %v5483_v47 = vmax.f32 %v5419_v43, %v5451_v38  ;;  %v5420_v63 = vld [vmem:[#allocation2 + $0xc8] sm:$0xff] }
 0x57f   : > { %5293 = vst.msk [vmem:[#allocation2 + $0xd0] sm:$0xff] %vm1086_vm0, %v5261_v22 }
 0x580   : > { %5572 = vst.msk [vmem:[%s8972_s6 + $0x2c] sm:$0x7] %vm5561_vm2, %v5554_v23  ;;  %v4763_v7 = vpop.f32.mrf.mxu0 }
 0x581   : > { %v5188_v25 = vpop.f32.mrf.mxu3  ;;  %v4852_v27 = vpop.f32.mrf.mxu1 }
 0x582   : > { %v5189_v26 = vadd.f32 %v5188_v25, %v5099_v24  ;;  %v4853_v29 = vadd.f32 %v4852_v27, %v4763_v7 }
 0x584   : > { %v5357_v30 = vadd.f32 %v5325_v28, %v5189_v26  ;;  %v5262_v32 = vadd.f32 %v5230_v31, %v4853_v29  ;;  %v5329_v26 = vld [vmem:[#allocation3 + $0xf0] sm:$0xff]  ;;  %v5234_v28 = vld [vmem:[#allocation2 + $0xf8] sm:$0xff] }
 0x585   : > { %v5452_v57 = vld [vmem:[#allocation3 + $0xc8] sm:$0xff] }
 0x586   : > { %5389 = vst.msk [vmem:[#allocation3 + $0xd0] sm:$0xff] %vm1086_vm0, %v5357_v30  ;;  %v5101_v33 = vpop.f32.mrf.mxu2  ;;  %v5421_v44 = vld [vmem:[#allocation2 + $0xd0] sm:$0xff]  ;;  %v5484_v3 = vmax.f32 %v5420_v63, %v5452_v57 }
 0x587   : > { %5294 = vst.msk [vmem:[#allocation2 + $0xd8] sm:$0xff] %vm1086_vm0, %v5262_v32 }
 0x588   : > { %v4766_v36 = vpop.f32.mrf.mxu0 }
 0x589   : > { %v5190_v34 = vpop.f32.mrf.mxu3  ;;  %v4855_v37 = vpop.f32.mrf.mxu1 }
 0x58a   : > { %v5191_v35 = vadd.f32 %v5190_v34, %v5101_v33  ;;  %v4856_v40 = vadd.f32 %v4855_v37, %v4766_v36  ;;  %v5330_v34 = vld [vmem:[#allocation3 + $0xf8] sm:$0xff] }
 0x58c   : > { %v5358_v41 = vadd.f32 %v5326_v39, %v5191_v35  ;;  %v5263_v46 = vadd.f32 %v5231_v42, %v4856_v40 }
 0x58d   : > { %v5453_v45 = vld [vmem:[#allocation3 + $0xd0] sm:$0xff] }
 0x58e   : > { %v5485_v48 = vmax.f32 %v5421_v44, %v5453_v45  ;;  %5390 = vst.msk [vmem:[#allocation3 + $0xd8] sm:$0xff] %vm1086_vm0, %v5358_v41  ;;  %v5104_v50 = vpop.f32.mrf.mxu2  ;;  %v5422_v0 = vld [vmem:[#allocation2 + $0xd8] sm:$0xff] }
 0x58f   : > { %5295 = vst.msk [vmem:[#allocation2 + $0xe0] sm:$0xff] %vm1086_vm0, %v5263_v46 }
 0x590   : > { %v5503_v49 = vmax.f32 %v5483_v47, %v5485_v48  ;;  %v4768_v55 = vpop.f32.mrf.mxu0 }
 0x591   : > { %v5193_v51 = vpop.f32.mrf.mxu3  ;;  %v4857_v56 = vpop.f32.mrf.mxu1 }
 0x592   : > { %v5523_v53 = vadd.f32 %v9096_v52, %v5503_v49  ;;  %v5194_v54 = vadd.f32 %v5193_v51, %v5104_v50  ;;  %v4858_v59 = vadd.f32 %v4857_v56, %v4768_v55 }
 0x594   : > { %v5539_v60 = vmax.f32 %v5523_v53, 0.0  ;;  %v5359_v61 = vadd.f32 %v5327_v58, %v5194_v54  ;;  %v5264_v2 = vadd.f32 %v5232_v62, %v4858_v59 }
 0x595   : > { %v5454_v1 = vld [vmem:[#allocation3 + $0xd8] sm:$0xff] }
 0x596   : > { %v5555_v4 = vpack.c.bf16 %v5539_v60, %v5539_v60  ;;  %v5486_v5 = vmax.f32 %v5422_v0, %v5454_v1  ;;  %5391 = vst.msk [vmem:[#allocation3 + $0xe0] sm:$0xff] %vm1086_vm0, %v5359_v61  ;;  %v5106_v8 = vpop.f32.mrf.mxu2  ;;  %v5423_v36 = vld [vmem:[#allocation2 + $0xe0] sm:$0xff] }
 0x597   : > { %5296 = vst.msk [vmem:[#allocation2 + $0xe8] sm:$0xff] %vm1086_vm0, %v5264_v2 }
 0x598   : > { %5573 = vst.msk [vmem:[%s8972_s6 + $0x30] sm:$0xf] %vm5559_vm1, %v5555_v4  ;;  %v5504_v6 = vmax.f32 %v5484_v3, %v5486_v5  ;;  %v4771_v12 = vpop.f32.mrf.mxu0 }
 0x599   : > { %v5195_v9 = vpop.f32.mrf.mxu3  ;;  %v4860_v13 = vpop.f32.mrf.mxu1 }
 0x59a   : > { %v5524_v10 = vadd.f32 %v9096_v52, %v5504_v6  ;;  %v5196_v11 = vadd.f32 %v5195_v9, %v5106_v8  ;;  %v4861_v15 = vadd.f32 %v4860_v13, %v4771_v12 }
 0x59c   : > { %v5540_v16 = vmax.f32 %v5524_v10, 0.0  ;;  %v5360_v17 = vadd.f32 %v5328_v14, %v5196_v11  ;;  %v5265_v19 = vadd.f32 %v5233_v18, %v4861_v15 }
 0x59d   : > { %v5455_v33 = vld [vmem:[#allocation3 + $0xe0] sm:$0xff] }
 0x59e   : > { %v5556_v20 = vpack.c.bf16 %v5540_v16, %v5540_v16  ;;  %5392 = vst.msk [vmem:[#allocation3 + $0xe8] sm:$0xff] %vm1086_vm0, %v5360_v17  ;;  %v5109_v21 = vpop.f32.mrf.mxu2  ;;  %v5487_v39 = vmax.f32 %v5423_v36, %v5455_v33  ;;  %v5424_v45 = vld [vmem:[#allocation2 + $0xe8] sm:$0xff] }
 0x59f   : > { %5297 = vst.msk [vmem:[#allocation2 + $0xf0] sm:$0xff] %vm1086_vm0, %v5265_v19 }
 0x5a0   : > { %5574 = vst.msk [vmem:[%s8972_s6 + $0x34] sm:$0x7] %vm5561_vm2, %v5556_v20  ;;  %v4773_v24 = vpop.f32.mrf.mxu0 }
 0x5a1   : > { %v5198_v22 = vpop.f32.mrf.mxu3  ;;  %v4862_v25 = vpop.f32.mrf.mxu1 }
 0x5a2   : > { %v5199_v23 = vadd.f32 %v5198_v22, %v5109_v21  ;;  %v4863_v7 = vadd.f32 %v4862_v25, %v4773_v24 }
 0x5a4   : > { %v5361_v27 = vadd.f32 %v5329_v26, %v5199_v23  ;;  %v5266_v29 = vadd.f32 %v5234_v28, %v4863_v7 }
 0x5a5   : > { %v5456_v43 = vld [vmem:[#allocation3 + $0xe8] sm:$0xff] }
 0x5a6   : > { %5393 = vst.msk [vmem:[#allocation3 + $0xf0] sm:$0xff] %vm1086_vm0, %v5361_v27  ;;  %v5111_v30 = vpop.f32.mrf.mxu2  ;;  %v5425_v37 = vld [vmem:[#allocation2 + $0xf0] sm:$0xff]  ;;  %v5488_v48 = vmax.f32 %v5424_v45, %v5456_v43 }
 0x5a7   : > { %5298 = vst.msk [vmem:[#allocation2 + $0xf8] sm:$0xff] %vm1086_vm0, %v5266_v29 }
 0x5a9   : > { %v5200_v31 = vpop.f32.mrf.mxu3 }
 0x5aa   : > { %v5201_v32 = vadd.f32 %v5200_v31, %v5111_v30 }
 0x5ac   : > { %v5362_v35 = vadd.f32 %v5330_v34, %v5201_v32 }
 0x5ad   : > { %v5457_v38 = vld [vmem:[#allocation3 + $0xf0] sm:$0xff] }
 0x5ae   : > { %v5489_v40 = vmax.f32 %v5425_v37, %v5457_v38  ;;  %5394 = vst.msk [vmem:[#allocation3 + $0xf8] sm:$0xff] %vm1086_vm0, %v5362_v35  ;;  %v5426_v46 = vld [vmem:[#allocation2 + $0xf8] sm:$0xff] }
 0x5b0   : > { %v5505_v41 = vmax.f32 %v5487_v39, %v5489_v40 }
 0x5b2   : > { %v5525_v42 = vadd.f32 %v9096_v52, %v5505_v41 }
 0x5b4   : > { %v5541_v44 = vmax.f32 %v5525_v42, 0.0 }
 0x5b5   : > { %v5458_v47 = vld [vmem:[#allocation3 + $0xf8] sm:$0xff] }
 0x5b6   : > { %v5557_v49 = vpack.c.bf16 %v5541_v44, %v5541_v44  ;;  %v5490_v50 = vmax.f32 %v5426_v46, %v5458_v47 }
 0x5b8   : > { %5575 = vst.msk [vmem:[%s8972_s6 + $0x38] sm:$0xf] %vm5559_vm1, %v5557_v49  ;;  %v5506_v51 = vmax.f32 %v5488_v48, %v5490_v50 }
 0x5ba   : > { %v5526_v53 = vadd.f32 %v9096_v52, %v5506_v51 }
 0x5bc   : > { %v5542_v54 = vmax.f32 %v5526_v53, 0.0 }
 0x5be   : > { %v5558_v55 = vpack.c.bf16 %v5542_v54, %v5542_v54 }
 0x5c0   : > { %5576 = vst.msk [vmem:[%s8972_s6 + $0x3c] sm:$0x7] %vm5561_vm2, %v5558_v55 }
 0x5c1 PF: > { %s14_s15 = sadd.s32 1, %s7801_s15  }
 0x5c2   : > { %p11_p4 = scmp.ge.s32.totalorder %s14_s15, 4  }
 0x5c4   :  { %13 = sbr.rel (!%p11_p4) target bundleno = 1 (0x1), region = 73 }

</bundles_post_ra>
